<compile_context>
chip_gen: v7x
topology: tpu7x:2x2x1
jax: 0.10.0
libtpu: 0.0.40
codegen_flags: <defaults>
</compile_context>

<pallas_src>
import jax
import jax.numpy as jnp
from jax.experimental import pallas as pl
from jax.experimental.pallas import tpu as pltpu

Z_DIM = 64
IM_DIM = 784
IM_PAD = 896  # 7 * 128 -> lane-dense output stores; sliced back to 784 outside
HIDDEN = 128
EPS = 1e-5


def _gen_block(h, w, g, be):
    """Linear (bias folded away) -> BatchNorm1d (training stats) -> ReLU.

    h: (B, D_in) f32, w: (D_in, D_out) bf16, g/be: (1, D_out) f32.
    The Linear bias is dropped because (xW + b) - mean(xW + b) == xW - mean(xW).
    """
    y = jnp.dot(h.astype(jnp.bfloat16), w, preferred_element_type=jnp.float32)
    mean = jnp.mean(y, axis=0, keepdims=True)                     # (1, D)
    var = jnp.mean(jnp.square(y - mean), axis=0, keepdims=True)   # biased var
    scale = g * jax.lax.rsqrt(var + EPS)                          # (1, D)
    shift = be - mean * scale                                     # (1, D)
    # Normalize + affine + ReLU as a single mul/add/max over the (B, D) tensor.
    return jnp.maximum(y * scale + shift, 0.0)


def generator_kernel(x_ref,
                     w1, g1, be1,
                     w2, g2, be2,
                     w3, g3, be3,
                     w4, g4, be4,
                     w5, b5,
                     o_ref):
    h = x_ref[...]  # (B, Z_DIM) f32
    h = _gen_block(h, w1[...], g1[...], be1[...])
    h = _gen_block(h, w2[...], g2[...], be2[...])
    h = _gen_block(h, w3[...], g3[...], be3[...])
    h = _gen_block(h, w4[...], g4[...], be4[...])
    logits = jnp.dot(h.astype(jnp.bfloat16), w5[...],
                     preferred_element_type=jnp.float32) + b5[...]
    o_ref[...] = jax.nn.sigmoid(logits).astype(o_ref.dtype)


@jax.jit
def generator_forward(x, kernel_params):
    """x: (B, 64) f32, kernel_params: output of prepare_params(). Returns (B, 784)."""
    batch = x.shape[0]
    flat_inputs = (x, *kernel_params)
    vmem_spec = pl.BlockSpec(memory_space=pltpu.MemorySpace.VMEM)
    out_padded = pl.pallas_call(
        generator_kernel,
        out_shape=jax.ShapeDtypeStruct((batch, IM_PAD), jnp.float32),
        in_specs=[vmem_spec] * len(flat_inputs),
        out_specs=vmem_spec,
        compiler_params=pltpu.CompilerParams(
            vmem_limit_bytes=32 * 1024 * 1024),
    )(*flat_inputs)
    return out_padded[:, :IM_DIM]


def init_params(key):
    """PyTorch-equivalent f32 parameters (uniform +-1/sqrt(fan_in), BN gamma=1,
    beta=0).  Weights stored (in, out) so that x @ W == x @ W_pt.T."""
    dims = [Z_DIM, HIDDEN, HIDDEN * 2, HIDDEN * 4, HIDDEN * 8, IM_DIM]
    keys = jax.random.split(key, 2 * (len(dims) - 1))
    layers = []
    for i in range(len(dims) - 1):
        d_in, d_out = dims[i], dims[i + 1]
        bound = 1.0 / (d_in ** 0.5)
        w = jax.random.uniform(keys[2 * i], (d_in, d_out), jnp.float32, -bound, bound)
        b = jax.random.uniform(keys[2 * i + 1], (d_out,), jnp.float32, -bound, bound)
        if i < len(dims) - 2:
            g = jnp.ones((d_out,), jnp.float32)
            be = jnp.zeros((d_out,), jnp.float32)
            layers.append((w, b, g, be))
        else:
            layers.append((w, b))
    return layers


def prepare_params(layers):
    """Convert PyTorch-layout f32 params into the kernel's storage format:
    bf16 weights, biases b1..b4 dropped (cancel with BN mean subtraction),
    (1, D) gamma/beta rows, and the final layer lane-padded to IM_PAD."""
    kparams = []
    for (w, _b, g, be) in layers[:-1]:
        kparams.append(w.astype(jnp.bfloat16))
        kparams.append(g.reshape(1, -1).astype(jnp.float32))
        kparams.append(be.reshape(1, -1).astype(jnp.float32))
    w5, b5 = layers[-1]
    pad = IM_PAD - IM_DIM
    kparams.append(jnp.pad(w5, ((0, 0), (0, pad))).astype(jnp.bfloat16))
    kparams.append(jnp.pad(b5, (0, pad)).reshape(1, -1).astype(jnp.float32))
    return tuple(kparams)


if __name__ == "__main__":
    key = jax.random.PRNGKey(0)
    kx, kp = jax.random.split(key)

    # Batch 128 amortizes the per-call weight fetch (the kernel is HBM-bound
    # at tiny batches) while remaining a small, fast example.
    batch = 128
    x = jax.random.normal(kx, (batch, Z_DIM), dtype=jnp.float32)
    kernel_params = prepare_params(init_params(kp))

    out = generator_forward(x, kernel_params)
    out = jax.block_until_ready(out)

    assert out.shape == (batch, IM_DIM), out.shape
    assert out.dtype == jnp.float32
    assert bool(jnp.all(jnp.isfinite(out)))
    assert bool(jnp.all((out >= 0.0) & (out <= 1.0)))  # sigmoid range
    print("KERNEL_OK")
</pallas_src>

<mosaic_0001>
module attributes {stable_mosaic.version = 11 : i64} {
  func.func @generator_kernel(%arg0: memref<128x64xf32, #tpu.memory_space<vmem>>, %arg1: memref<64x128xbf16, #tpu.memory_space<vmem>>, %arg2: memref<1x128xf32, #tpu.memory_space<vmem>>, %arg3: memref<1x128xf32, #tpu.memory_space<vmem>>, %arg4: memref<128x256xbf16, #tpu.memory_space<vmem>>, %arg5: memref<1x256xf32, #tpu.memory_space<vmem>>, %arg6: memref<1x256xf32, #tpu.memory_space<vmem>>, %arg7: memref<256x512xbf16, #tpu.memory_space<vmem>>, %arg8: memref<1x512xf32, #tpu.memory_space<vmem>>, %arg9: memref<1x512xf32, #tpu.memory_space<vmem>>, %arg10: memref<512x1024xbf16, #tpu.memory_space<vmem>>, %arg11: memref<1x1024xf32, #tpu.memory_space<vmem>>, %arg12: memref<1x1024xf32, #tpu.memory_space<vmem>>, %arg13: memref<1024x896xbf16, #tpu.memory_space<vmem>>, %arg14: memref<1x896xf32, #tpu.memory_space<vmem>>, %arg15: memref<128x896xf32, #tpu.memory_space<vmem>>) attributes {dimension_semantics = [], scalar_prefetch = 0 : i64, scratch_operands = 0 : i64, tpu.core_type = #tpu.core_type<tc>} {
    %c0 = arith.constant 0 : index
    %c0_0 = arith.constant 0 : index
    %0 = vector.load %arg0[%c0, %c0_0] : memref<128x64xf32, #tpu.memory_space<vmem>>, vector<128x64xf32>
    %c0_1 = arith.constant 0 : index
    %c0_2 = arith.constant 0 : index
    %1 = vector.load %arg1[%c0_1, %c0_2] : memref<64x128xbf16, #tpu.memory_space<vmem>>, vector<64x128xbf16>
    %c0_3 = arith.constant 0 : index
    %c0_4 = arith.constant 0 : index
    %2 = vector.load %arg2[%c0_3, %c0_4] : memref<1x128xf32, #tpu.memory_space<vmem>>, vector<1x128xf32>
    %c0_5 = arith.constant 0 : index
    %c0_6 = arith.constant 0 : index
    %3 = vector.load %arg3[%c0_5, %c0_6] : memref<1x128xf32, #tpu.memory_space<vmem>>, vector<1x128xf32>
    %4 = arith.truncf %0 : vector<128x64xf32> to vector<128x64xbf16>
    %cst = arith.constant dense<0.000000e+00> : vector<128x128xf32>
    %5 = tpu.matmul %4, %1, %cst {dimension_numbers = #tpu.dot_dimension_numbers<[1], [0], [0], [1], [0, 0, 1, 1], [], []>} : vector<128x64xbf16>, vector<64x128xbf16>, vector<128x128xf32> -> vector<128x128xf32>
    %cst_7 = arith.constant dense<0.000000e+00> : vector<128xf32>
    %6 = vector.multi_reduction <add>, %5, %cst_7 [0] : vector<128x128xf32> to vector<128xf32>
    %7 = vector.shape_cast %6 : vector<128xf32> to vector<1x128xf32>
    %cst_8 = arith.constant 1.280000e+02 : f32
    %8 = vector.broadcast %cst_8 : f32 to vector<1x128xf32>
    %9 = arith.divf %7, %8 : vector<1x128xf32>
    %10 = vector.broadcast %9 : vector<1x128xf32> to vector<128x128xf32>
    %11 = arith.subf %5, %10 : vector<128x128xf32>
    %12 = arith.mulf %11, %11 : vector<128x128xf32>
    %cst_9 = arith.constant dense<0.000000e+00> : vector<128xf32>
    %13 = vector.multi_reduction <add>, %12, %cst_9 [0] : vector<128x128xf32> to vector<128xf32>
    %14 = vector.shape_cast %13 : vector<128xf32> to vector<1x128xf32>
    %cst_10 = arith.constant 1.280000e+02 : f32
    %15 = vector.broadcast %cst_10 : f32 to vector<1x128xf32>
    %16 = arith.divf %14, %15 : vector<1x128xf32>
    %cst_11 = arith.constant 9.99999974E-6 : f32
    %17 = vector.broadcast %cst_11 : f32 to vector<1x128xf32>
    %18 = arith.addf %16, %17 : vector<1x128xf32>
    %19 = math.rsqrt %18 : vector<1x128xf32>
    %20 = arith.mulf %2, %19 : vector<1x128xf32>
    %21 = arith.mulf %9, %20 : vector<1x128xf32>
    %22 = arith.subf %3, %21 : vector<1x128xf32>
    %23 = vector.broadcast %20 : vector<1x128xf32> to vector<128x128xf32>
    %24 = arith.mulf %5, %23 : vector<128x128xf32>
    %25 = vector.broadcast %22 : vector<1x128xf32> to vector<128x128xf32>
    %26 = arith.addf %24, %25 : vector<128x128xf32>
    %cst_12 = arith.constant 0.000000e+00 : f32
    %27 = vector.broadcast %cst_12 : f32 to vector<128x128xf32>
    %28 = arith.maximumf %26, %27 : vector<128x128xf32>
    %c0_13 = arith.constant 0 : index
    %c0_14 = arith.constant 0 : index
    %29 = vector.load %arg4[%c0_13, %c0_14] : memref<128x256xbf16, #tpu.memory_space<vmem>>, vector<128x256xbf16>
    %c0_15 = arith.constant 0 : index
    %c0_16 = arith.constant 0 : index
    %30 = vector.load %arg5[%c0_15, %c0_16] : memref<1x256xf32, #tpu.memory_space<vmem>>, vector<1x256xf32>
    %c0_17 = arith.constant 0 : index
    %c0_18 = arith.constant 0 : index
    %31 = vector.load %arg6[%c0_17, %c0_18] : memref<1x256xf32, #tpu.memory_space<vmem>>, vector<1x256xf32>
    %32 = arith.truncf %28 : vector<128x128xf32> to vector<128x128xbf16>
    %cst_19 = arith.constant dense<0.000000e+00> : vector<128x256xf32>
    %33 = tpu.matmul %32, %29, %cst_19 {dimension_numbers = #tpu.dot_dimension_numbers<[1], [0], [0], [1], [0, 0, 1, 1], [], []>} : vector<128x128xbf16>, vector<128x256xbf16>, vector<128x256xf32> -> vector<128x256xf32>
    %cst_20 = arith.constant dense<0.000000e+00> : vector<256xf32>
    %34 = vector.multi_reduction <add>, %33, %cst_20 [0] : vector<128x256xf32> to vector<256xf32>
    %35 = vector.shape_cast %34 : vector<256xf32> to vector<1x256xf32>
    %cst_21 = arith.constant 1.280000e+02 : f32
    %36 = vector.broadcast %cst_21 : f32 to vector<1x256xf32>
    %37 = arith.divf %35, %36 : vector<1x256xf32>
    %38 = vector.broadcast %37 : vector<1x256xf32> to vector<128x256xf32>
    %39 = arith.subf %33, %38 : vector<128x256xf32>
    %40 = arith.mulf %39, %39 : vector<128x256xf32>
    %cst_22 = arith.constant dense<0.000000e+00> : vector<256xf32>
    %41 = vector.multi_reduction <add>, %40, %cst_22 [0] : vector<128x256xf32> to vector<256xf32>
    %42 = vector.shape_cast %41 : vector<256xf32> to vector<1x256xf32>
    %cst_23 = arith.constant 1.280000e+02 : f32
    %43 = vector.broadcast %cst_23 : f32 to vector<1x256xf32>
    %44 = arith.divf %42, %43 : vector<1x256xf32>
    %cst_24 = arith.constant 9.99999974E-6 : f32
    %45 = vector.broadcast %cst_24 : f32 to vector<1x256xf32>
    %46 = arith.addf %44, %45 : vector<1x256xf32>
    %47 = math.rsqrt %46 : vector<1x256xf32>
    %48 = arith.mulf %30, %47 : vector<1x256xf32>
    %49 = arith.mulf %37, %48 : vector<1x256xf32>
    %50 = arith.subf %31, %49 : vector<1x256xf32>
    %51 = vector.broadcast %48 : vector<1x256xf32> to vector<128x256xf32>
    %52 = arith.mulf %33, %51 : vector<128x256xf32>
    %53 = vector.broadcast %50 : vector<1x256xf32> to vector<128x256xf32>
    %54 = arith.addf %52, %53 : vector<128x256xf32>
    %cst_25 = arith.constant 0.000000e+00 : f32
    %55 = vector.broadcast %cst_25 : f32 to vector<128x256xf32>
    %56 = arith.maximumf %54, %55 : vector<128x256xf32>
    %c0_26 = arith.constant 0 : index
    %c0_27 = arith.constant 0 : index
    %57 = vector.load %arg7[%c0_26, %c0_27] : memref<256x512xbf16, #tpu.memory_space<vmem>>, vector<256x512xbf16>
    %c0_28 = arith.constant 0 : index
    %c0_29 = arith.constant 0 : index
    %58 = vector.load %arg8[%c0_28, %c0_29] : memref<1x512xf32, #tpu.memory_space<vmem>>, vector<1x512xf32>
    %c0_30 = arith.constant 0 : index
    %c0_31 = arith.constant 0 : index
    %59 = vector.load %arg9[%c0_30, %c0_31] : memref<1x512xf32, #tpu.memory_space<vmem>>, vector<1x512xf32>
    %60 = arith.truncf %56 : vector<128x256xf32> to vector<128x256xbf16>
    %cst_32 = arith.constant dense<0.000000e+00> : vector<128x512xf32>
    %61 = tpu.matmul %60, %57, %cst_32 {dimension_numbers = #tpu.dot_dimension_numbers<[1], [0], [0], [1], [0, 0, 1, 1], [], []>} : vector<128x256xbf16>, vector<256x512xbf16>, vector<128x512xf32> -> vector<128x512xf32>
    %cst_33 = arith.constant dense<0.000000e+00> : vector<512xf32>
    %62 = vector.multi_reduction <add>, %61, %cst_33 [0] : vector<128x512xf32> to vector<512xf32>
    %63 = vector.shape_cast %62 : vector<512xf32> to vector<1x512xf32>
    %cst_34 = arith.constant 1.280000e+02 : f32
    %64 = vector.broadcast %cst_34 : f32 to vector<1x512xf32>
    %65 = arith.divf %63, %64 : vector<1x512xf32>
    %66 = vector.broadcast %65 : vector<1x512xf32> to vector<128x512xf32>
    %67 = arith.subf %61, %66 : vector<128x512xf32>
    %68 = arith.mulf %67, %67 : vector<128x512xf32>
    %cst_35 = arith.constant dense<0.000000e+00> : vector<512xf32>
    %69 = vector.multi_reduction <add>, %68, %cst_35 [0] : vector<128x512xf32> to vector<512xf32>
    %70 = vector.shape_cast %69 : vector<512xf32> to vector<1x512xf32>
    %cst_36 = arith.constant 1.280000e+02 : f32
    %71 = vector.broadcast %cst_36 : f32 to vector<1x512xf32>
    %72 = arith.divf %70, %71 : vector<1x512xf32>
    %cst_37 = arith.constant 9.99999974E-6 : f32
    %73 = vector.broadcast %cst_37 : f32 to vector<1x512xf32>
    %74 = arith.addf %72, %73 : vector<1x512xf32>
    %75 = math.rsqrt %74 : vector<1x512xf32>
    %76 = arith.mulf %58, %75 : vector<1x512xf32>
    %77 = arith.mulf %65, %76 : vector<1x512xf32>
    %78 = arith.subf %59, %77 : vector<1x512xf32>
    %79 = vector.broadcast %76 : vector<1x512xf32> to vector<128x512xf32>
    %80 = arith.mulf %61, %79 : vector<128x512xf32>
    %81 = vector.broadcast %78 : vector<1x512xf32> to vector<128x512xf32>
    %82 = arith.addf %80, %81 : vector<128x512xf32>
    %cst_38 = arith.constant 0.000000e+00 : f32
    %83 = vector.broadcast %cst_38 : f32 to vector<128x512xf32>
    %84 = arith.maximumf %82, %83 : vector<128x512xf32>
    %c0_39 = arith.constant 0 : index
    %c0_40 = arith.constant 0 : index
    %85 = vector.load %arg10[%c0_39, %c0_40] : memref<512x1024xbf16, #tpu.memory_space<vmem>>, vector<512x1024xbf16>
    %c0_41 = arith.constant 0 : index
    %c0_42 = arith.constant 0 : index
    %86 = vector.load %arg11[%c0_41, %c0_42] : memref<1x1024xf32, #tpu.memory_space<vmem>>, vector<1x1024xf32>
    %c0_43 = arith.constant 0 : index
    %c0_44 = arith.constant 0 : index
    %87 = vector.load %arg12[%c0_43, %c0_44] : memref<1x1024xf32, #tpu.memory_space<vmem>>, vector<1x1024xf32>
    %88 = arith.truncf %84 : vector<128x512xf32> to vector<128x512xbf16>
    %cst_45 = arith.constant dense<0.000000e+00> : vector<128x1024xf32>
    %89 = tpu.matmul %88, %85, %cst_45 {dimension_numbers = #tpu.dot_dimension_numbers<[1], [0], [0], [1], [0, 0, 1, 1], [], []>} : vector<128x512xbf16>, vector<512x1024xbf16>, vector<128x1024xf32> -> vector<128x1024xf32>
    %cst_46 = arith.constant dense<0.000000e+00> : vector<1024xf32>
    %90 = vector.multi_reduction <add>, %89, %cst_46 [0] : vector<128x1024xf32> to vector<1024xf32>
    %91 = vector.shape_cast %90 : vector<1024xf32> to vector<1x1024xf32>
    %cst_47 = arith.constant 1.280000e+02 : f32
    %92 = vector.broadcast %cst_47 : f32 to vector<1x1024xf32>
    %93 = arith.divf %91, %92 : vector<1x1024xf32>
    %94 = vector.broadcast %93 : vector<1x1024xf32> to vector<128x1024xf32>
    %95 = arith.subf %89, %94 : vector<128x1024xf32>
    %96 = arith.mulf %95, %95 : vector<128x1024xf32>
    %cst_48 = arith.constant dense<0.000000e+00> : vector<1024xf32>
    %97 = vector.multi_reduction <add>, %96, %cst_48 [0] : vector<128x1024xf32> to vector<1024xf32>
    %98 = vector.shape_cast %97 : vector<1024xf32> to vector<1x1024xf32>
    %cst_49 = arith.constant 1.280000e+02 : f32
    %99 = vector.broadcast %cst_49 : f32 to vector<1x1024xf32>
    %100 = arith.divf %98, %99 : vector<1x1024xf32>
    %cst_50 = arith.constant 9.99999974E-6 : f32
    %101 = vector.broadcast %cst_50 : f32 to vector<1x1024xf32>
    %102 = arith.addf %100, %101 : vector<1x1024xf32>
    %103 = math.rsqrt %102 : vector<1x1024xf32>
    %104 = arith.mulf %86, %103 : vector<1x1024xf32>
    %105 = arith.mulf %93, %104 : vector<1x1024xf32>
    %106 = arith.subf %87, %105 : vector<1x1024xf32>
    %107 = vector.broadcast %104 : vector<1x1024xf32> to vector<128x1024xf32>
    %108 = arith.mulf %89, %107 : vector<128x1024xf32>
    %109 = vector.broadcast %106 : vector<1x1024xf32> to vector<128x1024xf32>
    %110 = arith.addf %108, %109 : vector<128x1024xf32>
    %cst_51 = arith.constant 0.000000e+00 : f32
    %111 = vector.broadcast %cst_51 : f32 to vector<128x1024xf32>
    %112 = arith.maximumf %110, %111 : vector<128x1024xf32>
    %113 = arith.truncf %112 : vector<128x1024xf32> to vector<128x1024xbf16>
    %c0_52 = arith.constant 0 : index
    %c0_53 = arith.constant 0 : index
    %114 = vector.load %arg13[%c0_52, %c0_53] : memref<1024x896xbf16, #tpu.memory_space<vmem>>, vector<1024x896xbf16>
    %cst_54 = arith.constant dense<0.000000e+00> : vector<128x896xf32>
    %115 = tpu.matmul %113, %114, %cst_54 {dimension_numbers = #tpu.dot_dimension_numbers<[1], [0], [0], [1], [0, 0, 1, 1], [], []>} : vector<128x1024xbf16>, vector<1024x896xbf16>, vector<128x896xf32> -> vector<128x896xf32>
    %c0_55 = arith.constant 0 : index
    %c0_56 = arith.constant 0 : index
    %116 = vector.load %arg14[%c0_55, %c0_56] : memref<1x896xf32, #tpu.memory_space<vmem>>, vector<1x896xf32>
    %117 = vector.broadcast %116 : vector<1x896xf32> to vector<128x896xf32>
    %118 = arith.addf %115, %117 : vector<128x896xf32>
    %119 = arith.negf %118 : vector<128x896xf32>
    %120 = math.exp %119 : vector<128x896xf32>
    %cst_57 = arith.constant 1.000000e+00 : f32
    %121 = vector.broadcast %cst_57 : f32 to vector<128x896xf32>
    %122 = arith.addf %121, %120 : vector<128x896xf32>
    %123 = arith.divf %121, %122 : vector<128x896xf32>
    %c0_58 = arith.constant 0 : index
    %c0_59 = arith.constant 0 : index
    %124 = vector.load %arg15[%c0_58, %c0_59] : memref<128x896xf32, #tpu.memory_space<vmem>>, vector<128x896xf32>
    tpu.vector_store %arg15[%c0_58, %c0_59], %123 {strides = array<i32>} : memref<128x896xf32, #tpu.memory_space<vmem>>, vector<128x896xf32>,
    return
  }
}

</mosaic_0001>

<bundles_post_ra>
// kernel: generator_forward.1
= control target key start
LH: loop header
LB: loop body
LE: loop exit
PB: predicated region body
PF: predicated region fallthrough
CT: control target
= control target key end

     0   :  { %20 = vsyncpa [#allocation3], 0  ;;  %s19026_s0 = inlined_call_operand.vmem [shape: f32[128,64], index: 0, kind: input, shape index: {}]   ;;  %s19027_s1 = inlined_call_operand.hbm [shape: bf16[64,128], index: 1, kind: input, shape index: {}]   ;;  %s19028_s2 = inlined_call_operand.hbm [shape: f32[1,128], index: 2, kind: input, shape index: {}]   ;;  %s19029_s3 = inlined_call_operand.hbm [shape: f32[1,128], index: 3, kind: input, shape index: {}]   ;;  %s19030_s4 = inlined_call_operand.hbm [shape: bf16[128,256], index: 4, kind: input, shape index: {}]   ;;  %s19031_s5 = inlined_call_operand.hbm [shape: f32[1,256], index: 5, kind: input, shape index: {}]   ;;  %s19032_s6 = inlined_call_operand.hbm [shape: f32[1,256], index: 6, kind: input, shape index: {}]   ;;  %s19033_s7 = inlined_call_operand.hbm [shape: bf16[256,512], index: 7, kind: input, shape index: {}]   ;;  %s19034_s8 = inlined_call_operand.hbm [shape: f32[1,512], index: 8, kind: input, shape index: {}]   ;;  %s19035_s9 = inlined_call_operand.hbm [shape: f32[1,512], index: 9, kind: input, shape index: {}]   ;;  %s19036_s10 = inlined_call_operand.hbm [shape: bf16[512,1024], index: 10, kind: input, shape index: {}]   ;;  %s19037_s11 = inlined_call_operand.hbm [shape: f32[1,1024], index: 11, kind: input, shape index: {}]   ;;  %s19038_s12 = inlined_call_operand.hbm [shape: f32[1,1024], index: 12, kind: input, shape index: {}]   ;;  %s19039_s13 = inlined_call_operand.hbm [shape: bf16[1024,896], index: 13, kind: input, shape index: {}]   ;;  %s19040_s14 = inlined_call_operand.hbm [shape: f32[1,896], index: 14, kind: input, shape index: {}]   ;;  %s19041_s15 = inlined_call_operand.vmem [shape: f32[128,896], index: 15, kind: output, shape index: {}]  }
   0x1   :  { %21 = vsyncpa [#allocation5], 0 }
   0x2   :  { %22 = vsyncpa [#allocation8], 0 }
   0x3   :  { %23 = vsyncpa [#allocation11], 0 }
   0x4   :  { %24 = vsyncpa [#allocation14], 0 }
   0x5   :  { %25 = vsyncpa [#allocation17], 0 }
   0x6   :  { %26 = vsyncpa [#allocation20], 0 }
   0x7   :  { %27 = vsyncpa [#allocation23], 0  ;;  %s14800_s18 = smov [#allocation4]   ;;  %s14801_s20 = smov [#allocation7]  }
   0x8   :  { %s48_s19 = sshll.u32 %s14800_s18, 4  ;;  %s67_s21 = sshll.u32 %s14801_s20, 4  ;;  %s49_s19 = int_to_ptr.vmem [resolvable:$true] %s48_s19  ;;  %s14906_s21 = int_to_ptr.vmem [resolvable:$true] %s67_s21 }
   0x9   :  { %s14476_s24 = scalar_lea.hbm %s19028_s2, 16 }
   0xa   :  { %p14477_p0 = scmp.ne.s32.totalorder %s19028_s2, %s14476_s24  ;;  %p14480_p1 = scmp.lt.u32.totalorder %s14476_s24, %s19028_s2 }
   0xc   :  { %p14482_p2 = pnand %p14480_p1, %p14477_p0 }
   0xe   :  { %14485 = shalt.err (!%p14482_p2)
}
   0xf   :  { %s14486_s29 = scalar_lea.vmem %s49_s19, 16  ;;  %s14490_s30 = scalar_lea.vmem %s49_s19, 32 }
  0x10   :  { %p14487_p3 = scmp.ne.s32.totalorder %s49_s19, %s14486_s29  ;;  %p14491_p4 = scmp.lt.s32.totalorder %s49_s19, %s49_s19 }
  0x11   :  { %p14492_p5 = scmp.lt.s32.totalorder %s14490_s30, %s14486_s29 }
  0x13   :  { %p14493_p6 = por %p14492_p5, %p14491_p4 }
  0x15   :  { %p14494_p7 = pnand %p14493_p6, %p14487_p3 }
  0x17   :  { %14497 = shalt.err (!%p14494_p7)
}
  0x18   :  { %51 = dma.hbm_to_vmem [thread:$0]  %s19028_s2, 16, %s49_s19, [#allocation5]  }
  0x19   :  { %s14498_s22 = scalar_lea.hbm %s19030_s4, 2048 }
  0x1a   :  { %p14499_p8 = scmp.ne.s32.totalorder %s19030_s4, %s14498_s22  ;;  %p14502_p9 = scmp.lt.u32.totalorder %s14498_s22, %s19030_s4 }
  0x1c   :  { %p14504_p10 = pnand %p14502_p9, %p14499_p8 }
  0x1e   :  { %14507 = shalt.err (!%p14504_p10)
}
  0x1f   :  { %s14508_s27 = scalar_lea.vmem %s14906_s21, 2048  ;;  %p14513_p12 = scmp.lt.s32.totalorder %s14906_s21, %s14906_s21 }
  0x20   :  { %p14509_p11 = scmp.ne.s32.totalorder %s14906_s21, %s14508_s27  ;;  %p14514_p13 = scmp.lt.s32.totalorder %s14508_s27, %s14508_s27 }
  0x22   :  { %p14515_p0 = por %p14514_p13, %p14513_p12 }
  0x24   :  { %p14516_p1 = pnand %p14515_p0, %p14509_p11 }
  0x26   :  { %14519 = shalt.err (!%p14516_p1)
}
  0x27   :  { %s14802_s2 = smov 128   ;;  %s14803_s19 = smov 8  }
  0x28   :  { %73 = dma.hbm_to_vmem [thread:$0]  %s19030_s4, 2048, %s14906_s21, [#allocation8], %s14802_s2, %s14802_s2, %s14803_s19  }
  0x29   :  { %s14804_s30 = smov [#allocation10]   ;;  %s14805_s17 = smov [#allocation13]  }
  0x2a   :  { %s90_s16 = sshll.u32 %s14804_s30, 4  ;;  %s112_s18 = sshll.u32 %s14805_s17, 4  ;;  %s91_s16 = int_to_ptr.vmem [resolvable:$true] %s90_s16  ;;  %s113_s18 = int_to_ptr.vmem [resolvable:$true] %s112_s18 }
  0x2b   :  { %s14520_s23 = scalar_lea.hbm %s19032_s6, 32 }
  0x2c   :  { %p14521_p2 = scmp.ne.s32.totalorder %s19032_s6, %s14520_s23  ;;  %p14524_p3 = scmp.lt.u32.totalorder %s14520_s23, %s19032_s6 }
  0x2e   :  { %p14526_p4 = pnand %p14524_p3, %p14521_p2 }
  0x30   :  { %14529 = shalt.err (!%p14526_p4)
}
  0x31   :  { %s14530_s4 = scalar_lea.vmem %s91_s16, 32  ;;  %p14535_p6 = scmp.lt.s32.totalorder %s91_s16, %s91_s16 }
  0x32   :  { %p14531_p5 = scmp.ne.s32.totalorder %s91_s16, %s14530_s4  ;;  %p14536_p7 = scmp.lt.s32.totalorder %s14530_s4, %s14530_s4 }
  0x34   :  { %p14537_p8 = por %p14536_p7, %p14535_p6 }
  0x36   :  { %p14538_p9 = pnand %p14537_p8, %p14531_p5 }
  0x38   :  { %14541 = shalt.err (!%p14538_p9)
}
  0x39   :  { %93 = dma.hbm_to_vmem [thread:$0]  %s19032_s6, 32, %s91_s16, [#allocation11]  }
  0x3a   :  { %s14542_s29 = scalar_lea.hbm %s19034_s8, 64 }
  0x3b   :  { %p14543_p10 = scmp.ne.s32.totalorder %s19034_s8, %s14542_s29  ;;  %p14546_p11 = scmp.lt.u32.totalorder %s14542_s29, %s19034_s8 }
  0x3d   :  { %p14548_p12 = pnand %p14546_p11, %p14543_p10 }
  0x3f   :  { %14551 = shalt.err (!%p14548_p12)
}
  0x40   :  { %s14552_s23 = scalar_lea.vmem %s113_s18, 64  ;;  %p14557_p0 = scmp.lt.s32.totalorder %s113_s18, %s113_s18 }
  0x41   :  { %p14553_p13 = scmp.ne.s32.totalorder %s113_s18, %s14552_s23  ;;  %p14558_p1 = scmp.lt.s32.totalorder %s14552_s23, %s14552_s23 }
  0x43   :  { %p14559_p2 = por %p14558_p1, %p14557_p0 }
  0x45   :  { %p14560_p3 = pnand %p14559_p2, %p14553_p13 }
  0x47   :  { %14563 = shalt.err (!%p14560_p3)
}
  0x48   :  { %115 = dma.hbm_to_vmem [thread:$0]  %s19034_s8, 64, %s113_s18, [#allocation14]  }
  0x49   :  { %s14806_s24 = smov [#allocation16]   ;;  %s14564_s4 = scalar_lea.hbm %s19036_s10, 32768 }
  0x4a   :  { %s131_s25 = sshll.u32 %s14806_s24, 4  ;;  %p14565_p4 = scmp.ne.s32.totalorder %s19036_s10, %s14564_s4  ;;  %s132_s25 = int_to_ptr.vmem [resolvable:$true] %s131_s25 }
  0x4b   :  { %p14568_p5 = scmp.lt.u32.totalorder %s14564_s4, %s19036_s10 }
  0x4d   :  { %p14570_p6 = pnand %p14568_p5, %p14565_p4 }
  0x4f   :  { %14573 = shalt.err (!%p14570_p6)
}
  0x50   :  { %s14574_s29 = scalar_lea.vmem %s132_s25, 32768  ;;  %p14579_p8 = scmp.lt.s32.totalorder %s132_s25, %s132_s25 }
  0x51   :  { %p14575_p7 = scmp.ne.s32.totalorder %s132_s25, %s14574_s29  ;;  %p14580_p9 = scmp.lt.s32.totalorder %s14574_s29, %s14574_s29 }
  0x53   :  { %p14581_p10 = por %p14580_p9, %p14579_p8 }
  0x55   :  { %p14582_p11 = pnand %p14581_p10, %p14575_p7 }
  0x57   :  { %14585 = shalt.err (!%p14582_p11)
}
  0x58   :  { %s14807_s8 = smov 512   ;;  %s14808_s18 = smov 32  }
  0x59   :  { %137 = dma.hbm_to_vmem [thread:$0]  %s19036_s10, 32768, %s132_s25, [#allocation17], %s14807_s8, %s14807_s8, %s14808_s18  }
  0x5a   :  { %s14809_s20 = smov [#allocation19]   ;;  %s14810_s23 = smov [#allocation2]  }
  0x5b   :  { %s154_s22 = sshll.u32 %s14809_s20, 4  ;;  %s35_s6 = sshll.u32 %s14810_s23, 4  ;;  %s155_s22 = int_to_ptr.vmem [resolvable:$true] %s154_s22  ;;  %s36_s6 = int_to_ptr.vmem [resolvable:$true] %s35_s6 }
  0x5c   :  { %s14586_s26 = scalar_lea.hbm %s19038_s12, 128 }
  0x5d   :  { %p14587_p12 = scmp.ne.s32.totalorder %s19038_s12, %s14586_s26  ;;  %p14590_p13 = scmp.lt.u32.totalorder %s14586_s26, %s19038_s12 }
  0x5f   :  { %p14592_p0 = pnand %p14590_p13, %p14587_p12 }
  0x61   :  { %14595 = shalt.err (!%p14592_p0)
}
  0x62   :  { %s14596_s10 = scalar_lea.vmem %s155_s22, 128  ;;  %p14601_p2 = scmp.lt.s32.totalorder %s155_s22, %s155_s22 }
  0x63   :  { %p14597_p1 = scmp.ne.s32.totalorder %s155_s22, %s14596_s10  ;;  %p14602_p3 = scmp.lt.s32.totalorder %s14596_s10, %s14596_s10 }
  0x65   :  { %p14603_p4 = por %p14602_p3, %p14601_p2 }
  0x67   :  { %p14604_p5 = pnand %p14603_p4, %p14597_p1 }
  0x69   :  { %14607 = shalt.err (!%p14604_p5)
}
  0x6a   :  { %157 = dma.hbm_to_vmem [thread:$0]  %s19038_s12, 128, %s155_s22, [#allocation20]  }
  0x6b   :  { %s14608_s8 = scalar_lea.hbm %s19027_s1, 512 }
  0x6c   :  { %p14609_p6 = scmp.ne.s32.totalorder %s19027_s1, %s14608_s8  ;;  %p14612_p7 = scmp.lt.u32.totalorder %s14608_s8, %s19027_s1 }
  0x6e   :  { %p14614_p8 = pnand %p14612_p7, %p14609_p6 }
  0x70   :  { %14617 = shalt.err (!%p14614_p8)
}
  0x71   :  { %s14618_s23 = scalar_lea.vmem %s36_s6, 512  ;;  %p14623_p10 = scmp.lt.s32.totalorder %s36_s6, %s36_s6 }
  0x72   :  { %p14619_p9 = scmp.ne.s32.totalorder %s36_s6, %s14618_s23  ;;  %p14624_p11 = scmp.lt.s32.totalorder %s14618_s23, %s14618_s23 }
  0x74   :  { %p14625_p12 = por %p14624_p11, %p14623_p10 }
  0x76   :  { %p14626_p13 = pnand %p14625_p12, %p14619_p9 }
  0x78   :  { %14629 = shalt.err (!%p14626_p13)
}
  0x79   :  { %s14811_s12 = smov 64   ;;  %s14812_s22 = smov 4  }
  0x7a   :  { %41 = dma.hbm_to_vmem [thread:$0]  %s19027_s1, 512, %s36_s6, [#allocation3], %s14811_s12, %s14811_s12, %s14812_s22  }
  0x7b   :  { %s14813_s26 = smov [#allocation6]   ;;  %s14814_s4 = smov [#allocation9]  }
  0x7c   :  { %s58_s27 = sshll.u32 %s14813_s26, 4  ;;  %s80_s21 = sshll.u32 %s14814_s4, 4  ;;  %s59_s27 = int_to_ptr.vmem [resolvable:$true] %s58_s27  ;;  %s81_s21 = int_to_ptr.vmem [resolvable:$true] %s80_s21 }
  0x7d   :  { %s14630_s25 = scalar_lea.hbm %s19029_s3, 16 }
  0x7e   :  { %p14631_p0 = scmp.ne.s32.totalorder %s19029_s3, %s14630_s25  ;;  %p14634_p1 = scmp.lt.u32.totalorder %s14630_s25, %s19029_s3 }
  0x80   :  { %p14636_p2 = pnand %p14634_p1, %p14631_p0 }
  0x82   :  { %14639 = shalt.err (!%p14636_p2)
}
  0x83   :  { %s14640_s1 = scalar_lea.vmem %s59_s27, 16  ;;  %s14644_s6 = scalar_lea.vmem %s59_s27, 32 }
  0x84   :  { %p14641_p3 = scmp.ne.s32.totalorder %s59_s27, %s14640_s1  ;;  %p14645_p4 = scmp.lt.s32.totalorder %s59_s27, %s59_s27 }
  0x85   :  { %p14646_p5 = scmp.lt.s32.totalorder %s14644_s6, %s14640_s1 }
  0x87   :  { %p14647_p6 = por %p14646_p5, %p14645_p4 }
  0x89   :  { %p14648_p7 = pnand %p14647_p6, %p14641_p3 }
  0x8b   :  { %14651 = shalt.err (!%p14648_p7)
}
  0x8c   :  { %61 = dma.hbm_to_vmem [thread:$0]  %s19029_s3, 16, %s59_s27, [#allocation5]  }
  0x8d   :  { %s14652_s23 = scalar_lea.hbm %s19031_s5, 32 }
  0x8e   :  { %p14653_p8 = scmp.ne.s32.totalorder %s19031_s5, %s14652_s23  ;;  %p14656_p9 = scmp.lt.u32.totalorder %s14652_s23, %s19031_s5 }
  0x90   :  { %p14658_p10 = pnand %p14656_p9, %p14653_p8 }
  0x92   :  { %14661 = shalt.err (!%p14658_p10)
}
  0x93   :  { %s14662_s26 = scalar_lea.vmem %s81_s21, 32  ;;  %p14667_p12 = scmp.lt.s32.totalorder %s81_s21, %s81_s21 }
  0x94   :  { %p14663_p11 = scmp.ne.s32.totalorder %s81_s21, %s14662_s26  ;;  %p14668_p13 = scmp.lt.s32.totalorder %s14662_s26, %s14662_s26 }
  0x96   :  { %p14669_p0 = por %p14668_p13, %p14667_p12 }
  0x98   :  { %p14670_p1 = pnand %p14669_p0, %p14663_p11 }
  0x9a   :  { %14673 = shalt.err (!%p14670_p1)
}
  0x9b   :  { %83 = dma.hbm_to_vmem [thread:$0]  %s19031_s5, 32, %s81_s21, [#allocation8]  }
  0x9c   :  { %s14815_s4 = smov [#allocation12]   ;;  %s14674_s19 = scalar_lea.hbm %s19033_s7, 8192 }
  0x9d   :  { %s99_s2 = sshll.u32 %s14815_s4, 4  ;;  %p14675_p2 = scmp.ne.s32.totalorder %s19033_s7, %s14674_s19  ;;  %s100_s2 = int_to_ptr.vmem [resolvable:$true] %s99_s2 }
  0x9e   :  { %p14678_p3 = scmp.lt.u32.totalorder %s14674_s19, %s19033_s7 }
  0xa0   :  { %p14680_p4 = pnand %p14678_p3, %p14675_p2 }
  0xa2   :  { %14683 = shalt.err (!%p14680_p4)
}
  0xa3   :  { %s14684_s6 = scalar_lea.vmem %s100_s2, 8192  ;;  %p14689_p6 = scmp.lt.s32.totalorder %s100_s2, %s100_s2 }
  0xa4   :  { %p14685_p5 = scmp.ne.s32.totalorder %s100_s2, %s14684_s6  ;;  %p14690_p7 = scmp.lt.s32.totalorder %s14684_s6, %s14684_s6 }
  0xa6   :  { %p14691_p8 = por %p14690_p7, %p14689_p6 }
  0xa8   :  { %p14692_p9 = pnand %p14691_p8, %p14685_p5 }
  0xaa   :  { %14695 = shalt.err (!%p14692_p9)
}
  0xab   :  { %s14816_s5 = smov 256   ;;  %s14817_s21 = smov 16  }
  0xac   :  { %105 = dma.hbm_to_vmem [thread:$0]  %s19033_s7, 8192, %s100_s2, [#allocation11], %s14816_s5, %s14816_s5, %s14817_s21  }
  0xad   :  { %s14818_s17 = smov [#allocation15]   ;;  %s14819_s23 = smov [#allocation18]  }
  0xae   :  { %s122_s20 = sshll.u32 %s14818_s17, 4  ;;  %s144_s12 = sshll.u32 %s14819_s23, 4  ;;  %s123_s20 = int_to_ptr.vmem [resolvable:$true] %s122_s20  ;;  %s145_s12 = int_to_ptr.vmem [resolvable:$true] %s144_s12 }
  0xaf   :  { %s14696_s24 = scalar_lea.hbm %s19035_s9, 64 }
  0xb0   :  { %p14697_p10 = scmp.ne.s32.totalorder %s19035_s9, %s14696_s24  ;;  %p14700_p11 = scmp.lt.u32.totalorder %s14696_s24, %s19035_s9 }
  0xb2   :  { %p14702_p12 = pnand %p14700_p11, %p14697_p10 }
  0xb4   :  { %14705 = shalt.err (!%p14702_p12)
}
  0xb5   :  { %s14706_s7 = scalar_lea.vmem %s123_s20, 64  ;;  %p14711_p0 = scmp.lt.s32.totalorder %s123_s20, %s123_s20 }
  0xb6   :  { %p14707_p13 = scmp.ne.s32.totalorder %s123_s20, %s14706_s7  ;;  %p14712_p1 = scmp.lt.s32.totalorder %s14706_s7, %s14706_s7 }
  0xb8   :  { %p14713_p2 = por %p14712_p1, %p14711_p0 }
  0xba   :  { %p14714_p3 = pnand %p14713_p2, %p14707_p13 }
  0xbc   :  { %14717 = shalt.err (!%p14714_p3)
}
  0xbd   :  { %125 = dma.hbm_to_vmem [thread:$0]  %s19035_s9, 64, %s123_s20, [#allocation14]  }
  0xbe   :  { %s14718_s28 = scalar_lea.hbm %s19037_s11, 128 }
  0xbf   :  { %p14719_p4 = scmp.ne.s32.totalorder %s19037_s11, %s14718_s28  ;;  %p14722_p5 = scmp.lt.u32.totalorder %s14718_s28, %s19037_s11 }
  0xc1   :  { %p14724_p6 = pnand %p14722_p5, %p14719_p4 }
  0xc3   :  { %14727 = shalt.err (!%p14724_p6)
}
  0xc4   :  { %s14728_s5 = scalar_lea.vmem %s145_s12, 128  ;;  %p14733_p8 = scmp.lt.s32.totalorder %s145_s12, %s145_s12 }
  0xc5   :  { %p14729_p7 = scmp.ne.s32.totalorder %s145_s12, %s14728_s5  ;;  %p14734_p9 = scmp.lt.s32.totalorder %s14728_s5, %s14728_s5 }
  0xc7   :  { %p14735_p10 = por %p14734_p9, %p14733_p8 }
  0xc9   :  { %p14736_p11 = pnand %p14735_p10, %p14729_p7 }
  0xcb   :  { %14739 = shalt.err (!%p14736_p11)
}
  0xcc   :  { %147 = dma.hbm_to_vmem [thread:$0]  %s19037_s11, 128, %s145_s12, [#allocation17]  }
  0xcd   :  { %s14820_s18 = smov [#allocation21]   ;;  %s14740_s23 = scalar_lea.hbm %s19039_s13, 57344 }
  0xce   :  { %s163_s30 = sshll.u32 %s14820_s18, 4  ;;  %p14741_p12 = scmp.ne.s32.totalorder %s19039_s13, %s14740_s23  ;;  %s164_s30 = int_to_ptr.vmem [resolvable:$true] %s163_s30 }
  0xcf   :  { %p14744_p13 = scmp.lt.u32.totalorder %s14740_s23, %s19039_s13 }
  0xd1   :  { %p14746_p0 = pnand %p14744_p13, %p14741_p12 }
  0xd3   :  { %14749 = shalt.err (!%p14746_p0)
}
  0xd4   :  { %s14750_s3 = scalar_lea.vmem %s164_s30, 57344  ;;  %p14755_p2 = scmp.lt.s32.totalorder %s164_s30, %s164_s30 }
  0xd5   :  { %p14751_p1 = scmp.ne.s32.totalorder %s164_s30, %s14750_s3  ;;  %p14756_p3 = scmp.lt.s32.totalorder %s14750_s3, %s14750_s3 }
  0xd7   :  { %p14757_p4 = por %p14756_p3, %p14755_p2 }
  0xd9   :  { %p14758_p5 = pnand %p14757_p4, %p14751_p1 }
  0xdb   :  { %14761 = shalt.err (!%p14758_p5)
}
  0xdc   :  { %s14821_s11 = smov 448   ;;  %s14822_s12 = smov 28  }
  0xdd   :  { %169 = dma.hbm_to_vmem [thread:$0]  %s19039_s13, 57344, %s164_s30, [#allocation20], %s14821_s11, %s14821_s11, %s14822_s12  }
  0xde   :  { %s14823_s7 = smov [#allocation22]   ;;  %s14762_s19 = scalar_lea.hbm %s19040_s14, 112 }
  0xdf   :  { %s176_s2 = sshll.u32 %s14823_s7, 4  ;;  %p14763_p6 = scmp.ne.s32.totalorder %s19040_s14, %s14762_s19  ;;  %s177_s2 = int_to_ptr.vmem [resolvable:$true] %s176_s2 }
  0xe0   :  { %p14766_p7 = scmp.lt.u32.totalorder %s14762_s19, %s19040_s14 }
  0xe2   :  { %p14768_p8 = pnand %p14766_p7, %p14763_p6 }
  0xe4   :  { %14771 = shalt.err (!%p14768_p8)
}
  0xe5   :  { %s14772_s6 = scalar_lea.vmem %s177_s2, 112  ;;  %s14776_s13 = scalar_lea.vmem %s177_s2, 128 }
  0xe6   :  { %p14773_p9 = scmp.ne.s32.totalorder %s177_s2, %s14772_s6  ;;  %p14777_p10 = scmp.lt.s32.totalorder %s177_s2, %s177_s2 }
  0xe7   :  { %p14778_p11 = scmp.lt.s32.totalorder %s14776_s13, %s14772_s6 }
  0xe9   :  { %p14779_p12 = por %p14778_p11, %p14777_p10 }
  0xeb   :  { %p14780_p13 = pnand %p14779_p12, %p14773_p9 }
  0xed   :  { %14783 = shalt.err (!%p14780_p13)
}
  0xee   :  { %179 = dma.hbm_to_vmem [thread:$0]  %s19040_s14, 112, %s177_s2, [#allocation23]  }
  0xef   :  { %14784 = dma.done.wait [#allocation3], 512  }
  0xf0   :  { %14785 = vsyncadd [#allocation3], 4294966784 }
  0xf1   :  { %14786 = dma.done.wait [#allocation5], 32  }
  0xf2   :  { %14787 = vsyncadd [#allocation5], 4294967264 }
  0xf3   :  { %14788 = dma.done.wait [#allocation8], 2080  }
  0xf4   :  { %14789 = vsyncadd [#allocation8], 4294965216 }
  0xf5   :  { %14790 = dma.done.wait [#allocation11], 8224  }
  0xf6   :  { %14791 = vsyncadd [#allocation11], 4294959072 }
  0xf7   :  { %14792 = dma.done.wait [#allocation14], 128  }
  0xf8   :  { %14793 = vsyncadd [#allocation14], 4294967168 }
  0xf9   :  { %14794 = dma.done.wait [#allocation17], 32896  }
  0xfa   :  { %14795 = vsyncadd [#allocation17], 4294934400 }
  0xfb   :  { %14796 = dma.done.wait [#allocation20], 57472  }
  0xfc   :  { %14797 = vsyncadd [#allocation20], 4294909824 }
  0xfd   :  { %14798 = dma.done.wait [#allocation23], 112  }
  0xfe   :  { %14799 = vsyncadd [#allocation23], 4294967184  ;;  %v13217_v0 = vld [vmem:[#allocation2] sm:$0xff]   ;;  %v13218_v1 = vld [vmem:[#allocation2 + $0x8] sm:$0xff]   ;;  %vm281_vm0 = vcmask 523264   ;;  %v14824_v44 = vmov 0  }
  0xff   :  { %12639 = vmatprep.subr.bf16.mxu0 %v13217_v0  ;;  %v13219_v2 = vld [vmem:[#allocation2 + $0x10] sm:$0xff]   ;;  %v223_v3 = vld [vmem:[%s19026_s0] sm:$0xff]  ;;  %v224_v4 = vld [vmem:[%s19026_s0 + $0x8] sm:$0xff]  ;;  %683 = vmatprep.mubr.bf16.mxu1 %v14824_v44 }
 0x100   :  { %12640 = vmatpush3.bf16.msra.mxu0 %v13217_v0  ;;  %v249_v5 = vpack.c.bf16 %v224_v4, %v223_v3  ;;  %v13220_v6 = vld [vmem:[#allocation2 + $0x18] sm:$0xff]   ;;  %v225_v7 = vld [vmem:[%s19026_s0 + $0x10] sm:$0xff]  ;;  %v227_v9 = vld [vmem:[%s19026_s0 + $0x20] sm:$0xff] }
 0x101   :  { %12641 = vmatprep.subr.bf16.mxu0 %v13218_v1  ;;  %v226_v8 = vld [vmem:[%s19026_s0 + $0x18] sm:$0xff]  ;;  %v228_v10 = vld [vmem:[%s19026_s0 + $0x28] sm:$0xff]  ;;  %v229_v13 = vld [vmem:[%s19026_s0 + $0x30] sm:$0xff] }
 0x102   :  { %12647 = vmatprep.mubr.msk.bf16.mxu0 %vm281_vm0, %v249_v5  ;;  %v250_v11 = vpack.c.bf16 %v226_v8, %v225_v7  ;;  %v251_v12 = vpack.c.bf16 %v228_v10, %v227_v9  ;;  %v230_v14 = vld [vmem:[%s19026_s0 + $0x38] sm:$0xff]  ;;  %v231_v15 = vld [vmem:[%s19026_s0 + $0x40] sm:$0xff]  ;;  %v232_v16 = vld [vmem:[%s19026_s0 + $0x48] sm:$0xff] }
 0x103   :  { %v252_v17 = vpack.c.bf16 %v230_v14, %v229_v13  ;;  %v253_v18 = vpack.c.bf16 %v232_v16, %v231_v15  ;;  %v233_v19 = vld [vmem:[%s19026_s0 + $0x50] sm:$0xff]  ;;  %v234_v20 = vld [vmem:[%s19026_s0 + $0x58] sm:$0xff]  ;;  %v235_v21 = vld [vmem:[%s19026_s0 + $0x60] sm:$0xff] }
 0x104   :  { %12642 = vmatpush3.bf16.msra.mxu0 %v13218_v1  ;;  %v236_v22 = vld [vmem:[%s19026_s0 + $0x68] sm:$0xff]  ;;  %v254_v23 = vpack.c.bf16 %v234_v20, %v233_v19  ;;  %v237_v25 = vld [vmem:[%s19026_s0 + $0x70] sm:$0xff]  ;;  %v238_v26 = vld [vmem:[%s19026_s0 + $0x78] sm:$0xff] }
 0x105   :  { %12643 = vmatprep.subr.bf16.mxu0 %v13219_v2  ;;  %v255_v24 = vpack.c.bf16 %v236_v22, %v235_v21  ;;  %v256_v27 = vpack.c.bf16 %v238_v26, %v237_v25  ;;  %v13221_v28 = vld [vmem:[#allocation7 + $0x4] ss:$8 sps:$4 sm:$0xff]   ;;  %v13223_v29 = vld [vmem:[#allocation7] ss:$8 sps:$4 sm:$0xff]   ;;  %v13224_v30 = vld [vmem:[#allocation7 + $0x14] ss:$8 sps:$4 sm:$0xff]  }
 0x106   :  { %651 = vmatprep.subr.bf16.mxu1 %v13221_v28  ;;  %v13226_v31 = vld [vmem:[#allocation7 + $0x10] ss:$8 sps:$4 sm:$0xff]   ;;  %v13227_v32 = vld [vmem:[#allocation7 + $0x24] ss:$8 sps:$4 sm:$0xff]   ;;  %v13229_v33 = vld [vmem:[#allocation7 + $0x20] ss:$8 sps:$4 sm:$0xff]  }
 0x107   :  { %652 = vmatpush1.bf16.msra.mxu1 %v13223_v29  ;;  %v13230_v34 = vld [vmem:[#allocation7 + $0x34] ss:$8 sps:$4 sm:$0xff]   ;;  %v13232_v35 = vld [vmem:[#allocation7 + $0x30] ss:$8 sps:$4 sm:$0xff]   ;;  %v13233_v36 = vld [vmem:[#allocation7 + $0x44] ss:$8 sps:$4 sm:$0xff]  }
 0x108   :  { %12644 = vmatpush3.bf16.msra.mxu0 %v13219_v2  ;;  %653 = vmatprep.subr.bf16.mxu1 %v13224_v30  ;;  %v13235_v37 = vld [vmem:[#allocation7 + $0x40] ss:$8 sps:$4 sm:$0xff]   ;;  %v13236_v38 = vld [vmem:[#allocation7 + $0x54] ss:$8 sps:$4 sm:$0xff]   ;;  %v13238_v39 = vld [vmem:[#allocation7 + $0x50] ss:$8 sps:$4 sm:$0xff]  }
 0x109   :  { %12645 = vmatprep.subr.bf16.mxu0 %v13220_v6  ;;  %v13239_v40 = vld [vmem:[#allocation7 + $0x64] ss:$8 sps:$4 sm:$0xff]   ;;  %v13241_v41 = vld [vmem:[#allocation7 + $0x60] ss:$8 sps:$4 sm:$0xff]   ;;  %v13242_v42 = vld [vmem:[#allocation7 + $0x74] ss:$8 sps:$4 sm:$0xff]  }
 0x10a   :  { %v13244_v43 = vld [vmem:[#allocation7 + $0x70] ss:$8 sps:$4 sm:$0xff]  }
 0x10b   :  { %654 = vmatpush1.bf16.msra.mxu1 %v13226_v31 }
 0x10c   :  { %12646 = vmatpush3.bf16.msra.mxu0 %v13220_v6  ;;  %655 = vmatprep.subr.bf16.mxu1 %v13227_v32 }
 0x10f   :  { %12648 = vmatmul.mubr.msk.bf16.vlgmr.msra.gmra.mrb[0].mxu0 %vm281_vm0, %v250_v11  ;;  %656 = vmatpush1.bf16.msra.mxu1 %v13229_v33 }
 0x110   :  { %12651 = vmatprep.mubr.msk.bf16.mxu0 %vm281_vm0, %v251_v12  ;;  %657 = vmatprep.subr.bf16.mxu1 %v13230_v34 }
 0x113   :  { %658 = vmatpush1.bf16.msra.mxu1 %v13232_v35 }
 0x114   :  { %659 = vmatprep.subr.bf16.mxu1 %v13233_v36 }
 0x117   :  { %12652 = vmatmul.mubr.msk.bf16.gmra.mrb[4].mxu0 %vm281_vm0, %v252_v17  ;;  %660 = vmatpush1.bf16.msra.mxu1 %v13235_v37 }
 0x118   :  { %12655 = vmatprep.mubr.msk.bf16.mxu0 %vm281_vm0, %v253_v18  ;;  %661 = vmatprep.subr.bf16.mxu1 %v13236_v38 }
 0x11b   :  { %662 = vmatpush1.bf16.msra.mxu1 %v13238_v39 }
 0x11c   :  { %663 = vmatprep.subr.bf16.mxu1 %v13239_v40 }
 0x11f   :  { %12656 = vmatmul.mubr.msk.bf16.gmra.mrb[8].mxu0 %vm281_vm0, %v254_v23  ;;  %664 = vmatpush1.bf16.msra.mxu1 %v13241_v41 }
 0x120   :  { %12659 = vmatprep.mubr.msk.bf16.mxu0 %vm281_vm0, %v255_v24  ;;  %665 = vmatprep.subr.bf16.mxu1 %v13242_v42 }
 0x123   :  { %666 = vmatpush1.bf16.msra.mxu1 %v13244_v43 }
 0x127   :  { %12660 = vmatmul.mubr.msk.bf16.gmra.mrb[12].mxu0 %vm281_vm0, %v256_v27 }
 0x1e2   :  { %v15138_v45 = vpop.f32.mrb[0].mxu0 }
 0x1e3   :  { %v15140_v46 = vpop.f32.mrb[1].mxu0 }
 0x1e4   :  { %v15142_v47 = vpop.f32.mrb[2].mxu0 }
 0x1e5   :  { %v15144_v48 = vpop.f32.mrb[3].mxu0 }
 0x1e6   :  { %v403_v49 = vadd.f32 %v15144_v48, %v15140_v46 }
 0x1e8   :  { %v404_v50 = vadd.f32 %v15138_v45, %v403_v49 }
 0x1ea   :  { %v15149_v51 = vpop.f32.mrb[4].mxu0  ;;  %v405_v52 = vadd.f32 %v15142_v47, %v404_v50 }
 0x1eb   :  { %v15152_v53 = vpop.f32.mrb[5].mxu0 }
 0x1ec   :  { %v406_v54 = vadd.f32 %v405_v52, %v15152_v53  ;;  %v15155_v55 = vpop.f32.mrb[6].mxu0 }
 0x1ed   :  { %v15157_v56 = vpop.f32.mrb[7].mxu0 }
 0x1ee   :  { %v407_v57 = vadd.f32 %v406_v54, %v15157_v56 }
 0x1f0   :  { %v408_v58 = vadd.f32 %v15149_v51, %v407_v57 }
 0x1f2   :  { %v15161_v59 = vpop.f32.mrb[8].mxu0  ;;  %v409_v60 = vadd.f32 %v15155_v55, %v408_v58 }
 0x1f3   :  { %v15164_v61 = vpop.f32.mrb[9].mxu0 }
 0x1f4   :  { %v410_v62 = vadd.f32 %v409_v60, %v15164_v61  ;;  %v15167_v63 = vpop.f32.mrb[10].mxu0 }
 0x1f5   :  { %v15169_v0 = vpop.f32.mrb[11].mxu0 }
 0x1f6   :  { %v411_v1 = vadd.f32 %v410_v62, %v15169_v0 }
 0x1f8   :  { %v412_v2 = vadd.f32 %v15161_v59, %v411_v1 }
 0x1fa   :  { %v15173_v3 = vpop.f32.mrb[12].mxu0  ;;  %v413_v4 = vadd.f32 %v15167_v63, %v412_v2 }
 0x1fb   :  { %v15176_v5 = vpop.f32.mrb[13].mxu0 }
 0x1fc   :  { %v414_v6 = vadd.f32 %v413_v4, %v15176_v5  ;;  %v15179_v7 = vpop.f32.mrb[14].mxu0 }
 0x1fd   :  { %v15181_v8 = vpop.f32.mrb[15].mxu0 }
 0x1fe   :  { %v415_v9 = vadd.f32 %v414_v6, %v15181_v8 }
 0x200   :  { %v416_v10 = vadd.f32 %v15173_v3, %v415_v9 }
 0x202   :  { %v417_v11 = vadd.f32 %v15179_v7, %v416_v10 }
 0x204   :  { %v418_v12 = vrot.slane %v417_v11, 4 }
 0x206   :  { %v419_v13 = vadd.f32 %v418_v12, %v417_v11 }
 0x208   :  { %v420_v14 = vrot.slane %v419_v13, 2 }
 0x20a   :  { %v421_v15 = vadd.f32 %v420_v14, %v419_v13 }
 0x20c   :  { %v422_v16 = vrot.slane %v421_v15, 1 }
 0x20e   :  { %v423_v17 = vadd.f32 %v422_v16, %v421_v15 }
 0x210   :  { %v15186_v18 = vmul.f32 0.0078125, %v423_v17 }
 0x212   :  { %v426_v19 = vsub.f32 %v15140_v46, %v15186_v18  ;;  %v427_v20 = vsub.f32 %v15144_v48, %v15186_v18  ;;  %v428_v21 = vsub.f32 %v15138_v45, %v15186_v18  ;;  %v429_v22 = vsub.f32 %v15142_v47, %v15186_v18 }
 0x213   :  { %v430_v23 = vsub.f32 %v15152_v53, %v15186_v18  ;;  %v431_v24 = vsub.f32 %v15157_v56, %v15186_v18  ;;  %v432_v25 = vsub.f32 %v15149_v51, %v15186_v18  ;;  %v433_v26 = vsub.f32 %v15155_v55, %v15186_v18 }
 0x214   :  { %v434_v27 = vsub.f32 %v15164_v61, %v15186_v18  ;;  %v435_v28 = vsub.f32 %v15169_v0, %v15186_v18  ;;  %v436_v29 = vsub.f32 %v15161_v59, %v15186_v18  ;;  %v437_v30 = vsub.f32 %v15167_v63, %v15186_v18 }
 0x215   :  { %v438_v31 = vsub.f32 %v15176_v5, %v15186_v18  ;;  %v439_v32 = vsub.f32 %v15181_v8, %v15186_v18  ;;  %v440_v33 = vsub.f32 %v15173_v3, %v15186_v18  ;;  %v441_v34 = vsub.f32 %v15179_v7, %v15186_v18 }
 0x216   :  { %v442_v35 = vmul.f32 %v426_v19, %v426_v19  ;;  %v443_v36 = vmul.f32 %v427_v20, %v427_v20  ;;  %v444_v37 = vmul.f32 %v428_v21, %v428_v21  ;;  %v445_v39 = vmul.f32 %v429_v22, %v429_v22 }
 0x217   :  { %v446_v41 = vmul.f32 %v430_v23, %v430_v23  ;;  %v447_v43 = vmul.f32 %v431_v24, %v431_v24  ;;  %v448_v50 = vmul.f32 %v432_v25, %v432_v25  ;;  %v449_v54 = vmul.f32 %v433_v26, %v433_v26 }
 0x218   :  { %v458_v38 = vadd.f32 %v443_v36, %v442_v35  ;;  %v450_v58 = vmul.f32 %v434_v27, %v434_v27  ;;  %v451_v62 = vmul.f32 %v435_v28, %v435_v28  ;;  %v452_v2 = vmul.f32 %v436_v29, %v436_v29 }
 0x219   :  { %v453_v6 = vmul.f32 %v437_v30, %v437_v30  ;;  %v454_v10 = vmul.f32 %v438_v31, %v438_v31  ;;  %v455_v12 = vmul.f32 %v439_v32, %v439_v32  ;;  %v456_v14 = vmul.f32 %v440_v33, %v440_v33  ;;  %v247_v30 = vld [vmem:[#allocation4] sm:$0x1] }
 0x21a   :  { %v459_v40 = vadd.f32 %v458_v38, %v444_v37  ;;  %v457_v16 = vmul.f32 %v441_v34, %v441_v34  ;;  %v486_v28 = vlaneseq  ;;  %v248_v34 = vld [vmem:[#allocation6] sm:$0x1] }
 0x21c   :  { %v460_v42 = vadd.f32 %v459_v40, %v445_v39  ;;  %v15220_v29 = vshrl.u32 %v486_v28, 7 }
 0x21e   :  { %v461_v49 = vadd.f32 %v460_v42, %v446_v41  ;;  %19446 = vst [vmem:[#allocation32_spill] sm:$0xff] %v15220_v29  ;;  %v15223_v31 = vsub.s32 0, %v15220_v29 }
 0x220   :  { %v462_v52 = vadd.f32 %v461_v49, %v447_v43  ;;  %19447 = vst [vmem:[#allocation33_spill] sm:$0xff] %v15223_v31 }
 0x222   :  { %v463_v57 = vadd.f32 %v462_v52, %v448_v50 }
 0x224   :  { %v464_v60 = vadd.f32 %v463_v57, %v449_v54 }
 0x226   :  { %v465_v1 = vadd.f32 %v464_v60, %v450_v58 }
 0x228   :  { %v466_v4 = vadd.f32 %v465_v1, %v451_v62 }
 0x22a   :  { %v467_v9 = vadd.f32 %v466_v4, %v452_v2 }
 0x22c   :  { %v468_v11 = vadd.f32 %v467_v9, %v453_v6 }
 0x22e   :  { %v469_v13 = vadd.f32 %v468_v11, %v454_v10 }
 0x230   :  { %v470_v15 = vadd.f32 %v469_v13, %v455_v12 }
 0x232   :  { %v471_v17 = vadd.f32 %v470_v15, %v456_v14 }
 0x234   :  { %v472_v19 = vadd.f32 %v471_v17, %v457_v16 }
 0x236   :  { %v473_v20 = vrot.slane %v472_v19, 4 }
 0x238   :  { %v474_v21 = vadd.f32 %v473_v20, %v472_v19 }
 0x23a   :  { %v475_v22 = vrot.slane %v474_v21, 2 }
 0x23c   :  { %v476_v23 = vadd.f32 %v475_v22, %v474_v21 }
 0x23e   :  { %v477_v24 = vrot.slane %v476_v23, 1 }
 0x240   :  { %v478_v25 = vadd.f32 %v477_v24, %v476_v23 }
 0x242   :  { %v479_v26 = vmul.f32 0.0078125, %v478_v25 }
 0x244   :  { %v480_v27 = vadd.f32 1e-05, %v479_v26 }
 0x246   :  { %13981 = vrsqrt.f32 %v480_v27 }
 0x250   :  { %v13982_v32 = vpop.eup %13981 }
 0x251   :  { %v482_v33 = vmul.f32 %v13982_v32, %v247_v30 }
 0x253   :  { %v483_v35 = vmul.f32 %v482_v33, %v15186_v18  ;;  %v489_v36 = vrot.slane %v482_v33, %v15223_v31 }
 0x255   :  { %v484_v37 = vsub.f32 %v248_v34, %v483_v35  ;;  %v504_v38 = vmul.f32 %v489_v36, %v15181_v8  ;;  %v491_v39 = vmul.f32 %v489_v36, %v15140_v46  ;;  %v492_v40 = vmul.f32 %v489_v36, %v15144_v48 }
 0x256   :  { %v493_v41 = vmul.f32 %v15138_v45, %v489_v36  ;;  %v494_v42 = vmul.f32 %v15142_v47, %v489_v36  ;;  %v495_v43 = vmul.f32 %v489_v36, %v15152_v53  ;;  %v496_v49 = vmul.f32 %v489_v36, %v15157_v56 }
 0x257   :  { %v511_v50 = vrot.slane %v484_v37, %v15223_v31  ;;  %v497_v18 = vmul.f32 %v15149_v51, %v489_v36  ;;  %v498_v52 = vmul.f32 %v15155_v55, %v489_v36  ;;  %v499_v8 = vmul.f32 %v489_v36, %v15164_v61  ;;  %v13248_v37 = vld [vmem:[#allocation12] ss:$16 sps:$4 sm:$0xff]  }
 0x258   :  { %v500_v46 = vmul.f32 %v489_v36, %v15169_v0  ;;  %v501_v48 = vmul.f32 %v15161_v59, %v489_v36  ;;  %v502_v45 = vmul.f32 %v15167_v63, %v489_v36  ;;  %v503_v47 = vmul.f32 %v489_v36, %v15176_v5 }
 0x259   :  { %v526_v54 = vadd.f32 %v511_v50, %v504_v38  ;;  %v513_v53 = vadd.f32 %v511_v50, %v491_v39  ;;  %v514_v57 = vadd.f32 %v511_v50, %v492_v40  ;;  %v515_v56 = vadd.f32 %v511_v50, %v493_v41  ;;  %v13253_v38 = vld [vmem:[#allocation12 + $0x2c] ss:$16 sps:$4 sm:$0xff]   ;;  %v13256_v39 = vld [vmem:[#allocation12 + $0x24] ss:$16 sps:$4 sm:$0xff]   ;;  %v13251_v40 = vld [vmem:[#allocation12 + $0x28] ss:$16 sps:$4 sm:$0xff]  }
 0x25a   :  { %v516_v58 = vadd.f32 %v511_v50, %v494_v42  ;;  %v517_v60 = vadd.f32 %v511_v50, %v495_v43  ;;  %v518_v62 = vadd.f32 %v511_v50, %v496_v49  ;;  %v519_v51 = vadd.f32 %v511_v50, %v497_v18  ;;  %v13254_v41 = vld [vmem:[#allocation12 + $0x20] ss:$16 sps:$4 sm:$0xff]   ;;  %v13259_v42 = vld [vmem:[#allocation12 + $0x4c] ss:$16 sps:$4 sm:$0xff]   ;;  %v13262_v43 = vld [vmem:[#allocation12 + $0x44] ss:$16 sps:$4 sm:$0xff]  }
 0x25b   :  { %v529_v1 = vmax.f32 %v513_v53, 0.0  ;;  %v530_v55 = vmax.f32 %v514_v57, 0.0  ;;  %v531_v2 = vmax.f32 %v515_v56, 0.0  ;;  %v520_v61 = vadd.f32 %v511_v50, %v498_v52  ;;  %v13260_v49 = vld [vmem:[#allocation12 + $0x40] ss:$16 sps:$4 sm:$0xff]  }
 0x25c   :  { %v532_v4 = vmax.f32 %v516_v58, 0.0  ;;  %v533_v0 = vmax.f32 %v517_v60, 0.0  ;;  %v534_v6 = vmax.f32 %v518_v62, 0.0  ;;  %v535_v59 = vmax.f32 %v519_v51, 0.0  ;;  %v13268_v18 = vld [vmem:[#allocation12 + $0x64] ss:$16 sps:$4 sm:$0xff]  }
 0x25d   :  { %v563_v9 = vpack.c.bf16 %v530_v55, %v529_v1  ;;  %v536_v63 = vmax.f32 %v520_v61, 0.0  ;;  %v521_v10 = vadd.f32 %v511_v50, %v499_v8  ;;  %v522_v5 = vadd.f32 %v511_v50, %v500_v46  ;;  %v13263_v52 = vld [vmem:[#allocation12 + $0x68] ss:$16 sps:$4 sm:$0xff]   ;;  %v13266_v8 = vld [vmem:[#allocation12 + $0x60] ss:$16 sps:$4 sm:$0xff]  }
 0x25e   :  { %v564_v11 = vpack.c.bf16 %v532_v4, %v531_v2  ;;  %v565_v12 = vpack.c.bf16 %v534_v6, %v533_v0  ;;  %v523_v13 = vadd.f32 %v511_v50, %v501_v48  ;;  %v524_v14 = vadd.f32 %v511_v50, %v502_v45  ;;  %v13269_v56 = vld [vmem:[#allocation12 + $0x88] ss:$16 sps:$4 sm:$0xff]   ;;  %v13272_v58 = vld [vmem:[#allocation12 + $0x80] ss:$16 sps:$4 sm:$0xff]   ;;  %v13277_v62 = vld [vmem:[#allocation12 + $0xac] ss:$16 sps:$4 sm:$0xff]  }
 0x25f   :  { %684 = vmatmul.mubr.bf16.vlgmr.msra.gmra.mrb[0].mxu1 %v563_v9  ;;  %v566_v15 = vpack.c.bf16 %v536_v63, %v535_v59  ;;  %v537_v16 = vmax.f32 %v521_v10, 0.0  ;;  %v538_v17 = vmax.f32 %v522_v5, 0.0  ;;  %v525_v19 = vadd.f32 %v511_v50, %v503_v47  ;;  %v13271_v47 = vld [vmem:[#allocation12 + $0x8c] ss:$16 sps:$4 sm:$0xff]   ;;  %v13280_v51 = vld [vmem:[#allocation12 + $0xa4] ss:$16 sps:$4 sm:$0xff]  }
 0x260   :  { %693 = vmatprep.mubr.bf16.mxu1 %v14824_v44  ;;  %v539_v20 = vmax.f32 %v523_v13, 0.0  ;;  %v540_v21 = vmax.f32 %v524_v14, 0.0  ;;  %v542_v22 = vmax.f32 %v526_v54, 0.0  ;;  %v505_v23 = vmul.f32 %v15173_v3, %v489_v36  ;;  %v13247_v3 = vld [vmem:[#allocation12 + $0xc] ss:$16 sps:$4 sm:$0xff]  }
 0x261   :  { %v567_v24 = vpack.c.bf16 %v538_v17, %v537_v16  ;;  %v541_v25 = vmax.f32 %v525_v19, 0.0  ;;  %v506_v26 = vmul.f32 %v15179_v7, %v489_v36  ;;  %v13250_v7 = vld [vmem:[#allocation12 + $0x4] ss:$16 sps:$4 sm:$0xff]   ;;  %v13245_v36 = vld [vmem:[#allocation12 + $0x8] ss:$16 sps:$4 sm:$0xff]   ;;  %1593 = vmatprep.subr.bf16.mxu1 %v13247_v3 }
 0x262   :  { %v568_v27 = vpack.c.bf16 %v540_v21, %v539_v20  ;;  %v527_v28 = vadd.f32 %v511_v50, %v505_v23  ;;  %1480 = vmatprep.subr.bf16.mxu0 %v13250_v7  ;;  %1594 = vmatpush1.bf16.msra.mxu1 %v13245_v36  ;;  %v13274_v54 = vld [vmem:[#allocation12 + $0x84] ss:$16 sps:$4 sm:$0xff]   ;;  %v13275_v1 = vld [vmem:[#allocation12 + $0xa8] ss:$16 sps:$4 sm:$0xff]   ;;  %v13278_v55 = vld [vmem:[#allocation12 + $0xa0] ss:$16 sps:$4 sm:$0xff]  }
 0x263   :  { %v569_v30 = vpack.c.bf16 %v542_v22, %v541_v25  ;;  %v528_v32 = vadd.f32 %v511_v50, %v506_v26  ;;  %1481 = vmatpush1.bf16.msra.mxu0 %v13248_v37  ;;  %1595 = vmatprep.subr.bf16.mxu1 %v13253_v38  ;;  %v13265_v50 = vld [vmem:[#allocation12 + $0x6c] ss:$16 sps:$4 sm:$0xff]   ;;  %v13286_v9 = vld [vmem:[#allocation12 + $0xc4] ss:$16 sps:$4 sm:$0xff]   ;;  %v13281_v5 = vld [vmem:[#allocation12 + $0xc8] ss:$16 sps:$4 sm:$0xff]  }
 0x264   :  { %v543_v33 = vmax.f32 %v527_v28, 0.0  ;;  %1482 = vmatprep.subr.bf16.mxu0 %v13256_v39  ;;  %v13283_v59 = vld [vmem:[#allocation12 + $0xcc] ss:$16 sps:$4 sm:$0xff]   ;;  %v13292_v14 = vld [vmem:[#allocation12 + $0xe4] ss:$16 sps:$4 sm:$0xff]  }
 0x265   :  { %v544_v34 = vmax.f32 %v528_v32, 0.0  ;;  %v13289_v13 = vld [vmem:[#allocation12 + $0xec] ss:$16 sps:$4 sm:$0xff]   ;;  %v13290_v16 = vld [vmem:[#allocation12 + $0xe0] ss:$16 sps:$4 sm:$0xff]  }
 0x266   :  { %1596 = vmatpush1.bf16.msra.mxu1 %v13251_v40  ;;  %v13295_v23 = vld [vmem:[#allocation12 + $0x10c] ss:$16 sps:$4 sm:$0xff]   ;;  %v13296_v28 = vld [vmem:[#allocation12 + $0x100] ss:$16 sps:$4 sm:$0xff]   ;;  %v13310_v40 = vld [vmem:[#allocation12 + $0x144] ss:$16 sps:$4 sm:$0xff]  }
 0x267   :  { %694 = vmatmul.mubr.bf16.gmra.mrb[4].mxu1 %v564_v11  ;;  %v570_v35 = vpack.c.bf16 %v544_v34, %v543_v33  ;;  %1483 = vmatpush1.bf16.msra.mxu0 %v13254_v41  ;;  %v13284_v11 = vld [vmem:[#allocation12 + $0xc0] ss:$16 sps:$4 sm:$0xff]   ;;  %v13301_v32 = vld [vmem:[#allocation12 + $0x12c] ss:$16 sps:$4 sm:$0xff]   ;;  %v13304_v33 = vld [vmem:[#allocation12 + $0x124] ss:$16 sps:$4 sm:$0xff]  }
 0x268   :  { %703 = vmatprep.mubr.bf16.mxu1 %v14824_v44  ;;  %1597 = vmatprep.subr.bf16.mxu1 %v13259_v42  ;;  %v13299_v34 = vld [vmem:[#allocation12 + $0x128] ss:$16 sps:$4 sm:$0xff]   ;;  %v13307_v39 = vld [vmem:[#allocation12 + $0x14c] ss:$16 sps:$4 sm:$0xff]  }
 0x269   :  { %1484 = vmatprep.subr.bf16.mxu0 %v13262_v43  ;;  %v13305_v43 = vld [vmem:[#allocation12 + $0x148] ss:$16 sps:$4 sm:$0xff]  }
 0x26b   :  { %1485 = vmatpush1.bf16.msra.mxu0 %v13260_v49 }
 0x26c   :  { %1486 = vmatprep.subr.bf16.mxu0 %v13268_v18  ;;  %v13316_v18 = vld [vmem:[#allocation12 + $0x164] ss:$16 sps:$4 sm:$0xff]  }
 0x26f   :  { %704 = vmatmul.mubr.bf16.gmra.mrb[8].mxu1 %v565_v12  ;;  %1487 = vmatpush1.bf16.msra.mxu0 %v13266_v8  ;;  %v13314_v8 = vld [vmem:[#allocation12 + $0x160] ss:$16 sps:$4 sm:$0xff]  }
 0x270   :  { %713 = vmatprep.mubr.bf16.mxu1 %v14824_v44  ;;  %1488 = vmatprep.subr.bf16.mxu0 %v13274_v54 }
 0x273   :  { %1489 = vmatpush1.bf16.msra.mxu0 %v13272_v58 }
 0x274   :  { %1490 = vmatprep.subr.bf16.mxu0 %v13280_v51 }
 0x277   :  { %714 = vmatmul.mubr.bf16.gmra.mrb[12].mxu1 %v566_v15  ;;  %1491 = vmatpush1.bf16.msra.mxu0 %v13278_v55  ;;  %v13287_v15 = vld [vmem:[#allocation12 + $0xe8] ss:$16 sps:$4 sm:$0xff]  }
 0x278   :  { %723 = vmatprep.mubr.bf16.mxu1 %v14824_v44  ;;  %1492 = vmatprep.subr.bf16.mxu0 %v13286_v9  ;;  %v13317_v55 = vld [vmem:[#allocation12 + $0x188] ss:$16 sps:$4 sm:$0xff]   ;;  %v13328_v9 = vld [vmem:[#allocation12 + $0x1a4] ss:$16 sps:$4 sm:$0xff]  }
 0x27b   :  { %1493 = vmatpush1.bf16.msra.mxu0 %v13284_v11 }
 0x27c   :  { %1494 = vmatprep.subr.bf16.mxu0 %v13292_v14 }
 0x27f   :  { %724 = vmatmul.mubr.bf16.gmra.mrb[16].mxu1 %v567_v24  ;;  %1495 = vmatpush1.bf16.msra.mxu0 %v13290_v16  ;;  %v13298_v24 = vld [vmem:[#allocation12 + $0x104] ss:$16 sps:$4 sm:$0xff]   ;;  %v13331_v16 = vld [vmem:[#allocation12 + $0x1cc] ss:$16 sps:$4 sm:$0xff]  }
 0x280   :  { %733 = vmatprep.mubr.bf16.mxu1 %v14824_v44  ;;  %1496 = vmatprep.subr.bf16.mxu0 %v13298_v24  ;;  %v13329_v24 = vld [vmem:[#allocation12 + $0x1c8] ss:$16 sps:$4 sm:$0xff]  }
 0x283   :  { %1497 = vmatpush1.bf16.msra.mxu0 %v13296_v28  ;;  %v13337_v28 = vld [vmem:[#allocation12 + $0x1ec] ss:$16 sps:$4 sm:$0xff]  }
 0x284   :  { %1498 = vmatprep.subr.bf16.mxu0 %v13304_v33  ;;  %v13340_v33 = vld [vmem:[#allocation12 + $0x1e4] ss:$16 sps:$4 sm:$0xff]  }
 0x287   :  { %734 = vmatmul.mubr.bf16.gmra.mrb[20].mxu1 %v568_v27  ;;  %v13293_v27 = vld [vmem:[#allocation12 + $0x108] ss:$16 sps:$4 sm:$0xff]  }
 0x288   :  { %743 = vmatprep.mubr.bf16.mxu1 %v14824_v44 }
 0x28f   :  { %744 = vmatmul.mubr.bf16.gmra.mrb[24].mxu1 %v569_v30 }
 0x290   :  { %753 = vmatprep.mubr.bf16.mxu1 %v14824_v44  ;;  %v13257_v44 = vld [vmem:[#allocation12 + $0x48] ss:$16 sps:$4 sm:$0xff]  }
 0x291   :  { %1598 = vmatpush1.bf16.msra.mxu1 %v13257_v44  ;;  %v13308_v44 = vld [vmem:[#allocation12 + $0x140] ss:$16 sps:$4 sm:$0xff]  }
 0x292   :  { %1599 = vmatprep.subr.bf16.mxu1 %v13265_v50  ;;  %v13313_v50 = vld [vmem:[#allocation12 + $0x16c] ss:$16 sps:$4 sm:$0xff]  }
 0x295   :  { %1600 = vmatpush1.bf16.msra.mxu1 %v13263_v52  ;;  %v13311_v52 = vld [vmem:[#allocation12 + $0x168] ss:$16 sps:$4 sm:$0xff]  }
 0x296   :  { %1601 = vmatprep.subr.bf16.mxu1 %v13271_v47 }
 0x297   :  { %754 = vmatmul.mubr.bf16.gmra.mrb[28].mxu1 %v570_v35  ;;  %v13302_v35 = vld [vmem:[#allocation12 + $0x120] ss:$16 sps:$4 sm:$0xff]  }
 0x298   :  { %1499 = vmatpush1.bf16.msra.mxu0 %v13302_v35 }
 0x299   :  { %1602 = vmatpush1.bf16.msra.mxu1 %v13269_v56  ;;  %1500 = vmatprep.subr.bf16.mxu0 %v13310_v40 }
 0x29a   :  { %1603 = vmatprep.subr.bf16.mxu1 %v13277_v62  ;;  %v13322_v62 = vld [vmem:[#allocation12 + $0x184] ss:$16 sps:$4 sm:$0xff]  }
 0x29c   :  { %1501 = vmatpush1.bf16.msra.mxu0 %v13308_v44 }
 0x29d   :  { %1604 = vmatpush1.bf16.msra.mxu1 %v13275_v1  ;;  %1502 = vmatprep.subr.bf16.mxu0 %v13316_v18 }
 0x29e   :  { %1605 = vmatprep.subr.bf16.mxu1 %v13283_v59  ;;  %v13325_v59 = vld [vmem:[#allocation12 + $0x1ac] ss:$16 sps:$4 sm:$0xff]  }
 0x2a0   :  { %1503 = vmatpush1.bf16.msra.mxu0 %v13314_v8 }
 0x2a1   :  { %1606 = vmatpush1.bf16.msra.mxu1 %v13281_v5  ;;  %1504 = vmatprep.subr.bf16.mxu0 %v13322_v62  ;;  %v13326_v5 = vld [vmem:[#allocation12 + $0x1a0] ss:$16 sps:$4 sm:$0xff]  }
 0x2a2   :  { %1607 = vmatprep.subr.bf16.mxu1 %v13289_v13 }
 0x2a5   :  { %1608 = vmatpush1.bf16.msra.mxu1 %v13287_v15 }
 0x2a6   :  { %1609 = vmatprep.subr.bf16.mxu1 %v13295_v23 }
 0x2a9   :  { %1610 = vmatpush1.bf16.msra.mxu1 %v13293_v27 }
 0x2aa   :  { %1611 = vmatprep.subr.bf16.mxu1 %v13301_v32  ;;  %v13338_v32 = vld [vmem:[#allocation12 + $0x1e0] ss:$16 sps:$4 sm:$0xff]  }
 0x2ad   :  { %1612 = vmatpush1.bf16.msra.mxu1 %v13299_v34 }
 0x2ae   :  { %1613 = vmatprep.subr.bf16.mxu1 %v13307_v39 }
 0x2b1   :  { %1614 = vmatpush1.bf16.msra.mxu1 %v13305_v43 }
 0x2b2   :  { %1615 = vmatprep.subr.bf16.mxu1 %v13313_v50 }
 0x2b5   :  { %1616 = vmatpush1.bf16.msra.mxu1 %v13311_v52 }
 0x332   :  { %v15251_v46 = vpop.f32.mrb[0].mxu1 }
 0x333   :  { %v15253_v48 = vpop.f32.mrb[1].mxu1 }
 0x334   :  { %v15255_v45 = vpop.f32.mrb[2].mxu1 }
 0x335   :  { %v764_v53 = vadd.f32 %v15255_v45, %v15251_v46  ;;  %v15259_v57 = vpop.f32.mrb[3].mxu1 }
 0x336   :  { %v785_v60 = vadd.f32 %v15259_v57, %v15253_v48 }
 0x33a   :  { %v15263_v2 = vpop.f32.mrb[4].mxu1 }
 0x33b   :  { %v765_v61 = vadd.f32 %v764_v53, %v15263_v2  ;;  %v15266_v4 = vpop.f32.mrb[5].mxu1 }
 0x33c   :  { %v786_v0 = vadd.f32 %v785_v60, %v15266_v4  ;;  %v15269_v6 = vpop.f32.mrb[6].mxu1  ;;  %v13319_v60 = vld [vmem:[#allocation12 + $0x18c] ss:$16 sps:$4 sm:$0xff]  }
 0x33d   :  { %v766_v63 = vadd.f32 %v765_v61, %v15269_v6  ;;  %v15272_v10 = vpop.f32.mrb[7].mxu1  ;;  %v13320_v61 = vld [vmem:[#allocation12 + $0x180] ss:$16 sps:$4 sm:$0xff]   ;;  %1617 = vmatprep.subr.bf16.mxu1 %v13319_v60 }
 0x33e   :  { %v787_v12 = vadd.f32 %v786_v0, %v15272_v10  ;;  %1618 = vmatpush1.bf16.msra.mxu1 %v13317_v55  ;;  %1505 = vmatpush1.bf16.msra.mxu0 %v13320_v61 }
 0x33f   :  { %1619 = vmatprep.subr.bf16.mxu1 %v13325_v59  ;;  %1506 = vmatprep.subr.bf16.mxu0 %v13328_v9 }
 0x342   :  { %v15275_v17 = vpop.f32.mrb[8].mxu1  ;;  %1507 = vmatpush1.bf16.msra.mxu0 %v13326_v5 }
 0x343   :  { %v767_v19 = vadd.f32 %v766_v63, %v15275_v17  ;;  %v15278_v20 = vpop.f32.mrb[9].mxu1  ;;  %v13323_v63 = vld [vmem:[#allocation12 + $0x1a8] ss:$16 sps:$4 sm:$0xff]  }
 0x344   :  { %v788_v21 = vadd.f32 %v787_v12, %v15278_v20  ;;  %v15281_v22 = vpop.f32.mrb[10].mxu1  ;;  %1620 = vmatpush1.bf16.msra.mxu1 %v13323_v63 }
 0x345   :  { %v768_v25 = vadd.f32 %v767_v19, %v15281_v22  ;;  %v15284_v26 = vpop.f32.mrb[11].mxu1  ;;  %v13334_v19 = vld [vmem:[#allocation12 + $0x1c4] ss:$16 sps:$4 sm:$0xff]   ;;  %1621 = vmatprep.subr.bf16.mxu1 %v13331_v16 }
 0x346   :  { %v789_v30 = vadd.f32 %v788_v21, %v15284_v26  ;;  %1508 = vmatprep.subr.bf16.mxu0 %v13334_v19 }
 0x348   :  { %1622 = vmatpush1.bf16.msra.mxu1 %v13329_v24 }
 0x349   :  { %1623 = vmatprep.subr.bf16.mxu1 %v13337_v28 }
 0x34a   :  { %v15287_v3 = vpop.f32.mrb[12].mxu1 }
 0x34b   :  { %v769_v7 = vadd.f32 %v768_v25, %v15287_v3  ;;  %v15290_v36 = vpop.f32.mrb[13].mxu1  ;;  %v13332_v25 = vld [vmem:[#allocation12 + $0x1c0] ss:$16 sps:$4 sm:$0xff]  }
 0x34c   :  { %v790_v37 = vadd.f32 %v789_v30, %v15290_v36  ;;  %v15293_v38 = vpop.f32.mrb[14].mxu1  ;;  %1509 = vmatpush1.bf16.msra.mxu0 %v13332_v25  ;;  %v13335_v30 = vld [vmem:[#allocation12 + $0x1e8] ss:$16 sps:$4 sm:$0xff]  }
 0x34d   :  { %v770_v41 = vadd.f32 %v769_v7, %v15293_v38  ;;  %v15296_v42 = vpop.f32.mrb[15].mxu1  ;;  %1510 = vmatprep.subr.bf16.mxu0 %v13340_v33  ;;  %1624 = vmatpush1.bf16.msra.mxu1 %v13335_v30 }
 0x34e   :  { %v791_v49 = vadd.f32 %v790_v37, %v15296_v42 }
 0x350   :  { %1511 = vmatpush1.bf16.msra.mxu0 %v13338_v32 }
 0x352   :  { %v15299_v47 = vpop.f32.mrb[16].mxu1 }
 0x353   :  { %v771_v54 = vadd.f32 %v770_v41, %v15299_v47  ;;  %v15302_v53 = vpop.f32.mrb[17].mxu1 }
 0x354   :  { %v792_v56 = vadd.f32 %v791_v49, %v15302_v53  ;;  %v15305_v58 = vpop.f32.mrb[18].mxu1 }
 0x355   :  { %v772_v51 = vadd.f32 %v771_v54, %v15305_v58  ;;  %v15308_v1 = vpop.f32.mrb[19].mxu1 }
 0x356   :  { %v793_v0 = vadd.f32 %v792_v56, %v15308_v1 }
 0x35a   :  { %v15311_v11 = vpop.f32.mrb[20].mxu1 }
 0x35b   :  { %v773_v12 = vadd.f32 %v772_v51, %v15311_v11  ;;  %v15314_v13 = vpop.f32.mrb[21].mxu1 }
 0x35c   :  { %v794_v14 = vadd.f32 %v793_v0, %v15314_v13  ;;  %v15317_v15 = vpop.f32.mrb[22].mxu1 }
 0x35d   :  { %v774_v21 = vadd.f32 %v773_v12, %v15317_v15  ;;  %v15320_v23 = vpop.f32.mrb[23].mxu1 }
 0x35e   :  { %v795_v27 = vadd.f32 %v794_v14, %v15320_v23 }
 0x362   :  { %v15323_v34 = vpop.f32.mrb[24].mxu1 }
 0x363   :  { %v15325_v35 = vpop.f32.mrb[25].mxu1  ;;  %v775_v7 = vadd.f32 %v774_v21, %v15323_v34 }
 0x364   :  { %v15328_v37 = vpop.f32.mrb[26].mxu1  ;;  %v796_v39 = vadd.f32 %v795_v27, %v15325_v35 }
 0x365   :  { %v15331_v40 = vpop.f32.mrb[27].mxu1  ;;  %v776_v41 = vadd.f32 %v775_v7, %v15328_v37 }
 0x366   :  { %v797_v43 = vadd.f32 %v796_v39, %v15331_v40 }
 0x36a   :  { %v15335_v44 = vpop.f32.mrb[28].mxu1 }
 0x36b   :  { %v777_v49 = vadd.f32 %v776_v41, %v15335_v44  ;;  %v15338_v50 = vpop.f32.mrb[29].mxu1 }
 0x36c   :  { %v798_v18 = vadd.f32 %v797_v43, %v15338_v50  ;;  %v15341_v52 = vpop.f32.mrb[30].mxu1 }
 0x36d   :  { %v778_v8 = vadd.f32 %v777_v49, %v15341_v52  ;;  %v15344_v54 = vpop.f32.mrb[31].mxu1 }
 0x36e   :  { %v799_v56 = vadd.f32 %v798_v18, %v15344_v54 }
 0x36f   :  { %v779_v60 = vrot.slane %v778_v8, 4 }
 0x370   :  { %v800_v62 = vrot.slane %v799_v56, 4 }
 0x371   :  { %v780_v51 = vadd.f32 %v779_v60, %v778_v8 }
 0x372   :  { %v801_v55 = vadd.f32 %v800_v62, %v799_v56 }
 0x373   :  { %v781_v61 = vrot.slane %v780_v51, 2 }
 0x374   :  { %v802_v0 = vrot.slane %v801_v55, 2 }
 0x375   :  { %v782_v59 = vadd.f32 %v781_v61, %v780_v51 }
 0x376   :  { %v803_v9 = vadd.f32 %v802_v0, %v801_v55 }
 0x377   :  { %v783_v63 = vrot.slane %v782_v59, 1 }
 0x378   :  { %v804_v12 = vrot.slane %v803_v9, 1 }
 0x379   :  { %v784_v5 = vadd.f32 %v783_v63, %v782_v59 }
 0x37a   :  { %v805_v21 = vadd.f32 %v804_v12, %v803_v9 }
 0x37b   :  { %v15347_v14 = vmul.f32 0.0078125, %v784_v5 }
 0x37c   :  { %v15355_v28 = vmul.f32 0.0078125, %v805_v21 }
 0x37d   :  { %v808_v16 = vsub.f32 %v15251_v46, %v15347_v14  ;;  %v810_v19 = vsub.f32 %v15255_v45, %v15347_v14  ;;  %v812_v24 = vsub.f32 %v15263_v2, %v15347_v14  ;;  %v814_v30 = vsub.f32 %v15269_v6, %v15347_v14 }
 0x37e   :  { %v816_v32 = vsub.f32 %v15275_v17, %v15347_v14  ;;  %v809_v39 = vsub.f32 %v15253_v48, %v15355_v28  ;;  %v811_v41 = vsub.f32 %v15259_v57, %v15355_v28  ;;  %v818_v43 = vsub.f32 %v15281_v22, %v15347_v14 }
 0x37f   :  { %v840_v25 = vmul.f32 %v808_v16, %v808_v16  ;;  %v842_v27 = vmul.f32 %v810_v19, %v810_v19  ;;  %v844_v33 = vmul.f32 %v812_v24, %v812_v24  ;;  %v846_v49 = vmul.f32 %v814_v30, %v814_v30 }
 0x380   :  { %v820_v8 = vsub.f32 %v15287_v3, %v15347_v14  ;;  %v848_v56 = vmul.f32 %v816_v32, %v816_v32  ;;  %v813_v62 = vsub.f32 %v15266_v4, %v15355_v28  ;;  %v841_v51 = vmul.f32 %v809_v39, %v809_v39 }
 0x381   :  { %v872_v7 = vadd.f32 %v842_v27, %v840_v25  ;;  %v843_v55 = vmul.f32 %v811_v41, %v811_v41  ;;  %v822_v61 = vsub.f32 %v15293_v38, %v15347_v14  ;;  %v850_v0 = vmul.f32 %v818_v43, %v818_v43 }
 0x382   :  { %v815_v9 = vsub.f32 %v15272_v10, %v15355_v28  ;;  %v824_v63 = vsub.f32 %v15299_v47, %v15347_v14  ;;  %v852_v5 = vmul.f32 %v820_v8, %v820_v8  ;;  %v817_v16 = vsub.f32 %v15278_v20, %v15355_v28 }
 0x383   :  { %v873_v18 = vadd.f32 %v872_v7, %v844_v33  ;;  %v845_v19 = vmul.f32 %v813_v62, %v813_v62  ;;  %v893_v21 = vadd.f32 %v843_v55, %v841_v51  ;;  %v826_v24 = vsub.f32 %v15305_v58, %v15347_v14 }
 0x384   :  { %v854_v25 = vmul.f32 %v822_v61, %v822_v61  ;;  %v819_v30 = vsub.f32 %v15284_v26, %v15355_v28  ;;  %v847_v32 = vmul.f32 %v815_v9, %v815_v9  ;;  %v828_v7 = vsub.f32 %v15311_v11, %v15347_v14 }
 0x385   :  { %v874_v60 = vadd.f32 %v873_v18, %v846_v49  ;;  %v894_v33 = vadd.f32 %v893_v21, %v845_v19  ;;  %v856_v39 = vmul.f32 %v824_v63, %v824_v63  ;;  %v821_v43 = vsub.f32 %v15290_v36, %v15355_v28 }
 0x386   :  { %v849_v49 = vmul.f32 %v817_v16, %v817_v16  ;;  %v830_v8 = vsub.f32 %v15317_v15, %v15347_v14  ;;  %v823_v62 = vsub.f32 %v15296_v42, %v15355_v28  ;;  %v851_v51 = vmul.f32 %v819_v30, %v819_v30 }
 0x387   :  { %v875_v59 = vadd.f32 %v874_v60, %v848_v56  ;;  %v895_v18 = vadd.f32 %v894_v33, %v847_v32  ;;  %v858_v56 = vmul.f32 %v826_v24, %v826_v24  ;;  %v832_v61 = vsub.f32 %v15323_v34, %v15347_v14 }
 0x388   :  { %v825_v9 = vsub.f32 %v15302_v53, %v15355_v28  ;;  %v853_v63 = vmul.f32 %v821_v43, %v821_v43  ;;  %v862_v16 = vmul.f32 %v830_v8, %v830_v8  ;;  %v827_v21 = vsub.f32 %v15308_v1, %v15355_v28 }
 0x389   :  { %v876_v12 = vadd.f32 %v875_v59, %v850_v0  ;;  %v896_v55 = vadd.f32 %v895_v18, %v849_v49  ;;  %v860_v0 = vmul.f32 %v828_v7, %v828_v7  ;;  %v855_v24 = vmul.f32 %v823_v62, %v823_v62 }
 0x38a   :  { %v864_v30 = vmul.f32 %v832_v61, %v832_v61  ;;  %v829_v33 = vsub.f32 %v15314_v13, %v15355_v28  ;;  %v857_v7 = vmul.f32 %v825_v9, %v825_v9  ;;  %v831_v18 = vsub.f32 %v15320_v23, %v15355_v28 }
 0x38b   :  { %v877_v27 = vadd.f32 %v876_v12, %v852_v5  ;;  %v897_v5 = vadd.f32 %v896_v55, %v851_v51  ;;  %v834_v12 = vsub.f32 %v15328_v37, %v15347_v14  ;;  %v859_v8 = vmul.f32 %v827_v21, %v827_v21 }
 0x38c   :  { %v833_v51 = vsub.f32 %v15325_v35, %v15355_v28  ;;  %v861_v55 = vmul.f32 %v829_v33, %v829_v33  ;;  %v835_v9 = vsub.f32 %v15331_v40, %v15355_v28 }
 0x38d   :  { %v878_v41 = vadd.f32 %v877_v27, %v854_v25  ;;  %v898_v25 = vadd.f32 %v897_v5, %v853_v63  ;;  %v836_v27 = vsub.f32 %v15335_v44, %v15347_v14  ;;  %v866_v43 = vmul.f32 %v834_v12, %v834_v12 }
 0x38e   :  { %v863_v63 = vmul.f32 %v831_v18, %v831_v18 }
 0x38f   :  { %v879_v60 = vadd.f32 %v878_v41, %v856_v39  ;;  %v899_v39 = vadd.f32 %v898_v25, %v855_v24  ;;  %v838_v41 = vsub.f32 %v15341_v52, %v15347_v14  ;;  %v839_v25 = vsub.f32 %v15344_v54, %v15355_v28 }
 0x391   :  { %v880_v59 = vadd.f32 %v879_v60, %v858_v56  ;;  %v900_v56 = vadd.f32 %v899_v39, %v857_v7  ;;  %v868_v60 = vmul.f32 %v836_v27, %v836_v27  ;;  %v867_v27 = vmul.f32 %v835_v9, %v835_v9 }
 0x393   :  { %v881_v19 = vadd.f32 %v880_v59, %v860_v0  ;;  %v901_v61 = vadd.f32 %v900_v56, %v859_v8  ;;  %v870_v0 = vmul.f32 %v838_v41, %v838_v41  ;;  %v871_v41 = vmul.f32 %v839_v25, %v839_v25 }
 0x395   :  { %v882_v32 = vadd.f32 %v881_v19, %v862_v16  ;;  %v902_v5 = vadd.f32 %v901_v61, %v861_v55  ;;  %v837_v16 = vsub.f32 %v15338_v50, %v15355_v28  ;;  %v865_v19 = vmul.f32 %v833_v51, %v833_v51 }
 0x397   :  { %v883_v49 = vadd.f32 %v882_v32, %v864_v30  ;;  %v903_v21 = vadd.f32 %v902_v5, %v863_v63  ;;  %v869_v33 = vmul.f32 %v837_v16, %v837_v16 }
 0x399   :  { %v884_v62 = vadd.f32 %v883_v49, %v866_v43  ;;  %v904_v30 = vadd.f32 %v903_v21, %v865_v19 }
 0x39b   :  { %v885_v59 = vadd.f32 %v884_v62, %v868_v60  ;;  %v905_v7 = vadd.f32 %v904_v30, %v867_v27 }
 0x39d   :  { %v886_v12 = vadd.f32 %v885_v59, %v870_v0  ;;  %v906_v43 = vadd.f32 %v905_v7, %v869_v33  ;;  %v15421_v7 = vsub.s32 1, %v15220_v29 }
 0x39f   :  { %v887_v24 = vrot.slane %v886_v12, 4  ;;  %v907_v18 = vadd.f32 %v906_v43, %v871_v41  ;;  %19449 = vst [vmem:[#allocation35_spill] sm:$0xff] %v15421_v7 }
 0x3a1   :  { %v888_v32 = vadd.f32 %v887_v24, %v886_v12  ;;  %v908_v56 = vrot.slane %v907_v18, 4  ;;  %v14825_v12 = vmov 1966171168  }
 0x3a2   :  { %v924_v16 = vunpack.c.l.s4 %v14825_v12 }
 0x3a3   :  { %v889_v39 = vrot.slane %v888_v32, 2  ;;  %v909_v62 = vadd.f32 %v908_v56, %v907_v18 }
 0x3a4   :  { %v925_v19 = vunpack.c.0.s8 %v924_v16 }
 0x3a5   :  { %v890_v49 = vadd.f32 %v889_v39, %v888_v32  ;;  %v910_v51 = vrot.slane %v909_v62, 2  ;;  %v561_v32 = vld [vmem:[#allocation9] sm:$0x3] }
 0x3a6   :  { %v15416_v24 = vsub.s32 %v925_v19, %v15220_v29 }
 0x3a7   :  { %v891_v8 = vrot.slane %v890_v49, 1  ;;  %v911_v61 = vadd.f32 %v910_v51, %v909_v62 }
 0x3a8   :  { %19448 = vst [vmem:[#allocation34_spill] sm:$0xff] %v15416_v24 }
 0x3a9   :  { %v892_v60 = vadd.f32 %v891_v8, %v890_v49  ;;  %v912_v0 = vrot.slane %v911_v61, 1 }
 0x3ab   :  { %v914_v55 = vmul.f32 0.0078125, %v892_v60  ;;  %v913_v63 = vadd.f32 %v912_v0, %v911_v61 }
 0x3ad   :  { %v916_v59 = vadd.f32 1e-05, %v914_v55  ;;  %v915_v9 = vmul.f32 0.0078125, %v913_v63  ;;  %v562_v63 = vld [vmem:[#allocation10] sm:$0x3] }
 0x3af   :  { %13983 = vrsqrt.f32 %v916_v59  ;;  %v917_v5 = vadd.f32 1e-05, %v915_v9 }
 0x3b1   :  { %13985 = vrsqrt.f32 %v917_v5 }
 0x3b9   :  { %v13984_v21 = vpop.eup %13983 }
 0x3bb   :  { %v13986_v25 = vpop.eup %13985 }
 0x3bc   :  { %v922_v27 = vcombine.low %v13984_v21, %v13986_v25 }
 0x3be   :  { %v929_v30 = vrot.slane %v922_v27, %v15416_v24 }
 0x3c0   :  { %v936_v33 = vrot.slane %v929_v30, %v15416_v24 }
 0x3c2   :  { %v938_v39 = vmul.f32 %v936_v33, %v561_v32 }
 0x3c4   :  { %v943_v41 = vrot.slane %v938_v39, %v15223_v31  ;;  %v947_v43 = vrot.slane %v938_v39, %v15421_v7 }
 0x3c6   :  { %v950_v49 = vmul.f32 %v943_v41, %v15347_v14  ;;  %v951_v18 = vmul.f32 %v947_v43, %v15355_v28  ;;  %v1002_v8 = vmul.f32 %v947_v43, %v15344_v54  ;;  %v972_v56 = vmul.f32 %v947_v43, %v15253_v48 }
 0x3c7   :  { %v974_v60 = vmul.f32 %v947_v43, %v15259_v57  ;;  %v971_v62 = vmul.f32 %v943_v41, %v15251_v46  ;;  %v973_v51 = vmul.f32 %v943_v41, %v15255_v45  ;;  %v976_v55 = vmul.f32 %v947_v43, %v15266_v4 }
 0x3c8   :  { %v954_v61 = vcombine.low %v950_v49, %v951_v18  ;;  %v978_v0 = vmul.f32 %v947_v43, %v15272_v10  ;;  %v975_v59 = vmul.f32 %v943_v41, %v15263_v2  ;;  %v977_v14 = vmul.f32 %v943_v41, %v15269_v6 }
 0x3c9   :  { %v980_v28 = vmul.f32 %v947_v43, %v15278_v20  ;;  %v982_v54 = vmul.f32 %v947_v43, %v15284_v26  ;;  %v979_v48 = vmul.f32 %v943_v41, %v15275_v17  ;;  %v981_v57 = vmul.f32 %v943_v41, %v15281_v22 }
 0x3ca   :  { %v961_v46 = vrot.slane %v954_v61, %v15416_v24  ;;  %v984_v45 = vmul.f32 %v947_v43, %v15290_v36  ;;  %v986_v4 = vmul.f32 %v947_v43, %v15296_v42  ;;  %v983_v10 = vmul.f32 %v943_v41, %v15287_v3 }
 0x3cb   :  { %v985_v2 = vmul.f32 %v943_v41, %v15293_v38  ;;  %v988_v6 = vmul.f32 %v947_v43, %v15302_v53  ;;  %v15447_v20 = vmul.f32 %v947_v43, %v15308_v1  ;;  %v15450_v17 = vmul.f32 %v943_v41, %v15299_v47 }
 0x3cc   :  { %v968_v22 = vrot.slane %v961_v46, %v15416_v24  ;;  %v15454_v26 = vmul.f32 %v943_v41, %v15305_v58  ;;  %v15457_v36 = vmul.f32 %v947_v43, %v15314_v13  ;;  %v15460_v3 = vmul.f32 %v947_v43, %v15320_v23 }
 0x3cd   :  { %v15463_v38 = vmul.f32 %v943_v41, %v15311_v11  ;;  %v15466_v42 = vmul.f32 %v943_v41, %v15317_v15  ;;  %v15469_v47 = vmul.f32 %v947_v43, %v15325_v35  ;;  %v15472_v53 = vmul.f32 %v947_v43, %v15331_v40 }
 0x3ce   :  { %v970_v58 = vsub.f32 %v562_v63, %v968_v22  ;;  %v15475_v1 = vmul.f32 %v943_v41, %v15323_v34  ;;  %v15478_v13 = vmul.f32 %v943_v41, %v15328_v37  ;;  %v15481_v23 = vmul.f32 %v947_v43, %v15338_v50 }
 0x3cf   :  { %v15484_v11 = vmul.f32 %v943_v41, %v15335_v44  ;;  %v15487_v15 = vmul.f32 %v943_v41, %v15341_v52 }
 0x3d0   :  { %v15490_v35 = vrot.slane %v970_v58, %v15223_v31  ;;  %v15493_v40 = vrot.slane %v970_v58, %v15421_v7 }
 0x3d2   :  { %v15496_v34 = vadd.f32 %v15493_v40, %v1002_v8  ;;  %v1015_v37 = vadd.f32 %v15493_v40, %v972_v56  ;;  %v1017_v50 = vadd.f32 %v15493_v40, %v974_v60  ;;  %v1014_v9 = vadd.f32 %v15490_v35, %v971_v62 }
 0x3d3   :  { %v1016_v44 = vadd.f32 %v15490_v35, %v973_v51  ;;  %v1019_v52 = vadd.f32 %v15493_v40, %v976_v55  ;;  %v1021_v5 = vadd.f32 %v15493_v40, %v978_v0  ;;  %v1018_v12 = vadd.f32 %v15490_v35, %v975_v59 }
 0x3d4   :  { %v1047_v16 = vmax.f32 %v1015_v37, 0.0  ;;  %v1049_v19 = vmax.f32 %v1017_v50, 0.0  ;;  %v1046_v21 = vmax.f32 %v1014_v9, 0.0  ;;  %v1020_v25 = vadd.f32 %v15490_v35, %v977_v14 }
 0x3d5   :  { %v1048_v27 = vmax.f32 %v1016_v44, 0.0  ;;  %v1051_v30 = vmax.f32 %v1019_v52, 0.0  ;;  %v1053_v32 = vmax.f32 %v1021_v5, 0.0  ;;  %v1050_v33 = vmax.f32 %v1018_v12, 0.0 }
 0x3d6   :  { %v1145_v39 = vpack.c.bf16 %v1049_v19, %v1047_v16  ;;  %v1052_v41 = vmax.f32 %v1020_v25, 0.0  ;;  %v1023_v43 = vadd.f32 %v15493_v40, %v980_v28  ;;  %v1025_v49 = vadd.f32 %v15493_v40, %v982_v54 }
 0x3d7   :  { %v1144_v18 = vpack.c.bf16 %v1048_v27, %v1046_v21  ;;  %v1147_v8 = vpack.c.bf16 %v1053_v32, %v1051_v30  ;;  %v1022_v56 = vadd.f32 %v15490_v35, %v979_v48  ;;  %v1024_v60 = vadd.f32 %v15490_v35, %v981_v57 }
 0x3d8   :  { %1512 = vmatprep.mubr.bf16.mxu0 %v1145_v39  ;;  %1625 = vmatprep.mubr.bf16.mxu1 %v1145_v39  ;;  %v1146_v62 = vpack.c.bf16 %v1052_v41, %v1050_v33  ;;  %v1055_v51 = vmax.f32 %v1023_v43, 0.0  ;;  %v1057_v55 = vmax.f32 %v1025_v49, 0.0  ;;  %v1027_v61 = vadd.f32 %v15493_v40, %v984_v45 }
 0x3d9   :  { %1513 = vmatmul.mubr.bf16.vlgmr.msra.gmra.mrb[16].mxu0 %v1144_v18  ;;  %1626 = vmatmul.mubr.bf16.vlgmr.msra.gmra.mrb[32].mxu1 %v1144_v18  ;;  %v1054_v0 = vmax.f32 %v1022_v56, 0.0  ;;  %v1056_v59 = vmax.f32 %v1024_v60, 0.0  ;;  %v1029_v14 = vadd.f32 %v15493_v40, %v986_v4  ;;  %v1026_v28 = vadd.f32 %v15490_v35, %v983_v10 }
 0x3da   :  { %1522 = vmatprep.mubr.bf16.mxu0 %v1147_v8  ;;  %1635 = vmatprep.mubr.bf16.mxu1 %v1147_v8  ;;  %v1149_v54 = vpack.c.bf16 %v1057_v55, %v1055_v51  ;;  %v1059_v48 = vmax.f32 %v1027_v61, 0.0  ;;  %v1028_v57 = vadd.f32 %v15490_v35, %v985_v2  ;;  %v1031_v46 = vadd.f32 %v15493_v40, %v988_v6 }
 0x3db   :  { %v1148_v63 = vpack.c.bf16 %v1056_v59, %v1054_v0  ;;  %v1061_v22 = vmax.f32 %v1029_v14, 0.0  ;;  %v1058_v58 = vmax.f32 %v1026_v28, 0.0  ;;  %v1033_v45 = vadd.f32 %v15493_v40, %v15447_v20 }
 0x3dc   :  { %v1060_v37 = vmax.f32 %v1028_v57, 0.0  ;;  %v1063_v50 = vmax.f32 %v1031_v46, 0.0  ;;  %v1030_v4 = vadd.f32 %v15490_v35, %v15450_v17  ;;  %v1032_v10 = vadd.f32 %v15490_v35, %v15454_v26 }
 0x3dd   :  { %v1151_v9 = vpack.c.bf16 %v1061_v22, %v1059_v48  ;;  %v1065_v44 = vmax.f32 %v1033_v45, 0.0  ;;  %v1035_v2 = vadd.f32 %v15493_v40, %v15457_v36  ;;  %v1037_v6 = vadd.f32 %v15493_v40, %v15460_v3 }
 0x3de   :  { %v1150_v52 = vpack.c.bf16 %v1060_v37, %v1058_v58  ;;  %v1062_v5 = vmax.f32 %v1030_v4, 0.0  ;;  %v1064_v12 = vmax.f32 %v1032_v10, 0.0  ;;  %v1034_v20 = vadd.f32 %v15490_v35, %v15463_v38 }
 0x3df   :  { %v1153_v16 = vpack.c.bf16 %v1065_v44, %v1063_v50  ;;  %v1067_v19 = vmax.f32 %v1035_v2, 0.0  ;;  %v1069_v17 = vmax.f32 %v1037_v6, 0.0  ;;  %v1036_v26 = vadd.f32 %v15490_v35, %v15466_v42 }
 0x3e0   :  { %v1152_v21 = vpack.c.bf16 %v1064_v12, %v1062_v5  ;;  %v1066_v25 = vmax.f32 %v1034_v20, 0.0  ;;  %v1039_v36 = vadd.f32 %v15493_v40, %v15469_v47  ;;  %v1041_v3 = vadd.f32 %v15493_v40, %v15472_v53  ;;  %v2320_v5 = vld [vmem:[#allocation16 + $0x20] sm:$0xff]  ;;  %v2317_v12 = vld [vmem:[#allocation16 + $0x8] sm:$0xff] }
 0x3e1   :  { %1523 = vmatmul.mubr.bf16.gmra.mrb[20].mxu0 %v1146_v62  ;;  %1636 = vmatmul.mubr.bf16.gmra.mrb[36].mxu1 %v1146_v62  ;;  %v1155_v27 = vpack.c.bf16 %v1069_v17, %v1067_v19  ;;  %v1068_v30 = vmax.f32 %v1036_v26, 0.0  ;;  %v1038_v38 = vadd.f32 %v15490_v35, %v15475_v1  ;;  %v1040_v32 = vadd.f32 %v15490_v35, %v15478_v13 }
 0x3e2   :  { %1532 = vmatprep.mubr.bf16.mxu0 %v1149_v54  ;;  %1645 = vmatprep.mubr.bf16.mxu1 %v1149_v54  ;;  %v1071_v42 = vmax.f32 %v1039_v36, 0.0  ;;  %v1073_v33 = vmax.f32 %v1041_v3, 0.0  ;;  %v1043_v47 = vadd.f32 %v15493_v40, %v15481_v23  ;;  %v1077_v39 = vmax.f32 %v15496_v34, 0.0  ;;  %v2324_v36 = vld [vmem:[#allocation16 + $0x40] sm:$0xff] }
 0x3e3   :  { %v1154_v53 = vpack.c.bf16 %v1068_v30, %v1066_v25  ;;  %v1070_v41 = vmax.f32 %v1038_v38, 0.0  ;;  %v1072_v43 = vmax.f32 %v1040_v32, 0.0  ;;  %v1042_v49 = vadd.f32 %v15490_v35, %v15484_v11  ;;  %v2328_v3 = vld [vmem:[#allocation16 + $0x60] sm:$0xff] }
 0x3e4   :  { %v1157_v18 = vpack.c.bf16 %v1073_v33, %v1071_v42  ;;  %v1075_v1 = vmax.f32 %v1043_v47, 0.0  ;;  %v1044_v13 = vadd.f32 %v15490_v35, %v15487_v15  ;;  %v11564_v33 = vcombine.high %v2324_v36, %v2328_v3  ;;  %v2329_v47 = vld [vmem:[#allocation16 + $0x68] sm:$0xff] }
 0x3e5   :  { %v1156_v8 = vpack.c.bf16 %v1072_v43, %v1070_v41  ;;  %v1074_v56 = vmax.f32 %v1042_v49, 0.0  ;;  %v11563_v49 = vcombine.low %v2324_v36, %v2328_v3 }
 0x3e6   :  { %v1159_v60 = vpack.c.bf16 %v1077_v39, %v1075_v1  ;;  %v1076_v62 = vmax.f32 %v1044_v13, 0.0 }
 0x3e8   :  { %v1158_v51 = vpack.c.bf16 %v1076_v62, %v1074_v56 }
 0x3e9   :  { %1533 = vmatmul.mubr.bf16.gmra.mrb[24].mxu0 %v1148_v63  ;;  %1646 = vmatmul.mubr.bf16.gmra.mrb[40].mxu1 %v1148_v63 }
 0x3ea   :  { %1542 = vmatprep.mubr.bf16.mxu0 %v1151_v9  ;;  %1655 = vmatprep.mubr.bf16.mxu1 %v1151_v9 }
 0x3f1   :  { %1543 = vmatmul.mubr.bf16.gmra.mrb[28].mxu0 %v1150_v52  ;;  %1656 = vmatmul.mubr.bf16.gmra.mrb[44].mxu1 %v1150_v52  ;;  %v2316_v52 = vld [vmem:[#allocation16] sm:$0xff] }
 0x3f2   :  { %1552 = vmatprep.mubr.bf16.mxu0 %v1153_v16  ;;  %1665 = vmatprep.mubr.bf16.mxu1 %v1153_v16  ;;  %v11556_v20 = vcombine.high %v2316_v52, %v2320_v5  ;;  %v2321_v16 = vld [vmem:[#allocation16 + $0x28] sm:$0xff]  ;;  %v11555_v19 = vcombine.low %v2316_v52, %v2320_v5 }
 0x3f3   :  { %v11557_v17 = vcombine.low %v2317_v12, %v2321_v16  ;;  %v11558_v26 = vcombine.high %v2317_v12, %v2321_v16  ;;  %v2341_v52 = vld [vmem:[#allocation16 + $0xc8] sm:$0xff] }
 0x3f4   :  { %3886 = vmatprep.subr.bf16.mxu0 %v11556_v20 }
 0x3f5   :  { %4112 = vmatprep.subr.bf16.mxu1 %v11558_v26  ;;  %3887 = vmatpush1.bf16.msra.mxu0 %v11555_v19 }
 0x3f6   :  { %4113 = vmatpush1.bf16.msra.mxu1 %v11557_v17  ;;  %3888 = vmatprep.subr.bf16.mxu0 %v11564_v33  ;;  %v2345_v17 = vld [vmem:[#allocation16 + $0xe8] sm:$0xff] }
 0x3f9   :  { %1553 = vmatmul.mubr.bf16.gmra.mrb[32].mxu0 %v1152_v21  ;;  %1666 = vmatmul.mubr.bf16.gmra.mrb[48].mxu1 %v1152_v21 }
 0x3fa   :  { %1562 = vmatprep.mubr.bf16.mxu0 %v1155_v27  ;;  %1675 = vmatprep.mubr.bf16.mxu1 %v1155_v27  ;;  %v2325_v27 = vld [vmem:[#allocation16 + $0x48] sm:$0xff] }
 0x3fb   :  { %3889 = vmatpush1.bf16.msra.mxu0 %v11563_v49  ;;  %v11582_v49 = vcombine.high %v2341_v52, %v2345_v17 }
 0x401   :  { %1563 = vmatmul.mubr.bf16.gmra.mrb[36].mxu0 %v1154_v53  ;;  %1676 = vmatmul.mubr.bf16.gmra.mrb[52].mxu1 %v1154_v53 }
 0x402   :  { %1572 = vmatprep.mubr.bf16.mxu0 %v1157_v18  ;;  %1685 = vmatprep.mubr.bf16.mxu1 %v1157_v18  ;;  %v11565_v18 = vcombine.low %v2325_v27, %v2329_v47 }
 0x409   :  { %1573 = vmatmul.mubr.bf16.gmra.mrb[40].mxu0 %v1156_v8  ;;  %1686 = vmatmul.mubr.bf16.gmra.mrb[56].mxu1 %v1156_v8 }
 0x40a   :  { %1582 = vmatprep.mubr.bf16.mxu0 %v1159_v60  ;;  %1695 = vmatprep.mubr.bf16.mxu1 %v1159_v60  ;;  %v11566_v60 = vcombine.high %v2325_v27, %v2329_v47 }
 0x40c   :  { %4114 = vmatprep.subr.bf16.mxu1 %v11566_v60  ;;  %v2352_v60 = vld [vmem:[#allocation16 + $0x120] sm:$0xff] }
 0x40d   :  { %4115 = vmatpush1.bf16.msra.mxu1 %v11565_v18 }
 0x411   :  { %1583 = vmatmul.mubr.bf16.gmra.mrb[44].mxu0 %v1158_v51  ;;  %1696 = vmatmul.mubr.bf16.gmra.mrb[60].mxu1 %v1158_v51 }
 0x4ac   :  { %v15544_v23 = vpop.f32.mrb[16].mxu0  ;;  %v15546_v11 = vpop.f32.mrb[32].mxu1 }
 0x4ad   :  { %19450 = vst [vmem:[#allocation36_spill] sm:$0xff] %v15546_v11  ;;  %v15548_v15 = vpop.f32.mrb[17].mxu0  ;;  %v15550_v35 = vpop.f32.mrb[33].mxu1 }
 0x4ae   :  { %19451 = vst [vmem:[#allocation37_spill] sm:$0xff] %v15550_v35  ;;  %v15552_v40 = vpop.f32.mrb[18].mxu0  ;;  %v15554_v34 = vpop.f32.mrb[34].mxu1 }
 0x4af   :  { %19452 = vst [vmem:[#allocation38_spill] sm:$0xff] %v15554_v34  ;;  %v1706_v55 = vadd.f32 %v15552_v40, %v15544_v23  ;;  %v1748_v61 = vadd.f32 %v15554_v34, %v15546_v11  ;;  %v15560_v0 = vpop.f32.mrb[19].mxu0  ;;  %v15562_v59 = vpop.f32.mrb[35].mxu1 }
 0x4b0   :  { %19453 = vst [vmem:[#allocation39_spill] sm:$0xff] %v15562_v59  ;;  %v1727_v14 = vadd.f32 %v15560_v0, %v15548_v15  ;;  %v1769_v28 = vadd.f32 %v15562_v59, %v15550_v35 }
 0x4b4   :  { %v15568_v54 = vpop.f32.mrb[20].mxu0  ;;  %v15570_v48 = vpop.f32.mrb[36].mxu1 }
 0x4b5   :  { %19454 = vst [vmem:[#allocation40_spill] sm:$0xff] %v15570_v48  ;;  %v1707_v57 = vadd.f32 %v1706_v55, %v15568_v54  ;;  %v1749_v46 = vadd.f32 %v1748_v61, %v15570_v48  ;;  %v15574_v63 = vpop.f32.mrb[21].mxu0  ;;  %v15576_v22 = vpop.f32.mrb[37].mxu1  ;;  %v2332_v55 = vld [vmem:[#allocation16 + $0x80] sm:$0xff] }
 0x4b6   :  { %19455 = vst [vmem:[#allocation41_spill] sm:$0xff] %v15576_v22  ;;  %v1728_v58 = vadd.f32 %v1727_v14, %v15574_v63  ;;  %v1770_v45 = vadd.f32 %v1769_v28, %v15576_v22  ;;  %v15580_v37 = vpop.f32.mrb[22].mxu0  ;;  %v15582_v50 = vpop.f32.mrb[38].mxu1  ;;  %v2336_v61 = vld [vmem:[#allocation16 + $0xa0] sm:$0xff]  ;;  %v2333_v14 = vld [vmem:[#allocation16 + $0x88] sm:$0xff] }
 0x4b7   :  { %19456 = vst [vmem:[#allocation42_spill] sm:$0xff] %v15582_v50  ;;  %v1708_v4 = vadd.f32 %v1707_v57, %v15580_v37  ;;  %v1750_v10 = vadd.f32 %v1749_v46, %v15582_v50  ;;  %v15586_v9 = vpop.f32.mrb[23].mxu0  ;;  %v15588_v44 = vpop.f32.mrb[39].mxu1  ;;  %v11572_v28 = vcombine.high %v2332_v55, %v2336_v61  ;;  %v2337_v57 = vld [vmem:[#allocation16 + $0xa8] sm:$0xff]  ;;  %v11571_v46 = vcombine.low %v2332_v55, %v2336_v61 }
 0x4b8   :  { %19457 = vst [vmem:[#allocation43_spill] sm:$0xff] %v15588_v44  ;;  %v1729_v2 = vadd.f32 %v1728_v58, %v15586_v9  ;;  %v1771_v6 = vadd.f32 %v1770_v45, %v15588_v44  ;;  %v11573_v58 = vcombine.low %v2333_v14, %v2337_v57  ;;  %v11574_v45 = vcombine.high %v2333_v14, %v2337_v57  ;;  %v2353_v55 = vld [vmem:[#allocation16 + $0x128] sm:$0xff] }
 0x4b9   :  { %3890 = vmatprep.subr.bf16.mxu0 %v11572_v28 }
 0x4ba   :  { %4116 = vmatprep.subr.bf16.mxu1 %v11574_v45  ;;  %3891 = vmatpush1.bf16.msra.mxu0 %v11571_v46  ;;  %v2360_v45 = vld [vmem:[#allocation16 + $0x160] sm:$0xff] }
 0x4bb   :  { %4117 = vmatpush1.bf16.msra.mxu1 %v11573_v58  ;;  %v2356_v58 = vld [vmem:[#allocation16 + $0x140] sm:$0xff] }
 0x4bc   :  { %v15592_v21 = vpop.f32.mrb[24].mxu0  ;;  %v15594_v25 = vpop.f32.mrb[40].mxu1  ;;  %4118 = vmatprep.subr.bf16.mxu1 %v11582_v49  ;;  %v11595_v49 = vcombine.low %v2356_v58, %v2360_v45 }
 0x4bd   :  { %19458 = vst [vmem:[#allocation44_spill] sm:$0xff] %v15594_v25  ;;  %v1709_v30 = vadd.f32 %v1708_v4, %v15592_v21  ;;  %v1751_v38 = vadd.f32 %v1750_v10, %v15594_v25  ;;  %v15598_v32 = vpop.f32.mrb[25].mxu0  ;;  %v15600_v42 = vpop.f32.mrb[41].mxu1 }
 0x4be   :  { %19459 = vst [vmem:[#allocation45_spill] sm:$0xff] %v15598_v32  ;;  %19460 = vst [vmem:[#allocation46_spill] sm:$0xff] %v15600_v42  ;;  %v1730_v39 = vadd.f32 %v1729_v2, %v15598_v32  ;;  %v1772_v53 = vadd.f32 %v1771_v6, %v15600_v42  ;;  %v15604_v41 = vpop.f32.mrb[26].mxu0  ;;  %v15606_v43 = vpop.f32.mrb[42].mxu1  ;;  %v2340_v2 = vld [vmem:[#allocation16 + $0xc0] sm:$0xff] }
 0x4bf   :  { %19461 = vst [vmem:[#allocation47_spill] sm:$0xff] %v15606_v43  ;;  %v1710_v1 = vadd.f32 %v1709_v30, %v15604_v41  ;;  %v1752_v13 = vadd.f32 %v1751_v38, %v15606_v43  ;;  %v15610_v8 = vpop.f32.mrb[27].mxu0  ;;  %v15612_v56 = vpop.f32.mrb[43].mxu1  ;;  %v2344_v6 = vld [vmem:[#allocation16 + $0xe0] sm:$0xff]  ;;  %v11581_v38 = vcombine.low %v2341_v52, %v2345_v17  ;;  %v2361_v17 = vld [vmem:[#allocation16 + $0x168] sm:$0xff] }
 0x4c0   :  { %19462 = vst [vmem:[#allocation48_spill] sm:$0xff] %v15610_v8  ;;  %19463 = vst [vmem:[#allocation49_spill] sm:$0xff] %v15612_v56  ;;  %v1731_v62 = vadd.f32 %v1730_v39, %v15610_v8  ;;  %v1773_v51 = vadd.f32 %v1772_v53, %v15612_v56  ;;  %v11580_v19 = vcombine.high %v2340_v2, %v2344_v6 }
 0x4c1   :  { %v11579_v30 = vcombine.low %v2340_v2, %v2344_v6  ;;  %4119 = vmatpush1.bf16.msra.mxu1 %v11581_v38  ;;  %v2357_v2 = vld [vmem:[#allocation16 + $0x148] sm:$0xff] }
 0x4c2   :  { %3892 = vmatprep.subr.bf16.mxu0 %v11580_v19  ;;  %v11596_v19 = vcombine.high %v2356_v58, %v2360_v45  ;;  %v2369_v58 = vld [vmem:[#allocation16 + $0x1a8] sm:$0xff] }
 0x4c3   :  { %3893 = vmatpush1.bf16.msra.mxu0 %v11579_v30 }
 0x4c4   :  { %v15616_v4 = vpop.f32.mrb[28].mxu0  ;;  %v15618_v10 = vpop.f32.mrb[44].mxu1 }
 0x4c5   :  { %19464 = vst [vmem:[#allocation50_spill] sm:$0xff] %v15618_v10  ;;  %v1711_v5 = vadd.f32 %v1710_v1, %v15616_v4  ;;  %v1753_v12 = vadd.f32 %v1752_v13, %v15618_v10  ;;  %v15622_v20 = vpop.f32.mrb[29].mxu0  ;;  %v15624_v16 = vpop.f32.mrb[45].mxu1  ;;  %v2348_v13 = vld [vmem:[#allocation16 + $0x100] sm:$0xff] }
 0x4c6   :  { %19465 = vst [vmem:[#allocation51_spill] sm:$0xff] %v15622_v20  ;;  %19466 = vst [vmem:[#allocation52_spill] sm:$0xff] %v15624_v16  ;;  %v1732_v26 = vadd.f32 %v1731_v62, %v15622_v20  ;;  %v1774_v36 = vadd.f32 %v1773_v51, %v15624_v16  ;;  %v15628_v3 = vpop.f32.mrb[30].mxu0  ;;  %v15630_v27 = vpop.f32.mrb[46].mxu1  ;;  %v2349_v62 = vld [vmem:[#allocation16 + $0x108] sm:$0xff]  ;;  %v11588_v51 = vcombine.high %v2348_v13, %v2352_v60 }
 0x4c7   :  { %19467 = vst [vmem:[#allocation53_spill] sm:$0xff] %v15630_v27  ;;  %v1712_v33 = vadd.f32 %v1711_v5, %v15628_v3  ;;  %v1754_v47 = vadd.f32 %v1753_v12, %v15630_v27  ;;  %v15634_v39 = vpop.f32.mrb[31].mxu0  ;;  %v15636_v53 = vpop.f32.mrb[47].mxu1  ;;  %v11587_v61 = vcombine.low %v2348_v13, %v2352_v60  ;;  %v11589_v14 = vcombine.low %v2349_v62, %v2353_v55 }
 0x4c8   :  { %19468 = vst [vmem:[#allocation54_spill] sm:$0xff] %v15634_v39  ;;  %19469 = vst [vmem:[#allocation55_spill] sm:$0xff] %v15636_v53  ;;  %v1733_v18 = vadd.f32 %v1732_v26, %v15634_v39  ;;  %v1775_v1 = vadd.f32 %v1774_v36, %v15636_v53  ;;  %v11590_v28 = vcombine.high %v2349_v62, %v2353_v55  ;;  %3894 = vmatprep.subr.bf16.mxu0 %v11588_v51  ;;  %v2364_v55 = vld [vmem:[#allocation16 + $0x180] sm:$0xff] }
 0x4c9   :  { %3895 = vmatpush1.bf16.msra.mxu0 %v11587_v61  ;;  %v11597_v13 = vcombine.low %v2357_v2, %v2361_v17  ;;  %v11598_v51 = vcombine.high %v2357_v2, %v2361_v17  ;;  %v2368_v61 = vld [vmem:[#allocation16 + $0x1a0] sm:$0xff] }
 0x4ca   :  { %4120 = vmatprep.subr.bf16.mxu1 %v11590_v28  ;;  %3896 = vmatprep.subr.bf16.mxu0 %v11596_v19  ;;  %v11604_v28 = vcombine.high %v2364_v55, %v2368_v61  ;;  %v11603_v45 = vcombine.low %v2364_v55, %v2368_v61  ;;  %v2372_v2 = vld [vmem:[#allocation16 + $0x1c0] sm:$0xff]  ;;  %v2377_v61 = vld [vmem:[#allocation16 + $0x1e8] sm:$0xff] }
 0x4cb   :  { %4121 = vmatpush1.bf16.msra.mxu1 %v11589_v14  ;;  %v2365_v14 = vld [vmem:[#allocation16 + $0x188] sm:$0xff]  ;;  %v2376_v17 = vld [vmem:[#allocation16 + $0x1e0] sm:$0xff] }
 0x4cc   :  { %v15640_v57 = vpop.f32.mrb[32].mxu0  ;;  %v15642_v46 = vpop.f32.mrb[48].mxu1  ;;  %4122 = vmatprep.subr.bf16.mxu1 %v11598_v51  ;;  %v11612_v55 = vcombine.high %v2372_v2, %v2376_v17 }
 0x4cd   :  { %19470 = vst [vmem:[#allocation56_spill] sm:$0xff] %v15642_v46  ;;  %v1713_v6 = vadd.f32 %v1712_v33, %v15640_v57  ;;  %v1755_v52 = vadd.f32 %v1754_v47, %v15642_v46  ;;  %v15646_v5 = vpop.f32.mrb[33].mxu0  ;;  %v15648_v12 = vpop.f32.mrb[49].mxu1  ;;  %3897 = vmatpush1.bf16.msra.mxu0 %v11595_v49 }
 0x4ce   :  { %19471 = vst [vmem:[#allocation57_spill] sm:$0xff] %v15646_v5  ;;  %19472 = vst [vmem:[#allocation58_spill] sm:$0xff] %v15648_v12  ;;  %v1734_v26 = vadd.f32 %v1733_v18, %v15646_v5  ;;  %v1776_v36 = vadd.f32 %v1775_v1, %v15648_v12  ;;  %v15652_v30 = vpop.f32.mrb[34].mxu0  ;;  %v15654_v38 = vpop.f32.mrb[50].mxu1  ;;  %3898 = vmatprep.subr.bf16.mxu0 %v11604_v28  ;;  %v2384_v12 = vld [vmem:[#allocation16 + $0x220] sm:$0xff]  ;;  %v2417_v5 = vld [vmem:[#allocation16 + $0x328] sm:$0xff] }
 0x4cf   :  { %19473 = vst [vmem:[#allocation59_spill] sm:$0xff] %v15654_v38  ;;  %v1714_v33 = vadd.f32 %v1713_v6, %v15652_v30  ;;  %v1756_v47 = vadd.f32 %v1755_v52, %v15654_v38  ;;  %v15658_v60 = vpop.f32.mrb[35].mxu0  ;;  %v15660_v62 = vpop.f32.mrb[51].mxu1  ;;  %4123 = vmatpush1.bf16.msra.mxu1 %v11597_v13  ;;  %v11605_v6 = vcombine.low %v2365_v14, %v2369_v58 }
 0x4d0   :  { %19474 = vst [vmem:[#allocation60_spill] sm:$0xff] %v15658_v60  ;;  %19475 = vst [vmem:[#allocation61_spill] sm:$0xff] %v15660_v62  ;;  %v1735_v18 = vadd.f32 %v1734_v26, %v15658_v60  ;;  %v1777_v1 = vadd.f32 %v1776_v36, %v15660_v62  ;;  %v11606_v52 = vcombine.high %v2365_v14, %v2369_v58  ;;  %v2373_v26 = vld [vmem:[#allocation16 + $0x1c8] sm:$0xff] }
 0x4d1   :  { %3899 = vmatpush1.bf16.msra.mxu0 %v11603_v45  ;;  %v11613_v31 = vcombine.low %v2373_v26, %v2377_v61  ;;  %v11614_v62 = vcombine.high %v2373_v26, %v2377_v61  ;;  %v2388_v26 = vld [vmem:[#allocation16 + $0x240] sm:$0xff] }
 0x4d2   :  { %4124 = vmatprep.subr.bf16.mxu1 %v11606_v52  ;;  %v11611_v52 = vcombine.low %v2372_v2, %v2376_v17  ;;  %3900 = vmatprep.subr.bf16.mxu0 %v11612_v55  ;;  %v2385_v17 = vld [vmem:[#allocation16 + $0x228] sm:$0xff]  ;;  %v2392_v61 = vld [vmem:[#allocation16 + $0x260] sm:$0xff] }
 0x4d3   :  { %4125 = vmatpush1.bf16.msra.mxu1 %v11605_v6  ;;  %v2381_v6 = vld [vmem:[#allocation16 + $0x208] sm:$0xff] }
 0x4d4   :  { %v15664_v7 = vpop.f32.mrb[36].mxu0  ;;  %v15666_v19 = vpop.f32.mrb[52].mxu1  ;;  %4126 = vmatprep.subr.bf16.mxu1 %v11614_v62  ;;  %v11622_v53 = vcombine.high %v2381_v6, %v2385_v17 }
 0x4d5   :  { %19476 = vst [vmem:[#allocation62_spill] sm:$0xff] %v15666_v19  ;;  %v1715_v36 = vadd.f32 %v1714_v33, %v15664_v7  ;;  %v1757_v49 = vadd.f32 %v1756_v47, %v15666_v19  ;;  %v15670_v51 = vpop.f32.mrb[37].mxu0  ;;  %v15672_v13 = vpop.f32.mrb[53].mxu1  ;;  %3901 = vmatpush1.bf16.msra.mxu0 %v11611_v52 }
 0x4d6   :  { %19477 = vst [vmem:[#allocation63_spill] sm:$0xff] %v15670_v51  ;;  %19478 = vst [vmem:[#allocation64_spill] sm:$0xff] %v15672_v13  ;;  %v1736_v14 = vadd.f32 %v1735_v18, %v15670_v51  ;;  %v1778_v28 = vadd.f32 %v1777_v1, %v15672_v13  ;;  %v15676_v58 = vpop.f32.mrb[38].mxu0  ;;  %v15678_v45 = vpop.f32.mrb[54].mxu1  ;;  %v2380_v13 = vld [vmem:[#allocation16 + $0x200] sm:$0xff] }
 0x4d7   :  { %19479 = vst [vmem:[#allocation65_spill] sm:$0xff] %v15678_v45  ;;  %v1716_v33 = vadd.f32 %v1715_v36, %v15676_v58  ;;  %v1758_v47 = vadd.f32 %v1757_v49, %v15678_v45  ;;  %v15682_v29 = vpop.f32.mrb[39].mxu0  ;;  %v15684_v24 = vpop.f32.mrb[55].mxu1  ;;  %v11620_v2 = vcombine.high %v2380_v13, %v2384_v12  ;;  %4127 = vmatpush1.bf16.msra.mxu1 %v11613_v31 }
 0x4d8   :  { %19480 = vst [vmem:[#allocation66_spill] sm:$0xff] %v15682_v29  ;;  %19481 = vst [vmem:[#allocation67_spill] sm:$0xff] %v15684_v24  ;;  %v1737_v18 = vadd.f32 %v1736_v14, %v15682_v29  ;;  %v1779_v1 = vadd.f32 %v1778_v28, %v15684_v24  ;;  %v11619_v36 = vcombine.low %v2380_v13, %v2384_v12  ;;  %4128 = vmatprep.subr.bf16.mxu1 %v11622_v53  ;;  %v2389_v14 = vld [vmem:[#allocation16 + $0x248] sm:$0xff] }
 0x4d9   :  { %v11621_v49 = vcombine.low %v2381_v6, %v2385_v17  ;;  %3902 = vmatprep.subr.bf16.mxu0 %v11620_v2  ;;  %v11628_v12 = vcombine.high %v2388_v26, %v2392_v61  ;;  %v2393_v13 = vld [vmem:[#allocation16 + $0x268] sm:$0xff] }
 0x4da   :  { %3903 = vmatpush1.bf16.msra.mxu0 %v11619_v36  ;;  %v11627_v36 = vcombine.low %v2388_v26, %v2392_v61  ;;  %v11629_v24 = vcombine.low %v2389_v14, %v2393_v13  ;;  %v11630_v44 = vcombine.high %v2389_v14, %v2393_v13  ;;  %v2401_v61 = vld [vmem:[#allocation16 + $0x2a8] sm:$0xff]  ;;  %v2404_v14 = vld [vmem:[#allocation16 + $0x2c0] sm:$0xff] }
 0x4db   :  { %4129 = vmatpush1.bf16.msra.mxu1 %v11621_v49  ;;  %3904 = vmatprep.subr.bf16.mxu0 %v11628_v12  ;;  %v2397_v49 = vld [vmem:[#allocation16 + $0x288] sm:$0xff]  ;;  %v2408_v13 = vld [vmem:[#allocation16 + $0x2e0] sm:$0xff] }
 0x4dc   :  { %v15688_v16 = vpop.f32.mrb[40].mxu0  ;;  %v15690_v55 = vpop.f32.mrb[56].mxu1  ;;  %4130 = vmatprep.subr.bf16.mxu1 %v11630_v44  ;;  %v11638_v29 = vcombine.high %v2397_v49, %v2401_v61 }
 0x4dd   :  { %19482 = vst [vmem:[#allocation68_spill] sm:$0xff] %v15688_v16  ;;  %19483 = vst [vmem:[#allocation69_spill] sm:$0xff] %v15690_v55  ;;  %v1717_v28 = vadd.f32 %v1716_v33, %v15688_v16  ;;  %v1759_v62 = vadd.f32 %v1758_v47, %v15690_v55  ;;  %v15694_v52 = vpop.f32.mrb[41].mxu0  ;;  %v15696_v31 = vpop.f32.mrb[57].mxu1 }
 0x4de   :  { %19484 = vst [vmem:[#allocation70_spill] sm:$0xff] %v15694_v52  ;;  %19485 = vst [vmem:[#allocation71_spill] sm:$0xff] %v15696_v31  ;;  %v1738_v6 = vadd.f32 %v1737_v18, %v15694_v52  ;;  %v1780_v2 = vadd.f32 %v1779_v1, %v15696_v31  ;;  %v15700_v17 = vpop.f32.mrb[42].mxu0  ;;  %v15702_v53 = vpop.f32.mrb[58].mxu1  ;;  %3905 = vmatpush1.bf16.msra.mxu0 %v11627_v36  ;;  %v2396_v31 = vld [vmem:[#allocation16 + $0x280] sm:$0xff] }
 0x4df   :  { %19486 = vst [vmem:[#allocation72_spill] sm:$0xff] %v15700_v17  ;;  %19487 = vst [vmem:[#allocation73_spill] sm:$0xff] %v15702_v53  ;;  %v1718_v33 = vadd.f32 %v1717_v28, %v15700_v17  ;;  %v1760_v47 = vadd.f32 %v1759_v62, %v15702_v53  ;;  %v15706_v56 = vpop.f32.mrb[43].mxu0  ;;  %v15708_v42 = vpop.f32.mrb[59].mxu1  ;;  %v2400_v52 = vld [vmem:[#allocation16 + $0x2a0] sm:$0xff]  ;;  %4131 = vmatpush1.bf16.msra.mxu1 %v11629_v24  ;;  %v11637_v62 = vcombine.low %v2397_v49, %v2401_v61 }
 0x4e0   :  { %19488 = vst [vmem:[#allocation74_spill] sm:$0xff] %v15706_v56  ;;  %19489 = vst [vmem:[#allocation75_spill] sm:$0xff] %v15708_v42  ;;  %v1739_v18 = vadd.f32 %v1738_v6, %v15706_v56  ;;  %v1781_v1 = vadd.f32 %v1780_v2, %v15708_v42  ;;  %v11636_v26 = vcombine.high %v2396_v31, %v2400_v52  ;;  %v2405_v6 = vld [vmem:[#allocation16 + $0x2c8] sm:$0xff]  ;;  %4132 = vmatprep.subr.bf16.mxu1 %v11638_v29 }
 0x4e1   :  { %v11635_v28 = vcombine.low %v2396_v31, %v2400_v52  ;;  %v11644_v24 = vcombine.high %v2404_v14, %v2408_v13  ;;  %v2409_v52 = vld [vmem:[#allocation16 + $0x2e8] sm:$0xff] }
 0x4e2   :  { %3906 = vmatprep.subr.bf16.mxu0 %v11636_v26  ;;  %v11646_v60 = vcombine.high %v2405_v6, %v2409_v52 }
 0x4e3   :  { %3907 = vmatpush1.bf16.msra.mxu0 %v11635_v28  ;;  %4133 = vmatpush1.bf16.msra.mxu1 %v11637_v62  ;;  %v11643_v28 = vcombine.low %v2404_v14, %v2408_v13  ;;  %v2413_v62 = vld [vmem:[#allocation16 + $0x308] sm:$0xff] }
 0x4e4   :  { %v15712_v22 = vpop.f32.mrb[44].mxu0  ;;  %v15714_v12 = vpop.f32.mrb[60].mxu1  ;;  %3908 = vmatprep.subr.bf16.mxu0 %v11644_v24  ;;  %4134 = vmatprep.subr.bf16.mxu1 %v11646_v60  ;;  %v11653_v35 = vcombine.low %v2413_v62, %v2417_v5  ;;  %v2425_v60 = vld [vmem:[#allocation16 + $0x368] sm:$0xff] }
 0x4e5   :  { %19490 = vst [vmem:[#allocation76_spill] sm:$0xff] %v15712_v22  ;;  %19491 = vst [vmem:[#allocation77_spill] sm:$0xff] %v15714_v12  ;;  %v1719_v2 = vadd.f32 %v1718_v33, %v15712_v22  ;;  %v1761_v36 = vadd.f32 %v1760_v47, %v15714_v12  ;;  %v15718_v44 = vpop.f32.mrb[45].mxu0  ;;  %v15720_v42 = vpop.f32.mrb[61].mxu1  ;;  %v11645_v33 = vcombine.low %v2405_v6, %v2409_v52 }
 0x4e6   :  { %19492 = vst [vmem:[#allocation78_spill] sm:$0xff] %v15718_v44  ;;  %19493 = vst [vmem:[#allocation79_spill] sm:$0xff] %v15720_v42  ;;  %v1740_v31 = vadd.f32 %v1739_v18, %v15718_v44  ;;  %v1782_v49 = vadd.f32 %v1781_v1, %v15720_v42  ;;  %v15724_v26 = vpop.f32.mrb[46].mxu0  ;;  %v15726_v61 = vpop.f32.mrb[62].mxu1  ;;  %v2412_v42 = vld [vmem:[#allocation16 + $0x300] sm:$0xff]  ;;  %v11654_v52 = vcombine.high %v2413_v62, %v2417_v5 }
 0x4e7   :  { %19494 = vst [vmem:[#allocation80_spill] sm:$0xff] %v15724_v26  ;;  %19495 = vst [vmem:[#allocation81_spill] sm:$0xff] %v15726_v61  ;;  %v1720_v47 = vadd.f32 %v1719_v2, %v15724_v26  ;;  %v1762_v56 = vadd.f32 %v1761_v36, %v15726_v61  ;;  %v15730_v51 = vpop.f32.mrb[47].mxu0  ;;  %v15732_v29 = vpop.f32.mrb[63].mxu1  ;;  %3909 = vmatpush1.bf16.msra.mxu0 %v11643_v28  ;;  %v2416_v44 = vld [vmem:[#allocation16 + $0x320] sm:$0xff]  ;;  %4135 = vmatpush1.bf16.msra.mxu1 %v11645_v33  ;;  %v2421_v28 = vld [vmem:[#allocation16 + $0x348] sm:$0xff] }
 0x4e8   :  { %19496 = vst [vmem:[#allocation82_spill] sm:$0xff] %v15730_v51  ;;  %19497 = vst [vmem:[#allocation83_spill] sm:$0xff] %v15732_v29  ;;  %v1741_v18 = vadd.f32 %v1740_v31, %v15730_v51  ;;  %v1783_v1 = vadd.f32 %v1782_v49, %v15732_v29  ;;  %v11652_v2 = vcombine.high %v2412_v42, %v2416_v44  ;;  %v2420_v31 = vld [vmem:[#allocation16 + $0x340] sm:$0xff]  ;;  %4136 = vmatprep.subr.bf16.mxu1 %v11654_v52 }
 0x4e9   :  { %v1721_v14 = vrot.slane %v1720_v47, 4  ;;  %v1763_v13 = vrot.slane %v1762_v56, 4  ;;  %v11651_v59 = vcombine.low %v2412_v42, %v2416_v44  ;;  %v2424_v49 = vld [vmem:[#allocation16 + $0x360] sm:$0xff]  ;;  %v11661_v33 = vcombine.low %v2421_v28, %v2425_v60 }
 0x4ea   :  { %v1742_v36 = vrot.slane %v1741_v18, 4  ;;  %v1784_v39 = vrot.slane %v1783_v1, 4  ;;  %3910 = vmatprep.subr.bf16.mxu0 %v11652_v2  ;;  %v11660_v20 = vcombine.high %v2420_v31, %v2424_v49  ;;  %v11659_v61 = vcombine.low %v2420_v31, %v2424_v49  ;;  %v2428_v5 = vld [vmem:[#allocation16 + $0x380] sm:$0xff] }
 0x4eb   :  { %v1722_v24 = vadd.f32 %v1721_v14, %v1720_v47  ;;  %v1764_v6 = vadd.f32 %v1763_v13, %v1762_v56  ;;  %3911 = vmatpush1.bf16.msra.mxu0 %v11651_v59  ;;  %4137 = vmatpush1.bf16.msra.mxu1 %v11653_v35  ;;  %v11662_v44 = vcombine.high %v2421_v28, %v2425_v60  ;;  %v2432_v59 = vld [vmem:[#allocation16 + $0x3a0] sm:$0xff]  ;;  %v2429_v47 = vld [vmem:[#allocation16 + $0x388] sm:$0xff] }
 0x4ec   :  { %v1743_v8 = vadd.f32 %v1742_v36, %v1741_v18  ;;  %v1785_v32 = vadd.f32 %v1784_v39, %v1783_v1  ;;  %3912 = vmatprep.subr.bf16.mxu0 %v11660_v20  ;;  %v11668_v14 = vcombine.high %v2428_v5, %v2432_v59  ;;  %v2433_v13 = vld [vmem:[#allocation16 + $0x3a8] sm:$0xff]  ;;  %v11667_v18 = vcombine.low %v2428_v5, %v2432_v59  ;;  %v2436_v20 = vld [vmem:[#allocation16 + $0x3c0] sm:$0xff] }
 0x4ed   :  { %v1723_v29 = vrot.slane %v1722_v24, 2  ;;  %v1765_v51 = vrot.slane %v1764_v6, 2  ;;  %4138 = vmatprep.subr.bf16.mxu1 %v11662_v44  ;;  %v11669_v39 = vcombine.low %v2429_v47, %v2433_v13  ;;  %v11670_v1 = vcombine.high %v2429_v47, %v2433_v13 }
 0x4ee   :  { %v1744_v2 = vrot.slane %v1743_v8, 2  ;;  %v1786_v52 = vrot.slane %v1785_v32, 2 }
 0x4ef   :  { %v1724_v42 = vadd.f32 %v1723_v29, %v1722_v24  ;;  %v1766_v56 = vadd.f32 %v1765_v51, %v1764_v6  ;;  %3913 = vmatpush1.bf16.msra.mxu0 %v11659_v61  ;;  %4139 = vmatpush1.bf16.msra.mxu1 %v11661_v33  ;;  %v2440_v51 = vld [vmem:[#allocation16 + $0x3e0] sm:$0xff] }
 0x4f0   :  { %3914 = vmatprep.subr.bf16.mxu0 %v11668_v14  ;;  %4140 = vmatprep.subr.bf16.mxu1 %v11670_v1  ;;  %v1745_v36 = vadd.f32 %v1744_v2, %v1743_v8  ;;  %v1787_v24 = vadd.f32 %v1786_v52, %v1785_v32  ;;  %v11675_v6 = vcombine.low %v2436_v20, %v2440_v51 }
 0x4f1   :  { %v1725_v62 = vrot.slane %v1724_v42, 1  ;;  %v1767_v29 = vrot.slane %v1766_v56, 1  ;;  %v11676_v31 = vcombine.high %v2436_v20, %v2440_v51 }
 0x4f2   :  { %v1746_v33 = vrot.slane %v1745_v36, 1 }
 0x4f3   :  { %v1726_v35 = vadd.f32 %v1725_v62, %v1724_v42  ;;  %3915 = vmatpush1.bf16.msra.mxu0 %v11667_v18  ;;  %4141 = vmatpush1.bf16.msra.mxu1 %v11669_v39  ;;  %v1768_v60 = vadd.f32 %v1767_v29, %v1766_v56  ;;  %v1788_v42 = vrot.slane %v1787_v24, 1 }
 0x4f4   :  { %3916 = vmatprep.subr.bf16.mxu0 %v11676_v31  ;;  %v1747_v47 = vadd.f32 %v1746_v33, %v1745_v36 }
 0x4f5   :  { %v15736_v61 = vmul.f32 0.0078125, %v1726_v35  ;;  %v15744_v32 = vmul.f32 0.0078125, %v1768_v60  ;;  %v1789_v62 = vadd.f32 %v1788_v42, %v1787_v24 }
 0x4f6   :  { %v15758_v29 = vmul.f32 0.0078125, %v1747_v47 }
 0x4f7   :  { %v1794_v49 = vsub.f32 %v15544_v23, %v15736_v61  ;;  %v1798_v28 = vsub.f32 %v15552_v40, %v15736_v61  ;;  %3917 = vmatpush1.bf16.msra.mxu0 %v11675_v6  ;;  %v1802_v44 = vsub.f32 %v15568_v54, %v15736_v61  ;;  %v1806_v59 = vsub.f32 %v15580_v37, %v15736_v61 }
 0x4f8   :  { %v1810_v14 = vsub.f32 %v15592_v21, %v15736_v61  ;;  %v1796_v2 = vsub.f32 %v15546_v11, %v15744_v32  ;;  %v1800_v52 = vsub.f32 %v15554_v34, %v15744_v32  ;;  %v1814_v18 = vsub.f32 %v15604_v41, %v15736_v61 }
 0x4f9   :  { %v1858_v5 = vmul.f32 %v1794_v49, %v1794_v49  ;;  %v1862_v8 = vmul.f32 %v1798_v28, %v1798_v28  ;;  %v1866_v56 = vmul.f32 %v1802_v44, %v1802_v44  ;;  %v1870_v39 = vmul.f32 %v1806_v59, %v1806_v59 }
 0x4fa   :  { %v1818_v1 = vsub.f32 %v15616_v4, %v15736_v61  ;;  %v15760_v20 = vmul.f32 0.0078125, %v1789_v62  ;;  %v1822_v51 = vsub.f32 %v15628_v3, %v15736_v61  ;;  %v1826_v36 = vsub.f32 %v15640_v57, %v15736_v61 }
 0x4fb   :  { %v1922_v13 = vadd.f32 %v1862_v8, %v1858_v5  ;;  %v1874_v24 = vmul.f32 %v1810_v14, %v1810_v14  ;;  %v1830_v31 = vsub.f32 %v15652_v30, %v15736_v61  ;;  %v1804_v49 = vsub.f32 %v15570_v48, %v15744_v32 }
 0x4fc   :  { %v1860_v28 = vmul.f32 %v1796_v2, %v1796_v2  ;;  %v1864_v60 = vmul.f32 %v1800_v52, %v1800_v52  ;;  %v1834_v33 = vsub.f32 %v15664_v7, %v15736_v61  ;;  %v1838_v42 = vsub.f32 %v15676_v58, %v15736_v61 }
 0x4fd   :  { %v1923_v35 = vadd.f32 %v1922_v13, %v1866_v56  ;;  %v1878_v44 = vmul.f32 %v1814_v18, %v1814_v18  ;;  %v1842_v8 = vsub.f32 %v15688_v16, %v15736_v61  ;;  %v1846_v59 = vsub.f32 %v15700_v17, %v15736_v61 }
 0x4fe   :  { %v1850_v47 = vsub.f32 %v15712_v22, %v15736_v61  ;;  %v1808_v62 = vsub.f32 %v15582_v50, %v15744_v32  ;;  %v1854_v14 = vsub.f32 %v15724_v26, %v15736_v61  ;;  %v1882_v56 = vmul.f32 %v1818_v1, %v1818_v1 }
 0x4ff   :  { %v1924_v6 = vadd.f32 %v1923_v35, %v1870_v39  ;;  %v1886_v13 = vmul.f32 %v1822_v51, %v1822_v51  ;;  %v1890_v52 = vmul.f32 %v1826_v36, %v1826_v36  ;;  %v1812_v18 = vsub.f32 %v15594_v25, %v15744_v32  ;;  %v15844_v25 = vld [vmem:[#allocation16 + $0x400] sm:$0xff] }
 0x500   :  { %v1868_v39 = vmul.f32 %v1804_v49, %v1804_v49  ;;  %v1964_v35 = vadd.f32 %v1864_v60, %v1860_v28  ;;  %v1902_v48 = vmul.f32 %v1838_v42, %v1838_v42  ;;  %v1906_v11 = vmul.f32 %v1842_v8, %v1842_v8 }
 0x501   :  { %v1925_v5 = vadd.f32 %v1924_v6, %v1874_v24  ;;  %v1894_v24 = vmul.f32 %v1830_v31, %v1830_v31  ;;  %v1898_v6 = vmul.f32 %v1834_v33, %v1834_v33  ;;  %v1816_v50 = vsub.f32 %v15606_v43, %v15744_v32 }
 0x502   :  { %v1872_v22 = vmul.f32 %v1808_v62, %v1808_v62  ;;  %v1965_v17 = vadd.f32 %v1964_v35, %v1868_v39  ;;  %v1910_v26 = vmul.f32 %v1846_v59, %v1846_v59  ;;  %v1795_v51 = vsub.f32 %v15548_v15, %v15758_v29 }
 0x503   :  { %v1926_v2 = vadd.f32 %v1925_v5, %v1878_v44  ;;  %v1799_v36 = vsub.f32 %v15560_v0, %v15758_v29  ;;  %v1914_v49 = vmul.f32 %v1850_v47, %v1850_v47  ;;  %v1820_v31 = vsub.f32 %v15618_v10, %v15744_v32  ;;  %v19511_v10 = vld [vmem:[#allocation43_spill] sm:$0xff] }
 0x504   :  { %v1876_v28 = vmul.f32 %v1812_v18, %v1812_v18  ;;  %v1966_v60 = vadd.f32 %v1965_v17, %v1872_v22  ;;  %v1918_v33 = vmul.f32 %v1854_v14, %v1854_v14  ;;  %v1824_v44 = vsub.f32 %v15630_v27, %v15744_v32 }
 0x505   :  { %v1927_v34 = vadd.f32 %v1926_v2, %v1882_v56  ;;  %v1832_v5 = vsub.f32 %v15654_v38, %v15744_v32  ;;  %v1836_v8 = vsub.f32 %v15666_v19, %v15744_v32  ;;  %v1880_v59 = vmul.f32 %v1816_v50, %v1816_v50 }
 0x506   :  { %v1967_v47 = vadd.f32 %v1966_v60, %v1876_v28  ;;  %v1803_v22 = vsub.f32 %v15574_v63, %v15758_v29  ;;  %v1859_v17 = vmul.f32 %v1795_v51, %v1795_v51  ;;  %v1863_v14 = vmul.f32 %v1799_v36, %v1799_v36 }
 0x507   :  { %v1928_v1 = vadd.f32 %v1927_v34, %v1886_v13  ;;  %v1828_v34 = vsub.f32 %v15642_v46, %v15744_v32  ;;  %v1840_v56 = vsub.f32 %v15678_v45, %v15744_v32  ;;  %v1844_v13 = vsub.f32 %v15690_v55, %v15744_v32  ;;  %v19500_v45 = vld [vmem:[#allocation48_spill] sm:$0xff] }
 0x508   :  { %v1884_v2 = vmul.f32 %v1820_v31, %v1820_v31  ;;  %v1848_v39 = vsub.f32 %v15702_v53, %v15744_v32  ;;  %v1852_v50 = vsub.f32 %v15714_v12, %v15744_v32  ;;  %v1807_v35 = vsub.f32 %v15586_v9, %v15758_v29  ;;  %v19499_v31 = vld [vmem:[#allocation45_spill] sm:$0xff] }
 0x509   :  { %v1929_v42 = vadd.f32 %v1928_v1, %v1890_v52  ;;  %v1968_v52 = vadd.f32 %v1967_v47, %v1880_v59  ;;  %v1888_v51 = vmul.f32 %v1824_v44, %v1824_v44  ;;  %v1892_v36 = vmul.f32 %v1828_v34, %v1828_v34 }
 0x50a   :  { %v1943_v59 = vadd.f32 %v1863_v14, %v1859_v17  ;;  %v1896_v47 = vmul.f32 %v1832_v5, %v1832_v5  ;;  %v1904_v53 = vmul.f32 %v1840_v56, %v1840_v56  ;;  %v1815_v19 = vsub.f32 %v19500_v45, %v15758_v29  ;;  %v19502_v14 = vld [vmem:[#allocation37_spill] sm:$0xff]  ;;  %v19503_v56 = vld [vmem:[#allocation39_spill] sm:$0xff] }
 0x50b   :  { %v1930_v62 = vadd.f32 %v1929_v42, %v1894_v24  ;;  %v19498_v24 = vld [vmem:[#allocation81_spill] sm:$0xff]  ;;  %v1969_v28 = vadd.f32 %v1968_v52, %v1884_v2  ;;  %v1811_v42 = vsub.f32 %v19499_v31, %v15758_v29  ;;  %v1871_v38 = vmul.f32 %v1807_v35, %v1807_v35  ;;  %v19501_v52 = vld [vmem:[#allocation51_spill] sm:$0xff] }
 0x50c   :  { %v1856_v1 = vsub.f32 %v19498_v24, %v15744_v32  ;;  %v1908_v24 = vmul.f32 %v1844_v13, %v1844_v13  ;;  %v1912_v44 = vmul.f32 %v1848_v39, %v1848_v39  ;;  %v1916_v34 = vmul.f32 %v1852_v50, %v1852_v50  ;;  %v19504_v13 = vld [vmem:[#allocation54_spill] sm:$0xff] }
 0x50d   :  { %v1931_v18 = vadd.f32 %v1930_v62, %v1898_v6  ;;  %v1867_v6 = vmul.f32 %v1803_v22, %v1803_v22  ;;  %v1900_v62 = vmul.f32 %v1836_v8, %v1836_v8  ;;  %v1970_v55 = vadd.f32 %v1969_v28, %v1888_v51 }
 0x50e   :  { %v1875_v22 = vmul.f32 %v1811_v42, %v1811_v42  ;;  %v1920_v5 = vmul.f32 %v1856_v1, %v1856_v1  ;;  %v1801_v51 = vsub.f32 %v19503_v56, %v15760_v20  ;;  %v1823_v39 = vsub.f32 %v19504_v13, %v15758_v29  ;;  %v19507_v1 = vld [vmem:[#allocation63_spill] sm:$0xff]  ;;  %v15850_v56 = vld [vmem:[#allocation16 + $0x408] sm:$0xff] }
 0x50f   :  { %v1932_v60 = vadd.f32 %v1931_v18, %v1902_v48  ;;  %v1944_v46 = vadd.f32 %v1943_v59, %v1867_v6  ;;  %v1971_v2 = vadd.f32 %v1970_v55, %v1892_v36  ;;  %v1819_v18 = vsub.f32 %v19501_v52, %v15758_v29 }
 0x510   :  { %v1879_v50 = vmul.f32 %v1815_v19, %v1815_v19  ;;  %v1835_v28 = vsub.f32 %v19507_v1, %v15758_v29  ;;  %v19509_v19 = vld [vmem:[#allocation66_spill] sm:$0xff]  ;;  %v1809_v43 = vsub.f32 %v19511_v10, %v15760_v20 }
 0x511   :  { %v1933_v12 = vadd.f32 %v1932_v60, %v1906_v11  ;;  %v1945_v17 = vadd.f32 %v1944_v46, %v1871_v38  ;;  %v1972_v8 = vadd.f32 %v1971_v2, %v1896_v47  ;;  %v1797_v11 = vsub.f32 %v19502_v14, %v15760_v20  ;;  %v19506_v46 = vld [vmem:[#allocation60_spill] sm:$0xff]  ;;  %v15852_v10 = vld [vmem:[#allocation16 + $0x428] sm:$0xff] }
 0x512   :  { %v1831_v38 = vsub.f32 %v19506_v46, %v15758_v29  ;;  %v1883_v42 = vmul.f32 %v1819_v18, %v1819_v18  ;;  %v1839_v2 = vsub.f32 %v19509_v19, %v15758_v29  ;;  %v2441_v18 = vld [vmem:[#allocation16 + $0x3e8] sm:$0xff]  ;;  %19514 = vst [vmem:[#allocation45_spill] sm:$0xff] %v15852_v10 }
 0x513   :  { %v1934_v48 = vadd.f32 %v1933_v12, %v1910_v26  ;;  %v1946_v55 = vadd.f32 %v1945_v17, %v1875_v22  ;;  %v1973_v12 = vadd.f32 %v1972_v8, %v1900_v62  ;;  %v19505_v26 = vld [vmem:[#allocation57_spill] sm:$0xff]  ;;  %v1861_v62 = vmul.f32 %v1797_v11, %v1797_v11  ;;  %v19510_v22 = vld [vmem:[#allocation70_spill] sm:$0xff] }
 0x514   :  { %v1827_v36 = vsub.f32 %v19505_v26, %v15758_v29  ;;  %v1843_v17 = vsub.f32 %v19510_v22, %v15758_v29  ;;  %v1887_v8 = vmul.f32 %v1823_v39, %v1823_v39  ;;  %v15846_v11 = vld [vmem:[#allocation16 + $0x420] sm:$0xff] }
 0x515   :  { %v1935_v35 = vadd.f32 %v1934_v48, %v1914_v49  ;;  %v1947_v6 = vadd.f32 %v1946_v55, %v1879_v50  ;;  %v19508_v49 = vld [vmem:[#allocation41_spill] sm:$0xff]  ;;  %v1974_v47 = vadd.f32 %v1973_v12, %v1904_v53  ;;  %v1865_v48 = vmul.f32 %v1801_v51, %v1801_v51  ;;  %v19512_v53 = vld [vmem:[#allocation46_spill] sm:$0xff] }
 0x516   :  { %v1805_v59 = vsub.f32 %v19508_v49, %v15760_v20  ;;  %v1891_v50 = vmul.f32 %v1827_v36, %v1827_v36  ;;  %v1895_v55 = vmul.f32 %v1831_v38, %v1831_v38  ;;  %v1813_v12 = vsub.f32 %v19512_v53, %v15760_v20  ;;  %v19513_v39 = vld [vmem:[#allocation49_spill] sm:$0xff] }
 0x517   :  { %v1936_v60 = vadd.f32 %v1935_v35, %v1918_v33  ;;  %v1948_v27 = vadd.f32 %v1947_v6, %v1883_v42  ;;  %v2437_v33 = vld [vmem:[#allocation16 + $0x3c8] sm:$0xff]  ;;  %v1975_v35 = vadd.f32 %v1974_v47, %v1908_v24  ;;  %v1817_v42 = vsub.f32 %v19513_v39, %v15760_v20  ;;  %v19523_v39 = vld [vmem:[#allocation67_spill] sm:$0xff] }
 0x518   :  { %v1869_v6 = vmul.f32 %v1805_v59, %v1805_v59  ;;  %v1985_v36 = vadd.f32 %v1865_v48, %v1861_v62  ;;  %v11677_v38 = vcombine.low %v2437_v33, %v2441_v18  ;;  %v11678_v47 = vcombine.high %v2437_v33, %v2441_v18 }
 0x519   :  { %v1937_v51 = vrot.slane %v1936_v60, 4  ;;  %v1949_v49 = vadd.f32 %v1948_v27, %v1887_v8  ;;  %v1976_v24 = vadd.f32 %v1975_v35, %v1912_v44  ;;  %v1873_v53 = vmul.f32 %v1809_v43, %v1809_v43 }
 0x51a   :  { %v11684_v27 = vcombine.high %v15844_v25, %v15846_v11  ;;  %v1986_v22 = vadd.f32 %v1985_v36, %v1869_v6  ;;  %4142 = vmatprep.subr.bf16.mxu1 %v11678_v47  ;;  %v11686_v44 = vcombine.high %v15850_v56, %v15852_v10  ;;  %v1899_v48 = vmul.f32 %v1835_v28, %v1835_v28  ;;  %v19517_v47 = vld [vmem:[#allocation55_spill] sm:$0xff] }
 0x51b   :  { %v1950_v14 = vadd.f32 %v1949_v49, %v1891_v50  ;;  %v1977_v8 = vadd.f32 %v1976_v24, %v1916_v34  ;;  %v1938_v62 = vadd.f32 %v1937_v51, %v1936_v60  ;;  %4143 = vmatpush1.bf16.msra.mxu1 %v11677_v38  ;;  %v19515_v49 = vld [vmem:[#allocation52_spill] sm:$0xff]  ;;  %v1877_v35 = vmul.f32 %v1813_v12, %v1813_v12  ;;  %v19516_v34 = vld [vmem:[#allocation74_spill] sm:$0xff] }
 0x51c   :  { %3999 = vmatprep.subr.bf16.mxu0 %v11684_v27  ;;  %v1821_v18 = vsub.f32 %v19515_v49, %v15760_v20  ;;  %v1987_v50 = vadd.f32 %v1986_v22, %v1873_v53  ;;  %4225 = vmatprep.subr.bf16.mxu1 %v11686_v44  ;;  %v1847_v6 = vsub.f32 %v19516_v34, %v15758_v29  ;;  %v19519_v12 = vld [vmem:[#allocation58_spill] sm:$0xff] }
 0x51d   :  { %v1951_v33 = vadd.f32 %v1950_v14, %v1895_v55  ;;  %v1978_v43 = vadd.f32 %v1977_v8, %v1920_v5  ;;  %v1903_v24 = vmul.f32 %v1839_v2, %v1839_v2  ;;  %v1825_v59 = vsub.f32 %v19517_v47, %v15760_v20  ;;  %v19518_v55 = vld [vmem:[#allocation78_spill] sm:$0xff] }
 0x51e   :  { %v1881_v60 = vmul.f32 %v1817_v42, %v1817_v42  ;;  %v1988_v28 = vadd.f32 %v1987_v50, %v1877_v35  ;;  %v1939_v14 = vrot.slane %v1938_v62, 2  ;;  %v1851_v5 = vsub.f32 %v19518_v55, %v15758_v29  ;;  %v19520_v8 = vld [vmem:[#allocation82_spill] sm:$0xff] }
 0x51f   :  { %v1952_v36 = vadd.f32 %v1951_v33, %v1899_v48  ;;  %v1907_v51 = vmul.f32 %v1843_v17, %v1843_v17  ;;  %v1829_v22 = vsub.f32 %v19519_v12, %v15760_v20  ;;  %v1885_v53 = vmul.f32 %v1821_v18, %v1821_v18  ;;  %v19521_v33 = vld [vmem:[#allocation61_spill] sm:$0xff] }
 0x520   :  { %v1989_v27 = vadd.f32 %v1988_v28, %v1881_v60  ;;  %v1855_v2 = vsub.f32 %v19520_v8, %v15758_v29  ;;  %v1911_v44 = vmul.f32 %v1847_v6, %v1847_v6  ;;  %v1833_v42 = vsub.f32 %v19521_v33, %v15760_v20 }
 0x521   :  { %v1953_v38 = vadd.f32 %v1952_v36, %v1903_v24  ;;  %v1889_v35 = vmul.f32 %v1825_v59, %v1825_v59  ;;  %v1940_v16 = vadd.f32 %v1939_v14, %v1938_v62  ;;  %v1915_v47 = vmul.f32 %v1851_v5, %v1851_v5  ;;  %v19522_v24 = vld [vmem:[#allocation64_spill] sm:$0xff]  ;;  %v19524_v62 = vld [vmem:[#allocation71_spill] sm:$0xff] }
 0x522   :  { %v1990_v50 = vadd.f32 %v1989_v27, %v1885_v53  ;;  %v1979_v17 = vrot.slane %v1978_v43, 4  ;;  %v1837_v36 = vsub.f32 %v19522_v24, %v15760_v20  ;;  %v1893_v12 = vmul.f32 %v1829_v22, %v1829_v22 }
 0x523   :  { %v1954_v48 = vadd.f32 %v1953_v38, %v1907_v51  ;;  %v1919_v60 = vmul.f32 %v1855_v2, %v1855_v2  ;;  %v1841_v6 = vsub.f32 %v19523_v39, %v15760_v20  ;;  %v1897_v51 = vmul.f32 %v1833_v42, %v1833_v42  ;;  %v19526_v42 = vld [vmem:[#allocation79_spill] sm:$0xff] }
 0x524   :  { %v1991_v18 = vadd.f32 %v1990_v50, %v1889_v35  ;;  %v1941_v10 = vrot.slane %v1940_v16, 1  ;;  %v1980_v59 = vadd.f32 %v1979_v17, %v1978_v43  ;;  %v1845_v14 = vsub.f32 %v19524_v62, %v15760_v20  ;;  %v19527_v17 = vld [vmem:[#allocation83_spill] sm:$0xff] }
 0x525   :  { %v1955_v49 = vadd.f32 %v1954_v48, %v1911_v44  ;;  %v1901_v5 = vmul.f32 %v1837_v36, %v1837_v36  ;;  %v19525_v44 = vld [vmem:[#allocation75_spill] sm:$0xff]  ;;  %v1905_v48 = vmul.f32 %v1841_v6, %v1841_v6 }
 0x526   :  { %v1992_v38 = vadd.f32 %v1991_v18, %v1893_v12  ;;  %v1849_v22 = vsub.f32 %v19525_v44, %v15760_v20  ;;  %v1981_v35 = vrot.slane %v1980_v59, 2  ;;  %v1853_v12 = vsub.f32 %v19526_v42, %v15760_v20 }
 0x527   :  { %v1956_v28 = vadd.f32 %v1955_v49, %v1915_v47  ;;  %v1942_v49 = vadd.f32 %v1941_v10, %v1940_v16  ;;  %v1909_v50 = vmul.f32 %v1845_v14, %v1845_v14 }
 0x528   :  { %v1993_v53 = vadd.f32 %v1992_v38, %v1897_v51  ;;  %v1913_v36 = vmul.f32 %v1849_v22, %v1849_v22  ;;  %v1982_v62 = vadd.f32 %v1981_v35, %v1980_v59  ;;  %v1917_v44 = vmul.f32 %v1853_v12, %v1853_v12 }
 0x529   :  { %v1957_v33 = vadd.f32 %v1956_v28, %v1919_v60  ;;  %v1857_v60 = vsub.f32 %v19527_v17, %v15760_v20  ;;  %v2006_v51 = vmul.f32 0.0078125, %v1942_v49 }
 0x52a   :  { %v1994_v2 = vadd.f32 %v1993_v53, %v1901_v5 }
 0x52b   :  { %v1958_v27 = vrot.slane %v1957_v33, 4  ;;  %v1921_v10 = vmul.f32 %v1857_v60, %v1857_v60 }
 0x52c   :  { %v1995_v18 = vadd.f32 %v1994_v2, %v1905_v48 }
 0x52d   :  { %v1959_v47 = vadd.f32 %v1958_v27, %v1957_v33  ;;  %v2010_v33 = vadd.f32 1e-05, %v2006_v51  ;;  %v1983_v27 = vrot.slane %v1982_v62, 1  ;;  %v15890_v51 = vld [vmem:[#allocation16 + $0x460] sm:$0xff] }
 0x52e   :  { %v1996_v28 = vadd.f32 %v1995_v18, %v1909_v50  ;;  %19529 = vst [vmem:[#allocation51_spill] sm:$0xff] %v15890_v51 }
 0x52f   :  { %v1960_v43 = vrot.slane %v1959_v47, 2  ;;  %13987 = vrsqrt.f32 %v2010_v33  ;;  %v1984_v39 = vadd.f32 %v1983_v27, %v1982_v62  ;;  %v15892_v62 = vld [vmem:[#allocation16 + $0x448] sm:$0xff]  ;;  %v15907_v27 = vld [vmem:[#allocation16 + $0x4e0] sm:$0xff] }
 0x530   :  { %v1997_v6 = vadd.f32 %v1996_v28, %v1913_v36  ;;  %v15888_v28 = vld [vmem:[#allocation16 + $0x440] sm:$0xff]  ;;  %19530 = vst [vmem:[#allocation54_spill] sm:$0xff] %v15892_v62 }
 0x531   :  { %v1961_v38 = vadd.f32 %v1960_v43, %v1959_v47  ;;  %v2008_v49 = vmul.f32 0.0078125, %v1984_v39  ;;  %19528 = vst [vmem:[#allocation48_spill] sm:$0xff] %v15888_v28  ;;  %v15896_v39 = vld [vmem:[#allocation16 + $0x480] sm:$0xff] }
 0x532   :  { %v1998_v16 = vadd.f32 %v1997_v6, %v1917_v44  ;;  %v15900_v6 = vld [vmem:[#allocation16 + $0x488] sm:$0xff]  ;;  %v15954_v62 = vld [vmem:[#allocation16 + $0x580] sm:$0xff] }
 0x533   :  { %v1962_v5 = vrot.slane %v1961_v38, 1  ;;  %v2012_v35 = vadd.f32 1e-05, %v2008_v49  ;;  %19532 = vst [vmem:[#allocation60_spill] sm:$0xff] %v15900_v6  ;;  %19548 = vst [vmem:[#allocation91_spill] sm:$0xff] %v15954_v62  ;;  %v15976_v28 = vld [vmem:[#allocation16 + $0x5c0] sm:$0xff] }
 0x534   :  { %v1999_v42 = vadd.f32 %v1998_v16, %v1921_v10  ;;  %v15904_v10 = vld [vmem:[#allocation16 + $0x4c0] sm:$0xff]  ;;  %v19534_v16 = vld [vmem:[#allocation34_spill] sm:$0xff]  ;;  %19552 = vst [vmem:[#allocation95_spill] sm:$0xff] %v15976_v28 }
 0x535   :  { %v1963_v53 = vadd.f32 %v1962_v5, %v1961_v38  ;;  %v15902_v5 = vld [vmem:[#allocation16 + $0x4a8] sm:$0xff]  ;;  %v16015_v6 = vld [vmem:[#allocation16 + $0x660] sm:$0xff] }
 0x536   :  { %v2000_v48 = vrot.slane %v1999_v42, 4  ;;  %19533 = vst [vmem:[#allocation63_spill] sm:$0xff] %v15902_v5  ;;  %v15964_v5 = vld [vmem:[#allocation16 + $0x588] sm:$0xff]  ;;  %19561 = vst [vmem:[#allocation104_spill] sm:$0xff] %v16015_v6 }
 0x537   :  { %v2007_v14 = vmul.f32 0.0078125, %v1963_v53  ;;  %19550 = vst [vmem:[#allocation93_spill] sm:$0xff] %v15964_v5 }
 0x538   :  { %v2001_v24 = vadd.f32 %v2000_v48, %v1999_v42  ;;  %v15894_v42 = vld [vmem:[#allocation16 + $0x468] sm:$0xff] }
 0x539   :  { %v2011_v2 = vadd.f32 1e-05, %v2007_v14  ;;  %v13988_v50 = vpop.eup %13987  ;;  %19531 = vst [vmem:[#allocation57_spill] sm:$0xff] %v15894_v42  ;;  %v15909_v14 = vld [vmem:[#allocation16 + $0x4c8] sm:$0xff] }
 0x53a   :  { %v2002_v22 = vrot.slane %v2001_v24, 2  ;;  %19535 = vst [vmem:[#allocation66_spill] sm:$0xff] %v15909_v14  ;;  %v15911_v48 = vld [vmem:[#allocation16 + $0x4e8] sm:$0xff] }
 0x53b   :  { %13989 = vrsqrt.f32 %v2011_v2  ;;  %19536 = vst [vmem:[#allocation74_spill] sm:$0xff] %v15911_v48  ;;  %v19537_v2 = vld [vmem:[#allocation32_spill] sm:$0xff]  ;;  %v15952_v42 = vld [vmem:[#allocation16 + $0x568] sm:$0xff] }
 0x53c   :  { %v2003_v47 = vadd.f32 %v2002_v22, %v2001_v24  ;;  %13991 = vrsqrt.f32 %v2012_v35  ;;  %v15898_v24 = vld [vmem:[#allocation16 + $0x4a0] sm:$0xff]  ;;  %v15914_v22 = vsub.s32 2, %v19537_v2  ;;  %v15917_v49 = vsub.s32 3, %v19537_v2  ;;  %19547 = vst [vmem:[#allocation90_spill] sm:$0xff] %v15952_v42  ;;  %v15980_v48 = vld [vmem:[#allocation16 + $0x5c8] sm:$0xff] }
 0x53d   :  { %v15923_v35 = vld [vmem:[#allocation16 + $0x500] sm:$0xff]  ;;  %19554 = vst [vmem:[#allocation97_spill] sm:$0xff] %v15980_v48  ;;  %v16011_v42 = vld [vmem:[#allocation16 + $0x628] sm:$0xff]  ;;  %v19574_v48 = vld [vmem:[#allocation39_spill] sm:$0xff] }
 0x53e   :  { %v2004_v59 = vrot.slane %v2003_v47, 1  ;;  %19538 = vst [vmem:[#allocation78_spill] sm:$0xff] %v15914_v22  ;;  %19539 = vst [vmem:[#allocation82_spill] sm:$0xff] %v15917_v49  ;;  %v15991_v2 = vld [vmem:[#allocation16 + $0x600] sm:$0xff] }
 0x53f   :  { %19540 = vst [vmem:[#allocation83_spill] sm:$0xff] %v15923_v35  ;;  %19556 = vst [vmem:[#allocation99_spill] sm:$0xff] %v15991_v2 }
 0x540   :  { %v2005_v12 = vadd.f32 %v2004_v59, %v2003_v47  ;;  %v15940_v47 = vld [vmem:[#allocation16 + $0x560] sm:$0xff]  ;;  %v1142_v59 = vld [vmem:[#allocation13] sm:$0xf]  ;;  %19559 = vst [vmem:[#allocation102_spill] sm:$0xff] %v16011_v42 }
 0x541   :  { %19545 = vst [vmem:[#allocation88_spill] sm:$0xff] %v15940_v47  ;;  %v16003_v47 = vld [vmem:[#allocation16 + $0x608] sm:$0xff] }
 0x542   :  { %v2009_v18 = vmul.f32 0.0078125, %v2005_v12  ;;  %v15925_v12 = vld [vmem:[#allocation16 + $0x520] sm:$0xff]  ;;  %19558 = vst [vmem:[#allocation101_spill] sm:$0xff] %v16003_v47 }
 0x543   :  { %19541 = vst [vmem:[#allocation84_spill] sm:$0xff] %v15925_v12  ;;  %v15989_v12 = vld [vmem:[#allocation16 + $0x5e8] sm:$0xff] }
 0x544   :  { %v2013_v60 = vadd.f32 1e-05, %v2009_v18  ;;  %19555 = vst [vmem:[#allocation98_spill] sm:$0xff] %v15989_v12 }
 0x545   :  { %v13990_v44 = vpop.eup %13989 }
 0x546   :  { %v2022_v43 = vcombine.low %v13988_v50, %v13990_v44  ;;  %13993 = vrsqrt.f32 %v2013_v60  ;;  %v13992_v36 = vpop.eup %13991  ;;  %v15927_v50 = vld [vmem:[#allocation16 + $0x508] sm:$0xff]  ;;  %v15962_v44 = vld [vmem:[#allocation16 + $0x5a0] sm:$0xff] }
 0x547   :  { %19542 = vst [vmem:[#allocation85_spill] sm:$0xff] %v15927_v50  ;;  %v15950_v60 = vld [vmem:[#allocation16 + $0x548] sm:$0xff]  ;;  %19549 = vst [vmem:[#allocation92_spill] sm:$0xff] %v15962_v44  ;;  %v19579_v44 = vld [vmem:[#allocation40_spill] sm:$0xff] }
 0x548   :  { %v2030_v33 = vrot.slane %v2022_v43, %v19534_v16  ;;  %19546 = vst [vmem:[#allocation89_spill] sm:$0xff] %v15950_v60  ;;  %v15966_v43 = vld [vmem:[#allocation16 + $0x5a8] sm:$0xff] }
 0x549   :  { %19551 = vst [vmem:[#allocation94_spill] sm:$0xff] %v15966_v43 }
 0x550   :  { %v13994_v38 = vpop.eup %13993 }
 0x551   :  { %v2023_v53 = vcombine.low %v13992_v36, %v13994_v38  ;;  %v15936_v36 = vld [vmem:[#allocation16 + $0x528] sm:$0xff]  ;;  %v15938_v38 = vld [vmem:[#allocation16 + $0x540] sm:$0xff] }
 0x552   :  { %19543 = vst [vmem:[#allocation86_spill] sm:$0xff] %v15936_v36  ;;  %19544 = vst [vmem:[#allocation87_spill] sm:$0xff] %v15938_v38  ;;  %v15993_v36 = vld [vmem:[#allocation16 + $0x620] sm:$0xff] }
 0x553   :  { %v2037_v18 = vrot.slane %v2023_v53, %v19534_v16  ;;  %v15978_v53 = vld [vmem:[#allocation16 + $0x5e0] sm:$0xff]  ;;  %19557 = vst [vmem:[#allocation100_spill] sm:$0xff] %v15993_v36 }
 0x554   :  { %19553 = vst [vmem:[#allocation96_spill] sm:$0xff] %v15978_v53  ;;  %v19562_v38 = vld [vmem:[#allocation33_spill] sm:$0xff]  ;;  %v19563_v53 = vld [vmem:[#allocation35_spill] sm:$0xff] }
 0x555   :  { %v2038_v51 = vcombine.low %v2030_v33, %v2037_v18 }
 0x557   :  { %v2045_v14 = vrot.slane %v2038_v51, %v19534_v16  ;;  %v16013_v51 = vld [vmem:[#allocation16 + $0x640] sm:$0xff] }
 0x558   :  { %19560 = vst [vmem:[#allocation103_spill] sm:$0xff] %v16013_v51 }
 0x559   :  { %v2047_v18 = vmul.f32 %v2045_v14, %v1142_v59 }
 0x55b   :  { %v2052_v50 = vrot.slane %v2047_v18, %v19562_v38  ;;  %v2056_v28 = vrot.slane %v2047_v18, %v19563_v53  ;;  %v16028_v43 = vrot.slane %v2047_v18, %v15914_v22  ;;  %v16031_v5 = vrot.slane %v2047_v18, %v15917_v49 }
 0x55d   :  { %19564 = vst [vmem:[#allocation105_spill] sm:$0xff] %v16028_v43  ;;  %19565 = vst [vmem:[#allocation106_spill] sm:$0xff] %v16031_v5  ;;  %v2069_v36 = vmul.f32 %v2052_v50, %v15736_v61  ;;  %v2070_v2 = vmul.f32 %v2056_v28, %v15758_v29  ;;  %v2071_v18 = vmul.f32 %v16028_v43, %v15744_v32 }
 0x55e   :  { %v2072_v12 = vmul.f32 %v16031_v5, %v15760_v20  ;;  %v2166_v33 = vmul.f32 %v16031_v5, %v19527_v17  ;;  %v2104_v14 = vmul.f32 %v2056_v28, %v15548_v15  ;;  %v2108_v59 = vmul.f32 %v2056_v28, %v15560_v0 }
 0x55f   :  { %v2103_v42 = vmul.f32 %v2052_v50, %v15544_v23  ;;  %v2077_v35 = vcombine.low %v2069_v36, %v2070_v2  ;;  %v2107_v61 = vmul.f32 %v2052_v50, %v15552_v40  ;;  %v2112_v29 = vmul.f32 %v2056_v28, %v15574_v63 }
 0x560   :  { %v2078_v6 = vcombine.low %v2071_v18, %v2072_v12  ;;  %v2116_v32 = vmul.f32 %v2056_v28, %v15586_v9  ;;  %v2111_v51 = vmul.f32 %v2052_v50, %v15568_v54  ;;  %v2115_v20 = vmul.f32 %v2052_v50, %v15580_v37  ;;  %v16107_v12 = vld [vmem:[#allocation16 + $0x648] sm:$0xff]  ;;  %v19570_v18 = vld [vmem:[#allocation72_spill] sm:$0xff] }
 0x561   :  { %v2120_v17 = vmul.f32 %v2056_v28, %v19499_v31  ;;  %v2085_v15 = vrot.slane %v2077_v35, %v19534_v16  ;;  %v2124_v23 = vmul.f32 %v2056_v28, %v19500_v45  ;;  %v16062_v2 = vmul.f32 %v2052_v50, %v15592_v21  ;;  %v19566_v35 = vld [vmem:[#allocation70_spill] sm:$0xff] }
 0x562   :  { %v2092_v0 = vrot.slane %v2078_v6, %v19534_v16  ;;  %v16065_v40 = vmul.f32 %v2052_v50, %v15604_v41  ;;  %v16068_v63 = vmul.f32 %v2056_v28, %v19501_v52  ;;  %v16071_v54 = vmul.f32 %v2056_v28, %v19504_v13  ;;  %v1143_v41 = vld [vmem:[#allocation15] sm:$0xf]  ;;  %19567 = vst [vmem:[#allocation70_spill] sm:$0xff] %v16107_v12 }
 0x563   :  { %v16074_v37 = vmul.f32 %v2052_v50, %v15616_v4  ;;  %v16077_v31 = vmul.f32 %v2052_v50, %v15628_v3  ;;  %v16080_v45 = vmul.f32 %v2056_v28, %v19505_v26  ;;  %v16083_v21 = vmul.f32 %v2056_v28, %v19506_v46 }
 0x564   :  { %v2093_v9 = vcombine.low %v2085_v15, %v2092_v0  ;;  %v16086_v52 = vmul.f32 %v2052_v50, %v15640_v57  ;;  %v16089_v13 = vmul.f32 %v2052_v50, %v15652_v30  ;;  %v16092_v4 = vmul.f32 %v2056_v28, %v19507_v1  ;;  %v16109_v30 = vld [vmem:[#allocation16 + $0x668] sm:$0xff] }
 0x565   :  { %v16095_v6 = vmul.f32 %v2056_v28, %v19509_v19  ;;  %v16099_v26 = vmul.f32 %v2052_v50, %v15664_v7  ;;  %v16102_v46 = vmul.f32 %v2052_v50, %v15676_v58  ;;  %v16105_v57 = vmul.f32 %v2056_v28, %v19566_v35  ;;  %19568 = vst [vmem:[#allocation107_spill] sm:$0xff] %v16109_v30  ;;  %v19569_v19 = vld [vmem:[#allocation68_spill] sm:$0xff] }
 0x566   :  { %v2100_v3 = vrot.slane %v2093_v9, %v19534_v16  ;;  %v16112_v1 = vmul.f32 %v2056_v28, %v19516_v34  ;;  %v16115_v36 = vmul.f32 %v2052_v50, %v19569_v19  ;;  %v16118_v15 = vmul.f32 %v2052_v50, %v19570_v18  ;;  %v19571_v9 = vld [vmem:[#allocation76_spill] sm:$0xff]  ;;  %v19573_v34 = vld [vmem:[#allocation37_spill] sm:$0xff] }
 0x567   :  { %v16121_v7 = vmul.f32 %v2056_v28, %v19518_v55  ;;  %v16124_v0 = vmul.f32 %v2056_v28, %v19520_v8  ;;  %v16127_v35 = vmul.f32 %v2052_v50, %v19571_v9  ;;  %v19572_v16 = vld [vmem:[#allocation80_spill] sm:$0xff]  ;;  %v16134_v19 = vmul.f32 %v16031_v5, %v19573_v34  ;;  %v19576_v8 = vld [vmem:[#allocation38_spill] sm:$0xff]  ;;  %v19577_v9 = vld [vmem:[#allocation41_spill] sm:$0xff] }
 0x568   :  { %v2102_v58 = vsub.f32 %v1143_v41, %v2100_v3  ;;  %v16130_v47 = vmul.f32 %v2052_v50, %v19572_v16  ;;  %v16138_v18 = vmul.f32 %v16031_v5, %v19574_v48  ;;  %v19575_v55 = vld [vmem:[#allocation36_spill] sm:$0xff]  ;;  %v16146_v28 = vmul.f32 %v16028_v43, %v19576_v8 }
 0x569   :  { %v16142_v41 = vmul.f32 %v16028_v43, %v19575_v55  ;;  %v16161_v34 = vmul.f32 %v16031_v5, %v19577_v9  ;;  %v19578_v55 = vld [vmem:[#allocation43_spill] sm:$0xff] }
 0x56a   :  { %v16149_v3 = vrot.slane %v2102_v58, %v19562_v38  ;;  %v16152_v16 = vrot.slane %v2102_v58, %v19563_v53  ;;  %v16155_v50 = vrot.slane %v2102_v58, %v15917_v49  ;;  %v16165_v8 = vmul.f32 %v16031_v5, %v19578_v55  ;;  %v19581_v53 = vld [vmem:[#allocation42_spill] sm:$0xff] }
 0x56b   :  { %v16169_v38 = vmul.f32 %v16028_v43, %v19579_v44  ;;  %v16173_v62 = vmul.f32 %v16028_v43, %v19581_v53  ;;  %v16186_v53 = vrot.slane %v2102_v58, %v15914_v22 }
 0x56c   :  { %v16176_v49 = vadd.f32 %v16155_v50, %v2166_v33  ;;  %v2189_v48 = vadd.f32 %v16152_v16, %v2104_v14  ;;  %v2193_v9 = vadd.f32 %v16152_v16, %v2108_v59  ;;  %v2188_v12 = vadd.f32 %v16149_v3, %v2103_v42 }
 0x56d   :  { %19580 = vst [vmem:[#allocation68_spill] sm:$0xff] %v16169_v38  ;;  %19582 = vst [vmem:[#allocation72_spill] sm:$0xff] %v16173_v62  ;;  %v2192_v55 = vadd.f32 %v16149_v3, %v2107_v61  ;;  %v2197_v30 = vadd.f32 %v16152_v16, %v2112_v29  ;;  %v2201_v44 = vadd.f32 %v16152_v16, %v2116_v32 }
 0x56e   :  { %19583 = vst [vmem:[#allocation76_spill] sm:$0xff] %v16176_v49  ;;  %v2196_v60 = vadd.f32 %v16149_v3, %v2111_v51  ;;  %v2253_v43 = vmax.f32 %v2189_v48, 0.0  ;;  %v2257_v33 = vmax.f32 %v2193_v9, 0.0  ;;  %v2252_v49 = vmax.f32 %v2188_v12, 0.0 }
 0x56f   :  { %v2256_v5 = vmax.f32 %v2192_v55, 0.0  ;;  %v2261_v14 = vmax.f32 %v2197_v30, 0.0  ;;  %v2265_v62 = vmax.f32 %v2201_v44, 0.0  ;;  %v2200_v59 = vadd.f32 %v16149_v3, %v2115_v20  ;;  %v19588_v44 = vld [vmem:[#allocation51_spill] sm:$0xff] }
 0x570   :  { %v16189_v42 = vpack.c.bf16 %v2257_v33, %v2253_v43  ;;  %v2260_v61 = vmax.f32 %v2196_v60, 0.0  ;;  %v2205_v29 = vadd.f32 %v16152_v16, %v2120_v17  ;;  %v2209_v32 = vadd.f32 %v16152_v16, %v2124_v23 }
 0x571   :  { %v16193_v38 = vpack.c.bf16 %v2256_v5, %v2252_v49  ;;  %v16195_v51 = vpack.c.bf16 %v2265_v62, %v2261_v14  ;;  %v2264_v58 = vmax.f32 %v2200_v59, 0.0  ;;  %v2204_v12 = vadd.f32 %v16149_v3, %v16062_v2  ;;  %v19590_v14 = vld [vmem:[#allocation54_spill] sm:$0xff]  ;;  %v19591_v59 = vld [vmem:[#allocation57_spill] sm:$0xff] }
 0x572   :  { %3918 = vmatprep.mubr.bf16.mxu0 %v16189_v42  ;;  %4144 = vmatprep.mubr.bf16.mxu1 %v16189_v42  ;;  %v2269_v20 = vmax.f32 %v2205_v29, 0.0  ;;  %v2273_v43 = vmax.f32 %v2209_v32, 0.0  ;;  %v2208_v60 = vadd.f32 %v16149_v3, %v16065_v40  ;;  %v2213_v17 = vadd.f32 %v16152_v16, %v16068_v63  ;;  %v19585_v40 = vld [vmem:[#allocation45_spill] sm:$0xff] }
 0x573   :  { %3919 = vmatmul.mubr.bf16.vlgmr.msra.gmra.mrb[48].mxu0 %v16193_v38  ;;  %4145 = vmatmul.mubr.bf16.vlgmr.msra.gmra.mrb[64].mxu1 %v16193_v38  ;;  %v16207_v62 = vpack.c.bf16 %v2264_v58, %v2260_v61  ;;  %v2268_v5 = vmax.f32 %v2204_v12, 0.0  ;;  %v2217_v49 = vadd.f32 %v16152_v16, %v16071_v54  ;;  %v2212_v23 = vadd.f32 %v16149_v3, %v16074_v37 }
 0x574   :  { %v19584_v2 = vcombine.low %v15844_v25, %v15846_v11  ;;  %v19586_v63 = vcombine.low %v15850_v56, %v19585_v40  ;;  %v16219_v30 = vpack.c.bf16 %v2273_v43, %v2269_v20  ;;  %v2272_v48 = vmax.f32 %v2208_v60, 0.0  ;;  %3928 = vmatprep.mubr.bf16.mxu0 %v16195_v51  ;;  %4154 = vmatprep.mubr.bf16.mxu1 %v16195_v51  ;;  %v19587_v11 = vld [vmem:[#allocation48_spill] sm:$0xff] }
 0x575   :  { %v2277_v9 = vmax.f32 %v2213_v17, 0.0  ;;  %v2216_v55 = vadd.f32 %v16149_v3, %v16077_v31  ;;  %v2281_v54 = vmax.f32 %v2217_v49, 0.0  ;;  %v2276_v37 = vmax.f32 %v2212_v23, 0.0  ;;  %v19597_v23 = vld [vmem:[#allocation63_spill] sm:$0xff] }
 0x576   :  { %4000 = vmatpush1.bf16.msra.mxu0 %v19584_v2  ;;  %4226 = vmatpush1.bf16.msra.mxu1 %v19586_v63  ;;  %v2221_v25 = vadd.f32 %v16152_v16, %v16080_v45  ;;  %v2225_v56 = vadd.f32 %v16152_v16, %v16083_v21  ;;  %v19589_v33 = vcombine.high %v19587_v11, %v19588_v44 }
 0x577   :  { %v19592_v61 = vcombine.high %v19590_v14, %v19591_v59  ;;  %v16235_v31 = vpack.c.bf16 %v2272_v48, %v2268_v5  ;;  %v2280_v29 = vmax.f32 %v2216_v55, 0.0  ;;  %v2220_v32 = vadd.f32 %v16149_v3, %v16086_v52 }
 0x578   :  { %4001 = vmatprep.subr.bf16.mxu0 %v19589_v33  ;;  %v2224_v45 = vadd.f32 %v16149_v3, %v16089_v13  ;;  %v16241_v58 = vpack.c.bf16 %v2281_v54, %v2277_v9  ;;  %v2285_v21 = vmax.f32 %v2221_v25, 0.0  ;;  %v2289_v12 = vmax.f32 %v2225_v56, 0.0 }
 0x579   :  { %4227 = vmatprep.subr.bf16.mxu1 %v19592_v61  ;;  %v2229_v20 = vadd.f32 %v16152_v16, %v16092_v4  ;;  %v19593_v43 = vcombine.low %v19587_v11, %v19588_v44  ;;  %v19594_v60 = vcombine.low %v19590_v14, %v19591_v59  ;;  %v16251_v17 = vpack.c.bf16 %v2280_v29, %v2276_v37  ;;  %v19596_v4 = vld [vmem:[#allocation60_spill] sm:$0xff]  ;;  %v19602_v61 = vld [vmem:[#allocation66_spill] sm:$0xff] }
 0x57a   :  { %v2284_v52 = vmax.f32 %v2220_v32, 0.0  ;;  %v2288_v5 = vmax.f32 %v2224_v45, 0.0  ;;  %v2233_v13 = vadd.f32 %v16152_v16, %v16095_v6  ;;  %v19595_v49 = vcombine.high %v15896_v39, %v15898_v24  ;;  %v19603_v29 = vld [vmem:[#allocation74_spill] sm:$0xff] }
 0x57b   :  { %4002 = vmatpush1.bf16.msra.mxu0 %v19593_v43  ;;  %4228 = vmatpush1.bf16.msra.mxu1 %v19594_v60  ;;  %v19598_v2 = vcombine.high %v19596_v4, %v19597_v23  ;;  %v16261_v40 = vpack.c.bf16 %v2289_v12, %v2285_v21  ;;  %v2293_v63 = vmax.f32 %v2229_v20, 0.0  ;;  %v2228_v48 = vadd.f32 %v16149_v3, %v16099_v26 }
 0x57c   :  { %4003 = vmatprep.subr.bf16.mxu0 %v19595_v49  ;;  %v2232_v9 = vadd.f32 %v16149_v3, %v16102_v46  ;;  %v16267_v55 = vpack.c.bf16 %v2288_v5, %v2284_v52  ;;  %v2297_v6 = vmax.f32 %v2233_v13, 0.0  ;;  %v2237_v54 = vadd.f32 %v16152_v16, %v16105_v57  ;;  %3929 = vmatmul.mubr.bf16.gmra.mrb[52].mxu0 %v16207_v62  ;;  %v19608_v13 = vld [vmem:[#allocation84_spill] sm:$0xff] }
 0x57d   :  { %4229 = vmatprep.subr.bf16.mxu1 %v19598_v2  ;;  %v2241_v37 = vadd.f32 %v16152_v16, %v16112_v1  ;;  %4155 = vmatmul.mubr.bf16.gmra.mrb[68].mxu1 %v16207_v62  ;;  %v2292_v25 = vmax.f32 %v2228_v48, 0.0  ;;  %v2236_v26 = vadd.f32 %v16149_v3, %v16115_v36  ;;  %v2240_v46 = vadd.f32 %v16149_v3, %v16118_v15 }
 0x57e   :  { %v2296_v56 = vmax.f32 %v2232_v9, 0.0  ;;  %v19599_v11 = vcombine.low %v15896_v39, %v15898_v24  ;;  %v19600_v57 = vcombine.low %v19596_v4, %v19597_v23  ;;  %v16285_v1 = vpack.c.bf16 %v2297_v6, %v2293_v63  ;;  %3938 = vmatprep.mubr.bf16.mxu0 %v16219_v30  ;;  %4164 = vmatprep.mubr.bf16.mxu1 %v16219_v30  ;;  %v19611_v4 = vld [vmem:[#allocation86_spill] sm:$0xff] }
 0x57f   :  { %v2301_v44 = vmax.f32 %v2237_v54, 0.0  ;;  %v2305_v33 = vmax.f32 %v2241_v37, 0.0  ;;  %v2245_v14 = vadd.f32 %v16152_v16, %v16121_v7  ;;  %v2300_v15 = vmax.f32 %v2236_v26, 0.0  ;;  %v19613_v37 = vld [vmem:[#allocation68_spill] sm:$0xff] }
 0x580   :  { %4004 = vmatpush1.bf16.msra.mxu0 %v19599_v11  ;;  %4230 = vmatpush1.bf16.msra.mxu1 %v19600_v57  ;;  %v16291_v36 = vpack.c.bf16 %v2296_v56, %v2292_v25  ;;  %v2304_v39 = vmax.f32 %v2240_v46, 0.0  ;;  %v2249_v24 = vadd.f32 %v16152_v16, %v16124_v0  ;;  %v19601_v59 = vcombine.high %v15904_v10, %v15907_v27  ;;  %v19614_v56 = vld [vmem:[#allocation72_spill] sm:$0xff]  ;;  %v19617_v57 = vld [vmem:[#allocation46_spill] sm:$0xff] }
 0x581   :  { %v19604_v32 = vcombine.high %v19602_v61, %v19603_v29  ;;  %v16301_v7 = vpack.c.bf16 %v2305_v33, %v2301_v44  ;;  %v2309_v45 = vmax.f32 %v2245_v14, 0.0  ;;  %v2244_v21 = vadd.f32 %v16149_v3, %v16127_v35  ;;  %v19618_v44 = vld [vmem:[#allocation106_spill] sm:$0xff]  ;;  %v19619_v14 = vld [vmem:[#allocation49_spill] sm:$0xff] }
 0x582   :  { %4005 = vmatprep.subr.bf16.mxu0 %v19601_v59  ;;  %v2248_v12 = vadd.f32 %v16149_v3, %v16130_v47  ;;  %v16307_v20 = vpack.c.bf16 %v2304_v39, %v2300_v15  ;;  %v2313_v0 = vmax.f32 %v2249_v24, 0.0  ;;  %v2191_v16 = vadd.f32 %v16155_v50, %v16134_v19  ;;  %v19607_v19 = vld [vmem:[#allocation83_spill] sm:$0xff]  ;;  %v19620_v59 = vld [vmem:[#allocation44_spill] sm:$0xff] }
 0x583   :  { %4231 = vmatprep.subr.bf16.mxu1 %v19604_v32  ;;  %v2195_v43 = vadd.f32 %v16155_v50, %v16138_v18  ;;  %v19605_v60 = vcombine.low %v15904_v10, %v15907_v27  ;;  %v19606_v52 = vcombine.low %v19602_v61, %v19603_v29  ;;  %v2308_v35 = vmax.f32 %v2244_v21, 0.0  ;;  %v19610_v18 = vld [vmem:[#allocation85_spill] sm:$0xff]  ;;  %v19622_v32 = vld [vmem:[#allocation47_spill] sm:$0xff] }
 0x584   :  { %v2312_v5 = vmax.f32 %v2248_v12, 0.0  ;;  %v2190_v47 = vadd.f32 %v16186_v53, %v16142_v41  ;;  %v2194_v3 = vadd.f32 %v16186_v53, %v16146_v28  ;;  %v19609_v49 = vcombine.high %v19607_v19, %v19608_v13  ;;  %3939 = vmatmul.mubr.bf16.gmra.mrb[56].mxu0 %v16235_v31  ;;  %v19621_v61 = vld [vmem:[#allocation105_spill] sm:$0xff]  ;;  %v19623_v21 = vld [vmem:[#allocation87_spill] sm:$0xff]  ;;  %v19624_v12 = vld [vmem:[#allocation88_spill] sm:$0xff] }
 0x585   :  { %4006 = vmatpush1.bf16.msra.mxu0 %v19605_v60  ;;  %4232 = vmatpush1.bf16.msra.mxu1 %v19606_v52  ;;  %v19612_v10 = vcombine.high %v19610_v18, %v19611_v4  ;;  %v16329_v27 = vpack.c.bf16 %v2313_v0, %v2309_v45  ;;  %v2255_v23 = vmax.f32 %v2191_v16, 0.0  ;;  %v2259_v2 = vmax.f32 %v2195_v43, 0.0  ;;  %v19626_v16 = vld [vmem:[#allocation89_spill] sm:$0xff]  ;;  %v19627_v43 = vld [vmem:[#allocation90_spill] sm:$0xff] }
 0x586   :  { %4007 = vmatprep.subr.bf16.mxu0 %v19609_v49  ;;  %v2199_v63 = vadd.f32 %v16155_v50, %v16161_v34  ;;  %v16333_v48 = vpack.c.bf16 %v2312_v5, %v2308_v35  ;;  %v2254_v41 = vmax.f32 %v2190_v47, 0.0  ;;  %v2258_v9 = vmax.f32 %v2194_v3, 0.0  ;;  %4165 = vmatmul.mubr.bf16.gmra.mrb[72].mxu1 %v16235_v31 }
 0x587   :  { %4233 = vmatprep.subr.bf16.mxu1 %v19612_v10  ;;  %v2203_v28 = vadd.f32 %v16155_v50, %v16165_v8  ;;  %v16339_v6 = vpack.c.bf16 %v2259_v2, %v2255_v23  ;;  %v2198_v25 = vadd.f32 %v16186_v53, %v19613_v37  ;;  %v2202_v34 = vadd.f32 %v16186_v53, %v19614_v56  ;;  %v19632_v2 = vld [vmem:[#allocation55_spill] sm:$0xff]  ;;  %v19638_v56 = vld [vmem:[#allocation94_spill] sm:$0xff] }
 0x588   :  { %v2263_v54 = vmax.f32 %v2199_v63, 0.0  ;;  %v19615_v26 = vcombine.low %v19607_v19, %v19608_v13  ;;  %v19616_v8 = vcombine.low %v19610_v18, %v19611_v4  ;;  %v16351_v46 = vpack.c.bf16 %v2258_v9, %v2254_v41  ;;  %3948 = vmatprep.mubr.bf16.mxu0 %v16241_v58  ;;  %4174 = vmatprep.mubr.bf16.mxu1 %v16241_v58  ;;  %v19629_v13 = vld [vmem:[#allocation52_spill] sm:$0xff]  ;;  %v19633_v41 = vld [vmem:[#allocation50_spill] sm:$0xff] }
 0x589   :  { %v2267_v11 = vmax.f32 %v2203_v28, 0.0  ;;  %v2122_v33 = vmul.f32 %v19618_v44, %v19617_v57  ;;  %v2126_v15 = vmul.f32 %v19618_v44, %v19619_v14  ;;  %v2262_v39 = vmax.f32 %v2198_v25, 0.0  ;;  %v19634_v28 = vld [vmem:[#allocation91_spill] sm:$0xff]  ;;  %v19637_v25 = vld [vmem:[#allocation93_spill] sm:$0xff] }
 0x58a   :  { %4008 = vmatpush1.bf16.msra.mxu0 %v19615_v26  ;;  %4234 = vmatpush1.bf16.msra.mxu1 %v19616_v8  ;;  %v2266_v24 = vmax.f32 %v2202_v34, 0.0  ;;  %v2121_v29 = vmul.f32 %v19621_v61, %v19620_v59  ;;  %v2125_v45 = vmul.f32 %v19621_v61, %v19622_v32  ;;  %v19625_v0 = vcombine.high %v19623_v21, %v19624_v12  ;;  %v19640_v57 = vld [vmem:[#allocation53_spill] sm:$0xff] }
 0x58b   :  { %v19628_v60 = vcombine.high %v19626_v16, %v19627_v43  ;;  %v16369_v52 = vpack.c.bf16 %v2267_v11, %v2263_v54  ;;  %v2207_v35 = vadd.f32 %v16155_v50, %v2122_v33  ;;  %v2211_v5 = vadd.f32 %v16155_v50, %v2126_v15  ;;  %v19635_v54 = vld [vmem:[#allocation92_spill] sm:$0xff] }
 0x58c   :  { %4009 = vmatprep.subr.bf16.mxu0 %v19625_v0  ;;  %v16373_v47 = vpack.c.bf16 %v2266_v24, %v2262_v39  ;;  %v2206_v3 = vadd.f32 %v16186_v53, %v2121_v29  ;;  %v2210_v19 = vadd.f32 %v16186_v53, %v2125_v45  ;;  %v2130_v49 = vmul.f32 %v19618_v44, %v19629_v13  ;;  %v19641_v24 = vld [vmem:[#allocation58_spill] sm:$0xff] }
 0x58d   :  { %4235 = vmatprep.subr.bf16.mxu1 %v19628_v60  ;;  %v19630_v18 = vcombine.low %v19623_v21, %v19624_v12  ;;  %v19631_v4 = vcombine.low %v19626_v16, %v19627_v43  ;;  %v2271_v10 = vmax.f32 %v2207_v35, 0.0  ;;  %v2275_v23 = vmax.f32 %v2211_v5, 0.0  ;;  %3949 = vmatmul.mubr.bf16.gmra.mrb[60].mxu0 %v16251_v17  ;;  %v19642_v21 = vld [vmem:[#allocation61_spill] sm:$0xff]  ;;  %v19645_v5 = vld [vmem:[#allocation56_spill] sm:$0xff] }
 0x58e   :  { %v2134_v63 = vmul.f32 %v19618_v44, %v19632_v2  ;;  %v2129_v9 = vmul.f32 %v19621_v61, %v19633_v41  ;;  %v19636_v37 = vcombine.high %v19634_v28, %v19635_v54  ;;  %v19639_v34 = vcombine.high %v19637_v25, %v19638_v56  ;;  %4175 = vmatmul.mubr.bf16.gmra.mrb[76].mxu1 %v16251_v17  ;;  %v19649_v2 = vld [vmem:[#allocation96_spill] sm:$0xff]  ;;  %v19651_v41 = vld [vmem:[#allocation97_spill] sm:$0xff] }
 0x58f   :  { %4010 = vmatpush1.bf16.msra.mxu0 %v19630_v18  ;;  %4236 = vmatpush1.bf16.msra.mxu1 %v19631_v4  ;;  %v2270_v26 = vmax.f32 %v2206_v3, 0.0  ;;  %v2274_v8 = vmax.f32 %v2210_v19, 0.0  ;;  %v2215_v11 = vadd.f32 %v16155_v50, %v2130_v49  ;;  %v2133_v33 = vmul.f32 %v19621_v61, %v19640_v57  ;;  %v19646_v49 = vld [vmem:[#allocation59_spill] sm:$0xff]  ;;  %v19647_v4 = vld [vmem:[#allocation64_spill] sm:$0xff] }
 0x590   :  { %4011 = vmatprep.subr.bf16.mxu0 %v19636_v37  ;;  %4237 = vmatprep.subr.bf16.mxu1 %v19639_v34  ;;  %v16398_v14 = vpack.c.bf16 %v2275_v23, %v2271_v10  ;;  %v2219_v15 = vadd.f32 %v16155_v50, %v2134_v63  ;;  %v2214_v39 = vadd.f32 %v16186_v53, %v2129_v9  ;;  %v19648_v23 = vld [vmem:[#allocation95_spill] sm:$0xff]  ;;  %v19652_v9 = vld [vmem:[#allocation98_spill] sm:$0xff] }
 0x591   :  { %v2138_v59 = vmul.f32 %v19618_v44, %v19641_v24  ;;  %v16406_v29 = vpack.c.bf16 %v2274_v8, %v2270_v26  ;;  %v2279_v32 = vmax.f32 %v2215_v11, 0.0  ;;  %v2218_v45 = vadd.f32 %v16186_v53, %v2133_v33  ;;  %3958 = vmatprep.mubr.bf16.mxu0 %v16261_v40  ;;  %4184 = vmatprep.mubr.bf16.mxu1 %v16261_v40 }
 0x592   :  { %v2142_v12 = vmul.f32 %v19618_v44, %v19642_v21  ;;  %v19643_v0 = vcombine.low %v19634_v28, %v19635_v54  ;;  %v19644_v16 = vcombine.low %v19637_v25, %v19638_v56  ;;  %v2283_v43 = vmax.f32 %v2219_v15, 0.0  ;;  %v19654_v56 = vld [vmem:[#allocation67_spill] sm:$0xff] }
 0x593   :  { %v2278_v60 = vmax.f32 %v2214_v39, 0.0  ;;  %v2223_v35 = vadd.f32 %v16155_v50, %v2138_v59  ;;  %v2137_v3 = vmul.f32 %v19621_v61, %v19645_v5  ;;  %v2282_v19 = vmax.f32 %v2218_v45, 0.0  ;;  %v19657_v59 = vld [vmem:[#allocation62_spill] sm:$0xff]  ;;  %v19658_v45 = vld [vmem:[#allocation65_spill] sm:$0xff] }
 0x594   :  { %4012 = vmatpush1.bf16.msra.mxu0 %v19643_v0  ;;  %4238 = vmatpush1.bf16.msra.mxu1 %v19644_v16  ;;  %v2227_v13 = vadd.f32 %v16155_v50, %v2142_v12  ;;  %v2141_v18 = vmul.f32 %v19621_v61, %v19646_v49  ;;  %v2146_v10 = vmul.f32 %v19618_v44, %v19647_v4  ;;  %v19659_v12 = vld [vmem:[#allocation99_spill] sm:$0xff]  ;;  %v19660_v0 = vld [vmem:[#allocation100_spill] sm:$0xff]  ;;  %v2524_v5 = vld [vmem:[#allocation16 + $0x680] sm:$0xff] }
 0x595   :  { %v19650_v63 = vcombine.high %v19648_v23, %v19649_v2  ;;  %v19653_v28 = vcombine.high %v19651_v41, %v19652_v9  ;;  %v16433_v54 = vpack.c.bf16 %v2283_v43, %v2279_v32  ;;  %v2287_v37 = vmax.f32 %v2223_v35, 0.0  ;;  %v19662_v43 = vld [vmem:[#allocation101_spill] sm:$0xff]  ;;  %v19665_v49 = vld [vmem:[#allocation71_spill] sm:$0xff]  ;;  %3959 = vmatmul.mubr.bf16.gmra.mrb[64].mxu0 %v16267_v55 }
 0x596   :  { %v2222_v25 = vadd.f32 %v16186_v53, %v2137_v3  ;;  %v2150_v34 = vmul.f32 %v19618_v44, %v19654_v56  ;;  %v16438_v26 = vpack.c.bf16 %v2282_v19, %v2278_v60  ;;  %v2291_v8 = vmax.f32 %v2227_v13, 0.0  ;;  %v19663_v60 = vld [vmem:[#allocation102_spill] sm:$0xff]  ;;  %v2528_v4 = vld [vmem:[#allocation16 + $0x6a0] sm:$0xff]  ;;  %4185 = vmatmul.mubr.bf16.gmra.mrb[80].mxu1 %v16267_v55  ;;  %3968 = vmatprep.mubr.bf16.mxu0 %v16285_v1 }
 0x597   :  { %4013 = vmatprep.subr.bf16.mxu0 %v19650_v63  ;;  %4239 = vmatprep.subr.bf16.mxu1 %v19653_v28  ;;  %v2226_v11 = vadd.f32 %v16186_v53, %v2141_v18  ;;  %v2231_v57 = vadd.f32 %v16155_v50, %v2146_v10  ;;  %v19655_v33 = vcombine.low %v19648_v23, %v19649_v2  ;;  %v2525_v10 = vld [vmem:[#allocation16 + $0x688] sm:$0xff] }
 0x598   :  { %v19656_v15 = vcombine.low %v19651_v41, %v19652_v9  ;;  %v2286_v39 = vmax.f32 %v2222_v25, 0.0  ;;  %v2235_v24 = vadd.f32 %v16155_v50, %v2150_v34  ;;  %v2145_v32 = vmul.f32 %v19621_v61, %v19657_v59  ;;  %v2529_v23 = vld [vmem:[#allocation16 + $0x6a8] sm:$0xff]  ;;  %v19666_v9 = vld [vmem:[#allocation75_spill] sm:$0xff]  ;;  %4194 = vmatprep.mubr.bf16.mxu1 %v16285_v1 }
 0x599   :  { %4014 = vmatpush1.bf16.msra.mxu0 %v19655_v33  ;;  %v2149_v21 = vmul.f32 %v19621_v61, %v19658_v45  ;;  %v19661_v16 = vcombine.high %v19659_v12, %v19660_v0  ;;  %v19664_v35 = vcombine.high %v19662_v43, %v19663_v60  ;;  %v16459_v3 = vpack.c.bf16 %v2291_v8, %v2287_v37  ;;  %v19667_v37 = vld [vmem:[#allocation107_spill] sm:$0xff]  ;;  %v19668_v25 = vld [vmem:[#allocation70_spill] sm:$0xff] }
 0x59a   :  { %4240 = vmatpush1.bf16.msra.mxu1 %v19656_v15  ;;  %v2290_v19 = vmax.f32 %v2226_v11, 0.0  ;;  %v2295_v13 = vmax.f32 %v2231_v57, 0.0  ;;  %v2154_v18 = vmul.f32 %v19618_v44, %v19665_v49  ;;  %v2299_v2 = vmax.f32 %v2235_v24, 0.0  ;;  %v2533_v49 = vld [vmem:[#allocation16 + $0x6c8] sm:$0xff] }
 0x59b   :  { %4015 = vmatprep.subr.bf16.mxu0 %v19661_v16  ;;  %4241 = vmatprep.subr.bf16.mxu1 %v19664_v35  ;;  %v2230_v63 = vadd.f32 %v16186_v53, %v2145_v32  ;;  %v2234_v41 = vadd.f32 %v16186_v53, %v2149_v21  ;;  %v2158_v28 = vmul.f32 %v19618_v44, %v19666_v9  ;;  %v19671_v21 = vld [vmem:[#allocation103_spill] sm:$0xff] }
 0x59c   :  { %v11757_v56 = vcombine.low %v19668_v25, %v19667_v37  ;;  %v16471_v34 = vpack.c.bf16 %v2290_v19, %v2286_v39  ;;  %v2239_v8 = vadd.f32 %v16155_v50, %v2154_v18  ;;  %v19669_v11 = vcombine.low %v19659_v12, %v19660_v0  ;;  %v19672_v12 = vld [vmem:[#allocation104_spill] sm:$0xff]  ;;  %v2537_v18 = vld [vmem:[#allocation16 + $0x6e8] sm:$0xff] }
 0x59d   :  { %v19670_v57 = vcombine.low %v19662_v43, %v19663_v60  ;;  %v16480_v33 = vpack.c.bf16 %v2299_v2, %v2295_v13  ;;  %v2294_v15 = vmax.f32 %v2230_v63, 0.0  ;;  %v2298_v24 = vmax.f32 %v2234_v41, 0.0  ;;  %v2532_v43 = vld [vmem:[#allocation16 + $0x6c0] sm:$0xff]  ;;  %3969 = vmatmul.mubr.bf16.gmra.mrb[68].mxu0 %v16291_v36 }
 0x59e   :  { %4016 = vmatpush1.bf16.msra.mxu0 %v19669_v11  ;;  %v2243_v59 = vadd.f32 %v16155_v50, %v2158_v28  ;;  %v11764_v39 = vcombine.high %v2524_v5, %v2528_v4  ;;  %v11766_v32 = vcombine.high %v2525_v10, %v2529_v23  ;;  %v2303_v45 = vmax.f32 %v2239_v8, 0.0  ;;  %v2536_v13 = vld [vmem:[#allocation16 + $0x6e0] sm:$0xff]  ;;  %v19678_v8 = vld [vmem:[#allocation79_spill] sm:$0xff]  ;;  %4195 = vmatmul.mubr.bf16.gmra.mrb[84].mxu1 %v16291_v36 }
 0x59f   :  { %4242 = vmatpush1.bf16.msra.mxu1 %v19670_v57  ;;  %v19673_v0 = vcombine.high %v19671_v21, %v19672_v12  ;;  %v19674_v16 = vcombine.high %v19668_v25, %v19667_v37  ;;  %v16491_v60 = vpack.c.bf16 %v2298_v24, %v2294_v15  ;;  %v11763_v19 = vcombine.low %v2524_v5, %v2528_v4  ;;  %v19675_v2 = vld [vmem:[#allocation69_spill] sm:$0xff]  ;;  %v19679_v15 = vld [vmem:[#allocation76_spill] sm:$0xff] }
 0x5a0   :  { %v2307_v35 = vmax.f32 %v2243_v59, 0.0  ;;  %v2153_v63 = vmul.f32 %v19621_v61, %v19675_v2  ;;  %v19676_v41 = vld [vmem:[#allocation73_spill] sm:$0xff]  ;;  %v19677_v28 = vcombine.low %v19671_v21, %v19672_v12  ;;  %v11765_v37 = vcombine.low %v2525_v10, %v2529_v23  ;;  %v2541_v12 = vld [vmem:[#allocation16 + $0x708] sm:$0xff]  ;;  %3978 = vmatprep.mubr.bf16.mxu0 %v16301_v7  ;;  %4204 = vmatprep.mubr.bf16.mxu1 %v16301_v7 }
 0x5a1   :  { %4017 = vmatprep.subr.bf16.mxu0 %v19673_v0  ;;  %4243 = vmatprep.subr.bf16.mxu1 %v19674_v16  ;;  %v2157_v9 = vmul.f32 %v19621_v61, %v19676_v41  ;;  %v2162_v5 = vmul.f32 %v19618_v44, %v19678_v8  ;;  %v2540_v4 = vld [vmem:[#allocation16 + $0x700] sm:$0xff]  ;;  %v2315_v24 = vmax.f32 %v19679_v15, 0.0  ;;  %v11772_v59 = vcombine.high %v2532_v43, %v2536_v13 }
 0x5a2   :  { %4018 = vmatpush1.bf16.msra.mxu0 %v19677_v28  ;;  %v16500_v25 = vpack.c.bf16 %v2307_v35, %v2303_v45  ;;  %v2238_v11 = vadd.f32 %v16186_v53, %v2153_v63  ;;  %v11774_v0 = vcombine.high %v2533_v49, %v2537_v18  ;;  %v2544_v21 = vld [vmem:[#allocation16 + $0x720] sm:$0xff]  ;;  %v11771_v44 = vcombine.low %v2532_v43, %v2536_v13  ;;  %v2549_v28 = vld [vmem:[#allocation16 + $0x748] sm:$0xff] }
 0x5a3   :  { %4244 = vmatpush1.bf16.msra.mxu1 %v11757_v56  ;;  %4019 = vmatprep.subr.bf16.mxu0 %v11764_v39  ;;  %v2242_v57 = vadd.f32 %v16186_v53, %v2157_v9  ;;  %v2545_v56 = vld [vmem:[#allocation16 + $0x728] sm:$0xff]  ;;  %v2247_v10 = vadd.f32 %v16155_v50, %v2162_v5  ;;  %v19680_v16 = vld [vmem:[#allocation77_spill] sm:$0xff]  ;;  %v11780_v50 = vcombine.high %v2540_v4, %v2544_v21 }
 0x5a4   :  { %4245 = vmatprep.subr.bf16.mxu1 %v11766_v32  ;;  %v2302_v23 = vmax.f32 %v2238_v11, 0.0  ;;  %v11773_v32 = vcombine.low %v2533_v49, %v2537_v18  ;;  %v2161_v35 = vmul.f32 %v19621_v61, %v19680_v16  ;;  %v19681_v2 = vld [vmem:[#allocation81_spill] sm:$0xff]  ;;  %v11782_v41 = vcombine.high %v2541_v12, %v2545_v56 }
 0x5a5   :  { %v2306_v39 = vmax.f32 %v2242_v57, 0.0  ;;  %v2311_v45 = vmax.f32 %v2247_v10, 0.0  ;;  %v2165_v63 = vmul.f32 %v19621_v61, %v19681_v2  ;;  %v2548_v43 = vld [vmem:[#allocation16 + $0x740] sm:$0xff]  ;;  %v2553_v61 = vld [vmem:[#allocation16 + $0x768] sm:$0xff]  ;;  %v11781_v8 = vcombine.low %v2541_v12, %v2545_v56  ;;  %3979 = vmatmul.mubr.bf16.gmra.mrb[72].mxu0 %v16307_v20 }
 0x5a6   :  { %4020 = vmatpush1.bf16.msra.mxu0 %v11763_v19  ;;  %v2246_v13 = vadd.f32 %v16186_v53, %v2161_v35  ;;  %v2552_v18 = vld [vmem:[#allocation16 + $0x760] sm:$0xff]  ;;  %v2561_v10 = vld [vmem:[#allocation16 + $0x7a8] sm:$0xff]  ;;  %4205 = vmatmul.mubr.bf16.gmra.mrb[88].mxu1 %v16307_v20  ;;  %v2318_v35 = vld [vmem:[#allocation16 + $0x10] sm:$0xff] }
 0x5a7   :  { %4246 = vmatpush1.bf16.msra.mxu1 %v11765_v37  ;;  %v16516_v9 = vpack.c.bf16 %v2306_v39, %v2302_v23  ;;  %4021 = vmatprep.subr.bf16.mxu0 %v11772_v59  ;;  %v16518_v19 = vpack.c.bf16 %v2315_v24, %v2311_v45  ;;  %v2250_v49 = vadd.f32 %v16186_v53, %v2165_v63  ;;  %v2556_v57 = vld [vmem:[#allocation16 + $0x780] sm:$0xff]  ;;  %v2565_v39 = vld [vmem:[#allocation16 + $0x7c8] sm:$0xff] }
 0x5a8   :  { %4247 = vmatprep.subr.bf16.mxu1 %v11774_v0  ;;  %v11779_v37 = vcombine.low %v2540_v4, %v2544_v21  ;;  %v2310_v5 = vmax.f32 %v2246_v13, 0.0  ;;  %v11788_v15 = vcombine.high %v2548_v43, %v2552_v18  ;;  %v11790_v59 = vcombine.high %v2549_v28, %v2553_v61  ;;  %v2560_v24 = vld [vmem:[#allocation16 + $0x7a0] sm:$0xff]  ;;  %v2557_v0 = vld [vmem:[#allocation16 + $0x788] sm:$0xff]  ;;  %3988 = vmatprep.mubr.bf16.mxu0 %v16329_v27 }
 0x5a9   :  { %v2314_v11 = vmax.f32 %v2250_v49, 0.0  ;;  %v11787_v53 = vcombine.low %v2548_v43, %v2552_v18  ;;  %v11789_v4 = vcombine.low %v2549_v28, %v2553_v61  ;;  %4214 = vmatprep.mubr.bf16.mxu1 %v16329_v27  ;;  %v11796_v21 = vcombine.high %v2556_v57, %v2560_v24  ;;  %v2564_v56 = vld [vmem:[#allocation16 + $0x7c0] sm:$0xff]  ;;  %v2323_v43 = vld [vmem:[#allocation16 + $0x38] sm:$0xff]  ;;  %v2326_v61 = vld [vmem:[#allocation16 + $0x50] sm:$0xff] }
 0x5aa   :  { %4022 = vmatpush1.bf16.msra.mxu0 %v11771_v44  ;;  %v11798_v12 = vcombine.high %v2557_v0, %v2561_v10  ;;  %v2568_v44 = vld [vmem:[#allocation16 + $0x7e0] sm:$0xff]  ;;  %v11795_v45 = vcombine.low %v2556_v57, %v2560_v24  ;;  %v11797_v16 = vcombine.low %v2557_v0, %v2561_v10  ;;  %v2338_v0 = vld [vmem:[#allocation16 + $0xb0] sm:$0xff]  ;;  %v2335_v10 = vld [vmem:[#allocation16 + $0x98] sm:$0xff] }
 0x5ab   :  { %4248 = vmatpush1.bf16.msra.mxu1 %v11773_v32  ;;  %4023 = vmatprep.subr.bf16.mxu0 %v11780_v50  ;;  %v16522_v23 = vpack.c.bf16 %v2314_v11, %v2310_v5  ;;  %v2569_v32 = vld [vmem:[#allocation16 + $0x7e8] sm:$0xff]  ;;  %v11804_v2 = vcombine.high %v2564_v56, %v2568_v44  ;;  %v2322_v50 = vld [vmem:[#allocation16 + $0x30] sm:$0xff]  ;;  %v11803_v13 = vcombine.low %v2564_v56, %v2568_v44  ;;  %v2331_v5 = vld [vmem:[#allocation16 + $0x78] sm:$0xff] }
 0x5ac   :  { %4249 = vmatprep.subr.bf16.mxu1 %v11782_v41  ;;  %v11806_v63 = vcombine.high %v2565_v39, %v2569_v32  ;;  %v2319_v41 = vld [vmem:[#allocation16 + $0x18] sm:$0xff]  ;;  %v11805_v49 = vcombine.low %v2565_v39, %v2569_v32  ;;  %v11560_v18 = vcombine.high %v2318_v35, %v2322_v50  ;;  %v11559_v11 = vcombine.low %v2318_v35, %v2322_v50  ;;  %v2342_v44 = vld [vmem:[#allocation16 + $0xd0] sm:$0xff] }
 0x5ad   :  { %3989 = vmatmul.mubr.bf16.gmra.mrb[76].mxu0 %v16333_v48  ;;  %v11562_v28 = vcombine.high %v2319_v41, %v2323_v43  ;;  %v11561_v57 = vcombine.low %v2319_v41, %v2323_v43  ;;  %v2346_v39 = vld [vmem:[#allocation16 + $0xf0] sm:$0xff]  ;;  %v2343_v32 = vld [vmem:[#allocation16 + $0xd8] sm:$0xff] }
 0x5ae   :  { %4024 = vmatpush1.bf16.msra.mxu0 %v11779_v37  ;;  %4215 = vmatmul.mubr.bf16.gmra.mrb[92].mxu1 %v16333_v48  ;;  %v2330_v37 = vld [vmem:[#allocation16 + $0x70] sm:$0xff]  ;;  %v2351_v43 = vld [vmem:[#allocation16 + $0x118] sm:$0xff] }
 0x5af   :  { %4250 = vmatpush1.bf16.msra.mxu1 %v11781_v8  ;;  %4025 = vmatprep.subr.bf16.mxu0 %v11788_v15  ;;  %v2327_v8 = vld [vmem:[#allocation16 + $0x58] sm:$0xff]  ;;  %v2334_v15 = vld [vmem:[#allocation16 + $0x90] sm:$0xff] }
 0x5b0   :  { %4251 = vmatprep.subr.bf16.mxu1 %v11790_v59  ;;  %4031 = vmatprep.mubr.bf16.mxu0 %v16339_v6  ;;  %v11568_v59 = vcombine.high %v2326_v61, %v2330_v37  ;;  %v11570_v24 = vcombine.high %v2327_v8, %v2331_v5  ;;  %v2354_v41 = vld [vmem:[#allocation16 + $0x130] sm:$0xff] }
 0x5b1   :  { %4257 = vmatprep.mubr.bf16.mxu1 %v16339_v6 }
 0x5b2   :  { %4026 = vmatpush1.bf16.msra.mxu0 %v11787_v53  ;;  %v2339_v53 = vld [vmem:[#allocation16 + $0xb8] sm:$0xff] }
 0x5b3   :  { %4252 = vmatpush1.bf16.msra.mxu1 %v11789_v4  ;;  %4027 = vmatprep.subr.bf16.mxu0 %v11796_v21  ;;  %v11567_v4 = vcombine.low %v2326_v61, %v2330_v37  ;;  %v11569_v21 = vcombine.low %v2327_v8, %v2331_v5  ;;  %v11578_v56 = vcombine.high %v2335_v10, %v2339_v53  ;;  %v2358_v37 = vld [vmem:[#allocation16 + $0x150] sm:$0xff]  ;;  %v2359_v5 = vld [vmem:[#allocation16 + $0x158] sm:$0xff] }
 0x5b4   :  { %4253 = vmatprep.subr.bf16.mxu1 %v11798_v12  ;;  %v11576_v12 = vcombine.high %v2334_v15, %v2338_v0  ;;  %v11577_v35 = vcombine.low %v2335_v10, %v2339_v53  ;;  %v2362_v8 = vld [vmem:[#allocation16 + $0x170] sm:$0xff]  ;;  %v2367_v53 = vld [vmem:[#allocation16 + $0x198] sm:$0xff] }
 0x5b5   :  { %v2370_v10 = vld [vmem:[#allocation16 + $0x1b0] sm:$0xff] }
 0x5b6   :  { %4028 = vmatpush1.bf16.msra.mxu0 %v11795_v45  ;;  %v2347_v45 = vld [vmem:[#allocation16 + $0xf8] sm:$0xff] }
 0x5b7   :  { %4254 = vmatpush1.bf16.msra.mxu1 %v11797_v16  ;;  %4029 = vmatprep.subr.bf16.mxu0 %v11804_v2  ;;  %v11575_v16 = vcombine.low %v2334_v15, %v2338_v0  ;;  %v2350_v2 = vld [vmem:[#allocation16 + $0x110] sm:$0xff]  ;;  %v11586_v50 = vcombine.high %v2343_v32, %v2347_v45 }
 0x5b8   :  { %4255 = vmatprep.subr.bf16.mxu1 %v11806_v63  ;;  %v11584_v63 = vcombine.high %v2342_v44, %v2346_v39 }
 0x5ba   :  { %4030 = vmatpush1.bf16.msra.mxu0 %v11803_v13  ;;  %v2355_v13 = vld [vmem:[#allocation16 + $0x138] sm:$0xff] }
 0x5bb   :  { %4256 = vmatpush1.bf16.msra.mxu1 %v11805_v49  ;;  %4338 = vmatprep.subr.bf16.mxu0 %v11560_v18  ;;  %v11583_v49 = vcombine.low %v2342_v44, %v2346_v39  ;;  %v11585_v18 = vcombine.low %v2343_v32, %v2347_v45  ;;  %v11594_v61 = vcombine.high %v2351_v43, %v2355_v13  ;;  %v2374_v39 = vld [vmem:[#allocation16 + $0x1d0] sm:$0xff]  ;;  %v2375_v45 = vld [vmem:[#allocation16 + $0x1d8] sm:$0xff] }
 0x5bc   :  { %4564 = vmatprep.subr.bf16.mxu1 %v11562_v28  ;;  %v11592_v28 = vcombine.high %v2350_v2, %v2354_v41  ;;  %v11593_v15 = vcombine.low %v2351_v43, %v2355_v13  ;;  %v2378_v32 = vld [vmem:[#allocation16 + $0x1f0] sm:$0xff]  ;;  %v2383_v13 = vld [vmem:[#allocation16 + $0x218] sm:$0xff] }
 0x5bd   :  { %4032 = vmatmul.mubr.bf16.vlgmr.msra.gmra.mrb[48].mxu0 %v16351_v46  ;;  %v2386_v43 = vld [vmem:[#allocation16 + $0x230] sm:$0xff] }
 0x5be   :  { %4258 = vmatmul.mubr.bf16.vlgmr.msra.gmra.mrb[64].mxu1 %v16351_v46  ;;  %4339 = vmatpush1.bf16.msra.mxu0 %v11559_v11  ;;  %v2363_v11 = vld [vmem:[#allocation16 + $0x178] sm:$0xff] }
 0x5bf   :  { %4565 = vmatpush1.bf16.msra.mxu1 %v11561_v57  ;;  %4041 = vmatprep.mubr.bf16.mxu0 %v16369_v52  ;;  %v11591_v57 = vcombine.low %v2350_v2, %v2354_v41  ;;  %v11602_v0 = vcombine.high %v2359_v5, %v2363_v11 }
 0x5c0   :  { %4267 = vmatprep.mubr.bf16.mxu1 %v16369_v52  ;;  %4340 = vmatprep.subr.bf16.mxu0 %v11568_v59  ;;  %v2366_v59 = vld [vmem:[#allocation16 + $0x190] sm:$0xff] }
 0x5c1   :  { %4566 = vmatprep.subr.bf16.mxu1 %v11570_v24  ;;  %v11600_v24 = vcombine.high %v2358_v37, %v2362_v8 }
 0x5c2   :  { %4341 = vmatpush1.bf16.msra.mxu0 %v11567_v4  ;;  %v2371_v4 = vld [vmem:[#allocation16 + $0x1b8] sm:$0xff] }
 0x5c3   :  { %4567 = vmatpush1.bf16.msra.mxu1 %v11569_v21  ;;  %4342 = vmatprep.subr.bf16.mxu0 %v11576_v12  ;;  %v11599_v21 = vcombine.low %v2358_v37, %v2362_v8  ;;  %v11601_v12 = vcombine.low %v2359_v5, %v2363_v11  ;;  %v11610_v44 = vcombine.high %v2367_v53, %v2371_v4  ;;  %v2390_v8 = vld [vmem:[#allocation16 + $0x250] sm:$0xff]  ;;  %v2391_v11 = vld [vmem:[#allocation16 + $0x258] sm:$0xff] }
 0x5c4   :  { %4568 = vmatprep.subr.bf16.mxu1 %v11578_v56  ;;  %v11608_v56 = vcombine.high %v2366_v59, %v2370_v10  ;;  %v11609_v2 = vcombine.low %v2367_v53, %v2371_v4  ;;  %v2394_v5 = vld [vmem:[#allocation16 + $0x270] sm:$0xff]  ;;  %v2399_v4 = vld [vmem:[#allocation16 + $0x298] sm:$0xff] }
 0x5c5   :  { %4042 = vmatmul.mubr.bf16.gmra.mrb[52].mxu0 %v16373_v47  ;;  %v2402_v53 = vld [vmem:[#allocation16 + $0x2b0] sm:$0xff] }
 0x5c6   :  { %4268 = vmatmul.mubr.bf16.gmra.mrb[68].mxu1 %v16373_v47  ;;  %4343 = vmatpush1.bf16.msra.mxu0 %v11575_v16  ;;  %v2379_v16 = vld [vmem:[#allocation16 + $0x1f8] sm:$0xff] }
 0x5c7   :  { %4569 = vmatpush1.bf16.msra.mxu1 %v11577_v35  ;;  %4051 = vmatprep.mubr.bf16.mxu0 %v16398_v14  ;;  %v11607_v35 = vcombine.low %v2366_v59, %v2370_v10  ;;  %v11618_v41 = vcombine.high %v2375_v45, %v2379_v16 }
 0x5c8   :  { %4277 = vmatprep.mubr.bf16.mxu1 %v16398_v14  ;;  %4344 = vmatprep.subr.bf16.mxu0 %v11584_v63  ;;  %v2382_v63 = vld [vmem:[#allocation16 + $0x210] sm:$0xff] }
 0x5c9   :  { %4570 = vmatprep.subr.bf16.mxu1 %v11586_v50  ;;  %v11616_v50 = vcombine.high %v2374_v39, %v2378_v32 }
 0x5ca   :  { %4345 = vmatpush1.bf16.msra.mxu0 %v11583_v49  ;;  %v2387_v49 = vld [vmem:[#allocation16 + $0x238] sm:$0xff] }
 0x5cb   :  { %4571 = vmatpush1.bf16.msra.mxu1 %v11585_v18  ;;  %4346 = vmatprep.subr.bf16.mxu0 %v11592_v28  ;;  %v11615_v18 = vcombine.low %v2374_v39, %v2378_v32  ;;  %v11617_v28 = vcombine.low %v2375_v45, %v2379_v16  ;;  %v11626_v37 = vcombine.high %v2383_v13, %v2387_v49  ;;  %v2406_v32 = vld [vmem:[#allocation16 + $0x2d0] sm:$0xff]  ;;  %v2407_v16 = vld [vmem:[#allocation16 + $0x2d8] sm:$0xff] }
 0x5cc   :  { %4572 = vmatprep.subr.bf16.mxu1 %v11594_v61  ;;  %v11624_v61 = vcombine.high %v2382_v63, %v2386_v43  ;;  %v11625_v59 = vcombine.low %v2383_v13, %v2387_v49  ;;  %v2410_v45 = vld [vmem:[#allocation16 + $0x2f0] sm:$0xff]  ;;  %v2415_v49 = vld [vmem:[#allocation16 + $0x318] sm:$0xff] }
 0x5cd   :  { %4052 = vmatmul.mubr.bf16.gmra.mrb[56].mxu0 %v16406_v29  ;;  %v2418_v13 = vld [vmem:[#allocation16 + $0x330] sm:$0xff] }
 0x5ce   :  { %4278 = vmatmul.mubr.bf16.gmra.mrb[72].mxu1 %v16406_v29  ;;  %4347 = vmatpush1.bf16.msra.mxu0 %v11591_v57  ;;  %v2395_v57 = vld [vmem:[#allocation16 + $0x278] sm:$0xff] }
 0x5cf   :  { %4573 = vmatpush1.bf16.msra.mxu1 %v11593_v15  ;;  %4061 = vmatprep.mubr.bf16.mxu0 %v16433_v54  ;;  %v11623_v15 = vcombine.low %v2382_v63, %v2386_v43  ;;  %v11634_v10 = vcombine.high %v2391_v11, %v2395_v57 }
 0x5d0   :  { %4287 = vmatprep.mubr.bf16.mxu1 %v16433_v54  ;;  %4348 = vmatprep.subr.bf16.mxu0 %v11600_v24  ;;  %v2398_v24 = vld [vmem:[#allocation16 + $0x290] sm:$0xff] }
 0x5d1   :  { %4574 = vmatprep.subr.bf16.mxu1 %v11602_v0  ;;  %v11632_v0 = vcombine.high %v2390_v8, %v2394_v5 }
 0x5d2   :  { %4349 = vmatpush1.bf16.msra.mxu0 %v11599_v21  ;;  %v2403_v21 = vld [vmem:[#allocation16 + $0x2b8] sm:$0xff] }
 0x5d3   :  { %4575 = vmatpush1.bf16.msra.mxu1 %v11601_v12  ;;  %4350 = vmatprep.subr.bf16.mxu0 %v11608_v56  ;;  %v11631_v12 = vcombine.low %v2390_v8, %v2394_v5  ;;  %v11633_v56 = vcombine.low %v2391_v11, %v2395_v57  ;;  %v11642_v39 = vcombine.high %v2399_v4, %v2403_v21  ;;  %v2422_v5 = vld [vmem:[#allocation16 + $0x350] sm:$0xff]  ;;  %v2423_v57 = vld [vmem:[#allocation16 + $0x358] sm:$0xff] }
 0x5d4   :  { %4576 = vmatprep.subr.bf16.mxu1 %v11610_v44  ;;  %v11640_v44 = vcombine.high %v2398_v24, %v2402_v53  ;;  %v11641_v63 = vcombine.low %v2399_v4, %v2403_v21  ;;  %v2426_v11 = vld [vmem:[#allocation16 + $0x370] sm:$0xff]  ;;  %v2431_v21 = vld [vmem:[#allocation16 + $0x398] sm:$0xff] }
 0x5d5   :  { %4062 = vmatmul.mubr.bf16.gmra.mrb[60].mxu0 %v16438_v26  ;;  %v2434_v4 = vld [vmem:[#allocation16 + $0x3b0] sm:$0xff] }
 0x5d6   :  { %4288 = vmatmul.mubr.bf16.gmra.mrb[76].mxu1 %v16438_v26  ;;  %4351 = vmatpush1.bf16.msra.mxu0 %v11607_v35  ;;  %v2411_v35 = vld [vmem:[#allocation16 + $0x2f8] sm:$0xff] }
 0x5d7   :  { %4577 = vmatpush1.bf16.msra.mxu1 %v11609_v2  ;;  %4071 = vmatprep.mubr.bf16.mxu0 %v16459_v3  ;;  %v11639_v2 = vcombine.low %v2398_v24, %v2402_v53  ;;  %v11650_v43 = vcombine.high %v2407_v16, %v2411_v35 }
 0x5d8   :  { %4297 = vmatprep.mubr.bf16.mxu1 %v16459_v3  ;;  %4352 = vmatprep.subr.bf16.mxu0 %v11616_v50  ;;  %v2414_v50 = vld [vmem:[#allocation16 + $0x310] sm:$0xff] }
 0x5d9   :  { %4578 = vmatprep.subr.bf16.mxu1 %v11618_v41  ;;  %v11648_v41 = vcombine.high %v2406_v32, %v2410_v45 }
 0x5da   :  { %4353 = vmatpush1.bf16.msra.mxu0 %v11615_v18  ;;  %v2419_v18 = vld [vmem:[#allocation16 + $0x338] sm:$0xff] }
 0x5db   :  { %4579 = vmatpush1.bf16.msra.mxu1 %v11617_v28  ;;  %4354 = vmatprep.subr.bf16.mxu0 %v11624_v61  ;;  %v11647_v28 = vcombine.low %v2406_v32, %v2410_v45  ;;  %v11649_v61 = vcombine.low %v2407_v16, %v2411_v35  ;;  %v11658_v8 = vcombine.high %v2415_v49, %v2419_v18  ;;  %v2438_v45 = vld [vmem:[#allocation16 + $0x3d0] sm:$0xff]  ;;  %v2439_v35 = vld [vmem:[#allocation16 + $0x3d8] sm:$0xff] }
 0x5dc   :  { %4580 = vmatprep.subr.bf16.mxu1 %v11626_v37  ;;  %v11656_v37 = vcombine.high %v2414_v50, %v2418_v13  ;;  %v11657_v24 = vcombine.low %v2415_v49, %v2419_v18  ;;  %v2442_v16 = vld [vmem:[#allocation16 + $0x3f0] sm:$0xff]  ;;  %v2447_v18 = vld [vmem:[#allocation16 + $0x418] sm:$0xff] }
 0x5dd   :  { %4072 = vmatmul.mubr.bf16.gmra.mrb[64].mxu0 %v16471_v34  ;;  %v2450_v49 = vld [vmem:[#allocation16 + $0x430] sm:$0xff] }
 0x5de   :  { %4298 = vmatmul.mubr.bf16.gmra.mrb[80].mxu1 %v16471_v34  ;;  %4355 = vmatpush1.bf16.msra.mxu0 %v11623_v15  ;;  %v2427_v15 = vld [vmem:[#allocation16 + $0x378] sm:$0xff] }
 0x5df   :  { %4581 = vmatpush1.bf16.msra.mxu1 %v11625_v59  ;;  %4081 = vmatprep.mubr.bf16.mxu0 %v16480_v33  ;;  %v11655_v59 = vcombine.low %v2414_v50, %v2418_v13  ;;  %v11666_v53 = vcombine.high %v2423_v57, %v2427_v15 }
 0x5e0   :  { %4307 = vmatprep.mubr.bf16.mxu1 %v16480_v33  ;;  %4356 = vmatprep.subr.bf16.mxu0 %v11632_v0  ;;  %v2430_v0 = vld [vmem:[#allocation16 + $0x390] sm:$0xff] }
 0x5e1   :  { %4582 = vmatprep.subr.bf16.mxu1 %v11634_v10  ;;  %v11664_v10 = vcombine.high %v2422_v5, %v2426_v11 }
 0x5e2   :  { %4357 = vmatpush1.bf16.msra.mxu0 %v11631_v12  ;;  %v2435_v12 = vld [vmem:[#allocation16 + $0x3b8] sm:$0xff] }
 0x5e3   :  { %4583 = vmatpush1.bf16.msra.mxu1 %v11633_v56  ;;  %4358 = vmatprep.subr.bf16.mxu0 %v11640_v44  ;;  %v11663_v56 = vcombine.low %v2422_v5, %v2426_v11  ;;  %v11665_v44 = vcombine.low %v2423_v57, %v2427_v15  ;;  %v11674_v32 = vcombine.high %v2431_v21, %v2435_v12  ;;  %v2454_v11 = vld [vmem:[#allocation16 + $0x450] sm:$0xff]  ;;  %v2455_v15 = vld [vmem:[#allocation16 + $0x458] sm:$0xff] }
 0x5e4   :  { %4584 = vmatprep.subr.bf16.mxu1 %v11642_v39  ;;  %v11672_v39 = vcombine.high %v2430_v0, %v2434_v4  ;;  %v11673_v50 = vcombine.low %v2431_v21, %v2435_v12  ;;  %v2458_v57 = vld [vmem:[#allocation16 + $0x470] sm:$0xff]  ;;  %v2463_v12 = vld [vmem:[#allocation16 + $0x498] sm:$0xff] }
 0x5e5   :  { %4082 = vmatmul.mubr.bf16.gmra.mrb[68].mxu0 %v16491_v60  ;;  %v2466_v21 = vld [vmem:[#allocation16 + $0x4b0] sm:$0xff] }
 0x5e6   :  { %4308 = vmatmul.mubr.bf16.gmra.mrb[84].mxu1 %v16491_v60  ;;  %4359 = vmatpush1.bf16.msra.mxu0 %v11639_v2  ;;  %v2443_v2 = vld [vmem:[#allocation16 + $0x3f8] sm:$0xff] }
 0x5e7   :  { %4585 = vmatpush1.bf16.msra.mxu1 %v11641_v63  ;;  %4091 = vmatprep.mubr.bf16.mxu0 %v16500_v25  ;;  %v11671_v63 = vcombine.low %v2430_v0, %v2434_v4  ;;  %v11682_v13 = vcombine.high %v2439_v35, %v2443_v2 }
 0x5e8   :  { %4317 = vmatprep.mubr.bf16.mxu1 %v16500_v25  ;;  %4360 = vmatprep.subr.bf16.mxu0 %v11648_v41  ;;  %v2446_v41 = vld [vmem:[#allocation16 + $0x410] sm:$0xff] }
 0x5e9   :  { %4586 = vmatprep.subr.bf16.mxu1 %v11650_v43  ;;  %v11680_v43 = vcombine.high %v2438_v45, %v2442_v16 }
 0x5ea   :  { %4361 = vmatpush1.bf16.msra.mxu0 %v11647_v28  ;;  %v2451_v28 = vld [vmem:[#allocation16 + $0x438] sm:$0xff] }
 0x5eb   :  { %4587 = vmatpush1.bf16.msra.mxu1 %v11649_v61  ;;  %4362 = vmatprep.subr.bf16.mxu0 %v11656_v37  ;;  %v11679_v61 = vcombine.low %v2438_v45, %v2442_v16  ;;  %v11681_v37 = vcombine.low %v2439_v35, %v2443_v2  ;;  %v11690_v5 = vcombine.high %v2447_v18, %v2451_v28  ;;  %v2470_v45 = vld [vmem:[#allocation16 + $0x4d0] sm:$0xff]  ;;  %v2471_v35 = vld [vmem:[#allocation16 + $0x4d8] sm:$0xff] }
 0x5ec   :  { %4588 = vmatprep.subr.bf16.mxu1 %v11658_v8  ;;  %v11688_v8 = vcombine.high %v2446_v41, %v2450_v49  ;;  %v11689_v0 = vcombine.low %v2447_v18, %v2451_v28  ;;  %v2474_v16 = vld [vmem:[#allocation16 + $0x4f0] sm:$0xff]  ;;  %v2475_v2 = vld [vmem:[#allocation16 + $0x4f8] sm:$0xff] }
 0x5ed   :  { %4092 = vmatmul.mubr.bf16.gmra.mrb[72].mxu0 %v16516_v9  ;;  %v11711_v18 = vcombine.low %v2470_v45, %v2474_v16  ;;  %v11713_v28 = vcombine.low %v2471_v35, %v2475_v2 }
 0x5ee   :  { %4318 = vmatmul.mubr.bf16.gmra.mrb[88].mxu1 %v16516_v9  ;;  %4363 = vmatpush1.bf16.msra.mxu0 %v11655_v59  ;;  %v2459_v59 = vld [vmem:[#allocation16 + $0x478] sm:$0xff] }
 0x5ef   :  { %4589 = vmatpush1.bf16.msra.mxu1 %v11657_v24  ;;  %4101 = vmatprep.mubr.bf16.mxu0 %v16518_v19  ;;  %v11687_v24 = vcombine.low %v2446_v41, %v2450_v49  ;;  %v11698_v4 = vcombine.high %v2455_v15, %v2459_v59  ;;  %v11712_v41 = vcombine.high %v2470_v45, %v2474_v16  ;;  %v2479_v49 = vld [vmem:[#allocation16 + $0x518] sm:$0xff]  ;;  %v2510_v16 = vld [vmem:[#allocation16 + $0x610] sm:$0xff] }
 0x5f0   :  { %4327 = vmatprep.mubr.bf16.mxu1 %v16518_v19  ;;  %4364 = vmatprep.subr.bf16.mxu0 %v11664_v10  ;;  %v2462_v10 = vld [vmem:[#allocation16 + $0x490] sm:$0xff] }
 0x5f1   :  { %4590 = vmatprep.subr.bf16.mxu1 %v11666_v53  ;;  %v11696_v53 = vcombine.high %v2454_v11, %v2458_v57 }
 0x5f2   :  { %4365 = vmatpush1.bf16.msra.mxu0 %v11663_v56  ;;  %v11695_v56 = vcombine.low %v2454_v11, %v2458_v57  ;;  %v2487_v11 = vld [vmem:[#allocation16 + $0x558] sm:$0xff] }
 0x5f3   :  { %4591 = vmatpush1.bf16.msra.mxu1 %v11665_v44  ;;  %4366 = vmatprep.subr.bf16.mxu0 %v11672_v39  ;;  %v11697_v44 = vcombine.low %v2455_v15, %v2459_v59  ;;  %v11704_v39 = vcombine.high %v2462_v10, %v2466_v21  ;;  %v2491_v57 = vld [vmem:[#allocation16 + $0x578] sm:$0xff]  ;;  %v2494_v59 = vld [vmem:[#allocation16 + $0x590] sm:$0xff] }
 0x5f4   :  { %4592 = vmatprep.subr.bf16.mxu1 %v11674_v32 }
 0x5f5   :  { %4102 = vmatmul.mubr.bf16.gmra.mrb[76].mxu0 %v16522_v23 }
 0x5f6   :  { %4328 = vmatmul.mubr.bf16.gmra.mrb[92].mxu1 %v16522_v23  ;;  %4367 = vmatpush1.bf16.msra.mxu0 %v11671_v63  ;;  %v11703_v63 = vcombine.low %v2462_v10, %v2466_v21  ;;  %v2498_v10 = vld [vmem:[#allocation16 + $0x5b0] sm:$0xff]  ;;  %v11729_v21 = vcombine.low %v2487_v11, %v2491_v57 }
 0x5f7   :  { %4593 = vmatpush1.bf16.msra.mxu1 %v11673_v50  ;;  %4370 = vmatprep.mubr.bf16.mxu0 %v16189_v42  ;;  %v2478_v50 = vld [vmem:[#allocation16 + $0x510] sm:$0xff]  ;;  %v11735_v45 = vcombine.low %v2494_v59, %v2498_v10 }
 0x5f8   :  { %4596 = vmatprep.mubr.bf16.mxu1 %v16189_v42  ;;  %4368 = vmatprep.subr.bf16.mxu0 %v11680_v43  ;;  %v2467_v42 = vld [vmem:[#allocation16 + $0x4b8] sm:$0xff]  ;;  %v11714_v43 = vcombine.high %v2471_v35, %v2475_v2 }
 0x5f9   :  { %4594 = vmatprep.subr.bf16.mxu1 %v11682_v13  ;;  %v11706_v32 = vcombine.high %v2463_v12, %v2467_v42  ;;  %v2482_v13 = vld [vmem:[#allocation16 + $0x530] sm:$0xff] }
 0x5fa   :  { %4369 = vmatpush1.bf16.msra.mxu0 %v11679_v61  ;;  %v11720_v61 = vcombine.high %v2478_v50, %v2482_v13  ;;  %v11719_v15 = vcombine.low %v2478_v50, %v2482_v13 }
 0x5fb   :  { %4595 = vmatpush1.bf16.msra.mxu1 %v11681_v37  ;;  %4451 = vmatprep.subr.bf16.mxu0 %v11688_v8  ;;  %v2486_v8 = vld [vmem:[#allocation16 + $0x550] sm:$0xff] }
 0x5fc   :  { %4677 = vmatprep.subr.bf16.mxu1 %v11690_v5  ;;  %v2490_v5 = vld [vmem:[#allocation16 + $0x570] sm:$0xff] }
 0x5fd   :  { %4371 = vmatmul.mubr.bf16.vlgmr.msra.gmra.mrb[80].mxu0 %v16193_v38 }
 0x5fe   :  { %4597 = vmatmul.mubr.bf16.vlgmr.msra.gmra.mrb[96].mxu1 %v16193_v38  ;;  %4452 = vmatpush1.bf16.msra.mxu0 %v11687_v24  ;;  %v11705_v38 = vcombine.low %v2463_v12, %v2467_v42  ;;  %v11728_v24 = vcombine.high %v2486_v8, %v2490_v5  ;;  %v11736_v12 = vcombine.high %v2494_v59, %v2498_v10  ;;  %v2538_v10 = vld [vmem:[#allocation16 + $0x6f0] sm:$0xff] }
 0x5ff   :  { %4678 = vmatpush1.bf16.msra.mxu1 %v11689_v0  ;;  %4380 = vmatprep.mubr.bf16.mxu0 %v16195_v51  ;;  %v11730_v0 = vcombine.high %v2487_v11, %v2491_v57  ;;  %v2530_v11 = vld [vmem:[#allocation16 + $0x6b0] sm:$0xff]  ;;  %v2527_v57 = vld [vmem:[#allocation16 + $0x698] sm:$0xff] }
 0x600   :  { %4606 = vmatprep.mubr.bf16.mxu1 %v16195_v51  ;;  %4453 = vmatprep.subr.bf16.mxu0 %v11696_v53  ;;  %v2483_v51 = vld [vmem:[#allocation16 + $0x538] sm:$0xff] }
 0x601   :  { %4679 = vmatprep.subr.bf16.mxu1 %v11698_v4  ;;  %v11722_v37 = vcombine.high %v2479_v49, %v2483_v51  ;;  %v2495_v53 = vld [vmem:[#allocation16 + $0x598] sm:$0xff]  ;;  %v11727_v4 = vcombine.low %v2486_v8, %v2490_v5 }
 0x602   :  { %4454 = vmatpush1.bf16.msra.mxu0 %v11695_v56  ;;  %v2502_v56 = vld [vmem:[#allocation16 + $0x5d0] sm:$0xff] }
 0x603   :  { %4680 = vmatpush1.bf16.msra.mxu1 %v11697_v44  ;;  %4455 = vmatprep.subr.bf16.mxu0 %v11704_v39  ;;  %v2506_v44 = vld [vmem:[#allocation16 + $0x5f0] sm:$0xff]  ;;  %v2503_v39 = vld [vmem:[#allocation16 + $0x5d8] sm:$0xff] }
 0x604   :  { %4681 = vmatprep.subr.bf16.mxu1 %v11706_v32  ;;  %v2507_v32 = vld [vmem:[#allocation16 + $0x5f8] sm:$0xff]  ;;  %v11744_v35 = vcombine.high %v2502_v56, %v2506_v44  ;;  %v11743_v50 = vcombine.low %v2502_v56, %v2506_v44  ;;  %v2546_v56 = vld [vmem:[#allocation16 + $0x730] sm:$0xff] }
 0x605   :  { %4381 = vmatmul.mubr.bf16.gmra.mrb[84].mxu0 %v16207_v62  ;;  %v11746_v2 = vcombine.high %v2503_v39, %v2507_v32  ;;  %v2543_v44 = vld [vmem:[#allocation16 + $0x718] sm:$0xff] }
 0x606   :  { %4607 = vmatmul.mubr.bf16.gmra.mrb[100].mxu1 %v16207_v62  ;;  %4456 = vmatpush1.bf16.msra.mxu0 %v11703_v63  ;;  %v11721_v62 = vcombine.low %v2479_v49, %v2483_v51  ;;  %v2514_v63 = vld [vmem:[#allocation16 + $0x630] sm:$0xff] }
 0x607   :  { %4682 = vmatpush1.bf16.msra.mxu1 %v11705_v38  ;;  %4390 = vmatprep.mubr.bf16.mxu0 %v16219_v30  ;;  %v2511_v38 = vld [vmem:[#allocation16 + $0x618] sm:$0xff]  ;;  %v2518_v49 = vld [vmem:[#allocation16 + $0x650] sm:$0xff] }
 0x608   :  { %4616 = vmatprep.mubr.bf16.mxu1 %v16219_v30  ;;  %4457 = vmatprep.subr.bf16.mxu0 %v11712_v41  ;;  %v2499_v30 = vld [vmem:[#allocation16 + $0x5b8] sm:$0xff]  ;;  %v11745_v41 = vcombine.low %v2503_v39, %v2507_v32  ;;  %v2522_v51 = vld [vmem:[#allocation16 + $0x670] sm:$0xff] }
 0x609   :  { %4683 = vmatprep.subr.bf16.mxu1 %v11714_v43  ;;  %v11738_v42 = vcombine.high %v2495_v53, %v2499_v30  ;;  %v11752_v43 = vcombine.high %v2510_v16, %v2514_v63  ;;  %v11760_v8 = vcombine.high %v2518_v49, %v2522_v51 }
 0x60a   :  { %4458 = vmatpush1.bf16.msra.mxu0 %v11711_v18  ;;  %v2519_v18 = vld [vmem:[#allocation16 + $0x658] sm:$0xff] }
 0x60b   :  { %4684 = vmatpush1.bf16.msra.mxu1 %v11713_v28  ;;  %4459 = vmatprep.subr.bf16.mxu0 %v11720_v61  ;;  %v2523_v28 = vld [vmem:[#allocation16 + $0x678] sm:$0xff]  ;;  %v11751_v61 = vcombine.low %v2510_v16, %v2514_v63  ;;  %v2550_v16 = vld [vmem:[#allocation16 + $0x750] sm:$0xff] }
 0x60c   :  { %4685 = vmatprep.subr.bf16.mxu1 %v11722_v37  ;;  %v2526_v37 = vld [vmem:[#allocation16 + $0x690] sm:$0xff]  ;;  %v11762_v5 = vcombine.high %v2519_v18, %v2523_v28  ;;  %v2555_v63 = vld [vmem:[#allocation16 + $0x778] sm:$0xff] }
 0x60d   :  { %4391 = vmatmul.mubr.bf16.gmra.mrb[88].mxu0 %v16235_v31  ;;  %v11768_v59 = vcombine.high %v2526_v37, %v2530_v11 }
 0x60e   :  { %4617 = vmatmul.mubr.bf16.gmra.mrb[104].mxu1 %v16235_v31  ;;  %4460 = vmatpush1.bf16.msra.mxu0 %v11719_v15  ;;  %v11737_v31 = vcombine.low %v2495_v53, %v2499_v30  ;;  %v11759_v15 = vcombine.low %v2518_v49, %v2522_v51  ;;  %v2535_v53 = vld [vmem:[#allocation16 + $0x6d8] sm:$0xff] }
 0x60f   :  { %4686 = vmatpush1.bf16.msra.mxu1 %v11721_v62  ;;  %4400 = vmatprep.mubr.bf16.mxu0 %v16241_v58  ;;  %v11761_v62 = vcombine.low %v2519_v18, %v2523_v28  ;;  %v2539_v30 = vld [vmem:[#allocation16 + $0x6f8] sm:$0xff] }
 0x610   :  { %4626 = vmatprep.mubr.bf16.mxu1 %v16241_v58  ;;  %4461 = vmatprep.subr.bf16.mxu0 %v11728_v24  ;;  %v2515_v58 = vld [vmem:[#allocation16 + $0x638] sm:$0xff]  ;;  %v11777_v32 = vcombine.low %v2535_v53, %v2539_v30 }
 0x611   :  { %4687 = vmatprep.subr.bf16.mxu1 %v11730_v0  ;;  %v11754_v13 = vcombine.high %v2511_v38, %v2515_v58  ;;  %v2534_v0 = vld [vmem:[#allocation16 + $0x6d0] sm:$0xff] }
 0x612   :  { %4462 = vmatpush1.bf16.msra.mxu0 %v11727_v4  ;;  %v11767_v4 = vcombine.low %v2526_v37, %v2530_v11  ;;  %v11775_v39 = vcombine.low %v2534_v0, %v2538_v10  ;;  %v2567_v37 = vld [vmem:[#allocation16 + $0x7d8] sm:$0xff] }
 0x613   :  { %4688 = vmatpush1.bf16.msra.mxu1 %v11729_v21  ;;  %4463 = vmatprep.subr.bf16.mxu0 %v11736_v12  ;;  %v2542_v21 = vld [vmem:[#allocation16 + $0x710] sm:$0xff]  ;;  %v11776_v12 = vcombine.high %v2534_v0, %v2538_v10 }
 0x614   :  { %4689 = vmatprep.subr.bf16.mxu1 %v11738_v42  ;;  %v11778_v42 = vcombine.high %v2535_v53, %v2539_v30 }
 0x615   :  { %4401 = vmatmul.mubr.bf16.gmra.mrb[92].mxu0 %v16251_v17 }
 0x616   :  { %4627 = vmatmul.mubr.bf16.gmra.mrb[108].mxu1 %v16251_v17  ;;  %4464 = vmatpush1.bf16.msra.mxu0 %v11735_v45  ;;  %v11753_v17 = vcombine.low %v2511_v38, %v2515_v58  ;;  %v11784_v45 = vcombine.high %v2542_v21, %v2546_v56  ;;  %v11783_v38 = vcombine.low %v2542_v21, %v2546_v56  ;;  %v2558_v58 = vld [vmem:[#allocation16 + $0x790] sm:$0xff] }
 0x617   :  { %4690 = vmatpush1.bf16.msra.mxu1 %v11737_v31  ;;  %4410 = vmatprep.mubr.bf16.mxu0 %v16261_v40 }
 0x618   :  { %4636 = vmatprep.mubr.bf16.mxu1 %v16261_v40  ;;  %4465 = vmatprep.subr.bf16.mxu0 %v11744_v35  ;;  %v2531_v40 = vld [vmem:[#allocation16 + $0x6b8] sm:$0xff]  ;;  %v2554_v35 = vld [vmem:[#allocation16 + $0x770] sm:$0xff] }
 0x619   :  { %4691 = vmatprep.subr.bf16.mxu1 %v11746_v2  ;;  %v11770_v24 = vcombine.high %v2527_v57, %v2531_v40  ;;  %v2551_v2 = vld [vmem:[#allocation16 + $0x758] sm:$0xff]  ;;  %v11791_v49 = vcombine.low %v2550_v16, %v2554_v35 }
 0x61a   :  { %4466 = vmatpush1.bf16.msra.mxu0 %v11743_v50  ;;  %v11792_v50 = vcombine.high %v2550_v16, %v2554_v35  ;;  %v11793_v51 = vcombine.low %v2551_v2, %v2555_v63 }
 0x61b   :  { %4692 = vmatpush1.bf16.msra.mxu1 %v11745_v41  ;;  %4467 = vmatprep.subr.bf16.mxu0 %v11752_v43  ;;  %v11794_v41 = vcombine.high %v2551_v2, %v2555_v63  ;;  %v2562_v43 = vld [vmem:[#allocation16 + $0x7b0] sm:$0xff] }
 0x61c   :  { %4693 = vmatprep.subr.bf16.mxu1 %v11754_v13  ;;  %v2559_v13 = vld [vmem:[#allocation16 + $0x798] sm:$0xff]  ;;  %v11800_v18 = vcombine.high %v2558_v58, %v2562_v43 }
 0x61d   :  { %4411 = vmatmul.mubr.bf16.gmra.mrb[96].mxu0 %v16267_v55 }
 0x61e   :  { %4637 = vmatmul.mubr.bf16.gmra.mrb[112].mxu1 %v16267_v55  ;;  %4468 = vmatpush1.bf16.msra.mxu0 %v11751_v61  ;;  %v11769_v55 = vcombine.low %v2527_v57, %v2531_v40  ;;  %v2566_v61 = vld [vmem:[#allocation16 + $0x7d0] sm:$0xff] }
 0x61f   :  { %4694 = vmatpush1.bf16.msra.mxu1 %v11753_v17  ;;  %4420 = vmatprep.mubr.bf16.mxu0 %v16285_v1  ;;  %v2570_v17 = vld [vmem:[#allocation16 + $0x7f0] sm:$0xff] }
 0x620   :  { %4646 = vmatprep.mubr.bf16.mxu1 %v16285_v1  ;;  %4469 = vmatprep.subr.bf16.mxu0 %v11760_v8  ;;  %v2547_v1 = vld [vmem:[#allocation16 + $0x738] sm:$0xff]  ;;  %v11808_v11 = vcombine.high %v2566_v61, %v2570_v17 }
 0x621   :  { %4695 = vmatprep.subr.bf16.mxu1 %v11762_v5  ;;  %v11786_v31 = vcombine.high %v2543_v44, %v2547_v1  ;;  %v2571_v8 = vld [vmem:[#allocation16 + $0x7f8] sm:$0xff]  ;;  %v11799_v5 = vcombine.low %v2558_v58, %v2562_v43 }
 0x622   :  { %4470 = vmatpush1.bf16.msra.mxu0 %v11759_v15  ;;  %v11810_v57 = vcombine.high %v2567_v37, %v2571_v8  ;;  %v11809_v40 = vcombine.low %v2567_v37, %v2571_v8 }
 0x623   :  { %4696 = vmatpush1.bf16.msra.mxu1 %v11761_v62  ;;  %4471 = vmatprep.subr.bf16.mxu0 %v11768_v59 }
 0x624   :  { %4697 = vmatprep.subr.bf16.mxu1 %v11770_v24 }
 0x625   :  { %4421 = vmatmul.mubr.bf16.gmra.mrb[100].mxu0 %v16291_v36 }
 0x626   :  { %4647 = vmatmul.mubr.bf16.gmra.mrb[116].mxu1 %v16291_v36  ;;  %4472 = vmatpush1.bf16.msra.mxu0 %v11767_v4  ;;  %v11785_v36 = vcombine.low %v2543_v44, %v2547_v1 }
 0x627   :  { %4698 = vmatpush1.bf16.msra.mxu1 %v11769_v55  ;;  %4430 = vmatprep.mubr.bf16.mxu0 %v16301_v7 }
 0x628   :  { %4656 = vmatprep.mubr.bf16.mxu1 %v16301_v7  ;;  %4473 = vmatprep.subr.bf16.mxu0 %v11776_v12  ;;  %v2563_v7 = vld [vmem:[#allocation16 + $0x7b8] sm:$0xff] }
 0x629   :  { %4699 = vmatprep.subr.bf16.mxu1 %v11778_v42  ;;  %v11802_v28 = vcombine.high %v2559_v13, %v2563_v7 }
 0x62a   :  { %4474 = vmatpush1.bf16.msra.mxu0 %v11775_v39 }
 0x62b   :  { %4700 = vmatpush1.bf16.msra.mxu1 %v11777_v32  ;;  %4475 = vmatprep.subr.bf16.mxu0 %v11784_v45 }
 0x62c   :  { %4701 = vmatprep.subr.bf16.mxu1 %v11786_v31 }
 0x62d   :  { %4431 = vmatmul.mubr.bf16.gmra.mrb[104].mxu0 %v16307_v20 }
 0x62e   :  { %4657 = vmatmul.mubr.bf16.gmra.mrb[120].mxu1 %v16307_v20  ;;  %4476 = vmatpush1.bf16.msra.mxu0 %v11783_v38  ;;  %v11801_v20 = vcombine.low %v2559_v13, %v2563_v7 }
 0x62f   :  { %4702 = vmatpush1.bf16.msra.mxu1 %v11785_v36  ;;  %4440 = vmatprep.mubr.bf16.mxu0 %v16329_v27 }
 0x630   :  { %4666 = vmatprep.mubr.bf16.mxu1 %v16329_v27  ;;  %4477 = vmatprep.subr.bf16.mxu0 %v11792_v50  ;;  %v11807_v27 = vcombine.low %v2566_v61, %v2570_v17 }
 0x631   :  { %4703 = vmatprep.subr.bf16.mxu1 %v11794_v41 }
 0x632   :  { %4478 = vmatpush1.bf16.msra.mxu0 %v11791_v49 }
 0x633   :  { %4704 = vmatpush1.bf16.msra.mxu1 %v11793_v51  ;;  %4479 = vmatprep.subr.bf16.mxu0 %v11800_v18 }
 0x634   :  { %4705 = vmatprep.subr.bf16.mxu1 %v11802_v28 }
 0x635   :  { %4441 = vmatmul.mubr.bf16.gmra.mrb[108].mxu0 %v16333_v48 }
 0x636   :  { %4667 = vmatmul.mubr.bf16.gmra.mrb[124].mxu1 %v16333_v48  ;;  %4480 = vmatpush1.bf16.msra.mxu0 %v11799_v5 }
 0x637   :  { %4706 = vmatpush1.bf16.msra.mxu1 %v11801_v20  ;;  %4483 = vmatprep.mubr.bf16.mxu0 %v16339_v6 }
 0x638   :  { %4709 = vmatprep.mubr.bf16.mxu1 %v16339_v6  ;;  %4481 = vmatprep.subr.bf16.mxu0 %v11808_v11 }
 0x639   :  { %4707 = vmatprep.subr.bf16.mxu1 %v11810_v57 }
 0x63a   :  { %4482 = vmatpush1.bf16.msra.mxu0 %v11807_v27 }
 0x63b   :  { %4708 = vmatpush1.bf16.msra.mxu1 %v11809_v40 }
 0x63d   :  { %4484 = vmatmul.mubr.bf16.vlgmr.msra.gmra.mrb[80].mxu0 %v16351_v46 }
 0x63e   :  { %4710 = vmatmul.mubr.bf16.vlgmr.msra.gmra.mrb[96].mxu1 %v16351_v46  ;;  %4493 = vmatprep.mubr.bf16.mxu0 %v16369_v52 }
 0x63f   :  { %4719 = vmatprep.mubr.bf16.mxu1 %v16369_v52 }
 0x645   :  { %4494 = vmatmul.mubr.bf16.gmra.mrb[84].mxu0 %v16373_v47 }
 0x646   :  { %4720 = vmatmul.mubr.bf16.gmra.mrb[100].mxu1 %v16373_v47  ;;  %4503 = vmatprep.mubr.bf16.mxu0 %v16398_v14 }
 0x647   :  { %4729 = vmatprep.mubr.bf16.mxu1 %v16398_v14 }
 0x64d   :  { %4504 = vmatmul.mubr.bf16.gmra.mrb[88].mxu0 %v16406_v29 }
 0x64e   :  { %4730 = vmatmul.mubr.bf16.gmra.mrb[104].mxu1 %v16406_v29  ;;  %4513 = vmatprep.mubr.bf16.mxu0 %v16433_v54 }
 0x64f   :  { %4739 = vmatprep.mubr.bf16.mxu1 %v16433_v54 }
 0x655   :  { %4514 = vmatmul.mubr.bf16.gmra.mrb[92].mxu0 %v16438_v26 }
 0x656   :  { %4740 = vmatmul.mubr.bf16.gmra.mrb[108].mxu1 %v16438_v26  ;;  %4523 = vmatprep.mubr.bf16.mxu0 %v16459_v3 }
 0x657   :  { %4749 = vmatprep.mubr.bf16.mxu1 %v16459_v3 }
 0x65d   :  { %4524 = vmatmul.mubr.bf16.gmra.mrb[96].mxu0 %v16471_v34 }
 0x65e   :  { %4750 = vmatmul.mubr.bf16.gmra.mrb[112].mxu1 %v16471_v34  ;;  %4533 = vmatprep.mubr.bf16.mxu0 %v16480_v33 }
 0x65f   :  { %4759 = vmatprep.mubr.bf16.mxu1 %v16480_v33 }
 0x665   :  { %4534 = vmatmul.mubr.bf16.gmra.mrb[100].mxu0 %v16491_v60 }
 0x666   :  { %4760 = vmatmul.mubr.bf16.gmra.mrb[116].mxu1 %v16491_v60  ;;  %4543 = vmatprep.mubr.bf16.mxu0 %v16500_v25 }
 0x667   :  { %4769 = vmatprep.mubr.bf16.mxu1 %v16500_v25 }
 0x66d   :  { %4544 = vmatmul.mubr.bf16.gmra.mrb[104].mxu0 %v16516_v9 }
 0x66e   :  { %4770 = vmatmul.mubr.bf16.gmra.mrb[120].mxu1 %v16516_v9  ;;  %4553 = vmatprep.mubr.bf16.mxu0 %v16518_v19 }
 0x66f   :  { %4779 = vmatprep.mubr.bf16.mxu1 %v16518_v19 }
 0x675   :  { %4554 = vmatmul.mubr.bf16.gmra.mrb[108].mxu0 %v16522_v23 }
 0x676   :  { %4780 = vmatmul.mubr.bf16.gmra.mrb[124].mxu1 %v16522_v23 }
 0x690   :  { %v16626_v48 = vpop.f32.mrb[48].mxu0 }
 0x691   :  { %19682 = vst [vmem:[#allocation80_spill] sm:$0xff] %v16626_v48  ;;  %v16628_v6 = vpop.f32.mrb[64].mxu1  ;;  %v16630_v46 = vpop.f32.mrb[49].mxu0 }
 0x692   :  { %19683 = vst [vmem:[#allocation37_spill] sm:$0xff] %v16628_v6  ;;  %19684 = vst [vmem:[#allocation39_spill] sm:$0xff] %v16630_v46  ;;  %v16632_v52 = vpop.f32.mrb[65].mxu1  ;;  %v16634_v47 = vpop.f32.mrb[50].mxu0 }
 0x693   :  { %19685 = vst [vmem:[#allocation36_spill] sm:$0xff] %v16632_v52  ;;  %19686 = vst [vmem:[#allocation38_spill] sm:$0xff] %v16634_v47  ;;  %v16636_v14 = vpop.f32.mrb[66].mxu1  ;;  %v4790_v29 = vadd.f32 %v16634_v47, %v16626_v48  ;;  %v16642_v26 = vpop.f32.mrb[51].mxu0 }
 0x694   :  { %19687 = vst [vmem:[#allocation41_spill] sm:$0xff] %v16636_v14  ;;  %v4832_v54 = vadd.f32 %v16636_v14, %v16628_v6  ;;  %19688 = vst [vmem:[#allocation43_spill] sm:$0xff] %v16642_v26  ;;  %v16644_v3 = vpop.f32.mrb[67].mxu1  ;;  %v4811_v34 = vadd.f32 %v16642_v26, %v16630_v46 }
 0x695   :  { %19689 = vst [vmem:[#allocation40_spill] sm:$0xff] %v16644_v3  ;;  %v4853_v33 = vadd.f32 %v16644_v3, %v16632_v52 }
 0x698   :  { %v16650_v60 = vpop.f32.mrb[52].mxu0 }
 0x699   :  { %19690 = vst [vmem:[#allocation42_spill] sm:$0xff] %v16650_v60  ;;  %v16652_v25 = vpop.f32.mrb[68].mxu1  ;;  %v4791_v9 = vadd.f32 %v4790_v29, %v16650_v60  ;;  %v16656_v23 = vpop.f32.mrb[53].mxu0 }
 0x69a   :  { %19691 = vst [vmem:[#allocation45_spill] sm:$0xff] %v16652_v25  ;;  %v4833_v19 = vadd.f32 %v4832_v54, %v16652_v25  ;;  %19692 = vst [vmem:[#allocation48_spill] sm:$0xff] %v16656_v23  ;;  %v16658_v15 = vpop.f32.mrb[69].mxu1  ;;  %v4812_v62 = vadd.f32 %v4811_v34, %v16656_v23  ;;  %v16662_v24 = vpop.f32.mrb[54].mxu0 }
 0x69b   :  { %19693 = vst [vmem:[#allocation51_spill] sm:$0xff] %v16658_v15  ;;  %v4854_v59 = vadd.f32 %v4853_v33, %v16658_v15  ;;  %19694 = vst [vmem:[#allocation54_spill] sm:$0xff] %v16662_v24  ;;  %v16664_v0 = vpop.f32.mrb[70].mxu1  ;;  %v4792_v10 = vadd.f32 %v4791_v9, %v16662_v24  ;;  %v16668_v30 = vpop.f32.mrb[55].mxu0 }
 0x69c   :  { %19695 = vst [vmem:[#allocation57_spill] sm:$0xff] %v16664_v0  ;;  %v4834_v53 = vadd.f32 %v4833_v19, %v16664_v0  ;;  %19696 = vst [vmem:[#allocation60_spill] sm:$0xff] %v16668_v30  ;;  %v16670_v4 = vpop.f32.mrb[71].mxu1  ;;  %v4813_v55 = vadd.f32 %v4812_v62, %v16668_v30 }
 0x69d   :  { %19697 = vst [vmem:[#allocation63_spill] sm:$0xff] %v16670_v4  ;;  %v4855_v21 = vadd.f32 %v4854_v59, %v16670_v4 }
 0x6a0   :  { %v16674_v12 = vpop.f32.mrb[56].mxu0 }
 0x6a1   :  { %19698 = vst [vmem:[#allocation66_spill] sm:$0xff] %v16674_v12  ;;  %v16676_v42 = vpop.f32.mrb[72].mxu1  ;;  %v4793_v56 = vadd.f32 %v4792_v10, %v16674_v12  ;;  %v16680_v1 = vpop.f32.mrb[57].mxu0 }
 0x6a2   :  { %19699 = vst [vmem:[#allocation74_spill] sm:$0xff] %v16676_v42  ;;  %v4835_v44 = vadd.f32 %v4834_v53, %v16676_v42  ;;  %19700 = vst [vmem:[#allocation83_spill] sm:$0xff] %v16680_v1  ;;  %v16682_v39 = vpop.f32.mrb[73].mxu1  ;;  %v4814_v32 = vadd.f32 %v4813_v55, %v16680_v1  ;;  %v16686_v31 = vpop.f32.mrb[58].mxu0 }
 0x6a3   :  { %19701 = vst [vmem:[#allocation84_spill] sm:$0xff] %v16682_v39  ;;  %v4856_v45 = vadd.f32 %v4855_v21, %v16682_v39  ;;  %19702 = vst [vmem:[#allocation85_spill] sm:$0xff] %v16686_v31  ;;  %v16688_v16 = vpop.f32.mrb[74].mxu1  ;;  %v4794_v35 = vadd.f32 %v4793_v56, %v16686_v31  ;;  %v16692_v63 = vpop.f32.mrb[59].mxu0 }
 0x6a4   :  { %19703 = vst [vmem:[#allocation86_spill] sm:$0xff] %v16688_v16  ;;  %v4836_v2 = vadd.f32 %v4835_v44, %v16688_v16  ;;  %19704 = vst [vmem:[#allocation68_spill] sm:$0xff] %v16692_v63  ;;  %v16694_v38 = vpop.f32.mrb[75].mxu1  ;;  %v4815_v36 = vadd.f32 %v4814_v32, %v16692_v63 }
 0x6a5   :  { %19705 = vst [vmem:[#allocation72_spill] sm:$0xff] %v16694_v38  ;;  %v4857_v58 = vadd.f32 %v4856_v45, %v16694_v38 }
 0x6a8   :  { %v16698_v50 = vpop.f32.mrb[60].mxu0 }
 0x6a9   :  { %19706 = vst [vmem:[#allocation46_spill] sm:$0xff] %v16698_v50  ;;  %v16700_v41 = vpop.f32.mrb[76].mxu1  ;;  %v4795_v43 = vadd.f32 %v4794_v35, %v16698_v50  ;;  %v16704_v7 = vpop.f32.mrb[61].mxu0 }
 0x6aa   :  { %19707 = vst [vmem:[#allocation106_spill] sm:$0xff] %v16700_v41  ;;  %v4837_v13 = vadd.f32 %v4836_v2, %v16700_v41  ;;  %19708 = vst [vmem:[#allocation49_spill] sm:$0xff] %v16704_v7  ;;  %v16706_v49 = vpop.f32.mrb[77].mxu1  ;;  %v4816_v51 = vadd.f32 %v4815_v36, %v16704_v7  ;;  %v16710_v28 = vpop.f32.mrb[62].mxu0 }
 0x6ab   :  { %19709 = vst [vmem:[#allocation44_spill] sm:$0xff] %v16706_v49  ;;  %v4858_v18 = vadd.f32 %v4857_v58, %v16706_v49  ;;  %19710 = vst [vmem:[#allocation105_spill] sm:$0xff] %v16710_v28  ;;  %v16712_v61 = vpop.f32.mrb[78].mxu1  ;;  %v4796_v17 = vadd.f32 %v4795_v43, %v16710_v28  ;;  %v16716_v8 = vpop.f32.mrb[63].mxu0 }
 0x6ac   :  { %19711 = vst [vmem:[#allocation47_spill] sm:$0xff] %v16712_v61  ;;  %v4838_v37 = vadd.f32 %v4837_v13, %v16712_v61  ;;  %19712 = vst [vmem:[#allocation87_spill] sm:$0xff] %v16716_v8  ;;  %v16718_v5 = vpop.f32.mrb[79].mxu1  ;;  %v4817_v20 = vadd.f32 %v4816_v51, %v16716_v8 }
 0x6ad   :  { %19713 = vst [vmem:[#allocation88_spill] sm:$0xff] %v16718_v5  ;;  %v4859_v11 = vadd.f32 %v4858_v18, %v16718_v5 }
 0x6b0   :  { %v16722_v57 = vpop.f32.mrb[64].mxu0 }
 0x6b1   :  { %19714 = vst [vmem:[#allocation89_spill] sm:$0xff] %v16722_v57  ;;  %v16724_v27 = vpop.f32.mrb[80].mxu1  ;;  %v4797_v40 = vadd.f32 %v4796_v17, %v16722_v57  ;;  %v16728_v54 = vpop.f32.mrb[65].mxu0 }
 0x6b2   :  { %19715 = vst [vmem:[#allocation90_spill] sm:$0xff] %v16724_v27  ;;  %v4839_v29 = vadd.f32 %v4838_v37, %v16724_v27  ;;  %19716 = vst [vmem:[#allocation52_spill] sm:$0xff] %v16728_v54  ;;  %v16730_v34 = vpop.f32.mrb[81].mxu1  ;;  %v4818_v33 = vadd.f32 %v4817_v20, %v16728_v54  ;;  %v16734_v19 = vpop.f32.mrb[66].mxu0 }
 0x6b3   :  { %19717 = vst [vmem:[#allocation55_spill] sm:$0xff] %v16730_v34  ;;  %v4860_v9 = vadd.f32 %v4859_v11, %v16730_v34  ;;  %19718 = vst [vmem:[#allocation50_spill] sm:$0xff] %v16734_v19  ;;  %v16736_v62 = vpop.f32.mrb[82].mxu1  ;;  %v4798_v59 = vadd.f32 %v4797_v40, %v16734_v19  ;;  %v16740_v53 = vpop.f32.mrb[67].mxu0 }
 0x6b4   :  { %19719 = vst [vmem:[#allocation91_spill] sm:$0xff] %v16736_v62  ;;  %v4840_v10 = vadd.f32 %v4839_v29, %v16736_v62  ;;  %19720 = vst [vmem:[#allocation92_spill] sm:$0xff] %v16740_v53  ;;  %v16742_v55 = vpop.f32.mrb[83].mxu1  ;;  %v4819_v21 = vadd.f32 %v4818_v33, %v16740_v53 }
 0x6b5   :  { %19721 = vst [vmem:[#allocation93_spill] sm:$0xff] %v16742_v55  ;;  %v4861_v56 = vadd.f32 %v4860_v9, %v16742_v55 }
 0x6b8   :  { %v16746_v44 = vpop.f32.mrb[68].mxu0 }
 0x6b9   :  { %19722 = vst [vmem:[#allocation94_spill] sm:$0xff] %v16746_v44  ;;  %v16748_v32 = vpop.f32.mrb[84].mxu1  ;;  %v4799_v45 = vadd.f32 %v4798_v59, %v16746_v44  ;;  %v16752_v2 = vpop.f32.mrb[69].mxu0 }
 0x6ba   :  { %19723 = vst [vmem:[#allocation53_spill] sm:$0xff] %v16748_v32  ;;  %v4841_v35 = vadd.f32 %v4840_v10, %v16748_v32  ;;  %19724 = vst [vmem:[#allocation58_spill] sm:$0xff] %v16752_v2  ;;  %v16754_v36 = vpop.f32.mrb[85].mxu1  ;;  %v4820_v58 = vadd.f32 %v4819_v21, %v16752_v2  ;;  %v16758_v13 = vpop.f32.mrb[70].mxu0 }
 0x6bb   :  { %19725 = vst [vmem:[#allocation61_spill] sm:$0xff] %v16754_v36  ;;  %v4862_v43 = vadd.f32 %v4861_v56, %v16754_v36  ;;  %19726 = vst [vmem:[#allocation56_spill] sm:$0xff] %v16758_v13  ;;  %v16760_v51 = vpop.f32.mrb[86].mxu1  ;;  %v4800_v18 = vadd.f32 %v4799_v45, %v16758_v13  ;;  %v16764_v37 = vpop.f32.mrb[71].mxu0 }
 0x6bc   :  { %19727 = vst [vmem:[#allocation59_spill] sm:$0xff] %v16760_v51  ;;  %v4842_v17 = vadd.f32 %v4841_v35, %v16760_v51  ;;  %19728 = vst [vmem:[#allocation64_spill] sm:$0xff] %v16764_v37  ;;  %v16766_v20 = vpop.f32.mrb[87].mxu1  ;;  %v4821_v11 = vadd.f32 %v4820_v58, %v16764_v37 }
 0x6bd   :  { %19729 = vst [vmem:[#allocation95_spill] sm:$0xff] %v16766_v20  ;;  %v4863_v40 = vadd.f32 %v4862_v43, %v16766_v20 }
 0x6c0   :  { %v16770_v29 = vpop.f32.mrb[72].mxu0 }
 0x6c1   :  { %19730 = vst [vmem:[#allocation96_spill] sm:$0xff] %v16770_v29  ;;  %v16772_v33 = vpop.f32.mrb[88].mxu1  ;;  %v4801_v9 = vadd.f32 %v4800_v18, %v16770_v29  ;;  %v16776_v10 = vpop.f32.mrb[73].mxu0 }
 0x6c2   :  { %19731 = vst [vmem:[#allocation97_spill] sm:$0xff] %v16772_v33  ;;  %v4843_v59 = vadd.f32 %v4842_v17, %v16772_v33  ;;  %19732 = vst [vmem:[#allocation98_spill] sm:$0xff] %v16776_v10  ;;  %v16778_v21 = vpop.f32.mrb[89].mxu1  ;;  %v4822_v56 = vadd.f32 %v4821_v11, %v16776_v10  ;;  %v16782_v35 = vpop.f32.mrb[74].mxu0 }
 0x6c3   :  { %19733 = vst [vmem:[#allocation67_spill] sm:$0xff] %v16778_v21  ;;  %v4864_v45 = vadd.f32 %v4863_v40, %v16778_v21  ;;  %19734 = vst [vmem:[#allocation62_spill] sm:$0xff] %v16782_v35  ;;  %v16784_v58 = vpop.f32.mrb[90].mxu1  ;;  %v4802_v43 = vadd.f32 %v4801_v9, %v16782_v35  ;;  %v16788_v20 = vpop.f32.mrb[75].mxu0 }
 0x6c4   :  { %19735 = vst [vmem:[#allocation65_spill] sm:$0xff] %v16784_v58  ;;  %v4844_v22 = vadd.f32 %v4843_v59, %v16784_v58  ;;  %19736 = vst [vmem:[#allocation99_spill] sm:$0xff] %v16788_v20  ;;  %v16790_v18 = vpop.f32.mrb[91].mxu1  ;;  %v4823_v17 = vadd.f32 %v4822_v56, %v16788_v20 }
 0x6c5   :  { %19737 = vst [vmem:[#allocation100_spill] sm:$0xff] %v16790_v18  ;;  %v4865_v36 = vadd.f32 %v4864_v45, %v16790_v18 }
 0x6c8   :  { %v16794_v55 = vpop.f32.mrb[76].mxu0 }
 0x6c9   :  { %19738 = vst [vmem:[#allocation101_spill] sm:$0xff] %v16794_v55  ;;  %v16796_v11 = vpop.f32.mrb[92].mxu1  ;;  %v4803_v40 = vadd.f32 %v4802_v43, %v16794_v55  ;;  %v16800_v34 = vpop.f32.mrb[77].mxu0 }
 0x6ca   :  { %19739 = vst [vmem:[#allocation102_spill] sm:$0xff] %v16796_v11  ;;  %v4845_v21 = vadd.f32 %v4844_v22, %v16796_v11  ;;  %19740 = vst [vmem:[#allocation71_spill] sm:$0xff] %v16800_v34  ;;  %v16802_v9 = vpop.f32.mrb[93].mxu1  ;;  %v4824_v59 = vadd.f32 %v4823_v17, %v16800_v34  ;;  %v16806_v49 = vpop.f32.mrb[78].mxu0 }
 0x6cb   :  { %19741 = vst [vmem:[#allocation75_spill] sm:$0xff] %v16802_v9  ;;  %v4866_v5 = vadd.f32 %v4865_v36, %v16802_v9  ;;  %19742 = vst [vmem:[#allocation107_spill] sm:$0xff] %v16806_v49  ;;  %v16808_v56 = vpop.f32.mrb[94].mxu1  ;;  %v4804_v45 = vadd.f32 %v4803_v40, %v16806_v49  ;;  %v16812_v20 = vpop.f32.mrb[79].mxu0 }
 0x6cc   :  { %19743 = vst [vmem:[#allocation70_spill] sm:$0xff] %v16808_v56  ;;  %v4846_v18 = vadd.f32 %v4845_v21, %v16808_v56  ;;  %19744 = vst [vmem:[#allocation103_spill] sm:$0xff] %v16812_v20  ;;  %v16814_v43 = vpop.f32.mrb[95].mxu1  ;;  %v4825_v22 = vadd.f32 %v4824_v59, %v16812_v20 }
 0x6cd   :  { %19745 = vst [vmem:[#allocation104_spill] sm:$0xff] %v16814_v43  ;;  %v4867_v10 = vadd.f32 %v4866_v5, %v16814_v43  ;;  %v4805_v38 = vrot.slane %v4804_v45, 4 }
 0x6ce   :  { %v4847_v17 = vrot.slane %v4846_v18, 4  ;;  %v4826_v39 = vrot.slane %v4825_v22, 4 }
 0x6cf   :  { %v4806_v34 = vadd.f32 %v4805_v38, %v4804_v45  ;;  %v4868_v2 = vrot.slane %v4867_v10, 4 }
 0x6d0   :  { %v4848_v36 = vadd.f32 %v4847_v17, %v4846_v18  ;;  %v4827_v21 = vadd.f32 %v4826_v39, %v4825_v22 }
 0x6d1   :  { %v4807_v9 = vrot.slane %v4806_v34, 2  ;;  %v4869_v56 = vadd.f32 %v4868_v2, %v4867_v10 }
 0x6d2   :  { %v4849_v37 = vrot.slane %v4848_v36, 2  ;;  %v4828_v59 = vrot.slane %v4827_v21, 2 }
 0x6d3   :  { %v4808_v4 = vadd.f32 %v4807_v9, %v4806_v34  ;;  %v4870_v20 = vrot.slane %v4869_v56, 2 }
 0x6d4   :  { %v4850_v40 = vadd.f32 %v4849_v37, %v4848_v36  ;;  %v4829_v45 = vadd.f32 %v4828_v59, %v4827_v21 }
 0x6d5   :  { %v4809_v53 = vrot.slane %v4808_v4, 1  ;;  %v4871_v17 = vadd.f32 %v4870_v20, %v4869_v56 }
 0x6d6   :  { %v4851_v54 = vrot.slane %v4850_v40, 1 }
 0x6d7   :  { %v4810_v15 = vadd.f32 %v4809_v53, %v4808_v4  ;;  %v4830_v53 = vrot.slane %v4829_v45, 1  ;;  %v4872_v37 = vrot.slane %v4871_v17, 1 }
 0x6d8   :  { %v4852_v18 = vadd.f32 %v4851_v54, %v4850_v40 }
 0x6d9   :  { %v16818_v11 = vmul.f32 0.0078125, %v4810_v15  ;;  %v4831_v21 = vadd.f32 %v4830_v53, %v4829_v45  ;;  %v4873_v59 = vadd.f32 %v4872_v37, %v4871_v17 }
 0x6da   :  { %v16826_v4 = vmul.f32 0.0078125, %v4852_v18 }
 0x6db   :  { %19746 = vst [vmem:[#allocation69_spill] sm:$0xff] %v16818_v11  ;;  %v4966_v5 = vsub.f32 %v16626_v48, %v16818_v11  ;;  %v4974_v38 = vsub.f32 %v16634_v47, %v16818_v11  ;;  %v4982_v34 = vsub.f32 %v16650_v60, %v16818_v11  ;;  %v4990_v15 = vsub.f32 %v16662_v24, %v16818_v11  ;;  %v13343_v47 = vld [vmem:[#allocation21 + $0x4] ss:$28 sps:$4 sm:$0xff]   ;;  %v13346_v48 = vld [vmem:[#allocation21 + $0xc] ss:$28 sps:$4 sm:$0xff]  }
 0x6dc   :  { %19747 = vst [vmem:[#allocation73_spill] sm:$0xff] %v16826_v4  ;;  %v4998_v10 = vsub.f32 %v16674_v12, %v16818_v11  ;;  %v4968_v54 = vsub.f32 %v16628_v6, %v16826_v4  ;;  %v4976_v20 = vsub.f32 %v16636_v14, %v16826_v4  ;;  %v5006_v56 = vsub.f32 %v16686_v31, %v16818_v11 }
 0x6dd   :  { %v5094_v39 = vmul.f32 %v4966_v5, %v4966_v5  ;;  %v5102_v2 = vmul.f32 %v4974_v38, %v4974_v38  ;;  %v5110_v9 = vmul.f32 %v4982_v34, %v4982_v34  ;;  %v5118_v36 = vmul.f32 %v4990_v15, %v4990_v15  ;;  %8923 = vmatprep.subr.bf16.mxu0 %v13343_v47 }
 0x6de   :  { %v5014_v5 = vsub.f32 %v16698_v50, %v16818_v11  ;;  %v5126_v38 = vmul.f32 %v4998_v10, %v4998_v10  ;;  %v4984_v34 = vsub.f32 %v16652_v25, %v16826_v4  ;;  %v5022_v14 = vsub.f32 %v16710_v28, %v16818_v11  ;;  %9375 = vmatprep.subr.bf16.mxu1 %v13346_v48 }
 0x6df   :  { %v5222_v22 = vadd.f32 %v5102_v2, %v5094_v39  ;;  %v5096_v39 = vmul.f32 %v4968_v54, %v4968_v54  ;;  %v5104_v2 = vmul.f32 %v4976_v20, %v4976_v20  ;;  %v5134_v6 = vmul.f32 %v5006_v56, %v5006_v56 }
 0x6e0   :  { %v4992_v15 = vsub.f32 %v16664_v0, %v16826_v4  ;;  %v16846_v45 = vmul.f32 0.0078125, %v4831_v21  ;;  %v16848_v17 = vmul.f32 0.0078125, %v4873_v59  ;;  %v5030_v53 = vsub.f32 %v16722_v57, %v16818_v11 }
 0x6e1   :  { %v5223_v40 = vadd.f32 %v5222_v22, %v5110_v9  ;;  %v5038_v37 = vsub.f32 %v16734_v19, %v16818_v11  ;;  %v5142_v10 = vmul.f32 %v5014_v5, %v5014_v5  ;;  %v5046_v22 = vsub.f32 %v16746_v44, %v16818_v11 }
 0x6e2   :  { %19748 = vst [vmem:[#allocation79_spill] sm:$0xff] %v16846_v45  ;;  %19749 = vst [vmem:[#allocation76_spill] sm:$0xff] %v16848_v17  ;;  %v5000_v54 = vsub.f32 %v16676_v42, %v16826_v4  ;;  %v5112_v20 = vmul.f32 %v4984_v34, %v4984_v34  ;;  %v5264_v56 = vadd.f32 %v5104_v2, %v5096_v39 }
 0x6e3   :  { %v5224_v18 = vadd.f32 %v5223_v40, %v5118_v36  ;;  %v5054_v36 = vsub.f32 %v16758_v13, %v16818_v11  ;;  %v5062_v40 = vsub.f32 %v16770_v29, %v16818_v11  ;;  %v5150_v21 = vmul.f32 %v5022_v14, %v5022_v14 }
 0x6e4   :  { %v5070_v5 = vsub.f32 %v16782_v35, %v16818_v11  ;;  %v4967_v34 = vsub.f32 %v16630_v46, %v16846_v45  ;;  %v4975_v39 = vsub.f32 %v16642_v26, %v16846_v45  ;;  %v5078_v14 = vsub.f32 %v16794_v55, %v16818_v11 }
 0x6e5   :  { %v5225_v12 = vadd.f32 %v5224_v18, %v5126_v38  ;;  %v5265_v38 = vadd.f32 %v5264_v56, %v5112_v20  ;;  %v5158_v18 = vmul.f32 %v5030_v53, %v5030_v53  ;;  %v5016_v2 = vsub.f32 %v16700_v41, %v16826_v4 }
 0x6e6   :  { %v5166_v20 = vmul.f32 %v5038_v37, %v5038_v37  ;;  %v5174_v53 = vmul.f32 %v5046_v22, %v5046_v22  ;;  %v4983_v55 = vsub.f32 %v16656_v23, %v16846_v45  ;;  %v5095_v35 = vmul.f32 %v4967_v34, %v4967_v34 }
 0x6e7   :  { %v5226_v9 = vadd.f32 %v5225_v12, %v5134_v6  ;;  %v5008_v6 = vsub.f32 %v16688_v16, %v16826_v4  ;;  %v5120_v12 = vmul.f32 %v4992_v15, %v4992_v15  ;;  %v5086_v15 = vsub.f32 %v16806_v49, %v16818_v11  ;;  %v19818_v11 = vld [vmem:[#allocation34_spill] sm:$0xff] }
 0x6e8   :  { %v5103_v41 = vmul.f32 %v4975_v39, %v4975_v39  ;;  %v5198_v22 = vmul.f32 %v5070_v5, %v5070_v5  ;;  %v5111_v39 = vmul.f32 %v4983_v55, %v4983_v55 }
 0x6e9   :  { %v5227_v59 = vadd.f32 %v5226_v9, %v5142_v10  ;;  %v5128_v10 = vmul.f32 %v5000_v54, %v5000_v54  ;;  %v5266_v9 = vadd.f32 %v5265_v38, %v5120_v12  ;;  %v5136_v16 = vmul.f32 %v5008_v6, %v5008_v6 }
 0x6ea   :  { %v5190_v54 = vmul.f32 %v5062_v40, %v5062_v40  ;;  %v5032_v12 = vsub.f32 %v16724_v27, %v16826_v4  ;;  %v5144_v38 = vmul.f32 %v5016_v2, %v5016_v2  ;;  %v5214_v6 = vmul.f32 %v5086_v15, %v5086_v15 }
 0x6eb   :  { %v5228_v42 = vadd.f32 %v5227_v59, %v5150_v21  ;;  %v5182_v21 = vmul.f32 %v5054_v36, %v5054_v36  ;;  %v5024_v59 = vsub.f32 %v16712_v61, %v16826_v4  ;;  %v5267_v0 = vadd.f32 %v5266_v9, %v5128_v10 }
 0x6ec   :  { %v5040_v10 = vsub.f32 %v16736_v62, %v16826_v4  ;;  %v4999_v40 = vsub.f32 %v16680_v1, %v16846_v45  ;;  %v5007_v2 = vsub.f32 %v16692_v63, %v16846_v45 }
 0x6ed   :  { %v5229_v56 = vadd.f32 %v5228_v42, %v5158_v18  ;;  %v5268_v37 = vadd.f32 %v5267_v0, %v5136_v16  ;;  %v5206_v42 = vmul.f32 %v5078_v14, %v5078_v14  ;;  %v4991_v18 = vsub.f32 %v16668_v30, %v16846_v45 }
 0x6ee   :  { %v5152_v9 = vmul.f32 %v5024_v59, %v5024_v59  ;;  %v5048_v0 = vsub.f32 %v16748_v32, %v16826_v4  ;;  %v5160_v16 = vmul.f32 %v5032_v12, %v5032_v12  ;;  %v5168_v55 = vmul.f32 %v5040_v10, %v5040_v10 }
 0x6ef   :  { %v5230_v25 = vadd.f32 %v5229_v56, %v5166_v20  ;;  %v5269_v20 = vadd.f32 %v5268_v37, %v5144_v38  ;;  %v5243_v56 = vadd.f32 %v5103_v41, %v5095_v35  ;;  %v5119_v15 = vmul.f32 %v4991_v18, %v4991_v18 }
 0x6f0   :  { %v5072_v41 = vsub.f32 %v16784_v58, %v16826_v4  ;;  %v5015_v38 = vsub.f32 %v16704_v7, %v16846_v45  ;;  %v5127_v12 = vmul.f32 %v4999_v40, %v4999_v40  ;;  %v4969_v18 = vsub.f32 %v16632_v52, %v16848_v17 }
 0x6f1   :  { %v5231_v36 = vadd.f32 %v5230_v25, %v5174_v53  ;;  %v5056_v25 = vsub.f32 %v16760_v51, %v16826_v4  ;;  %v5270_v5 = vadd.f32 %v5269_v20, %v5152_v9  ;;  %v5244_v53 = vadd.f32 %v5243_v56, %v5111_v39 }
 0x6f2   :  { %v4977_v9 = vsub.f32 %v16644_v3, %v16848_v17  ;;  %v5135_v10 = vmul.f32 %v5007_v2, %v5007_v2  ;;  %v5097_v58 = vmul.f32 %v4969_v18, %v4969_v18  ;;  %v19753_v2 = vld [vmem:[#allocation70_spill] sm:$0xff] }
 0x6f3   :  { %v5232_v34 = vadd.f32 %v5231_v36, %v5182_v21  ;;  %v5064_v21 = vsub.f32 %v16772_v33, %v16826_v4  ;;  %v5271_v35 = vadd.f32 %v5270_v5, %v5160_v16  ;;  %v5245_v37 = vadd.f32 %v5244_v53, %v5119_v15 }
 0x6f4   :  { %v5184_v16 = vmul.f32 %v5056_v25, %v5056_v25  ;;  %v5143_v53 = vmul.f32 %v5015_v38, %v5015_v38  ;;  %v5105_v33 = vmul.f32 %v4977_v9, %v4977_v9  ;;  %v19755_v38 = vld [vmem:[#allocation63_spill] sm:$0xff] }
 0x6f5   :  { %v5233_v14 = vadd.f32 %v5232_v34, %v5190_v54  ;;  %v5176_v54 = vmul.f32 %v5048_v0, %v5048_v0  ;;  %v5272_v36 = vadd.f32 %v5271_v35, %v5168_v55  ;;  %v5023_v34 = vsub.f32 %v16716_v8, %v16846_v45 }
 0x6f6   :  { %v5246_v39 = vadd.f32 %v5245_v37, %v5127_v12  ;;  %v5192_v40 = vmul.f32 %v5064_v21, %v5064_v21  ;;  %v5088_v12 = vsub.f32 %v19753_v2, %v16826_v4  ;;  %v19754_v37 = vld [vmem:[#allocation92_spill] sm:$0xff]  ;;  %v5285_v62 = vadd.f32 %v5105_v33, %v5097_v58 }
 0x6f7   :  { %v5234_v59 = vadd.f32 %v5233_v14, %v5198_v22  ;;  %v19750_v22 = vld [vmem:[#allocation102_spill] sm:$0xff]  ;;  %v5273_v5 = vadd.f32 %v5272_v36, %v5176_v54  ;;  %v19751_v14 = vld [vmem:[#allocation52_spill] sm:$0xff]  ;;  %v5039_v25 = vsub.f32 %v19754_v37, %v16846_v45  ;;  %v5151_v21 = vmul.f32 %v5023_v34, %v5023_v34 }
 0x6f8   :  { %v5080_v56 = vsub.f32 %v19750_v22, %v16826_v4  ;;  %v5031_v15 = vsub.f32 %v19751_v14, %v16846_v45  ;;  %v5247_v55 = vadd.f32 %v5246_v39, %v5135_v10  ;;  %v4993_v10 = vsub.f32 %v19755_v38, %v16848_v17  ;;  %v19757_v2 = vld [vmem:[#allocation84_spill] sm:$0xff] }
 0x6f9   :  { %v5235_v20 = vadd.f32 %v5234_v59, %v5206_v42  ;;  %v5274_v35 = vadd.f32 %v5273_v5, %v5184_v16  ;;  %v19752_v42 = vld [vmem:[#allocation51_spill] sm:$0xff]  ;;  %v19756_v16 = vld [vmem:[#allocation58_spill] sm:$0xff]  ;;  %v5001_v51 = vsub.f32 %v19757_v2, %v16848_v17  ;;  %v5216_v34 = vmul.f32 %v5088_v12, %v5088_v12  ;;  %v19761_v33 = vld [vmem:[#allocation44_spill] sm:$0xff] }
 0x6fa   :  { %v4985_v59 = vsub.f32 %v19752_v42, %v16848_v17  ;;  %v5248_v54 = vadd.f32 %v5247_v55, %v5143_v53  ;;  %v5208_v36 = vmul.f32 %v5080_v56, %v5080_v56  ;;  %v5047_v5 = vsub.f32 %v19756_v16, %v16846_v45  ;;  %v13344_v4 = vld [vmem:[#allocation21 + $0x8] ss:$28 sps:$4 sm:$0xff]  }
 0x6fb   :  { %v5236_v0 = vadd.f32 %v5235_v20, %v5214_v6  ;;  %v5200_v6 = vmul.f32 %v5072_v41, %v5072_v41  ;;  %v5275_v20 = vadd.f32 %v5274_v35, %v5192_v40  ;;  %v5159_v18 = vmul.f32 %v5031_v15, %v5031_v15  ;;  %v19758_v41 = vld [vmem:[#allocation64_spill] sm:$0xff]  ;;  %9376 = vmatpush1.bf16.msra.mxu1 %v13344_v4 }
 0x6fc   :  { %v5249_v9 = vadd.f32 %v5248_v54, %v5151_v21  ;;  %v5113_v32 = vmul.f32 %v4985_v59, %v4985_v59  ;;  %v5055_v56 = vsub.f32 %v19758_v41, %v16846_v45  ;;  %v5167_v40 = vmul.f32 %v5039_v25, %v5039_v25  ;;  %v19759_v35 = vld [vmem:[#allocation72_spill] sm:$0xff]  ;;  %v19760_v21 = vld [vmem:[#allocation98_spill] sm:$0xff]  ;;  %v19762_v25 = vld [vmem:[#allocation99_spill] sm:$0xff] }
 0x6fd   :  { %v5237_v39 = vrot.slane %v5236_v0, 4  ;;  %v5276_v22 = vadd.f32 %v5275_v20, %v5200_v6  ;;  %v5009_v27 = vsub.f32 %v19759_v35, %v16848_v17  ;;  %v5121_v61 = vmul.f32 %v4993_v10, %v4993_v10  ;;  %v19763_v10 = vld [vmem:[#allocation88_spill] sm:$0xff] }
 0x6fe   :  { %v5250_v53 = vadd.f32 %v5249_v9, %v5159_v18  ;;  %v5286_v38 = vadd.f32 %v5285_v62, %v5113_v32  ;;  %v5063_v54 = vsub.f32 %v19760_v21, %v16846_v45  ;;  %v5175_v6 = vmul.f32 %v5047_v5, %v5047_v5  ;;  %v19764_v5 = vld [vmem:[#allocation71_spill] sm:$0xff] }
 0x6ff   :  { %v5277_v55 = vadd.f32 %v5276_v22, %v5208_v36  ;;  %v5238_v15 = vadd.f32 %v5237_v39, %v5236_v0  ;;  %v5017_v58 = vsub.f32 %v19761_v33, %v16848_v17  ;;  %v5129_v12 = vmul.f32 %v5001_v51, %v5001_v51 }
 0x700   :  { %v5251_v20 = vadd.f32 %v5250_v53, %v5167_v40  ;;  %v5287_v2 = vadd.f32 %v5286_v38, %v5121_v61  ;;  %v5071_v22 = vsub.f32 %v19762_v25, %v16846_v45  ;;  %v5183_v36 = vmul.f32 %v5055_v56, %v5055_v56  ;;  %v19765_v53 = vld [vmem:[#allocation55_spill] sm:$0xff] }
 0x701   :  { %v5278_v59 = vadd.f32 %v5277_v55, %v5216_v34  ;;  %v5025_v62 = vsub.f32 %v19763_v10, %v16848_v17  ;;  %v5137_v32 = vmul.f32 %v5009_v27, %v5009_v27  ;;  %v5239_v39 = vrot.slane %v5238_v15, 2  ;;  %v19766_v55 = vld [vmem:[#allocation103_spill] sm:$0xff]  ;;  %v19767_v10 = vld [vmem:[#allocation93_spill] sm:$0xff] }
 0x702   :  { %v5252_v18 = vadd.f32 %v5251_v20, %v5175_v6  ;;  %v5288_v0 = vadd.f32 %v5287_v2, %v5129_v12  ;;  %v5079_v9 = vsub.f32 %v19764_v5, %v16846_v45  ;;  %v5191_v34 = vmul.f32 %v5063_v54, %v5063_v54  ;;  %v19768_v2 = vld [vmem:[#allocation61_spill] sm:$0xff] }
 0x703   :  { %v5033_v51 = vsub.f32 %v19765_v53, %v16848_v17  ;;  %v5145_v61 = vmul.f32 %v5017_v58, %v5017_v58  ;;  %v5087_v56 = vsub.f32 %v19766_v55, %v16846_v45  ;;  %v5199_v6 = vmul.f32 %v5071_v22, %v5071_v22 }
 0x704   :  { %v5253_v40 = vadd.f32 %v5252_v18, %v5183_v36  ;;  %v5289_v38 = vadd.f32 %v5288_v0, %v5137_v32  ;;  %v5041_v27 = vsub.f32 %v19767_v10, %v16848_v17  ;;  %v5049_v12 = vsub.f32 %v19768_v2, %v16848_v17 }
 0x705   :  { %v5153_v33 = vmul.f32 %v5025_v62, %v5025_v62  ;;  %v5240_v54 = vadd.f32 %v5239_v39, %v5238_v15  ;;  %v5207_v36 = vmul.f32 %v5079_v9, %v5079_v9  ;;  %v5279_v42 = vrot.slane %v5278_v59, 4  ;;  %v19772_v15 = vld [vmem:[#allocation67_spill] sm:$0xff] }
 0x706   :  { %v5254_v20 = vadd.f32 %v5253_v40, %v5191_v34  ;;  %v5290_v35 = vadd.f32 %v5289_v38, %v5145_v61  ;;  %v5161_v53 = vmul.f32 %v5033_v51, %v5033_v51  ;;  %v5215_v22 = vmul.f32 %v5087_v56, %v5087_v56  ;;  %v19770_v40 = vld [vmem:[#allocation95_spill] sm:$0xff] }
 0x707   :  { %v5057_v10 = vsub.f32 %v19770_v40, %v16848_v17  ;;  %v5065_v62 = vsub.f32 %v19772_v15, %v16848_v17  ;;  %v5169_v39 = vmul.f32 %v5041_v27, %v5041_v27  ;;  %v5177_v9 = vmul.f32 %v5049_v12, %v5049_v12  ;;  %v19777_v15 = vld [vmem:[#allocation75_spill] sm:$0xff] }
 0x708   :  { %v5255_v18 = vadd.f32 %v5254_v20, %v5199_v6  ;;  %v5291_v58 = vadd.f32 %v5290_v35, %v5153_v33  ;;  %v5241_v61 = vrot.slane %v5240_v54, 1  ;;  %v5081_v40 = vsub.f32 %v19777_v15, %v16848_v17 }
 0x709   :  { %v5185_v52 = vmul.f32 %v5057_v10, %v5057_v10 }
 0x70a   :  { %v5256_v34 = vadd.f32 %v5255_v18, %v5207_v36  ;;  %v5292_v51 = vadd.f32 %v5291_v58, %v5161_v53  ;;  %v5280_v18 = vadd.f32 %v5279_v42, %v5278_v59  ;;  %v5242_v55 = vadd.f32 %v5241_v61, %v5240_v54 }
 0x70b   :  { %v5089_v42 = vsub.f32 %v16814_v43, %v16848_v17  ;;  %v5193_v59 = vmul.f32 %v5065_v62, %v5065_v62 }
 0x70c   :  { %v5257_v38 = vadd.f32 %v5256_v34, %v5215_v22  ;;  %v5293_v27 = vadd.f32 %v5292_v51, %v5169_v39  ;;  %v19776_v22 = vld [vmem:[#allocation100_spill] sm:$0xff]  ;;  %v5281_v29 = vrot.slane %v5280_v18, 2 }
 0x70d   :  { %v5073_v34 = vsub.f32 %v19776_v22, %v16848_v17  ;;  %v5217_v44 = vmul.f32 %v5089_v42, %v5089_v42  ;;  %v13341_v17 = vld [vmem:[#allocation21] ss:$28 sps:$4 sm:$0xff]  }
 0x70e   :  { %v5258_v58 = vrot.slane %v5257_v38, 4  ;;  %v5294_v49 = vadd.f32 %v5293_v27, %v5177_v9  ;;  %v5209_v9 = vmul.f32 %v5081_v40, %v5081_v40  ;;  %v5390_v27 = vmul.f32 0.0078125, %v5242_v55  ;;  %8924 = vmatpush1.bf16.msra.mxu0 %v13341_v17 }
 0x70f   :  { %v5201_v13 = vmul.f32 %v5073_v34, %v5073_v34  ;;  %v5282_v40 = vadd.f32 %v5281_v29, %v5280_v18 }
 0x710   :  { %v16944_v32 = vpop.f32.mrb[80].mxu0  ;;  %v5259_v5 = vadd.f32 %v5258_v58, %v5257_v38  ;;  %v5295_v39 = vadd.f32 %v5294_v49, %v5185_v52  ;;  %v5398_v16 = vadd.f32 1e-05, %v5390_v27 }
 0x711   :  { %v16946_v0 = vpop.f32.mrb[96].mxu1  ;;  %v16950_v3 = vpop.f32.mrb[81].mxu0 }
 0x712   :  { %19769 = vst [vmem:[#allocation77_spill] sm:$0xff] %v16946_v0  ;;  %v16952_v2 = vpop.f32.mrb[97].mxu1  ;;  %v16956_v35 = vpop.f32.mrb[82].mxu0  ;;  %v5260_v21 = vrot.slane %v5259_v5, 2  ;;  %v5296_v61 = vadd.f32 %v5295_v39, %v5193_v59  ;;  %13995 = vrsqrt.f32 %v5398_v16 }
 0x713   :  { %19771 = vst [vmem:[#allocation81_spill] sm:$0xff] %v16952_v2  ;;  %19773 = vst [vmem:[#allocation108_spill] sm:$0xff] %v16956_v35  ;;  %v16958_v33 = vpop.f32.mrb[98].mxu1  ;;  %v4874_v56 = vadd.f32 %v16956_v35, %v16944_v32  ;;  %v16964_v20 = vpop.f32.mrb[83].mxu0 }
 0x714   :  { %19774 = vst [vmem:[#allocation109_spill] sm:$0xff] %v16958_v33  ;;  %v4916_v6 = vadd.f32 %v16958_v33, %v16946_v0  ;;  %v16966_v36 = vpop.f32.mrb[99].mxu1  ;;  %v4895_v53 = vadd.f32 %v16964_v20, %v16950_v3  ;;  %v5261_v58 = vadd.f32 %v5260_v21, %v5259_v5  ;;  %v5297_v59 = vadd.f32 %v5296_v61, %v5201_v13 }
 0x715   :  { %19775 = vst [vmem:[#allocation110_spill] sm:$0xff] %v16966_v36  ;;  %v4937_v12 = vadd.f32 %v16966_v36, %v16952_v2  ;;  %v5283_v21 = vrot.slane %v5282_v40, 1 }
 0x716   :  { %v5262_v39 = vrot.slane %v5261_v58, 1  ;;  %v5298_v41 = vadd.f32 %v5297_v59, %v5209_v9 }
 0x718   :  { %v16978_v51 = vpop.f32.mrb[84].mxu0  ;;  %v5263_v55 = vadd.f32 %v5262_v39, %v5261_v58  ;;  %v5299_v5 = vadd.f32 %v5298_v41, %v5217_v44 }
 0x719   :  { %19778 = vst [vmem:[#allocation111_spill] sm:$0xff] %v16978_v51  ;;  %v16980_v25 = vpop.f32.mrb[100].mxu1  ;;  %v4875_v22 = vadd.f32 %v4874_v56, %v16978_v51  ;;  %v16984_v10 = vpop.f32.mrb[85].mxu0 }
 0x71a   :  { %19779 = vst [vmem:[#allocation112_spill] sm:$0xff] %v16980_v25  ;;  %v4917_v15 = vadd.f32 %v4916_v6, %v16980_v25  ;;  %19780 = vst [vmem:[#allocation113_spill] sm:$0xff] %v16984_v10  ;;  %v16986_v54 = vpop.f32.mrb[101].mxu1  ;;  %v4896_v38 = vadd.f32 %v4895_v53, %v16984_v10  ;;  %v16990_v49 = vpop.f32.mrb[86].mxu0  ;;  %v5391_v19 = vmul.f32 0.0078125, %v5263_v55  ;;  %v5300_v61 = vrot.slane %v5299_v5, 4 }
 0x71b   :  { %19781 = vst [vmem:[#allocation114_spill] sm:$0xff] %v16986_v54  ;;  %v4938_v52 = vadd.f32 %v4937_v12, %v16986_v54  ;;  %19782 = vst [vmem:[#allocation115_spill] sm:$0xff] %v16990_v49  ;;  %v16992_v62 = vpop.f32.mrb[102].mxu1  ;;  %v4876_v56 = vadd.f32 %v4875_v22, %v16990_v49  ;;  %v16996_v34 = vpop.f32.mrb[87].mxu0 }
 0x71c   :  { %19783 = vst [vmem:[#allocation116_spill] sm:$0xff] %v16992_v62  ;;  %v4918_v6 = vadd.f32 %v4917_v15, %v16992_v62  ;;  %19784 = vst [vmem:[#allocation117_spill] sm:$0xff] %v16996_v34  ;;  %v16998_v43 = vpop.f32.mrb[103].mxu1  ;;  %v4897_v53 = vadd.f32 %v4896_v38, %v16996_v34  ;;  %v5399_v41 = vadd.f32 1e-05, %v5391_v19  ;;  %v5301_v59 = vadd.f32 %v5300_v61, %v5299_v5  ;;  %v13996_v50 = vpop.eup %13995 }
 0x71d   :  { %19785 = vst [vmem:[#allocation118_spill] sm:$0xff] %v16998_v43  ;;  %v4939_v12 = vadd.f32 %v4938_v52, %v16998_v43  ;;  %v13371_v43 = vld [vmem:[#allocation21 + $0x118] ss:$28 sps:$4 sm:$0xff]  }
 0x71e   :  { %13997 = vrsqrt.f32 %v5399_v41  ;;  %v5302_v39 = vrot.slane %v5301_v59, 2 }
 0x720   :  { %v17002_v22 = vpop.f32.mrb[88].mxu0  ;;  %v5303_v37 = vadd.f32 %v5302_v39, %v5301_v59 }
 0x721   :  { %19786 = vst [vmem:[#allocation119_spill] sm:$0xff] %v17002_v22  ;;  %v17004_v15 = vpop.f32.mrb[104].mxu1  ;;  %v4877_v57 = vadd.f32 %v4876_v56, %v17002_v22  ;;  %v17008_v29 = vpop.f32.mrb[89].mxu0 }
 0x722   :  { %19787 = vst [vmem:[#allocation120_spill] sm:$0xff] %v17004_v15  ;;  %v4919_v13 = vadd.f32 %v4918_v6, %v17004_v15  ;;  %19788 = vst [vmem:[#allocation121_spill] sm:$0xff] %v17008_v29  ;;  %v17010_v18 = vpop.f32.mrb[105].mxu1  ;;  %v4898_v42 = vadd.f32 %v4897_v53, %v17008_v29  ;;  %v17014_v38 = vpop.f32.mrb[90].mxu0  ;;  %v5284_v6 = vadd.f32 %v5283_v21, %v5282_v40  ;;  %v5304_v21 = vrot.slane %v5303_v37, 1 }
 0x723   :  { %19789 = vst [vmem:[#allocation122_spill] sm:$0xff] %v17010_v18  ;;  %v4940_v9 = vadd.f32 %v4939_v12, %v17010_v18  ;;  %19790 = vst [vmem:[#allocation123_spill] sm:$0xff] %v17014_v38  ;;  %v17016_v44 = vpop.f32.mrb[106].mxu1  ;;  %v4878_v52 = vadd.f32 %v4877_v57, %v17014_v38  ;;  %v17020_v58 = vpop.f32.mrb[91].mxu0  ;;  %v13373_v18 = vld [vmem:[#allocation21 + $0x11c] ss:$28 sps:$4 sm:$0xff]  }
 0x724   :  { %19791 = vst [vmem:[#allocation124_spill] sm:$0xff] %v17016_v44  ;;  %v4920_v27 = vadd.f32 %v4919_v13, %v17016_v44  ;;  %19792 = vst [vmem:[#allocation125_spill] sm:$0xff] %v17020_v58  ;;  %v17022_v56 = vpop.f32.mrb[107].mxu1  ;;  %v4899_v53 = vadd.f32 %v4898_v42, %v17020_v58  ;;  %v5392_v55 = vmul.f32 0.0078125, %v5284_v6  ;;  %v5305_v39 = vadd.f32 %v5304_v21, %v5303_v37 }
 0x725   :  { %19793 = vst [vmem:[#allocation126_spill] sm:$0xff] %v17022_v56  ;;  %v4941_v12 = vadd.f32 %v4940_v9, %v17022_v56 }
 0x726   :  { %v5400_v59 = vadd.f32 1e-05, %v5392_v55 }
 0x728   :  { %v17026_v16 = vpop.f32.mrb[92].mxu0  ;;  %v13998_v8 = vpop.eup %13997  ;;  %13999 = vrsqrt.f32 %v5400_v59 }
 0x729   :  { %19794 = vst [vmem:[#allocation127_spill] sm:$0xff] %v17026_v16  ;;  %v17028_v19 = vpop.f32.mrb[108].mxu1  ;;  %v4879_v57 = vadd.f32 %v4878_v52, %v17026_v16  ;;  %v17032_v14 = vpop.f32.mrb[93].mxu0  ;;  %v5422_v7 = vcombine.low %v13996_v50, %v13998_v8 }
 0x72a   :  { %19795 = vst [vmem:[#allocation128_spill] sm:$0xff] %v17028_v19  ;;  %v4921_v13 = vadd.f32 %v4920_v27, %v17028_v19  ;;  %19796 = vst [vmem:[#allocation129_spill] sm:$0xff] %v17032_v14  ;;  %v17034_v40 = vpop.f32.mrb[109].mxu1  ;;  %v4900_v5 = vadd.f32 %v4899_v53, %v17032_v14  ;;  %v17038_v42 = vpop.f32.mrb[94].mxu0 }
 0x72b   :  { %19797 = vst [vmem:[#allocation130_spill] sm:$0xff] %v17034_v40  ;;  %v4942_v61 = vadd.f32 %v4941_v12, %v17034_v40  ;;  %19798 = vst [vmem:[#allocation131_spill] sm:$0xff] %v17038_v42  ;;  %v17040_v9 = vpop.f32.mrb[110].mxu1  ;;  %v4880_v41 = vadd.f32 %v4879_v57, %v17038_v42  ;;  %v17044_v52 = vpop.f32.mrb[95].mxu0  ;;  %v5393_v12 = vmul.f32 0.0078125, %v5305_v39 }
 0x72c   :  { %19799 = vst [vmem:[#allocation132_spill] sm:$0xff] %v17040_v9  ;;  %v4922_v6 = vadd.f32 %v4921_v13, %v17040_v9  ;;  %19800 = vst [vmem:[#allocation133_spill] sm:$0xff] %v17044_v52  ;;  %v17046_v27 = vpop.f32.mrb[111].mxu1  ;;  %v4901_v28 = vadd.f32 %v4900_v5, %v17044_v52  ;;  %v13350_v40 = vld [vmem:[#allocation21 + $0x40] ss:$28 sps:$4 sm:$0xff]  }
 0x72d   :  { %19801 = vst [vmem:[#allocation134_spill] sm:$0xff] %v17046_v27  ;;  %v4943_v53 = vadd.f32 %v4942_v61, %v17046_v27  ;;  %v5401_v31 = vadd.f32 1e-05, %v5393_v12  ;;  %v13347_v27 = vld [vmem:[#allocation21 + $0x38] ss:$28 sps:$4 sm:$0xff]  }
 0x72f   :  { %14001 = vrsqrt.f32 %v5401_v31 }
 0x730   :  { %v17050_v63 = vpop.f32.mrb[96].mxu0 }
 0x731   :  { %19802 = vst [vmem:[#allocation135_spill] sm:$0xff] %v17050_v63  ;;  %v17052_v57 = vpop.f32.mrb[112].mxu1  ;;  %v4881_v13 = vadd.f32 %v4880_v41, %v17050_v63  ;;  %v17056_v55 = vpop.f32.mrb[97].mxu0 }
 0x732   :  { %19803 = vst [vmem:[#allocation136_spill] sm:$0xff] %v17052_v57  ;;  %v4923_v1 = vadd.f32 %v4922_v6, %v17052_v57  ;;  %19804 = vst [vmem:[#allocation137_spill] sm:$0xff] %v17056_v55  ;;  %v17058_v37 = vpop.f32.mrb[113].mxu1  ;;  %v4902_v21 = vadd.f32 %v4901_v28, %v17056_v55  ;;  %v17062_v61 = vpop.f32.mrb[98].mxu0 }
 0x733   :  { %19805 = vst [vmem:[#allocation138_spill] sm:$0xff] %v17058_v37  ;;  %v4944_v5 = vadd.f32 %v4943_v53, %v17058_v37  ;;  %19806 = vst [vmem:[#allocation139_spill] sm:$0xff] %v17062_v61  ;;  %v17064_v50 = vpop.f32.mrb[114].mxu1  ;;  %v4882_v8 = vadd.f32 %v4881_v13, %v17062_v61  ;;  %v17068_v41 = vpop.f32.mrb[99].mxu0 }
 0x734   :  { %19807 = vst [vmem:[#allocation140_spill] sm:$0xff] %v17064_v50  ;;  %v4924_v59 = vadd.f32 %v4923_v1, %v17064_v50  ;;  %19808 = vst [vmem:[#allocation141_spill] sm:$0xff] %v17068_v41  ;;  %v17070_v6 = vpop.f32.mrb[115].mxu1  ;;  %v4903_v39 = vadd.f32 %v4902_v21, %v17068_v41  ;;  %v14000_v1 = vpop.eup %13999  ;;  %v13374_v41 = vld [vmem:[#allocation21 + $0x120] ss:$28 sps:$4 sm:$0xff]  }
 0x735   :  { %19809 = vst [vmem:[#allocation142_spill] sm:$0xff] %v17070_v6  ;;  %v4945_v31 = vadd.f32 %v4944_v5, %v17070_v6 }
 0x738   :  { %v17074_v12 = vpop.f32.mrb[100].mxu0 }
 0x739   :  { %19810 = vst [vmem:[#allocation143_spill] sm:$0xff] %v17074_v12  ;;  %v17076_v28 = vpop.f32.mrb[116].mxu1  ;;  %v4883_v53 = vadd.f32 %v4882_v8, %v17074_v12  ;;  %v17080_v60 = vpop.f32.mrb[101].mxu0 }
 0x73a   :  { %19811 = vst [vmem:[#allocation144_spill] sm:$0xff] %v17076_v28  ;;  %v4925_v24 = vadd.f32 %v4924_v59, %v17076_v28  ;;  %19812 = vst [vmem:[#allocation145_spill] sm:$0xff] %v17080_v60  ;;  %v17082_v13 = vpop.f32.mrb[117].mxu1  ;;  %v4904_v30 = vadd.f32 %v4903_v39, %v17080_v60  ;;  %v17086_v21 = vpop.f32.mrb[102].mxu0 }
 0x73b   :  { %19813 = vst [vmem:[#allocation146_spill] sm:$0xff] %v17082_v13  ;;  %v4946_v23 = vadd.f32 %v4945_v31, %v17082_v13  ;;  %19814 = vst [vmem:[#allocation147_spill] sm:$0xff] %v17086_v21  ;;  %v17088_v5 = vpop.f32.mrb[118].mxu1  ;;  %v4884_v26 = vadd.f32 %v4883_v53, %v17086_v21  ;;  %v17092_v59 = vpop.f32.mrb[103].mxu0  ;;  %v17099_v13 = vrot.slane %v5422_v7, %v19818_v11  ;;  %v13352_v53 = vld [vmem:[#allocation21 + $0x44] ss:$28 sps:$4 sm:$0xff]  }
 0x73c   :  { %19815 = vst [vmem:[#allocation148_spill] sm:$0xff] %v17088_v5  ;;  %v4926_v8 = vadd.f32 %v4925_v24, %v17088_v5  ;;  %19816 = vst [vmem:[#allocation149_spill] sm:$0xff] %v17092_v59  ;;  %v17094_v46 = vpop.f32.mrb[119].mxu1  ;;  %v14002_v45 = vpop.eup %14001  ;;  %v4905_v39 = vadd.f32 %v4904_v30, %v17092_v59  ;;  %v13349_v24 = vld [vmem:[#allocation21 + $0x3c] ss:$28 sps:$4 sm:$0xff]   ;;  %9377 = vmatprep.subr.bf16.mxu1 %v13352_v53 }
 0x73d   :  { %19817 = vst [vmem:[#allocation150_spill] sm:$0xff] %v17094_v46  ;;  %v4947_v31 = vadd.f32 %v4946_v23, %v17094_v46  ;;  %19819 = vst [vmem:[#allocation151_spill] sm:$0xff] %v17099_v13  ;;  %v5423_v6 = vcombine.low %v14000_v1, %v14002_v45  ;;  %8925 = vmatprep.subr.bf16.mxu0 %v13349_v24  ;;  %9378 = vmatpush1.bf16.msra.mxu1 %v13350_v40  ;;  %v13355_v24 = vld [vmem:[#allocation21 + $0x74] ss:$28 sps:$4 sm:$0xff]   ;;  %v13358_v53 = vld [vmem:[#allocation21 + $0x7c] ss:$28 sps:$4 sm:$0xff]  }
 0x73e   :  { %8926 = vmatpush1.bf16.msra.mxu0 %v13347_v27  ;;  %v13353_v27 = vld [vmem:[#allocation21 + $0x70] ss:$28 sps:$4 sm:$0xff]   ;;  %v13356_v40 = vld [vmem:[#allocation21 + $0x78] ss:$28 sps:$4 sm:$0xff]   ;;  %9379 = vmatprep.subr.bf16.mxu1 %v13358_v53  ;;  %v13365_v59 = vld [vmem:[#allocation21 + $0xe0] ss:$28 sps:$4 sm:$0xff]  }
 0x73f   :  { %v17102_v37 = vrot.slane %v5423_v6, %v19818_v11  ;;  %8927 = vmatprep.subr.bf16.mxu0 %v13355_v24  ;;  %v13361_v13 = vld [vmem:[#allocation21 + $0xac] ss:$28 sps:$4 sm:$0xff]   ;;  %v13364_v11 = vld [vmem:[#allocation21 + $0xb4] ss:$28 sps:$4 sm:$0xff]  }
 0x740   :  { %v17104_v56 = vpop.f32.mrb[104].mxu0 }
 0x741   :  { %19820 = vst [vmem:[#allocation152_spill] sm:$0xff] %v17102_v37  ;;  %19821 = vst [vmem:[#allocation153_spill] sm:$0xff] %v17104_v56  ;;  %v17106_v30 = vpop.f32.mrb[120].mxu1  ;;  %v4885_v47 = vadd.f32 %v4884_v26, %v17104_v56  ;;  %v17112_v7 = vpop.f32.mrb[105].mxu0  ;;  %9380 = vmatpush1.bf16.msra.mxu1 %v13356_v40 }
 0x742   :  { %19822 = vst [vmem:[#allocation154_spill] sm:$0xff] %v17106_v30  ;;  %v4927_v23 = vadd.f32 %v4926_v8, %v17106_v30  ;;  %19823 = vst [vmem:[#allocation155_spill] sm:$0xff] %v17112_v7  ;;  %v17114_v4 = vpop.f32.mrb[121].mxu1  ;;  %v4906_v45 = vadd.f32 %v4905_v39, %v17112_v7  ;;  %v17118_v6 = vpop.f32.mrb[106].mxu0  ;;  %8928 = vmatpush1.bf16.msra.mxu0 %v13353_v27  ;;  %9381 = vmatprep.subr.bf16.mxu1 %v13364_v11 }
 0x743   :  { %19824 = vst [vmem:[#allocation156_spill] sm:$0xff] %v17114_v4  ;;  %v4948_v17 = vadd.f32 %v4947_v31, %v17114_v4  ;;  %19825 = vst [vmem:[#allocation157_spill] sm:$0xff] %v17118_v6  ;;  %v17120_v1 = vpop.f32.mrb[122].mxu1  ;;  %v4886_v26 = vadd.f32 %v4885_v47, %v17118_v6  ;;  %v17124_v48 = vpop.f32.mrb[107].mxu0  ;;  %v13359_v4 = vld [vmem:[#allocation21 + $0xa8] ss:$28 sps:$4 sm:$0xff]   ;;  %8929 = vmatprep.subr.bf16.mxu0 %v13361_v13 }
 0x744   :  { %19826 = vst [vmem:[#allocation158_spill] sm:$0xff] %v17120_v1  ;;  %v4928_v8 = vadd.f32 %v4927_v23, %v17120_v1  ;;  %19827 = vst [vmem:[#allocation159_spill] sm:$0xff] %v17124_v48  ;;  %v17126_v37 = vpop.f32.mrb[123].mxu1  ;;  %v4907_v39 = vadd.f32 %v4906_v45, %v17124_v48  ;;  %v13362_v47 = vld [vmem:[#allocation21 + $0xb0] ss:$28 sps:$4 sm:$0xff]  }
 0x745   :  { %19828 = vst [vmem:[#allocation160_spill] sm:$0xff] %v17126_v37  ;;  %v4949_v31 = vadd.f32 %v4948_v17, %v17126_v37  ;;  %9382 = vmatpush1.bf16.msra.mxu1 %v13362_v47  ;;  %v13367_v13 = vld [vmem:[#allocation21 + $0xe4] ss:$28 sps:$4 sm:$0xff]   ;;  %v13370_v47 = vld [vmem:[#allocation21 + $0xec] ss:$28 sps:$4 sm:$0xff]  }
 0x746   :  { %8930 = vmatpush1.bf16.msra.mxu0 %v13359_v4  ;;  %9383 = vmatprep.subr.bf16.mxu1 %v13370_v47  ;;  %v13380_v47 = vld [vmem:[#allocation21 + $0x158] ss:$28 sps:$4 sm:$0xff]  }
 0x747   :  { %8931 = vmatprep.subr.bf16.mxu0 %v13367_v13 }
 0x748   :  { %v17130_v46 = vpop.f32.mrb[108].mxu0 }
 0x749   :  { %19829 = vst [vmem:[#allocation161_spill] sm:$0xff] %v17130_v46  ;;  %v17132_v23 = vpop.f32.mrb[124].mxu1  ;;  %v4887_v7 = vadd.f32 %v4886_v26, %v17130_v46  ;;  %v17136_v48 = vpop.f32.mrb[109].mxu0 }
 0x74a   :  { %19830 = vst [vmem:[#allocation162_spill] sm:$0xff] %v17132_v23  ;;  %v4929_v45 = vadd.f32 %v4928_v8, %v17132_v23  ;;  %19831 = vst [vmem:[#allocation163_spill] sm:$0xff] %v17136_v48  ;;  %v17138_v17 = vpop.f32.mrb[125].mxu1  ;;  %v4908_v24 = vadd.f32 %v4907_v39, %v17136_v48  ;;  %v17142_v27 = vpop.f32.mrb[110].mxu0  ;;  %8932 = vmatpush1.bf16.msra.mxu0 %v13365_v59  ;;  %v13377_v59 = vld [vmem:[#allocation21 + $0x150] ss:$28 sps:$4 sm:$0xff]  }
 0x74b   :  { %19832 = vst [vmem:[#allocation164_spill] sm:$0xff] %v17138_v17  ;;  %v4950_v53 = vadd.f32 %v4949_v31, %v17138_v17  ;;  %19833 = vst [vmem:[#allocation165_spill] sm:$0xff] %v17142_v27  ;;  %v17144_v40 = vpop.f32.mrb[126].mxu1  ;;  %v4888_v11 = vadd.f32 %v4887_v7, %v17142_v27  ;;  %v17148_v8 = vpop.f32.mrb[111].mxu0  ;;  %v13368_v31 = vld [vmem:[#allocation21 + $0xe8] ss:$28 sps:$4 sm:$0xff]   ;;  %8933 = vmatprep.subr.bf16.mxu0 %v13373_v18 }
 0x74c   :  { %19834 = vst [vmem:[#allocation166_spill] sm:$0xff] %v17144_v40  ;;  %v4930_v26 = vadd.f32 %v4929_v45, %v17144_v40  ;;  %19835 = vst [vmem:[#allocation167_spill] sm:$0xff] %v17148_v8  ;;  %v17150_v37 = vpop.f32.mrb[127].mxu1  ;;  %v4909_v4 = vadd.f32 %v4908_v24, %v17148_v8  ;;  %v13376_v7 = vld [vmem:[#allocation21 + $0x124] ss:$28 sps:$4 sm:$0xff]   ;;  %9384 = vmatpush1.bf16.msra.mxu1 %v13368_v31 }
 0x74d   :  { %19836 = vst [vmem:[#allocation168_spill] sm:$0xff] %v17150_v37  ;;  %v4951_v39 = vadd.f32 %v4950_v53, %v17150_v37  ;;  %v4889_v17 = vrot.slane %v4888_v11, 4  ;;  %9385 = vmatprep.subr.bf16.mxu1 %v13376_v7  ;;  %v13379_v37 = vld [vmem:[#allocation21 + $0x154] ss:$28 sps:$4 sm:$0xff]   ;;  %v13382_v8 = vld [vmem:[#allocation21 + $0x15c] ss:$28 sps:$4 sm:$0xff]  }
 0x74e   :  { %v4931_v48 = vrot.slane %v4930_v26, 4  ;;  %8934 = vmatpush1.bf16.msra.mxu0 %v13371_v43  ;;  %v4910_v53 = vrot.slane %v4909_v4, 4  ;;  %v13385_v18 = vld [vmem:[#allocation21 + $0x18c] ss:$28 sps:$4 sm:$0xff]  }
 0x74f   :  { %v4890_v60 = vadd.f32 %v4889_v17, %v4888_v11  ;;  %v4952_v13 = vrot.slane %v4951_v39, 4  ;;  %8935 = vmatprep.subr.bf16.mxu0 %v13379_v37  ;;  %v13383_v43 = vld [vmem:[#allocation21 + $0x188] ss:$28 sps:$4 sm:$0xff]   ;;  %v13386_v7 = vld [vmem:[#allocation21 + $0x190] ss:$28 sps:$4 sm:$0xff]  }
 0x750   :  { %v4932_v45 = vadd.f32 %v4931_v48, %v4930_v26  ;;  %9386 = vmatpush1.bf16.msra.mxu1 %v13374_v41  ;;  %v4911_v17 = vadd.f32 %v4910_v53, %v4909_v4  ;;  %v13388_v26 = vld [vmem:[#allocation21 + $0x194] ss:$28 sps:$4 sm:$0xff]   ;;  %v13391_v37 = vld [vmem:[#allocation21 + $0x1c4] ss:$28 sps:$4 sm:$0xff]  }
 0x751   :  { %v4891_v40 = vrot.slane %v4890_v60, 2  ;;  %9387 = vmatprep.subr.bf16.mxu1 %v13382_v8  ;;  %v4953_v11 = vadd.f32 %v4952_v13, %v4951_v39  ;;  %v13394_v8 = vld [vmem:[#allocation21 + $0x1cc] ss:$28 sps:$4 sm:$0xff]  }
 0x752   :  { %v4933_v24 = vrot.slane %v4932_v45, 2  ;;  %8936 = vmatpush1.bf16.msra.mxu0 %v13377_v59  ;;  %v4912_v41 = vrot.slane %v4911_v17, 2  ;;  %v13397_v59 = vld [vmem:[#allocation21 + $0x1fc] ss:$28 sps:$4 sm:$0xff]  }
 0x753   :  { %v4892_v54 = vadd.f32 %v4891_v40, %v4890_v60  ;;  %8937 = vmatprep.subr.bf16.mxu0 %v13385_v18  ;;  %v4954_v40 = vrot.slane %v4953_v11, 2 }
 0x754   :  { %v4934_v55 = vadd.f32 %v4933_v24, %v4932_v45  ;;  %9388 = vmatpush1.bf16.msra.mxu1 %v13380_v47  ;;  %v13392_v45 = vld [vmem:[#allocation21 + $0x1c8] ss:$28 sps:$4 sm:$0xff]   ;;  %v4913_v53 = vadd.f32 %v4912_v41, %v4911_v17  ;;  %v13406_v41 = vld [vmem:[#allocation21 + $0x23c] ss:$28 sps:$4 sm:$0xff]  }
 0x755   :  { %v4893_v48 = vrot.slane %v4892_v54, 1  ;;  %9389 = vmatprep.subr.bf16.mxu1 %v13388_v26  ;;  %v4955_v13 = vadd.f32 %v4954_v40, %v4953_v11  ;;  %v13400_v47 = vld [vmem:[#allocation21 + $0x204] ss:$28 sps:$4 sm:$0xff]  }
 0x756   :  { %v4935_v23 = vrot.slane %v4934_v55, 1  ;;  %8938 = vmatpush1.bf16.msra.mxu0 %v13383_v43  ;;  %v13398_v43 = vld [vmem:[#allocation21 + $0x200] ss:$28 sps:$4 sm:$0xff]   ;;  %v4914_v17 = vrot.slane %v4913_v53, 1 }
 0x757   :  { %v4894_v31 = vadd.f32 %v4893_v48, %v4892_v54  ;;  %v13389_v54 = vld [vmem:[#allocation21 + $0x1c0] ss:$28 sps:$4 sm:$0xff]   ;;  %8939 = vmatprep.subr.bf16.mxu0 %v13391_v37  ;;  %v4956_v11 = vrot.slane %v4955_v13, 1 }
 0x758   :  { %9390 = vmatpush1.bf16.msra.mxu1 %v13386_v7  ;;  %v4936_v24 = vadd.f32 %v4935_v23, %v4934_v55  ;;  %v13403_v7 = vld [vmem:[#allocation21 + $0x234] ss:$28 sps:$4 sm:$0xff]  }
 0x759   :  { %v17154_v60 = vmul.f32 0.0078125, %v4894_v31  ;;  %9391 = vmatprep.subr.bf16.mxu1 %v13394_v8  ;;  %v13395_v31 = vld [vmem:[#allocation21 + $0x1f8] ss:$28 sps:$4 sm:$0xff]   ;;  %v13401_v23 = vld [vmem:[#allocation21 + $0x230] ss:$28 sps:$4 sm:$0xff]  }
 0x75a   :  { %8940 = vmatpush1.bf16.msra.mxu0 %v13389_v54 }
 0x75b   :  { %v4970_v4 = vsub.f32 %v16944_v32, %v17154_v60  ;;  %v4978_v39 = vsub.f32 %v16956_v35, %v17154_v60  ;;  %v4986_v48 = vsub.f32 %v16978_v51, %v17154_v60  ;;  %v17162_v35 = vmul.f32 0.0078125, %v4936_v24  ;;  %8941 = vmatprep.subr.bf16.mxu0 %v13397_v59  ;;  %v19913_v51 = vld [vmem:[#allocation40_spill] sm:$0xff] }
 0x75c   :  { %9392 = vmatpush1.bf16.msra.mxu1 %v13392_v45  ;;  %v4994_v55 = vsub.f32 %v16990_v49, %v17154_v60  ;;  %v5002_v40 = vsub.f32 %v17002_v22, %v17154_v60  ;;  %v13409_v45 = vld [vmem:[#allocation21 + $0x26c] ss:$28 sps:$4 sm:$0xff]   ;;  %v5010_v24 = vsub.f32 %v17014_v38, %v17154_v60  ;;  %v4915_v22 = vadd.f32 %v4914_v17, %v4913_v53  ;;  %v13413_v17 = vld [vmem:[#allocation21 + $0x2a0] ss:$28 sps:$4 sm:$0xff]  }
 0x75d   :  { %v5098_v18 = vmul.f32 %v4970_v4, %v4970_v4  ;;  %v5106_v26 = vmul.f32 %v4978_v39, %v4978_v39  ;;  %9393 = vmatprep.subr.bf16.mxu1 %v13400_v47  ;;  %v5114_v37 = vmul.f32 %v4986_v48, %v4986_v48  ;;  %v13404_v4 = vld [vmem:[#allocation21 + $0x238] ss:$28 sps:$4 sm:$0xff]   ;;  %v4972_v39 = vsub.f32 %v16946_v0, %v17162_v35 }
 0x75e   :  { %8942 = vmatpush1.bf16.msra.mxu0 %v13395_v31  ;;  %v4980_v54 = vsub.f32 %v16958_v33, %v17162_v35  ;;  %v5122_v59 = vmul.f32 %v4994_v55, %v4994_v55  ;;  %v13407_v31 = vld [vmem:[#allocation21 + $0x268] ss:$28 sps:$4 sm:$0xff]   ;;  %v4957_v48 = vadd.f32 %v4956_v11, %v4955_v13  ;;  %v13410_v33 = vld [vmem:[#allocation21 + $0x270] ss:$28 sps:$4 sm:$0xff]   ;;  %v5026_v53 = vsub.f32 %v17038_v42, %v17154_v60 }
 0x75f   :  { %v5306_v8 = vadd.f32 %v5106_v26, %v5098_v18  ;;  %8943 = vmatprep.subr.bf16.mxu0 %v13403_v7  ;;  %v13412_v18 = vld [vmem:[#allocation21 + $0x274] ss:$28 sps:$4 sm:$0xff]   ;;  %v5018_v26 = vsub.f32 %v17026_v16, %v17154_v60  ;;  %v4988_v7 = vsub.f32 %v16980_v25, %v17162_v35  ;;  %v5100_v49 = vmul.f32 %v4972_v39, %v4972_v39  ;;  %v13415_v55 = vld [vmem:[#allocation21 + $0x2a4] ss:$28 sps:$4 sm:$0xff]  }
 0x760   :  { %9394 = vmatpush1.bf16.msra.mxu1 %v13398_v43  ;;  %v5130_v43 = vmul.f32 %v5002_v40, %v5002_v40  ;;  %v5108_v38 = vmul.f32 %v4980_v54, %v4980_v54  ;;  %v5138_v13 = vmul.f32 %v5010_v24, %v5010_v24  ;;  %v4996_v11 = vsub.f32 %v16992_v62, %v17162_v35 }
 0x761   :  { %v5307_v47 = vadd.f32 %v5306_v8, %v5114_v37  ;;  %9395 = vmatprep.subr.bf16.mxu1 %v13406_v41  ;;  %v17182_v41 = vmul.f32 0.0078125, %v4915_v22  ;;  %v17184_v40 = vmul.f32 0.0078125, %v4957_v48  ;;  %v13418_v37 = vld [vmem:[#allocation21 + $0x2ac] ss:$28 sps:$4 sm:$0xff]   ;;  %v5034_v8 = vsub.f32 %v17050_v63, %v17154_v60 }
 0x762   :  { %8944 = vmatpush1.bf16.msra.mxu0 %v13401_v23  ;;  %v5146_v39 = vmul.f32 %v5018_v26, %v5018_v26  ;;  %v5004_v22 = vsub.f32 %v17004_v15, %v17162_v35  ;;  %v5116_v24 = vmul.f32 %v4988_v7, %v4988_v7  ;;  %v5066_v48 = vsub.f32 %v17104_v56, %v17154_v60  ;;  %v19903_v63 = vld [vmem:[#allocation56_spill] sm:$0xff] }
 0x763   :  { %v5308_v0 = vadd.f32 %v5307_v47, %v5122_v59  ;;  %8945 = vmatprep.subr.bf16.mxu0 %v13409_v45  ;;  %v5050_v45 = vsub.f32 %v17074_v12, %v17154_v60  ;;  %v5348_v59 = vadd.f32 %v5108_v38, %v5100_v49  ;;  %v13421_v47 = vld [vmem:[#allocation21 + $0x2dc] ss:$28 sps:$4 sm:$0xff]   ;;  %v5124_v7 = vmul.f32 %v4996_v11, %v4996_v11  ;;  %v13424_v38 = vld [vmem:[#allocation21 + $0x2e4] ss:$28 sps:$4 sm:$0xff]  }
 0x764   :  { %9396 = vmatpush1.bf16.msra.mxu1 %v13404_v4  ;;  %v5042_v4 = vsub.f32 %v17062_v61, %v17154_v60  ;;  %v4971_v15 = vsub.f32 %v16950_v3, %v17182_v41  ;;  %v5132_v11 = vmul.f32 %v5004_v22, %v5004_v22  ;;  %v5028_v62 = vsub.f32 %v17040_v9, %v17162_v35  ;;  %v19854_v9 = vld [vmem:[#allocation142_spill] sm:$0xff] }
 0x765   :  { %v5309_v23 = vadd.f32 %v5308_v0, %v5130_v43  ;;  %9397 = vmatprep.subr.bf16.mxu1 %v13412_v18  ;;  %v13416_v0 = vld [vmem:[#allocation21 + $0x2a8] ss:$28 sps:$4 sm:$0xff]   ;;  %v5154_v18 = vmul.f32 %v5026_v53, %v5026_v53  ;;  %v5074_v43 = vsub.f32 %v17118_v6, %v17154_v60  ;;  %v5349_v49 = vadd.f32 %v5348_v59, %v5116_v24  ;;  %v19883_v6 = vld [vmem:[#allocation38_spill] sm:$0xff] }
 0x766   :  { %8946 = vmatpush1.bf16.msra.mxu0 %v13407_v31  ;;  %v5058_v31 = vsub.f32 %v17086_v21, %v17154_v60  ;;  %v4979_v53 = vsub.f32 %v16964_v20, %v17182_v41  ;;  %v5170_v59 = vmul.f32 %v5042_v4, %v5042_v4  ;;  %v13428_v4 = vld [vmem:[#allocation21 + $0x318] ss:$28 sps:$4 sm:$0xff]  }
 0x767   :  { %v5310_v54 = vadd.f32 %v5309_v23, %v5138_v13  ;;  %8947 = vmatprep.subr.bf16.mxu0 %v13415_v55  ;;  %v5012_v13 = vsub.f32 %v17016_v44, %v17162_v35  ;;  %v5162_v55 = vmul.f32 %v5034_v8, %v5034_v8  ;;  %v5350_v24 = vadd.f32 %v5349_v49, %v5124_v7  ;;  %v13425_v44 = vld [vmem:[#allocation21 + $0x310] ss:$28 sps:$4 sm:$0xff]  }
 0x768   :  { %9398 = vmatpush1.bf16.msra.mxu1 %v13410_v33  ;;  %v13419_v33 = vld [vmem:[#allocation21 + $0x2d8] ss:$28 sps:$4 sm:$0xff]   ;;  %v5090_v8 = vsub.f32 %v17142_v27, %v17154_v60  ;;  %v5099_v7 = vmul.f32 %v4971_v15, %v4971_v15  ;;  %v5107_v49 = vmul.f32 %v4979_v53, %v4979_v53  ;;  %v5044_v53 = vsub.f32 %v17064_v50, %v17162_v35  ;;  %v19881_v27 = vld [vmem:[#allocation43_spill] sm:$0xff] }
 0x769   :  { %v5311_v26 = vadd.f32 %v5310_v54, %v5146_v39  ;;  %9399 = vmatprep.subr.bf16.mxu1 %v13418_v37  ;;  %v5082_v39 = vsub.f32 %v17130_v46, %v17154_v60  ;;  %v5020_v54 = vsub.f32 %v17028_v19, %v17162_v35  ;;  %v13427_v37 = vld [vmem:[#allocation21 + $0x314] ss:$28 sps:$4 sm:$0xff]   ;;  %v5140_v25 = vmul.f32 %v5012_v13, %v5012_v13  ;;  %v13430_v19 = vld [vmem:[#allocation21 + $0x31c] ss:$28 sps:$4 sm:$0xff]  }
 0x76a   :  { %8948 = vmatpush1.bf16.msra.mxu0 %v13413_v17  ;;  %v13422_v17 = vld [vmem:[#allocation21 + $0x2e0] ss:$28 sps:$4 sm:$0xff]   ;;  %v5351_v46 = vadd.f32 %v5350_v24, %v5132_v11  ;;  %v5202_v13 = vmul.f32 %v5074_v43, %v5074_v43  ;;  %v4995_v24 = vsub.f32 %v16996_v34, %v17182_v41  ;;  %v5218_v15 = vmul.f32 %v5090_v8, %v5090_v8 }
 0x76b   :  { %v5312_v23 = vadd.f32 %v5311_v26, %v5154_v18  ;;  %8949 = vmatprep.subr.bf16.mxu0 %v13421_v47  ;;  %v5178_v18 = vmul.f32 %v5050_v45, %v5050_v45  ;;  %v4987_v47 = vsub.f32 %v16984_v10, %v17182_v41  ;;  %v5194_v45 = vmul.f32 %v5066_v48, %v5066_v48 }
 0x76c   :  { %9400 = vmatpush1.bf16.msra.mxu1 %v13416_v0  ;;  %v5186_v0 = vmul.f32 %v5058_v31, %v5058_v31  ;;  %v5148_v31 = vmul.f32 %v5020_v54, %v5020_v54  ;;  %v5210_v11 = vmul.f32 %v5082_v39, %v5082_v39  ;;  %v5156_v48 = vmul.f32 %v5028_v62, %v5028_v62  ;;  %v13434_v39 = vld [vmem:[#allocation21 + $0x350] ss:$28 sps:$4 sm:$0xff]   ;;  %v13439_v62 = vld [vmem:[#allocation21 + $0x384] ss:$28 sps:$4 sm:$0xff]  }
 0x76d   :  { %v5313_v26 = vadd.f32 %v5312_v23, %v5162_v55  ;;  %9401 = vmatprep.subr.bf16.mxu1 %v13424_v38  ;;  %v5352_v55 = vadd.f32 %v5351_v46, %v5140_v25  ;;  %v13433_v23 = vld [vmem:[#allocation21 + $0x34c] ss:$28 sps:$4 sm:$0xff]   ;;  %v5003_v46 = vsub.f32 %v17008_v29, %v17182_v41  ;;  %v5115_v25 = vmul.f32 %v4987_v47, %v4987_v47 }
 0x76e   :  { %8950 = vmatpush1.bf16.msra.mxu0 %v13419_v33  ;;  %v5036_v33 = vsub.f32 %v17052_v57, %v17162_v35  ;;  %v5327_v43 = vadd.f32 %v5107_v49, %v5099_v7  ;;  %v13442_v47 = vld [vmem:[#allocation21 + $0x38c] ss:$28 sps:$4 sm:$0xff]   ;;  %v5068_v7 = vsub.f32 %v17106_v30, %v17162_v35  ;;  %v5076_v49 = vsub.f32 %v17120_v1, %v17162_v35 }
 0x76f   :  { %v5314_v22 = vadd.f32 %v5313_v26, %v5170_v59  ;;  %8951 = vmatprep.subr.bf16.mxu0 %v13427_v37  ;;  %v13431_v59 = vld [vmem:[#allocation21 + $0x348] ss:$28 sps:$4 sm:$0xff]   ;;  %v13436_v26 = vld [vmem:[#allocation21 + $0x354] ss:$28 sps:$4 sm:$0xff]   ;;  %v5060_v37 = vsub.f32 %v17088_v5, %v17162_v35 }
 0x770   :  { %9402 = vmatpush1.bf16.msra.mxu1 %v13422_v17  ;;  %v5353_v17 = vadd.f32 %v5352_v55, %v5148_v31  ;;  %v5164_v8 = vmul.f32 %v5036_v33, %v5036_v33  ;;  %v5328_v31 = vadd.f32 %v5327_v43, %v5115_v25 }
 0x771   :  { %v5315_v38 = vadd.f32 %v5314_v22, %v5178_v18  ;;  %9403 = vmatprep.subr.bf16.mxu1 %v13430_v19  ;;  %v5123_v22 = vmul.f32 %v4995_v24, %v4995_v24  ;;  %v5188_v43 = vmul.f32 %v5060_v37, %v5060_v37 }
 0x772   :  { %8952 = vmatpush1.bf16.msra.mxu0 %v13425_v44  ;;  %v5052_v44 = vsub.f32 %v17076_v28, %v17162_v35  ;;  %v5354_v18 = vadd.f32 %v5353_v17, %v5156_v48  ;;  %v4981_v17 = vsub.f32 %v16966_v36, %v17184_v40 }
 0x773   :  { %v5316_v54 = vadd.f32 %v5315_v38, %v5186_v0  ;;  %8953 = vmatprep.subr.bf16.mxu0 %v13433_v23  ;;  %v5011_v0 = vsub.f32 %v17020_v58, %v17182_v41  ;;  %v5131_v23 = vmul.f32 %v5003_v46, %v5003_v46  ;;  %v5329_v38 = vadd.f32 %v5328_v31, %v5123_v22  ;;  %v19837_v46 = vld [vmem:[#allocation162_spill] sm:$0xff] }
 0x774   :  { %9404 = vmatpush1.bf16.msra.mxu1 %v13428_v4  ;;  %v5172_v4 = vmul.f32 %v5044_v53, %v5044_v53  ;;  %v5355_v55 = vadd.f32 %v5354_v18, %v5164_v8  ;;  %v5180_v24 = vmul.f32 %v5052_v44, %v5052_v44  ;;  %v5027_v53 = vsub.f32 %v17044_v52, %v17182_v41  ;;  %v19838_v18 = vld [vmem:[#allocation137_spill] sm:$0xff] }
 0x775   :  { %v5317_v19 = vadd.f32 %v5316_v54, %v5194_v45  ;;  %9405 = vmatprep.subr.bf16.mxu1 %v13436_v26  ;;  %v5019_v45 = vsub.f32 %v17032_v14, %v17182_v41  ;;  %v5330_v26 = vadd.f32 %v5329_v38, %v5131_v23  ;;  %v5084_v25 = vsub.f32 %v19837_v46, %v17162_v35  ;;  %v19841_v23 = vld [vmem:[#allocation141_spill] sm:$0xff] }
 0x776   :  { %8954 = vmatpush1.bf16.msra.mxu0 %v13431_v59  ;;  %v5356_v48 = vadd.f32 %v5355_v55, %v5172_v4  ;;  %v4973_v59 = vsub.f32 %v16952_v2, %v17184_v40  ;;  %v5043_v37 = vsub.f32 %v19841_v23, %v17182_v41  ;;  %v19904_v23 = vld [vmem:[#allocation98_spill] sm:$0xff] }
 0x777   :  { %v5318_v33 = vadd.f32 %v5317_v19, %v5202_v13  ;;  %9036 = vmatprep.subr.bf16.mxu0 %v13439_v62  ;;  %v5139_v13 = vmul.f32 %v5011_v0, %v5011_v0  ;;  %v5035_v19 = vsub.f32 %v19838_v18, %v17182_v41  ;;  %v5147_v22 = vmul.f32 %v5019_v45, %v5019_v45  ;;  %v19842_v45 = vld [vmem:[#allocation118_spill] sm:$0xff]  ;;  %v19905_v18 = vld [vmem:[#allocation99_spill] sm:$0xff] }
 0x778   :  { %9406 = vmatpush1.bf16.msra.mxu1 %v13434_v39  ;;  %v5196_v39 = vmul.f32 %v5068_v7, %v5068_v7  ;;  %v5357_v44 = vadd.f32 %v5356_v48, %v5180_v24  ;;  %v5101_v55 = vmul.f32 %v4973_v59, %v4973_v59  ;;  %v5109_v0 = vmul.f32 %v4981_v17, %v4981_v17 }
 0x779   :  { %v5319_v54 = vadd.f32 %v5318_v33, %v5210_v11  ;;  %9488 = vmatprep.subr.bf16.mxu1 %v13442_v47  ;;  %v5331_v31 = vadd.f32 %v5330_v26, %v5139_v13  ;;  %v19839_v11 = vld [vmem:[#allocation114_spill] sm:$0xff]  ;;  %v5155_v7 = vmul.f32 %v5027_v53, %v5027_v53  ;;  %v5212_v24 = vmul.f32 %v5084_v25, %v5084_v25  ;;  %v19843_v26 = vld [vmem:[#allocation145_spill] sm:$0xff] }
 0x77a   :  { %v5358_v62 = vadd.f32 %v5357_v44, %v5188_v43  ;;  %v4989_v4 = vsub.f32 %v19839_v11, %v17184_v40  ;;  %v19840_v47 = vld [vmem:[#allocation166_spill] sm:$0xff]  ;;  %v5051_v43 = vsub.f32 %v19843_v26, %v17182_v41  ;;  %v5163_v59 = vmul.f32 %v5035_v19, %v5035_v19  ;;  %v19880_v11 = vld [vmem:[#allocation39_spill] sm:$0xff] }
 0x77b   :  { %v5320_v8 = vadd.f32 %v5319_v54, %v5218_v15  ;;  %v5092_v33 = vsub.f32 %v19840_v47, %v17162_v35  ;;  %v5332_v38 = vadd.f32 %v5331_v31, %v5147_v22  ;;  %v5204_v15 = vmul.f32 %v5076_v49, %v5076_v49  ;;  %v19844_v47 = vld [vmem:[#allocation122_spill] sm:$0xff]  ;;  %v19845_v49 = vld [vmem:[#allocation149_spill] sm:$0xff] }
 0x77c   :  { %v5359_v48 = vadd.f32 %v5358_v62, %v5196_v39  ;;  %v4997_v54 = vsub.f32 %v19842_v45, %v17184_v40  ;;  %v5005_v46 = vsub.f32 %v19844_v47, %v17184_v40  ;;  %v5117_v1 = vmul.f32 %v4989_v4, %v4989_v4  ;;  %v19846_v62 = vld [vmem:[#allocation126_spill] sm:$0xff] }
 0x77d   :  { %v5321_v13 = vrot.slane %v5320_v8, 4  ;;  %v5333_v17 = vadd.f32 %v5332_v38, %v5155_v7  ;;  %v5369_v30 = vadd.f32 %v5109_v0, %v5101_v55  ;;  %v5220_v53 = vmul.f32 %v5092_v33, %v5092_v33  ;;  %v19847_v7 = vld [vmem:[#allocation155_spill] sm:$0xff]  ;;  %v19848_v55 = vld [vmem:[#allocation130_spill] sm:$0xff] }
 0x77e   :  { %v5360_v44 = vadd.f32 %v5359_v48, %v5204_v15  ;;  %v5059_v25 = vsub.f32 %v19845_v49, %v17182_v41  ;;  %v5171_v39 = vmul.f32 %v5043_v37, %v5043_v37  ;;  %v5013_v5 = vsub.f32 %v19846_v62, %v17184_v40  ;;  %v19849_v37 = vld [vmem:[#allocation159_spill] sm:$0xff]  ;;  %v19856_v47 = vld [vmem:[#allocation150_spill] sm:$0xff] }
 0x77f   :  { %v5334_v22 = vadd.f32 %v5333_v17, %v5163_v59  ;;  %v5125_v28 = vmul.f32 %v4997_v54, %v4997_v54  ;;  %v5370_v50 = vadd.f32 %v5369_v30, %v5117_v1  ;;  %v5322_v19 = vadd.f32 %v5321_v13, %v5320_v8  ;;  %v19850_v54 = vld [vmem:[#allocation134_spill] sm:$0xff] }
 0x780   :  { %v5361_v31 = vadd.f32 %v5360_v44, %v5212_v24  ;;  %v5067_v38 = vsub.f32 %v19847_v7, %v17182_v41  ;;  %v5179_v15 = vmul.f32 %v5051_v43, %v5051_v43  ;;  %v5021_v0 = vsub.f32 %v19848_v55, %v17184_v40  ;;  %v19851_v43 = vld [vmem:[#allocation163_spill] sm:$0xff] }
 0x781   :  { %v5335_v48 = vadd.f32 %v5334_v22, %v5171_v39  ;;  %v5133_v33 = vmul.f32 %v5005_v46, %v5005_v46  ;;  %v5371_v57 = vadd.f32 %v5370_v50, %v5125_v28  ;;  %v5075_v24 = vsub.f32 %v19849_v37, %v17182_v41  ;;  %v19852_v22 = vld [vmem:[#allocation138_spill] sm:$0xff] }
 0x782   :  { %v5362_v4 = vadd.f32 %v5361_v31, %v5220_v53  ;;  %v5187_v59 = vmul.f32 %v5059_v25, %v5059_v25  ;;  %v5029_v30 = vsub.f32 %v19850_v54, %v17184_v40  ;;  %v5141_v1 = vmul.f32 %v5013_v5, %v5013_v5  ;;  %v19853_v31 = vld [vmem:[#allocation167_spill] sm:$0xff] }
 0x783   :  { %v5336_v17 = vadd.f32 %v5335_v48, %v5179_v15  ;;  %v5372_v8 = vadd.f32 %v5371_v57, %v5133_v33  ;;  %v5323_v13 = vrot.slane %v5322_v19, 2  ;;  %v5083_v44 = vsub.f32 %v19851_v43, %v17182_v41 }
 0x784   :  { %v5195_v53 = vmul.f32 %v5067_v38, %v5067_v38  ;;  %v5037_v46 = vsub.f32 %v19852_v22, %v17184_v40  ;;  %v5149_v50 = vmul.f32 %v5021_v0, %v5021_v0  ;;  %v5091_v25 = vsub.f32 %v19853_v31, %v17182_v41  ;;  %v19882_v31 = vld [vmem:[#allocation80_spill] sm:$0xff] }
 0x785   :  { %v5337_v39 = vadd.f32 %v5336_v17, %v5187_v59  ;;  %v5373_v28 = vadd.f32 %v5372_v8, %v5141_v1  ;;  %v5203_v15 = vmul.f32 %v5075_v24, %v5075_v24  ;;  %v5045_v5 = vsub.f32 %v19854_v9, %v17184_v40  ;;  %v19855_v59 = vld [vmem:[#allocation146_spill] sm:$0xff] }
 0x786   :  { %v5157_v57 = vmul.f32 %v5029_v30, %v5029_v30  ;;  %v5324_v54 = vadd.f32 %v5323_v13, %v5322_v19  ;;  %v5211_v55 = vmul.f32 %v5083_v44, %v5083_v44  ;;  %v5363_v38 = vrot.slane %v5362_v4, 4  ;;  %v19857_v19 = vld [vmem:[#allocation156_spill] sm:$0xff] }
 0x787   :  { %v5338_v48 = vadd.f32 %v5337_v39, %v5195_v53  ;;  %v5374_v33 = vadd.f32 %v5373_v28, %v5149_v50  ;;  %v5053_v17 = vsub.f32 %v19855_v59, %v17184_v40  ;;  %v5165_v22 = vmul.f32 %v5037_v46, %v5037_v46 }
 0x788   :  { %v5219_v1 = vmul.f32 %v5091_v25, %v5091_v25  ;;  %v5061_v24 = vsub.f32 %v19856_v47, %v17184_v40  ;;  %v5173_v53 = vmul.f32 %v5045_v5, %v5045_v5  ;;  %v5325_v45 = vrot.slane %v5324_v54, 1  ;;  %v19859_v5 = vld [vmem:[#allocation164_spill] sm:$0xff] }
 0x789   :  { %v5339_v62 = vadd.f32 %v5338_v48, %v5203_v15  ;;  %v5375_v0 = vadd.f32 %v5374_v33, %v5157_v57  ;;  %v5364_v30 = vadd.f32 %v5363_v38, %v5362_v4  ;;  %v5069_v13 = vsub.f32 %v19857_v19, %v17184_v40  ;;  %v19858_v15 = vld [vmem:[#allocation160_spill] sm:$0xff] }
 0x78a   :  { %v5181_v44 = vmul.f32 %v5053_v17, %v5053_v17  ;;  %v5077_v46 = vsub.f32 %v19858_v15, %v17184_v40  ;;  %v5189_v48 = vmul.f32 %v5061_v24, %v5061_v24  ;;  %v19860_v38 = vld [vmem:[#allocation168_spill] sm:$0xff] }
 0x78b   :  { %v5340_v8 = vadd.f32 %v5339_v62, %v5211_v55  ;;  %v5376_v39 = vadd.f32 %v5375_v0, %v5165_v22  ;;  %v5326_v62 = vadd.f32 %v5325_v45, %v5324_v54  ;;  %v5365_v57 = vrot.slane %v5364_v30, 2 }
 0x78c   :  { %v5085_v22 = vsub.f32 %v19859_v5, %v17184_v40  ;;  %v5197_v33 = vmul.f32 %v5069_v13, %v5069_v13  ;;  %v5205_v17 = vmul.f32 %v5077_v46, %v5077_v46 }
 0x78d   :  { %v5341_v9 = vadd.f32 %v5340_v8, %v5219_v1  ;;  %v5377_v50 = vadd.f32 %v5376_v39, %v5173_v53  ;;  %v5093_v1 = vsub.f32 %v19860_v38, %v17184_v40  ;;  %v5394_v53 = vmul.f32 0.0078125, %v5326_v62 }
 0x78e   :  { %v5366_v19 = vadd.f32 %v5365_v57, %v5364_v30  ;;  %v5213_v15 = vmul.f32 %v5085_v22, %v5085_v22 }
 0x78f   :  { %v5342_v28 = vrot.slane %v5341_v9, 4  ;;  %v5378_v25 = vadd.f32 %v5377_v50, %v5181_v44  ;;  %v5221_v45 = vmul.f32 %v5093_v1, %v5093_v1  ;;  %v5402_v54 = vadd.f32 1e-05, %v5394_v53  ;;  %v19861_v53 = vld [vmem:[#allocation34_spill] sm:$0xff] }
 0x791   :  { %v5343_v55 = vadd.f32 %v5342_v28, %v5341_v9  ;;  %v5379_v0 = vadd.f32 %v5378_v25, %v5189_v48  ;;  %v5367_v28 = vrot.slane %v5366_v19, 1  ;;  %14003 = vrsqrt.f32 %v5402_v54  ;;  %v2572_v54 = vld [vmem:[#allocation18] sm:$0xff] }
 0x793   :  { %v5344_v4 = vrot.slane %v5343_v55, 2  ;;  %v5380_v8 = vadd.f32 %v5379_v0, %v5197_v33  ;;  %v5368_v47 = vadd.f32 %v5367_v28, %v5366_v19  ;;  %v19865_v28 = vld [vmem:[#allocation32_spill] sm:$0xff] }
 0x795   :  { %v5345_v39 = vadd.f32 %v5344_v4, %v5343_v55  ;;  %v5381_v24 = vadd.f32 %v5380_v8, %v5205_v17  ;;  %v5396_v62 = vmul.f32 0.0078125, %v5368_v47  ;;  %v19862_v47 = vld [vmem:[#allocation151_spill] sm:$0xff] }
 0x797   :  { %v5346_v44 = vrot.slane %v5345_v39, 1  ;;  %v5382_v9 = vadd.f32 %v5381_v24, %v5213_v15  ;;  %v5404_v57 = vadd.f32 1e-05, %v5396_v62 }
 0x799   :  { %v5347_v50 = vadd.f32 %v5346_v44, %v5345_v39  ;;  %v5383_v5 = vadd.f32 %v5382_v9, %v5221_v45 }
 0x79b   :  { %v5395_v13 = vmul.f32 0.0078125, %v5347_v50  ;;  %v5384_v48 = vrot.slane %v5383_v5, 4  ;;  %v14004_v33 = vpop.eup %14003 }
 0x79d   :  { %v5403_v25 = vadd.f32 1e-05, %v5395_v13  ;;  %v5385_v59 = vadd.f32 %v5384_v48, %v5383_v5  ;;  %v17298_v13 = vsub.s32 4, %v19865_v28  ;;  %v17301_v48 = vsub.s32 5, %v19865_v28 }
 0x79f   :  { %14005 = vrsqrt.f32 %v5403_v25  ;;  %v5386_v46 = vrot.slane %v5385_v59, 2  ;;  %19866 = vst [vmem:[#allocation168_spill] sm:$0xff] %v17298_v13  ;;  %19867 = vst [vmem:[#allocation34_spill] sm:$0xff] %v17301_v48  ;;  %v17304_v25 = vsub.s32 6, %v19865_v28 }
 0x7a0   :  { %14007 = vrsqrt.f32 %v5404_v57  ;;  %v19870_v57 = vld [vmem:[#allocation35_spill] sm:$0xff] }
 0x7a1   :  { %v5387_v55 = vadd.f32 %v5386_v46, %v5385_v59  ;;  %v19863_v59 = vld [vmem:[#allocation152_spill] sm:$0xff]  ;;  %19868 = vst [vmem:[#allocation151_spill] sm:$0xff] %v17304_v25  ;;  %v19365_v46 = vsub.s32 7, %v19865_v28 }
 0x7a2   :  { %v19864_v44 = vcombine.low %v19862_v47, %v19863_v59  ;;  %v19878_v59 = vld [vmem:[#allocation73_spill] sm:$0xff] }
 0x7a3   :  { %v5388_v30 = vrot.slane %v5387_v55, 1 }
 0x7a4   :  { %v5462_v45 = vrot.slane %v19864_v44, %v19861_v53 }
 0x7a5   :  { %v5389_v22 = vadd.f32 %v5388_v30, %v5387_v55  ;;  %v19869_v55 = vld [vmem:[#allocation33_spill] sm:$0xff] }
 0x7a7   :  { %v5397_v0 = vmul.f32 0.0078125, %v5389_v22 }
 0x7a9   :  { %v14006_v15 = vpop.eup %14005  ;;  %v5405_v1 = vadd.f32 1e-05, %v5397_v0 }
 0x7aa   :  { %v5424_v4 = vcombine.low %v14004_v33, %v14006_v15  ;;  %v14008_v17 = vpop.eup %14007  ;;  %v19871_v33 = vld [vmem:[#allocation78_spill] sm:$0xff] }
 0x7ab   :  { %14009 = vrsqrt.f32 %v5405_v1  ;;  %v19872_v15 = vld [vmem:[#allocation82_spill] sm:$0xff] }
 0x7ac   :  { %v5446_v39 = vrot.slane %v5424_v4, %v19861_v53 }
 0x7b5   :  { %v14010_v8 = vpop.eup %14009 }
 0x7b6   :  { %v5425_v19 = vcombine.low %v14008_v17, %v14010_v8 }
 0x7b8   :  { %v5453_v5 = vrot.slane %v5425_v19, %v19861_v53  ;;  %v19876_v19 = vld [vmem:[#allocation69_spill] sm:$0xff] }
 0x7ba   :  { %v5455_v24 = vcombine.low %v5446_v39, %v5453_v5 }
 0x7bc   :  { %v5469_v9 = vrot.slane %v5455_v24, %v19861_v53  ;;  %v19877_v24 = vld [vmem:[#allocation79_spill] sm:$0xff] }
 0x7be   :  { %v5470_v50 = vcombine.low %v5462_v45, %v5469_v9  ;;  %v19879_v45 = vld [vmem:[#allocation76_spill] sm:$0xff] }
 0x7c0   :  { %v5472_v62 = vmul.f32 %v5470_v50, %v2572_v54 }
 0x7c2   :  { %v5477_v30 = vrot.slane %v5472_v62, %v19869_v55  ;;  %v5481_v22 = vrot.slane %v5472_v62, %v19870_v57  ;;  %v17310_v0 = vrot.slane %v5472_v62, %v19871_v33  ;;  %v17313_v4 = vrot.slane %v5472_v62, %v19872_v15 }
 0x7c3   :  { %v17316_v1 = vrot.slane %v5472_v62, %v17298_v13  ;;  %v17319_v17 = vrot.slane %v5472_v62, %v17301_v48  ;;  %v17322_v8 = vrot.slane %v5472_v62, %v17304_v25  ;;  %v17326_v39 = vrot.slane %v5472_v62, %v19365_v46 }
 0x7c4   :  { %v5514_v5 = vmul.f32 %v5477_v30, %v19876_v19  ;;  %v5515_v47 = vmul.f32 %v5481_v22, %v19877_v24  ;;  %v5516_v44 = vmul.f32 %v17310_v0, %v19878_v59  ;;  %v5517_v9 = vmul.f32 %v17313_v4, %v19879_v45 }
 0x7c5   :  { %19873 = vst [vmem:[#allocation152_spill] sm:$0xff] %v17316_v1  ;;  %19874 = vst [vmem:[#allocation32_spill] sm:$0xff] %v17322_v8  ;;  %v5518_v54 = vmul.f32 %v17316_v1, %v17154_v60  ;;  %v5519_v50 = vmul.f32 %v17319_v17, %v17182_v41  ;;  %v5520_v62 = vmul.f32 %v17322_v8, %v17162_v35  ;;  %v19884_v35 = vld [vmem:[#allocation48_spill] sm:$0xff] }
 0x7c6   :  { %19875 = vst [vmem:[#allocation169_spill] sm:$0xff] %v17326_v39  ;;  %v5521_v19 = vmul.f32 %v17326_v39, %v17184_v40  ;;  %v5530_v46 = vcombine.low %v5514_v5, %v5515_v47  ;;  %v5531_v24 = vcombine.low %v5516_v44, %v5517_v9  ;;  %v5582_v36 = vmul.f32 %v5481_v22, %v19880_v11  ;;  %v19885_v47 = vld [vmem:[#allocation60_spill] sm:$0xff]  ;;  %v19886_v44 = vld [vmem:[#allocation42_spill] sm:$0xff] }
 0x7c7   :  { %v5532_v59 = vcombine.low %v5518_v54, %v5519_v50  ;;  %v5590_v45 = vmul.f32 %v5481_v22, %v19881_v27  ;;  %v5581_v43 = vmul.f32 %v5477_v30, %v19882_v31  ;;  %v5589_v56 = vmul.f32 %v5477_v30, %v19883_v6  ;;  %v19887_v27 = vld [vmem:[#allocation54_spill] sm:$0xff]  ;;  %v19888_v31 = vld [vmem:[#allocation83_spill] sm:$0xff] }
 0x7c8   :  { %v5533_v2 = vcombine.low %v5520_v62, %v5521_v19  ;;  %v5540_v60 = vrot.slane %v5530_v46, %v19861_v53  ;;  %v5547_v41 = vrot.slane %v5531_v24, %v19861_v53  ;;  %v5598_v8 = vmul.f32 %v5481_v22, %v19884_v35  ;;  %v19889_v46 = vld [vmem:[#allocation68_spill] sm:$0xff]  ;;  %v19890_v24 = vld [vmem:[#allocation66_spill] sm:$0xff] }
 0x7c9   :  { %v5554_v40 = vrot.slane %v5532_v59, %v19861_v53  ;;  %v5606_v11 = vmul.f32 %v5481_v22, %v19885_v47  ;;  %v5597_v9 = vmul.f32 %v5477_v30, %v19886_v44  ;;  %v5605_v50 = vmul.f32 %v5477_v30, %v19887_v27  ;;  %v19891_v59 = vld [vmem:[#allocation85_spill] sm:$0xff]  ;;  %v19894_v27 = vld [vmem:[#allocation46_spill] sm:$0xff] }
 0x7ca   :  { %v5561_v5 = vrot.slane %v5533_v2, %v19861_v53  ;;  %v5562_v54 = vcombine.low %v5540_v60, %v5547_v41  ;;  %v17355_v62 = vmul.f32 %v5481_v22, %v19888_v31  ;;  %v17358_v19 = vmul.f32 %v5481_v22, %v19889_v46  ;;  %v19892_v2 = vld [vmem:[#allocation49_spill] sm:$0xff]  ;;  %v19893_v41 = vld [vmem:[#allocation87_spill] sm:$0xff] }
 0x7cb   :  { %v17361_v35 = vmul.f32 %v5477_v30, %v19890_v24  ;;  %v17364_v37 = vmul.f32 %v5477_v30, %v19891_v59  ;;  %v17367_v47 = vmul.f32 %v5481_v22, %v19892_v2  ;;  %v17371_v44 = vmul.f32 %v5481_v22, %v19893_v41  ;;  %v19895_v46 = vld [vmem:[#allocation105_spill] sm:$0xff]  ;;  %v19897_v59 = vld [vmem:[#allocation92_spill] sm:$0xff]  ;;  %v19899_v41 = vld [vmem:[#allocation50_spill] sm:$0xff] }
 0x7cc   :  { %v5563_v6 = vcombine.low %v5554_v40, %v5561_v5  ;;  %v5570_v60 = vrot.slane %v5562_v54, %v19861_v53  ;;  %v17374_v31 = vmul.f32 %v5477_v30, %v19894_v27  ;;  %v17377_v7 = vmul.f32 %v5477_v30, %v19895_v46  ;;  %v19896_v5 = vld [vmem:[#allocation52_spill] sm:$0xff]  ;;  %v19898_v2 = vld [vmem:[#allocation89_spill] sm:$0xff]  ;;  %v2573_v54 = vld [vmem:[#allocation19] sm:$0xff] }
 0x7cd   :  { %v17381_v24 = vmul.f32 %v5481_v22, %v19896_v5  ;;  %v17384_v21 = vmul.f32 %v5481_v22, %v19897_v59  ;;  %v17387_v12 = vmul.f32 %v5477_v30, %v19898_v2  ;;  %v17390_v49 = vmul.f32 %v5477_v30, %v19899_v41  ;;  %v19900_v27 = vld [vmem:[#allocation58_spill] sm:$0xff]  ;;  %v19901_v46 = vld [vmem:[#allocation64_spill] sm:$0xff] }
 0x7ce   :  { %v5577_v40 = vrot.slane %v5563_v6, %v19861_v53  ;;  %v17393_v26 = vmul.f32 %v5481_v22, %v19900_v27  ;;  %v17396_v61 = vmul.f32 %v5481_v22, %v19901_v46  ;;  %v19902_v53 = vld [vmem:[#allocation94_spill] sm:$0xff]  ;;  %v17402_v59 = vmul.f32 %v5477_v30, %v19903_v63  ;;  %v19906_v41 = vld [vmem:[#allocation96_spill] sm:$0xff]  ;;  %v19908_v46 = vld [vmem:[#allocation71_spill] sm:$0xff] }
 0x7cf   :  { %v17399_v6 = vmul.f32 %v5477_v30, %v19902_v53  ;;  %v17405_v2 = vmul.f32 %v5481_v22, %v19904_v23  ;;  %v17408_v42 = vmul.f32 %v5481_v22, %v19905_v18  ;;  %v17411_v16 = vmul.f32 %v5477_v30, %v19906_v41  ;;  %v19907_v27 = vld [vmem:[#allocation62_spill] sm:$0xff]  ;;  %v19909_v53 = vld [vmem:[#allocation103_spill] sm:$0xff]  ;;  %v19912_v18 = vld [vmem:[#allocation36_spill] sm:$0xff] }
 0x7d0   :  { %v5578_v5 = vcombine.low %v5570_v60, %v5577_v40  ;;  %v17414_v52 = vmul.f32 %v5477_v30, %v19907_v27  ;;  %v17417_v14 = vmul.f32 %v5481_v22, %v19908_v46  ;;  %v17420_v60 = vmul.f32 %v5481_v22, %v19909_v53  ;;  %v19910_v40 = vld [vmem:[#allocation101_spill] sm:$0xff]  ;;  %v19911_v23 = vld [vmem:[#allocation107_spill] sm:$0xff] }
 0x7d1   :  { %v17423_v58 = vmul.f32 %v5477_v30, %v19910_v40  ;;  %v17426_v29 = vmul.f32 %v5477_v30, %v19911_v23  ;;  %v17430_v41 = vmul.f32 %v17313_v4, %v19912_v18  ;;  %v17434_v27 = vmul.f32 %v17313_v4, %v19913_v51  ;;  %v19914_v46 = vld [vmem:[#allocation37_spill] sm:$0xff] }
 0x7d2   :  { %v5580_v63 = vsub.f32 %v2573_v54, %v5578_v5  ;;  %v17438_v34 = vmul.f32 %v17310_v0, %v19914_v46  ;;  %v19915_v22 = vld [vmem:[#allocation41_spill] sm:$0xff]  ;;  %v19916_v5 = vld [vmem:[#allocation51_spill] sm:$0xff]  ;;  %v5708_v53 = vmul.f32 %v17326_v39, %v19860_v38  ;;  %v19919_v38 = vsub.s32 7, %v19865_v28 }
 0x7d3   :  { %v17442_v54 = vmul.f32 %v17310_v0, %v19915_v22  ;;  %v17446_v30 = vmul.f32 %v17313_v4, %v19916_v5 }
 0x7d4   :  { %v17451_v40 = vrot.slane %v5580_v63, %v19869_v55  ;;  %v17454_v51 = vrot.slane %v5580_v63, %v19870_v57  ;;  %v17457_v23 = vrot.slane %v5580_v63, %v19871_v33  ;;  %v17460_v18 = vrot.slane %v5580_v63, %v19872_v15 }
 0x7d5   :  { %v17463_v46 = vrot.slane %v5580_v63, %v17298_v13  ;;  %v17466_v22 = vrot.slane %v5580_v63, %v17301_v48  ;;  %v17470_v5 = vrot.slane %v5580_v63, %v19919_v38 }
 0x7d6   :  { %v5751_v55 = vadd.f32 %v17454_v51, %v5582_v36  ;;  %v5759_v57 = vadd.f32 %v17454_v51, %v5590_v45  ;;  %v5750_v33 = vadd.f32 %v17451_v40, %v5581_v43  ;;  %v5758_v39 = vadd.f32 %v17451_v40, %v5589_v56 }
 0x7d7   :  { %19917 = vst [vmem:[#allocation69_spill] sm:$0xff] %v17463_v46  ;;  %19918 = vst [vmem:[#allocation79_spill] sm:$0xff] %v17466_v22  ;;  %v17477_v15 = vadd.f32 %v17470_v5, %v5708_v53  ;;  %v5767_v13 = vadd.f32 %v17454_v51, %v5598_v8  ;;  %v5775_v48 = vadd.f32 %v17454_v51, %v5606_v11  ;;  %v13437_v53 = vld [vmem:[#allocation21 + $0x380] ss:$28 sps:$4 sm:$0xff]  }
 0x7d8   :  { %v5766_v10 = vadd.f32 %v17451_v40, %v5597_v9  ;;  %v5879_v28 = vmax.f32 %v5751_v55, 0.0  ;;  %v5887_v38 = vmax.f32 %v5759_v57, 0.0  ;;  %v5878_v46 = vmax.f32 %v5750_v33, 0.0  ;;  %v13440_v55 = vld [vmem:[#allocation21 + $0x388] ss:$28 sps:$4 sm:$0xff]  }
 0x7d9   :  { %19920 = vst [vmem:[#allocation73_spill] sm:$0xff] %v17477_v15  ;;  %v5886_v22 = vmax.f32 %v5758_v39, 0.0  ;;  %v17483_v36 = vrot.slane %v5580_v63, %v17304_v25  ;;  %v5895_v45 = vmax.f32 %v5767_v13, 0.0  ;;  %v5903_v43 = vmax.f32 %v5775_v48, 0.0  ;;  %v13445_v48 = vld [vmem:[#allocation21 + $0x3bc] ss:$28 sps:$4 sm:$0xff]  }
 0x7da   :  { %v5774_v56 = vadd.f32 %v17451_v40, %v5605_v50  ;;  %v17486_v1 = vpack.c.bf16 %v5887_v38, %v5879_v28  ;;  %v5894_v8 = vmax.f32 %v5766_v10, 0.0  ;;  %v5783_v11 = vadd.f32 %v17454_v51, %v17355_v62  ;;  %v13448_v9 = vld [vmem:[#allocation21 + $0x3c4] ss:$28 sps:$4 sm:$0xff]  }
 0x7db   :  { %v17488_v15 = vpack.c.bf16 %v5886_v22, %v5878_v46  ;;  %v17492_v57 = vpack.c.bf16 %v5903_v43, %v5895_v45  ;;  %v5791_v39 = vadd.f32 %v17454_v51, %v17358_v19  ;;  %v5782_v13 = vadd.f32 %v17451_v40, %v17361_v35  ;;  %v13446_v45 = vld [vmem:[#allocation21 + $0x3c0] ss:$28 sps:$4 sm:$0xff]   ;;  %v13451_v43 = vld [vmem:[#allocation21 + $0x3f4] ss:$28 sps:$4 sm:$0xff]  }
 0x7dc   :  { %v5902_v33 = vmax.f32 %v5774_v56, 0.0  ;;  %8955 = vmatprep.mubr.bf16.mxu0 %v17486_v1  ;;  %9407 = vmatprep.mubr.bf16.mxu1 %v17486_v1  ;;  %v5911_v10 = vmax.f32 %v5783_v11, 0.0  ;;  %v5790_v50 = vadd.f32 %v17451_v40, %v17364_v37  ;;  %v5799_v62 = vadd.f32 %v17454_v51, %v17367_v47  ;;  %v13443_v37 = vld [vmem:[#allocation21 + $0x3b8] ss:$28 sps:$4 sm:$0xff]  }
 0x7dd   :  { %19921 = vst [vmem:[#allocation76_spill] sm:$0xff] %v17488_v15  ;;  %v5807_v63 = vadd.f32 %v17454_v51, %v17371_v44  ;;  %8956 = vmatmul.mubr.bf16.vlgmr.msra.gmra.mrb[112].mxu0 %v17488_v15  ;;  %9408 = vmatmul.mubr.bf16.vlgmr.msra.gmra.mrb[128].mxu1 %v17488_v15  ;;  %v5919_v35 = vmax.f32 %v5791_v39, 0.0  ;;  %v5910_v46 = vmax.f32 %v5782_v13, 0.0  ;;  %v5798_v22 = vadd.f32 %v17451_v40, %v17374_v31  ;;  %v13454_v11 = vld [vmem:[#allocation21 + $0x3fc] ss:$28 sps:$4 sm:$0xff]   ;;  %v20029_v15 = vld [vmem:[#allocation148_spill] sm:$0xff] }
 0x7de   :  { %v17508_v19 = vpack.c.bf16 %v5902_v33, %v5894_v8  ;;  %9037 = vmatpush1.bf16.msra.mxu0 %v13437_v53  ;;  %8965 = vmatprep.mubr.bf16.mxu0 %v17492_v57  ;;  %v5918_v28 = vmax.f32 %v5790_v50, 0.0  ;;  %v5927_v47 = vmax.f32 %v5799_v62, 0.0  ;;  %v5806_v44 = vadd.f32 %v17451_v40, %v17377_v7 }
 0x7df   :  { %v5935_v38 = vmax.f32 %v5807_v63, 0.0  ;;  %9417 = vmatprep.mubr.bf16.mxu1 %v17492_v57  ;;  %9489 = vmatpush1.bf16.msra.mxu1 %v13440_v55  ;;  %v17516_v56 = vpack.c.bf16 %v5919_v35, %v5911_v10  ;;  %v5926_v8 = vmax.f32 %v5798_v22, 0.0  ;;  %v5815_v31 = vadd.f32 %v17454_v51, %v17381_v24  ;;  %v13457_v22 = vld [vmem:[#allocation21 + $0x42c] ss:$28 sps:$4 sm:$0xff]  }
 0x7e0   :  { %19922 = vst [vmem:[#allocation39_spill] sm:$0xff] %v17508_v19  ;;  %v5823_v53 = vadd.f32 %v17454_v51, %v17384_v21  ;;  %9038 = vmatprep.subr.bf16.mxu0 %v13445_v48  ;;  %9490 = vmatprep.subr.bf16.mxu1 %v13448_v9  ;;  %v17522_v33 = vpack.c.bf16 %v5918_v28, %v5910_v46  ;;  %v5934_v39 = vmax.f32 %v5806_v44, 0.0  ;;  %v13449_v21 = vld [vmem:[#allocation21 + $0x3f0] ss:$28 sps:$4 sm:$0xff]  }
 0x7e1   :  { %19923 = vst [vmem:[#allocation43_spill] sm:$0xff] %v17516_v56  ;;  %v17524_v7 = vpack.c.bf16 %v5935_v38, %v5927_v47  ;;  %v5814_v55 = vadd.f32 %v17451_v40, %v17387_v12  ;;  %v5943_v13 = vmax.f32 %v5815_v31, 0.0  ;;  %v5822_v50 = vadd.f32 %v17451_v40, %v17390_v49  ;;  %v13452_v12 = vld [vmem:[#allocation21 + $0x3f8] ss:$28 sps:$4 sm:$0xff]  }
 0x7e2   :  { %19924 = vst [vmem:[#allocation80_spill] sm:$0xff] %v17522_v33  ;;  %v5951_v10 = vmax.f32 %v5823_v53, 0.0  ;;  %v5831_v24 = vadd.f32 %v17454_v51, %v17393_v26  ;;  %9039 = vmatpush1.bf16.msra.mxu0 %v13443_v37  ;;  %v17532_v48 = vpack.c.bf16 %v5934_v39, %v5926_v8  ;;  %v5839_v62 = vadd.f32 %v17454_v51, %v17396_v61  ;;  %v13460_v37 = vld [vmem:[#allocation21 + $0x434] ss:$28 sps:$4 sm:$0xff]  }
 0x7e3   :  { %19925 = vst [vmem:[#allocation38_spill] sm:$0xff] %v17524_v7  ;;  %v5942_v9 = vmax.f32 %v5814_v55, 0.0  ;;  %v5830_v63 = vadd.f32 %v17451_v40, %v17399_v6  ;;  %9491 = vmatpush1.bf16.msra.mxu1 %v13446_v45  ;;  %9040 = vmatprep.subr.bf16.mxu0 %v13451_v43  ;;  %v5950_v49 = vmax.f32 %v5822_v50, 0.0  ;;  %v5838_v26 = vadd.f32 %v17451_v40, %v17402_v59  ;;  %v13458_v53 = vld [vmem:[#allocation21 + $0x430] ss:$28 sps:$4 sm:$0xff]  }
 0x7e4   :  { %19926 = vst [vmem:[#allocation48_spill] sm:$0xff] %v17532_v48  ;;  %v17538_v35 = vpack.c.bf16 %v5951_v10, %v5943_v13  ;;  %v5959_v46 = vmax.f32 %v5831_v24, 0.0  ;;  %9492 = vmatprep.subr.bf16.mxu1 %v13454_v11  ;;  %v5967_v28 = vmax.f32 %v5839_v62, 0.0  ;;  %v5847_v61 = vadd.f32 %v17454_v51, %v17405_v2  ;;  %v13455_v2 = vld [vmem:[#allocation21 + $0x428] ss:$28 sps:$4 sm:$0xff]  }
 0x7e5   :  { %v5958_v47 = vmax.f32 %v5830_v63, 0.0  ;;  %v5855_v6 = vadd.f32 %v17454_v51, %v17408_v42  ;;  %8966 = vmatmul.mubr.bf16.gmra.mrb[116].mxu0 %v17508_v19  ;;  %9418 = vmatmul.mubr.bf16.gmra.mrb[132].mxu1 %v17508_v19  ;;  %v17548_v38 = vpack.c.bf16 %v5950_v49, %v5942_v9  ;;  %v5966_v44 = vmax.f32 %v5838_v26, 0.0  ;;  %v13463_v11 = vld [vmem:[#allocation21 + $0x464] ss:$28 sps:$4 sm:$0xff]   ;;  %v13466_v13 = vld [vmem:[#allocation21 + $0x46c] ss:$28 sps:$4 sm:$0xff]  }
 0x7e6   :  { %19927 = vst [vmem:[#allocation60_spill] sm:$0xff] %v17538_v35  ;;  %v5846_v59 = vadd.f32 %v17451_v40, %v17411_v16  ;;  %v5854_v45 = vadd.f32 %v17451_v40, %v17414_v52  ;;  %9041 = vmatpush1.bf16.msra.mxu0 %v13449_v21  ;;  %8975 = vmatprep.mubr.bf16.mxu0 %v17516_v56  ;;  %v5975_v42 = vmax.f32 %v5847_v61, 0.0  ;;  %v19934_v26 = vld [vmem:[#allocation63_spill] sm:$0xff] }
 0x7e7   :  { %19928 = vst [vmem:[#allocation42_spill] sm:$0xff] %v17548_v38  ;;  %v17555_v43 = vpack.c.bf16 %v5967_v28, %v5959_v46  ;;  %v5983_v8 = vmax.f32 %v5855_v6, 0.0  ;;  %v5863_v31 = vadd.f32 %v17454_v51, %v17417_v14  ;;  %9427 = vmatprep.mubr.bf16.mxu1 %v17516_v56  ;;  %9493 = vmatpush1.bf16.msra.mxu1 %v13452_v12  ;;  %v13577_v56 = vld [vmem:[#allocation21 + $0x88c] ss:$28 sps:$4 sm:$0xff]  }
 0x7e8   :  { %v17560_v16 = vpack.c.bf16 %v5966_v44, %v5958_v47  ;;  %v5974_v39 = vmax.f32 %v5846_v59, 0.0  ;;  %v5982_v52 = vmax.f32 %v5854_v45, 0.0  ;;  %v5871_v55 = vadd.f32 %v17454_v51, %v17420_v60  ;;  %9042 = vmatprep.subr.bf16.mxu0 %v13457_v22  ;;  %9494 = vmatprep.subr.bf16.mxu1 %v13460_v37  ;;  %v13461_v51 = vld [vmem:[#allocation21 + $0x460] ss:$28 sps:$4 sm:$0xff]   ;;  %v19937_v44 = vld [vmem:[#allocation45_spill] sm:$0xff] }
 0x7e9   :  { %19929 = vst [vmem:[#allocation54_spill] sm:$0xff] %v17555_v43  ;;  %v17564_v10 = vpack.c.bf16 %v5983_v8, %v5975_v42  ;;  %v5991_v50 = vmax.f32 %v5863_v31, 0.0  ;;  %v5862_v14 = vadd.f32 %v17451_v40, %v17423_v58  ;;  %v5870_v24 = vadd.f32 %v17451_v40, %v17426_v29  ;;  %v13464_v29 = vld [vmem:[#allocation21 + $0x468] ss:$28 sps:$4 sm:$0xff]   ;;  %v13469_v22 = vld [vmem:[#allocation21 + $0x49c] ss:$28 sps:$4 sm:$0xff]  }
 0x7ea   :  { %19930 = vst [vmem:[#allocation83_spill] sm:$0xff] %v17560_v16  ;;  %v17570_v21 = vpack.c.bf16 %v5982_v52, %v5974_v39  ;;  %v5999_v9 = vmax.f32 %v5871_v55, 0.0  ;;  %v5753_v62 = vadd.f32 %v17460_v18, %v17430_v41  ;;  %v5761_v60 = vadd.f32 %v17460_v18, %v17434_v27  ;;  %9043 = vmatpush1.bf16.msra.mxu0 %v13455_v2  ;;  %v13472_v37 = vld [vmem:[#allocation21 + $0x4a4] ss:$28 sps:$4 sm:$0xff]   ;;  %v13467_v45 = vld [vmem:[#allocation21 + $0x498] ss:$28 sps:$4 sm:$0xff]  }
 0x7eb   :  { %19931 = vst [vmem:[#allocation68_spill] sm:$0xff] %v17564_v10  ;;  %v5990_v63 = vmax.f32 %v5862_v14, 0.0  ;;  %v5998_v12 = vmax.f32 %v5870_v24, 0.0  ;;  %v5752_v49 = vadd.f32 %v17457_v23, %v17438_v34  ;;  %v5760_v58 = vadd.f32 %v17457_v23, %v17442_v54  ;;  %9495 = vmatpush1.bf16.msra.mxu1 %v13458_v53  ;;  %9044 = vmatprep.subr.bf16.mxu0 %v13463_v11  ;;  %v19939_v8 = vld [vmem:[#allocation57_spill] sm:$0xff]  ;;  %v19940_v31 = vld [vmem:[#allocation84_spill] sm:$0xff]  ;;  %v19942_v14 = vld [vmem:[#allocation74_spill] sm:$0xff] }
 0x7ec   :  { %19932 = vst [vmem:[#allocation66_spill] sm:$0xff] %v17570_v21  ;;  %v17580_v40 = vpack.c.bf16 %v5999_v9, %v5991_v50  ;;  %v5881_v46 = vmax.f32 %v5753_v62, 0.0  ;;  %v5889_v41 = vmax.f32 %v5761_v60, 0.0  ;;  %v5608_v27 = vmul.f32 %v17313_v4, %v19934_v26  ;;  %9496 = vmatprep.subr.bf16.mxu1 %v13466_v13  ;;  %v13470_v11 = vld [vmem:[#allocation21 + $0x4a0] ss:$28 sps:$4 sm:$0xff]   ;;  %v19941_v13 = vld [vmem:[#allocation72_spill] sm:$0xff] }
 0x7ed   :  { %v17584_v28 = vpack.c.bf16 %v5998_v12, %v5990_v63  ;;  %v5880_v47 = vmax.f32 %v5752_v49, 0.0  ;;  %v5888_v34 = vmax.f32 %v5760_v58, 0.0  ;;  %v5769_v54 = vadd.f32 %v17460_v18, %v17446_v30  ;;  %8976 = vmatmul.mubr.bf16.gmra.mrb[120].mxu0 %v17522_v33  ;;  %9428 = vmatmul.mubr.bf16.gmra.mrb[136].mxu1 %v17522_v33  ;;  %v13475_v39 = vld [vmem:[#allocation21 + $0x4d4] ss:$28 sps:$4 sm:$0xff]   ;;  %v13478_v9 = vld [vmem:[#allocation21 + $0x4dc] ss:$28 sps:$4 sm:$0xff]  }
 0x7ee   :  { %19933 = vst [vmem:[#allocation85_spill] sm:$0xff] %v17580_v40  ;;  %v17590_v61 = vpack.c.bf16 %v5889_v41, %v5881_v46  ;;  %v5777_v6 = vadd.f32 %v17460_v18, %v5608_v27  ;;  %v5599_v59 = vmul.f32 %v17310_v0, %v19937_v44  ;;  %9045 = vmatpush1.bf16.msra.mxu0 %v13461_v51  ;;  %v19943_v51 = vld [vmem:[#allocation86_spill] sm:$0xff]  ;;  %v13473_v46 = vld [vmem:[#allocation21 + $0x4d0] ss:$28 sps:$4 sm:$0xff]  }
 0x7ef   :  { %19935 = vst [vmem:[#allocation49_spill] sm:$0xff] %v17584_v28  ;;  %8985 = vmatprep.mubr.bf16.mxu0 %v17524_v7  ;;  %v17596_v2 = vpack.c.bf16 %v5888_v34, %v5880_v47  ;;  %v5897_v42 = vmax.f32 %v5769_v54, 0.0  ;;  %v5607_v30 = vmul.f32 %v17310_v0, %v19939_v8  ;;  %v5616_v53 = vmul.f32 %v17313_v4, %v19940_v31  ;;  %v13476_v47 = vld [vmem:[#allocation21 + $0x4d8] ss:$28 sps:$4 sm:$0xff]   ;;  %v20024_v33 = vld [vmem:[#allocation136_spill] sm:$0xff] }
 0x7f0   :  { %19936 = vst [vmem:[#allocation87_spill] sm:$0xff] %v17590_v61  ;;  %9437 = vmatprep.mubr.bf16.mxu1 %v17524_v7  ;;  %9497 = vmatpush1.bf16.msra.mxu1 %v13464_v29  ;;  %v5905_v52 = vmax.f32 %v5777_v6, 0.0  ;;  %v5768_v55 = vadd.f32 %v17457_v23, %v5599_v59  ;;  %v5624_v50 = vmul.f32 %v17313_v4, %v19941_v13  ;;  %v19946_v6 = vld [vmem:[#allocation88_spill] sm:$0xff]  ;;  %v19947_v59 = vld [vmem:[#allocation106_spill] sm:$0xff]  ;;  %v13484_v8 = vld [vmem:[#allocation21 + $0x514] ss:$28 sps:$4 sm:$0xff]  }
 0x7f1   :  { %19938 = vst [vmem:[#allocation46_spill] sm:$0xff] %v17596_v2  ;;  %v5615_v24 = vmul.f32 %v17310_v0, %v19942_v14  ;;  %9046 = vmatprep.subr.bf16.mxu0 %v13469_v22  ;;  %9498 = vmatprep.subr.bf16.mxu1 %v13472_v37  ;;  %v5776_v62 = vadd.f32 %v17457_v23, %v5607_v30  ;;  %v19945_v22 = vld [vmem:[#allocation44_spill] sm:$0xff] }
 0x7f2   :  { %v5785_v60 = vadd.f32 %v17460_v18, %v5616_v53  ;;  %v5623_v63 = vmul.f32 %v17310_v0, %v19943_v51  ;;  %v17612_v12 = vpack.c.bf16 %v5905_v52, %v5897_v42  ;;  %v5896_v49 = vmax.f32 %v5768_v55, 0.0  ;;  %9047 = vmatpush1.bf16.msra.mxu0 %v13467_v45  ;;  %v13481_v45 = vld [vmem:[#allocation21 + $0x50c] ss:$28 sps:$4 sm:$0xff]   ;;  %v19949_v52 = vld [vmem:[#allocation47_spill] sm:$0xff] }
 0x7f3   :  { %v5793_v58 = vadd.f32 %v17460_v18, %v5624_v50  ;;  %v5784_v29 = vadd.f32 %v17457_v23, %v5615_v24  ;;  %v5904_v41 = vmax.f32 %v5776_v62, 0.0  ;;  %v5632_v37 = vmul.f32 %v17313_v4, %v19945_v22  ;;  %9048 = vmatprep.subr.bf16.mxu0 %v13475_v39  ;;  %v13479_v50 = vld [vmem:[#allocation21 + $0x508] ss:$28 sps:$4 sm:$0xff]   ;;  %v13482_v51 = vld [vmem:[#allocation21 + $0x510] ss:$28 sps:$4 sm:$0xff]  }
 0x7f4   :  { %19944 = vst [vmem:[#allocation105_spill] sm:$0xff] %v17612_v12  ;;  %v5913_v26 = vmax.f32 %v5785_v60, 0.0  ;;  %v5792_v27 = vadd.f32 %v17457_v23, %v5623_v63  ;;  %9499 = vmatpush1.bf16.msra.mxu1 %v13470_v11  ;;  %v5640_v44 = vmul.f32 %v17313_v4, %v19946_v6  ;;  %v5631_v42 = vmul.f32 %v17310_v0, %v19947_v59  ;;  %v19952_v62 = vld [vmem:[#allocation55_spill] sm:$0xff] }
 0x7f5   :  { %v5921_v34 = vmax.f32 %v5793_v58, 0.0  ;;  %v5912_v54 = vmax.f32 %v5784_v29, 0.0  ;;  %9500 = vmatprep.subr.bf16.mxu1 %v13478_v9  ;;  %v17623_v30 = vpack.c.bf16 %v5904_v41, %v5896_v49  ;;  %v5801_v53 = vadd.f32 %v17460_v18, %v5632_v37  ;;  %8986 = vmatmul.mubr.bf16.gmra.mrb[124].mxu0 %v17532_v48  ;;  %v13487_v63 = vld [vmem:[#allocation21 + $0x544] ss:$28 sps:$4 sm:$0xff]   ;;  %v19953_v29 = vld [vmem:[#allocation93_spill] sm:$0xff]  ;;  %v19954_v41 = vld [vmem:[#allocation90_spill] sm:$0xff] }
 0x7f6   :  { %v5920_v31 = vmax.f32 %v5792_v27, 0.0  ;;  %v5639_v11 = vmul.f32 %v17310_v0, %v19949_v52  ;;  %9438 = vmatmul.mubr.bf16.gmra.mrb[140].mxu1 %v17532_v48  ;;  %v5809_v55 = vadd.f32 %v17460_v18, %v5640_v44  ;;  %v5800_v13 = vadd.f32 %v17457_v23, %v5631_v42  ;;  %9049 = vmatpush1.bf16.msra.mxu0 %v13473_v46  ;;  %v13490_v27 = vld [vmem:[#allocation21 + $0x54c] ss:$28 sps:$4 sm:$0xff]  }
 0x7f7   :  { %19948 = vst [vmem:[#allocation52_spill] sm:$0xff] %v17623_v30  ;;  %v17630_v39 = vpack.c.bf16 %v5921_v34, %v5913_v26  ;;  %8995 = vmatprep.mubr.bf16.mxu0 %v17538_v35  ;;  %v5929_v24 = vmax.f32 %v5801_v53, 0.0  ;;  %v5648_v60 = vmul.f32 %v17313_v4, %v19952_v62  ;;  %9447 = vmatprep.mubr.bf16.mxu1 %v17538_v35  ;;  %v19955_v34 = vld [vmem:[#allocation91_spill] sm:$0xff]  ;;  %v20015_v35 = vld [vmem:[#allocation120_spill] sm:$0xff] }
 0x7f8   :  { %v17635_v14 = vpack.c.bf16 %v5920_v31, %v5912_v54  ;;  %v5808_v9 = vadd.f32 %v17457_v23, %v5639_v11  ;;  %9501 = vmatpush1.bf16.msra.mxu1 %v13476_v47  ;;  %v5937_v49 = vmax.f32 %v5809_v55, 0.0  ;;  %v5928_v58 = vmax.f32 %v5800_v13, 0.0  ;;  %9050 = vmatprep.subr.bf16.mxu0 %v13481_v45  ;;  %v19956_v47 = vld [vmem:[#allocation61_spill] sm:$0xff]  ;;  %v19958_v31 = vld [vmem:[#allocation95_spill] sm:$0xff] }
 0x7f9   :  { %19950 = vst [vmem:[#allocation92_spill] sm:$0xff] %v17630_v39  ;;  %v5656_v46 = vmul.f32 %v17313_v4, %v19953_v29  ;;  %v5647_v26 = vmul.f32 %v17310_v0, %v19954_v41  ;;  %9502 = vmatprep.subr.bf16.mxu1 %v13484_v8  ;;  %v5817_v37 = vadd.f32 %v17460_v18, %v5648_v60  ;;  %v13485_v8 = vld [vmem:[#allocation21 + $0x540] ss:$28 sps:$4 sm:$0xff]   ;;  %v13488_v13 = vld [vmem:[#allocation21 + $0x548] ss:$28 sps:$4 sm:$0xff]   ;;  %v19960_v60 = vld [vmem:[#allocation53_spill] sm:$0xff] }
 0x7fa   :  { %19951 = vst [vmem:[#allocation89_spill] sm:$0xff] %v17635_v14  ;;  %v5936_v22 = vmax.f32 %v5808_v9, 0.0  ;;  %v5655_v54 = vmul.f32 %v17310_v0, %v19955_v34  ;;  %v5664_v6 = vmul.f32 %v17313_v4, %v19956_v47  ;;  %v17650_v44 = vpack.c.bf16 %v5937_v49, %v5929_v24  ;;  %9051 = vmatpush1.bf16.msra.mxu0 %v13479_v50  ;;  %v13493_v50 = vld [vmem:[#allocation21 + $0x57c] ss:$28 sps:$4 sm:$0xff]   ;;  %v13496_v29 = vld [vmem:[#allocation21 + $0x584] ss:$28 sps:$4 sm:$0xff]  }
 0x7fb   :  { %v5825_v59 = vadd.f32 %v17460_v18, %v5656_v46  ;;  %v5816_v42 = vadd.f32 %v17457_v23, %v5647_v26  ;;  %v5672_v45 = vmul.f32 %v17313_v4, %v19958_v31  ;;  %v5945_v52 = vmax.f32 %v5817_v37, 0.0  ;;  %9052 = vmatprep.subr.bf16.mxu0 %v13487_v63  ;;  %v19961_v41 = vld [vmem:[#allocation59_spill] sm:$0xff]  ;;  %v13491_v47 = vld [vmem:[#allocation21 + $0x578] ss:$28 sps:$4 sm:$0xff]  }
 0x7fc   :  { %19957 = vst [vmem:[#allocation50_spill] sm:$0xff] %v17650_v44  ;;  %v17656_v53 = vpack.c.bf16 %v5936_v22, %v5928_v58  ;;  %v5824_v11 = vadd.f32 %v17457_v23, %v5655_v54  ;;  %v5833_v55 = vadd.f32 %v17460_v18, %v5664_v6  ;;  %9503 = vmatpush1.bf16.msra.mxu1 %v13482_v51  ;;  %v19962_v22 = vld [vmem:[#allocation67_spill] sm:$0xff] }
 0x7fd   :  { %v5953_v24 = vmax.f32 %v5825_v59, 0.0  ;;  %v5944_v9 = vmax.f32 %v5816_v42, 0.0  ;;  %v5841_v62 = vadd.f32 %v17460_v18, %v5672_v45  ;;  %v5663_v49 = vmul.f32 %v17310_v0, %v19960_v60  ;;  %9504 = vmatprep.subr.bf16.mxu1 %v13490_v27  ;;  %8996 = vmatmul.mubr.bf16.gmra.mrb[128].mxu0 %v17548_v38  ;;  %v19964_v27 = vld [vmem:[#allocation100_spill] sm:$0xff]  ;;  %v13494_v31 = vld [vmem:[#allocation21 + $0x580] ss:$28 sps:$4 sm:$0xff]  }
 0x7fe   :  { %19959 = vst [vmem:[#allocation58_spill] sm:$0xff] %v17656_v53  ;;  %v5952_v58 = vmax.f32 %v5824_v11, 0.0  ;;  %v5961_v46 = vmax.f32 %v5833_v55, 0.0  ;;  %v5671_v26 = vmul.f32 %v17310_v0, %v19961_v41  ;;  %v5680_v51 = vmul.f32 %v17313_v4, %v19962_v22  ;;  %9448 = vmatmul.mubr.bf16.gmra.mrb[144].mxu1 %v17548_v38  ;;  %9053 = vmatpush1.bf16.msra.mxu0 %v13485_v8  ;;  %v13499_v45 = vld [vmem:[#allocation21 + $0x5b4] ss:$28 sps:$4 sm:$0xff]   ;;  %v19967_v41 = vld [vmem:[#allocation75_spill] sm:$0xff] }
 0x7ff   :  { %v17669_v63 = vpack.c.bf16 %v5953_v24, %v5945_v52  ;;  %v5969_v37 = vmax.f32 %v5841_v62, 0.0  ;;  %v5832_v34 = vadd.f32 %v17457_v23, %v5663_v49  ;;  %v5688_v54 = vmul.f32 %v17313_v4, %v19964_v27  ;;  %9005 = vmatprep.mubr.bf16.mxu0 %v17555_v43  ;;  %9457 = vmatprep.mubr.bf16.mxu1 %v17555_v43  ;;  %v19965_v8 = vld [vmem:[#allocation97_spill] sm:$0xff]  ;;  %v19968_v22 = vld [vmem:[#allocation104_spill] sm:$0xff]  ;;  %v19999_v43 = vld [vmem:[#allocation163_spill] sm:$0xff] }
 0x800   :  { %v17675_v6 = vpack.c.bf16 %v5952_v58, %v5944_v9  ;;  %v5840_v59 = vadd.f32 %v17457_v23, %v5671_v26  ;;  %v5849_v42 = vadd.f32 %v17460_v18, %v5680_v51  ;;  %9505 = vmatpush1.bf16.msra.mxu1 %v13488_v13  ;;  %v5679_v24 = vmul.f32 %v17310_v0, %v19965_v8  ;;  %v13502_v9 = vld [vmem:[#allocation21 + $0x5bc] ss:$28 sps:$4 sm:$0xff]   ;;  %v19966_v49 = vld [vmem:[#allocation65_spill] sm:$0xff] }
 0x801   :  { %19963 = vst [vmem:[#allocation64_spill] sm:$0xff] %v17669_v63  ;;  %v17680_v52 = vpack.c.bf16 %v5969_v37, %v5961_v46  ;;  %v5960_v11 = vmax.f32 %v5832_v34, 0.0  ;;  %v5857_v55 = vadd.f32 %v17460_v18, %v5688_v54  ;;  %9054 = vmatprep.subr.bf16.mxu0 %v13493_v50  ;;  %9506 = vmatprep.subr.bf16.mxu1 %v13496_v29  ;;  %v19969_v37 = vld [vmem:[#allocation102_spill] sm:$0xff]  ;;  %v13497_v50 = vld [vmem:[#allocation21 + $0x5b0] ss:$28 sps:$4 sm:$0xff]  }
 0x802   :  { %v5968_v62 = vmax.f32 %v5840_v59, 0.0  ;;  %v5977_v60 = vmax.f32 %v5849_v42, 0.0  ;;  %v5687_v58 = vmul.f32 %v17310_v0, %v19966_v49  ;;  %v5696_v13 = vmul.f32 %v17313_v4, %v19967_v41  ;;  %9055 = vmatpush1.bf16.msra.mxu0 %v13491_v47  ;;  %v19970_v59 = vld [vmem:[#allocation70_spill] sm:$0xff] }
 0x803   :  { %v5985_v26 = vmax.f32 %v5857_v55, 0.0  ;;  %v5848_v46 = vadd.f32 %v17457_v23, %v5679_v24  ;;  %v5704_v51 = vmul.f32 %v17313_v4, %v19968_v22  ;;  %v5695_v34 = vmul.f32 %v17310_v0, %v19969_v37  ;;  %9056 = vmatprep.subr.bf16.mxu0 %v13499_v45  ;;  %v13500_v55 = vld [vmem:[#allocation21 + $0x5b8] ss:$28 sps:$4 sm:$0xff]   ;;  %v19973_v22 = vld [vmem:[#allocation108_spill] sm:$0xff] }
 0x804   :  { %v17694_v29 = vpack.c.bf16 %v5968_v62, %v5960_v11  ;;  %v5856_v27 = vadd.f32 %v17457_v23, %v5687_v58  ;;  %v5865_v54 = vadd.f32 %v17460_v18, %v5696_v13  ;;  %v5703_v42 = vmul.f32 %v17310_v0, %v19970_v59  ;;  %9507 = vmatpush1.bf16.msra.mxu1 %v13494_v31  ;;  %v13505_v11 = vld [vmem:[#allocation21 + $0x5ec] ss:$28 sps:$4 sm:$0xff]   ;;  %v13508_v62 = vld [vmem:[#allocation21 + $0x5f4] ss:$28 sps:$4 sm:$0xff]  }
 0x805   :  { %v17700_v8 = vpack.c.bf16 %v5985_v26, %v5977_v60  ;;  %v5976_v4 = vmax.f32 %v5848_v46, 0.0  ;;  %v5873_v24 = vadd.f32 %v17460_v18, %v5704_v51  ;;  %v5864_v47 = vadd.f32 %v17457_v23, %v5695_v34  ;;  %9508 = vmatprep.subr.bf16.mxu1 %v13502_v9  ;;  %9006 = vmatmul.mubr.bf16.gmra.mrb[132].mxu0 %v17560_v16  ;;  %v19971_v9 = vld [vmem:[#allocation152_spill] sm:$0xff] }
 0x806   :  { %v5984_v49 = vmax.f32 %v5856_v27, 0.0  ;;  %v5993_v58 = vmax.f32 %v5865_v54, 0.0  ;;  %v5872_v41 = vadd.f32 %v17457_v23, %v5703_v42  ;;  %v5586_v0 = vmul.f32 %v17319_v17, %v16950_v3  ;;  %9458 = vmatmul.mubr.bf16.gmra.mrb[148].mxu1 %v17560_v16  ;;  %9057 = vmatpush1.bf16.msra.mxu0 %v13497_v50  ;;  %v13503_v13 = vld [vmem:[#allocation21 + $0x5e8] ss:$28 sps:$4 sm:$0xff]   ;;  %v13506_v37 = vld [vmem:[#allocation21 + $0x5f0] ss:$28 sps:$4 sm:$0xff]  }
 0x807   :  { %v6001_v31 = vmax.f32 %v5873_v24, 0.0  ;;  %v5992_v45 = vmax.f32 %v5864_v47, 0.0  ;;  %v5594_v18 = vmul.f32 %v17319_v17, %v16964_v20  ;;  %v5585_v60 = vmul.f32 %v19971_v9, %v16944_v32  ;;  %9015 = vmatprep.mubr.bf16.mxu0 %v17564_v10  ;;  %v19972_v3 = vld [vmem:[#allocation79_spill] sm:$0xff]  ;;  %9467 = vmatprep.mubr.bf16.mxu1 %v17564_v10  ;;  %v19974_v50 = vld [vmem:[#allocation69_spill] sm:$0xff]  ;;  %v13514_v54 = vld [vmem:[#allocation21 + $0x62c] ss:$28 sps:$4 sm:$0xff]  }
 0x808   :  { %v17714_v23 = vpack.c.bf16 %v5984_v49, %v5976_v4  ;;  %v6000_v26 = vmax.f32 %v5872_v41, 0.0  ;;  %v5755_v46 = vadd.f32 %v19972_v3, %v5586_v0  ;;  %v5593_v51 = vmul.f32 %v19971_v9, %v19973_v22  ;;  %9509 = vmatpush1.bf16.msra.mxu1 %v13500_v55  ;;  %v13511_v20 = vld [vmem:[#allocation21 + $0x624] ss:$28 sps:$4 sm:$0xff]   ;;  %9058 = vmatprep.subr.bf16.mxu0 %v13505_v11  ;;  %v19975_v24 = vld [vmem:[#allocation113_spill] sm:$0xff] }
 0x809   :  { %v17720_v34 = vpack.c.bf16 %v6001_v31, %v5993_v58  ;;  %v5763_v32 = vadd.f32 %v19972_v3, %v5594_v18  ;;  %v5754_v27 = vadd.f32 %v19974_v50, %v5585_v60  ;;  %9510 = vmatprep.subr.bf16.mxu1 %v13508_v62  ;;  %v5602_v47 = vmul.f32 %v17319_v17, %v19975_v24  ;;  %v19976_v41 = vld [vmem:[#allocation117_spill] sm:$0xff]  ;;  %v19977_v0 = vld [vmem:[#allocation111_spill] sm:$0xff] }
 0x80a   :  { %v17724_v59 = vpack.c.bf16 %v6000_v26, %v5992_v45  ;;  %v5883_v42 = vmax.f32 %v5755_v46, 0.0  ;;  %v5762_v4 = vadd.f32 %v19974_v50, %v5593_v51  ;;  %v5610_v58 = vmul.f32 %v17319_v17, %v19976_v41  ;;  %9059 = vmatpush1.bf16.msra.mxu0 %v13503_v13  ;;  %v13509_v11 = vld [vmem:[#allocation21 + $0x620] ss:$28 sps:$4 sm:$0xff]   ;;  %v19979_v26 = vld [vmem:[#allocation121_spill] sm:$0xff]  ;;  %v13512_v22 = vld [vmem:[#allocation21 + $0x628] ss:$28 sps:$4 sm:$0xff]  }
 0x80b   :  { %v5891_v55 = vmax.f32 %v5763_v32, 0.0  ;;  %v5882_v49 = vmax.f32 %v5754_v27, 0.0  ;;  %v5601_v31 = vmul.f32 %v19971_v9, %v19977_v0  ;;  %v5771_v45 = vadd.f32 %v19972_v3, %v5602_v47  ;;  %v19978_v18 = vld [vmem:[#allocation115_spill] sm:$0xff]  ;;  %9060 = vmatprep.subr.bf16.mxu0 %v13511_v20  ;;  %v13517_v13 = vld [vmem:[#allocation21 + $0x65c] ss:$28 sps:$4 sm:$0xff]   ;;  %v19980_v0 = vld [vmem:[#allocation125_spill] sm:$0xff] }
 0x80c   :  { %v5890_v62 = vmax.f32 %v5762_v4, 0.0  ;;  %v5609_v60 = vmul.f32 %v19971_v9, %v19978_v18  ;;  %v5618_v46 = vmul.f32 %v17319_v17, %v19979_v26  ;;  %9511 = vmatpush1.bf16.msra.mxu1 %v13506_v37  ;;  %v5779_v32 = vadd.f32 %v19972_v3, %v5610_v58  ;;  %v13520_v4 = vld [vmem:[#allocation21 + $0x664] ss:$28 sps:$4 sm:$0xff]  }
 0x80d   :  { %v17738_v51 = vpack.c.bf16 %v5891_v55, %v5883_v42  ;;  %v5770_v27 = vadd.f32 %v19974_v50, %v5601_v31  ;;  %9512 = vmatprep.subr.bf16.mxu1 %v13514_v54  ;;  %v5899_v47 = vmax.f32 %v5771_v45, 0.0  ;;  %v5626_v18 = vmul.f32 %v17319_v17, %v19980_v0  ;;  %9016 = vmatmul.mubr.bf16.gmra.mrb[136].mxu0 %v17570_v21  ;;  %v19981_v55 = vld [vmem:[#allocation119_spill] sm:$0xff] }
 0x80e   :  { %v17742_v24 = vpack.c.bf16 %v5890_v62, %v5882_v49  ;;  %v5778_v41 = vadd.f32 %v19974_v50, %v5609_v60  ;;  %9468 = vmatmul.mubr.bf16.gmra.mrb[152].mxu1 %v17570_v21  ;;  %v5907_v37 = vmax.f32 %v5779_v32, 0.0  ;;  %v5787_v42 = vadd.f32 %v19972_v3, %v5618_v46  ;;  %9061 = vmatpush1.bf16.msra.mxu0 %v13509_v11  ;;  %v13515_v49 = vld [vmem:[#allocation21 + $0x658] ss:$28 sps:$4 sm:$0xff]   ;;  %v19982_v62 = vld [vmem:[#allocation123_spill] sm:$0xff] }
 0x80f   :  { %v5898_v20 = vmax.f32 %v5770_v27, 0.0  ;;  %v5617_v54 = vmul.f32 %v19971_v9, %v19981_v55  ;;  %9025 = vmatprep.mubr.bf16.mxu0 %v17580_v40  ;;  %v5795_v31 = vadd.f32 %v19972_v3, %v5626_v18  ;;  %v5625_v45 = vmul.f32 %v19971_v9, %v19982_v62  ;;  %v19983_v60 = vld [vmem:[#allocation129_spill] sm:$0xff]  ;;  %9477 = vmatprep.mubr.bf16.mxu1 %v17580_v40  ;;  %v13518_v46 = vld [vmem:[#allocation21 + $0x660] ss:$28 sps:$4 sm:$0xff]  }
 0x810   :  { %v5906_v58 = vmax.f32 %v5778_v41, 0.0  ;;  %v5634_v26 = vmul.f32 %v17319_v17, %v19983_v60  ;;  %9513 = vmatpush1.bf16.msra.mxu1 %v13512_v22  ;;  %v13523_v32 = vld [vmem:[#allocation21 + $0x694] ss:$28 sps:$4 sm:$0xff]   ;;  %v17759_v27 = vpack.c.bf16 %v5907_v37, %v5899_v47  ;;  %v5915_v11 = vmax.f32 %v5787_v42, 0.0  ;;  %9062 = vmatprep.subr.bf16.mxu0 %v13517_v13  ;;  %v13526_v18 = vld [vmem:[#allocation21 + $0x69c] ss:$28 sps:$4 sm:$0xff]  }
 0x811   :  { %v5786_v0 = vadd.f32 %v19974_v50, %v5617_v54  ;;  %v19984_v55 = vld [vmem:[#allocation133_spill] sm:$0xff]  ;;  %9514 = vmatprep.subr.bf16.mxu1 %v13520_v4  ;;  %v5923_v25 = vmax.f32 %v5795_v31, 0.0  ;;  %v5794_v60 = vadd.f32 %v19974_v50, %v5625_v45  ;;  %v19985_v37 = vld [vmem:[#allocation127_spill] sm:$0xff] }
 0x812   :  { %v5642_v41 = vmul.f32 %v17319_v17, %v19984_v55  ;;  %v17764_v62 = vpack.c.bf16 %v5906_v58, %v5898_v20  ;;  %v5803_v22 = vadd.f32 %v19972_v3, %v5634_v26  ;;  %v5633_v42 = vmul.f32 %v19971_v9, %v19985_v37  ;;  %v19986_v54 = vld [vmem:[#allocation131_spill] sm:$0xff]  ;;  %9063 = vmatpush1.bf16.msra.mxu0 %v13515_v49  ;;  %v13521_v13 = vld [vmem:[#allocation21 + $0x690] ss:$28 sps:$4 sm:$0xff]   ;;  %v13524_v26 = vld [vmem:[#allocation21 + $0x698] ss:$28 sps:$4 sm:$0xff]  }
 0x813   :  { %v5914_v40 = vmax.f32 %v5786_v0, 0.0  ;;  %v5641_v21 = vmul.f32 %v19971_v9, %v19986_v54  ;;  %v17773_v4 = vpack.c.bf16 %v5923_v25, %v5915_v11  ;;  %v5922_v20 = vmax.f32 %v5794_v60, 0.0  ;;  %v19987_v31 = vld [vmem:[#allocation137_spill] sm:$0xff]  ;;  %9064 = vmatprep.subr.bf16.mxu0 %v13523_v32  ;;  %v13529_v49 = vld [vmem:[#allocation21 + $0x6cc] ss:$28 sps:$4 sm:$0xff]   ;;  %v19990_v32 = vld [vmem:[#allocation139_spill] sm:$0xff] }
 0x814   :  { %v5811_v47 = vadd.f32 %v19972_v3, %v5642_v41  ;;  %v5931_v58 = vmax.f32 %v5803_v22, 0.0  ;;  %v5650_v45 = vmul.f32 %v17319_v17, %v19987_v31  ;;  %9515 = vmatpush1.bf16.msra.mxu1 %v13518_v46  ;;  %v5802_v55 = vadd.f32 %v19974_v50, %v5633_v42  ;;  %v19988_v37 = vld [vmem:[#allocation141_spill] sm:$0xff]  ;;  %v19989_v22 = vld [vmem:[#allocation135_spill] sm:$0xff] }
 0x815   :  { %v5810_v41 = vadd.f32 %v19974_v50, %v5641_v21  ;;  %v5658_v54 = vmul.f32 %v17319_v17, %v19988_v37  ;;  %9516 = vmatprep.subr.bf16.mxu1 %v13526_v18  ;;  %v13532_v25 = vld [vmem:[#allocation21 + $0x6d4] ss:$28 sps:$4 sm:$0xff]   ;;  %v17781_v11 = vpack.c.bf16 %v5922_v20, %v5914_v40  ;;  %v5649_v46 = vmul.f32 %v19971_v9, %v19989_v22  ;;  %v13527_v40 = vld [vmem:[#allocation21 + $0x6c8] ss:$28 sps:$4 sm:$0xff]  }
 0x816   :  { %v5939_v0 = vmax.f32 %v5811_v47, 0.0  ;;  %v5819_v60 = vadd.f32 %v19972_v3, %v5650_v45  ;;  %v5657_v47 = vmul.f32 %v19971_v9, %v19990_v32  ;;  %9026 = vmatmul.mubr.bf16.gmra.mrb[140].mxu0 %v17584_v28  ;;  %9478 = vmatmul.mubr.bf16.gmra.mrb[156].mxu1 %v17584_v28  ;;  %v5930_v42 = vmax.f32 %v5802_v55, 0.0  ;;  %v19991_v22 = vld [vmem:[#allocation145_spill] sm:$0xff]  ;;  %v19993_v28 = vld [vmem:[#allocation143_spill] sm:$0xff] }
 0x817   :  { %v5938_v18 = vmax.f32 %v5810_v41, 0.0  ;;  %v5827_v31 = vadd.f32 %v19972_v3, %v5658_v54  ;;  %9065 = vmatpush1.bf16.msra.mxu0 %v13521_v13  ;;  %9068 = vmatprep.mubr.bf16.mxu0 %v17590_v61  ;;  %v5818_v45 = vadd.f32 %v19974_v50, %v5649_v46  ;;  %v5666_v32 = vmul.f32 %v17319_v17, %v19991_v22  ;;  %v19992_v13 = vld [vmem:[#allocation149_spill] sm:$0xff]  ;;  %v13538_v46 = vld [vmem:[#allocation21 + $0x70c] ss:$28 sps:$4 sm:$0xff]   ;;  %v19994_v22 = vld [vmem:[#allocation147_spill] sm:$0xff] }
 0x818   :  { %v17790_v21 = vpack.c.bf16 %v5939_v0, %v5931_v58  ;;  %v5947_v20 = vmax.f32 %v5819_v60, 0.0  ;;  %v5826_v37 = vadd.f32 %v19974_v50, %v5657_v47  ;;  %9517 = vmatpush1.bf16.msra.mxu1 %v13524_v26  ;;  %9520 = vmatprep.mubr.bf16.mxu1 %v17590_v61  ;;  %v13530_v58 = vld [vmem:[#allocation21 + $0x6d0] ss:$28 sps:$4 sm:$0xff]   ;;  %v13535_v0 = vld [vmem:[#allocation21 + $0x704] ss:$28 sps:$4 sm:$0xff]   ;;  %v5674_v54 = vmul.f32 %v17319_v17, %v19992_v13 }
 0x819   :  { %v17799_v55 = vpack.c.bf16 %v5938_v18, %v5930_v42  ;;  %v5955_v41 = vmax.f32 %v5827_v31, 0.0  ;;  %v5665_v60 = vmul.f32 %v19971_v9, %v19993_v28  ;;  %9066 = vmatprep.subr.bf16.mxu0 %v13529_v49  ;;  %9518 = vmatprep.subr.bf16.mxu1 %v13532_v25  ;;  %v5946_v47 = vmax.f32 %v5818_v45, 0.0  ;;  %v19995_v31 = vld [vmem:[#allocation155_spill] sm:$0xff] }
 0x81a   :  { %v5954_v10 = vmax.f32 %v5826_v37, 0.0  ;;  %v5835_v26 = vadd.f32 %v19972_v3, %v5666_v32  ;;  %v5673_v61 = vmul.f32 %v19971_v9, %v19994_v22  ;;  %v5843_v42 = vadd.f32 %v19972_v3, %v5674_v54  ;;  %v13533_v28 = vld [vmem:[#allocation21 + $0x700] ss:$28 sps:$4 sm:$0xff]  }
 0x81b   :  { %v17808_v16 = vpack.c.bf16 %v5955_v41, %v5947_v20  ;;  %v5834_v18 = vadd.f32 %v19974_v50, %v5665_v60  ;;  %v5682_v13 = vmul.f32 %v17319_v17, %v19995_v31  ;;  %9067 = vmatpush1.bf16.msra.mxu0 %v13527_v40  ;;  %v19996_v37 = vld [vmem:[#allocation159_spill] sm:$0xff]  ;;  %v19997_v60 = vld [vmem:[#allocation153_spill] sm:$0xff]  ;;  %v13541_v40 = vld [vmem:[#allocation21 + $0x73c] ss:$28 sps:$4 sm:$0xff]  }
 0x81c   :  { %v17814_v49 = vpack.c.bf16 %v5954_v10, %v5946_v47  ;;  %v5963_v25 = vmax.f32 %v5835_v26, 0.0  ;;  %v5842_v45 = vadd.f32 %v19974_v50, %v5673_v61  ;;  %v5690_v32 = vmul.f32 %v17319_v17, %v19996_v37  ;;  %9519 = vmatpush1.bf16.msra.mxu1 %v13530_v58  ;;  %9149 = vmatprep.subr.bf16.mxu0 %v13535_v0  ;;  %v13536_v31 = vld [vmem:[#allocation21 + $0x708] ss:$28 sps:$4 sm:$0xff]   ;;  %v19998_v26 = vld [vmem:[#allocation157_spill] sm:$0xff] }
 0x81d   :  { %v5971_v20 = vmax.f32 %v5843_v42, 0.0  ;;  %v5962_v41 = vmax.f32 %v5834_v18, 0.0  ;;  %v5851_v54 = vadd.f32 %v19972_v3, %v5682_v13  ;;  %v5681_v22 = vmul.f32 %v19971_v9, %v19997_v60  ;;  %9601 = vmatprep.subr.bf16.mxu1 %v13538_v46  ;;  %v13544_v0 = vld [vmem:[#allocation21 + $0x744] ss:$28 sps:$4 sm:$0xff]  }
 0x81e   :  { %v5970_v10 = vmax.f32 %v5842_v45, 0.0  ;;  %v5859_v47 = vadd.f32 %v19972_v3, %v5690_v32  ;;  %v5689_v61 = vmul.f32 %v19971_v9, %v19998_v26  ;;  %v5698_v58 = vmul.f32 %v17319_v17, %v19999_v43  ;;  %9069 = vmatmul.mubr.bf16.vlgmr.msra.gmra.mrb[112].mxu0 %v17596_v2  ;;  %v20000_v37 = vld [vmem:[#allocation167_spill] sm:$0xff]  ;;  %v13539_v45 = vld [vmem:[#allocation21 + $0x738] ss:$28 sps:$4 sm:$0xff]  }
 0x81f   :  { %v17828_v42 = vpack.c.bf16 %v5971_v20, %v5963_v25  ;;  %v5979_v18 = vmax.f32 %v5851_v54, 0.0  ;;  %v5850_v13 = vadd.f32 %v19974_v50, %v5681_v22  ;;  %v5706_v46 = vmul.f32 %v17319_v17, %v20000_v37  ;;  %9150 = vmatpush1.bf16.msra.mxu0 %v13533_v28  ;;  %9521 = vmatmul.mubr.bf16.vlgmr.msra.gmra.mrb[128].mxu1 %v17596_v2  ;;  %v13547_v25 = vld [vmem:[#allocation21 + $0x774] ss:$28 sps:$4 sm:$0xff]  }
 0x820   :  { %v17834_v32 = vpack.c.bf16 %v5970_v10, %v5962_v41  ;;  %v5987_v60 = vmax.f32 %v5859_v47, 0.0  ;;  %v5858_v43 = vadd.f32 %v19974_v50, %v5689_v61  ;;  %v5867_v26 = vadd.f32 %v19972_v3, %v5698_v58  ;;  %9078 = vmatprep.mubr.bf16.mxu0 %v17612_v12  ;;  %9530 = vmatprep.mubr.bf16.mxu1 %v17612_v12  ;;  %v20001_v17 = vld [vmem:[#allocation161_spill] sm:$0xff]  ;;  %v13542_v10 = vld [vmem:[#allocation21 + $0x740] ss:$28 sps:$4 sm:$0xff]  }
 0x821   :  { %v5978_v20 = vmax.f32 %v5850_v13, 0.0  ;;  %v5875_v54 = vadd.f32 %v19972_v3, %v5706_v46  ;;  %v5697_v28 = vmul.f32 %v19971_v9, %v20001_v17  ;;  %v20002_v22 = vld [vmem:[#allocation165_spill] sm:$0xff]  ;;  %9602 = vmatpush1.bf16.msra.mxu1 %v13536_v31  ;;  %9151 = vmatprep.subr.bf16.mxu0 %v13541_v40  ;;  %v13550_v13 = vld [vmem:[#allocation21 + $0x77c] ss:$28 sps:$4 sm:$0xff]  }
 0x822   :  { %v5705_v41 = vmul.f32 %v19971_v9, %v20002_v22  ;;  %v17845_v47 = vpack.c.bf16 %v5987_v60, %v5979_v18  ;;  %v5986_v61 = vmax.f32 %v5858_v43, 0.0  ;;  %v5995_v58 = vmax.f32 %v5867_v26, 0.0  ;;  %v20003_v37 = vld [vmem:[#allocation81_spill] sm:$0xff]  ;;  %9603 = vmatprep.subr.bf16.mxu1 %v13544_v0  ;;  %v20005_v17 = vld [vmem:[#allocation110_spill] sm:$0xff]  ;;  %v20007_v43 = vld [vmem:[#allocation32_spill] sm:$0xff] }
 0x823   :  { %v20004_v2 = vld [vmem:[#allocation169_spill] sm:$0xff]  ;;  %v6003_v38 = vmax.f32 %v5875_v54, 0.0  ;;  %v5866_v3 = vadd.f32 %v19974_v50, %v5697_v28  ;;  %9152 = vmatpush1.bf16.msra.mxu0 %v13539_v45 }
 0x824   :  { %v5588_v12 = vmul.f32 %v20004_v2, %v20003_v37  ;;  %v5874_v46 = vadd.f32 %v19974_v50, %v5705_v41  ;;  %v5596_v9 = vmul.f32 %v20004_v2, %v20005_v17  ;;  %v13545_v31 = vld [vmem:[#allocation21 + $0x770] ss:$28 sps:$4 sm:$0xff]   ;;  %v17853_v40 = vpack.c.bf16 %v5986_v61, %v5978_v20  ;;  %9153 = vmatprep.subr.bf16.mxu0 %v13547_v25  ;;  %v13548_v45 = vld [vmem:[#allocation21 + $0x778] ss:$28 sps:$4 sm:$0xff]  }
 0x825   :  { %v20006_v60 = vld [vmem:[#allocation77_spill] sm:$0xff]  ;;  %v17860_v54 = vpack.c.bf16 %v6003_v38, %v5995_v58  ;;  %v5994_v28 = vmax.f32 %v5866_v3, 0.0  ;;  %9604 = vmatpush1.bf16.msra.mxu1 %v13542_v10  ;;  %v13553_v37 = vld [vmem:[#allocation21 + $0x7ac] ss:$28 sps:$4 sm:$0xff]   ;;  %v20009_v17 = vld [vmem:[#allocation114_spill] sm:$0xff] }
 0x826   :  { %v5757_v18 = vadd.f32 %v17470_v5, %v5588_v12  ;;  %v5587_v26 = vmul.f32 %v20007_v43, %v20006_v60  ;;  %v20008_v22 = vld [vmem:[#allocation109_spill] sm:$0xff]  ;;  %v6002_v50 = vmax.f32 %v5874_v46, 0.0  ;;  %v5765_v41 = vadd.f32 %v17470_v5, %v5596_v9  ;;  %9079 = vmatmul.mubr.bf16.gmra.mrb[116].mxu0 %v17623_v30  ;;  %9605 = vmatprep.subr.bf16.mxu1 %v13550_v13  ;;  %v20010_v3 = vld [vmem:[#allocation118_spill] sm:$0xff]  ;;  %v20011_v46 = vld [vmem:[#allocation112_spill] sm:$0xff] }
 0x827   :  { %v5595_v0 = vmul.f32 %v20007_v43, %v20008_v22  ;;  %v5604_v60 = vmul.f32 %v20004_v2, %v20009_v17  ;;  %v13556_v38 = vld [vmem:[#allocation21 + $0x7b4] ss:$28 sps:$4 sm:$0xff]   ;;  %v5612_v10 = vmul.f32 %v20004_v2, %v20010_v3  ;;  %v5603_v9 = vmul.f32 %v20007_v43, %v20011_v46  ;;  %9154 = vmatpush1.bf16.msra.mxu0 %v13545_v31  ;;  %v20012_v17 = vld [vmem:[#allocation116_spill] sm:$0xff]  ;;  %v20013_v46 = vld [vmem:[#allocation122_spill] sm:$0xff] }
 0x828   :  { %v5885_v20 = vmax.f32 %v5757_v18, 0.0  ;;  %v5756_v61 = vadd.f32 %v17483_v36, %v5587_v26  ;;  %v17868_v25 = vpack.c.bf16 %v6002_v50, %v5994_v28  ;;  %v5893_v58 = vmax.f32 %v5765_v41, 0.0  ;;  %9531 = vmatmul.mubr.bf16.gmra.mrb[132].mxu1 %v17623_v30  ;;  %v13551_v18 = vld [vmem:[#allocation21 + $0x7a8] ss:$28 sps:$4 sm:$0xff]   ;;  %9088 = vmatprep.mubr.bf16.mxu0 %v17630_v39 }
 0x829   :  { %v5764_v12 = vadd.f32 %v17483_v36, %v5595_v0  ;;  %v5773_v0 = vadd.f32 %v17470_v5, %v5604_v60  ;;  %v5611_v13 = vmul.f32 %v20007_v43, %v20012_v17  ;;  %9540 = vmatprep.mubr.bf16.mxu1 %v17630_v39  ;;  %v13559_v28 = vld [vmem:[#allocation21 + $0x7e4] ss:$28 sps:$4 sm:$0xff]   ;;  %v5781_v41 = vadd.f32 %v17470_v5, %v5612_v10  ;;  %v13562_v39 = vld [vmem:[#allocation21 + $0x7ec] ss:$28 sps:$4 sm:$0xff]  }
 0x82a   :  { %v5884_v26 = vmax.f32 %v5756_v61, 0.0  ;;  %v17880_v50 = vpack.c.bf16 %v5893_v58, %v5885_v20  ;;  %v5772_v31 = vadd.f32 %v17483_v36, %v5603_v9  ;;  %9606 = vmatpush1.bf16.msra.mxu1 %v13548_v45  ;;  %9155 = vmatprep.subr.bf16.mxu0 %v13553_v37  ;;  %v13554_v61 = vld [vmem:[#allocation21 + $0x7b0] ss:$28 sps:$4 sm:$0xff]   ;;  %v5620_v17 = vmul.f32 %v20004_v2, %v20013_v46  ;;  %v20014_v58 = vld [vmem:[#allocation126_spill] sm:$0xff] }
 0x82b   :  { %v5892_v22 = vmax.f32 %v5764_v12, 0.0  ;;  %v5901_v60 = vmax.f32 %v5773_v0, 0.0  ;;  %v5780_v3 = vadd.f32 %v17483_v36, %v5611_v13  ;;  %9607 = vmatprep.subr.bf16.mxu1 %v13556_v38  ;;  %v5909_v30 = vmax.f32 %v5781_v41, 0.0  ;;  %9156 = vmatpush1.bf16.msra.mxu0 %v13551_v18  ;;  %v13557_v37 = vld [vmem:[#allocation21 + $0x7e0] ss:$28 sps:$4 sm:$0xff]  }
 0x82c   :  { %v5900_v20 = vmax.f32 %v5772_v31, 0.0  ;;  %v5628_v10 = vmul.f32 %v20004_v2, %v20014_v58  ;;  %v5619_v45 = vmul.f32 %v20007_v43, %v20015_v35  ;;  %v20017_v13 = vld [vmem:[#allocation130_spill] sm:$0xff]  ;;  %9157 = vmatprep.subr.bf16.mxu0 %v13559_v28  ;;  %v13560_v18 = vld [vmem:[#allocation21 + $0x7e8] ss:$28 sps:$4 sm:$0xff]  }
 0x82d   :  { %v17884_v12 = vpack.c.bf16 %v5892_v22, %v5884_v26  ;;  %v5908_v9 = vmax.f32 %v5780_v3, 0.0  ;;  %v5789_v26 = vadd.f32 %v17470_v5, %v5620_v17  ;;  %v20016_v22 = vld [vmem:[#allocation124_spill] sm:$0xff]  ;;  %v5636_v38 = vmul.f32 %v20004_v2, %v20017_v13  ;;  %v20018_v58 = vld [vmem:[#allocation134_spill] sm:$0xff] }
 0x82e   :  { %v5627_v0 = vmul.f32 %v20007_v43, %v20016_v22  ;;  %v17898_v41 = vpack.c.bf16 %v5909_v30, %v5901_v60  ;;  %v5797_v31 = vadd.f32 %v17470_v5, %v5628_v10  ;;  %v5788_v46 = vadd.f32 %v17483_v36, %v5619_v45  ;;  %9608 = vmatpush1.bf16.msra.mxu1 %v13554_v61  ;;  %v13565_v3 = vld [vmem:[#allocation21 + $0x81c] ss:$28 sps:$4 sm:$0xff]   ;;  %v13568_v30 = vld [vmem:[#allocation21 + $0x824] ss:$28 sps:$4 sm:$0xff]   ;;  %v20019_v45 = vld [vmem:[#allocation128_spill] sm:$0xff] }
 0x82f   :  { %v5644_v35 = vmul.f32 %v20004_v2, %v20018_v58  ;;  %v17904_v17 = vpack.c.bf16 %v5908_v9, %v5900_v20  ;;  %v5917_v48 = vmax.f32 %v5789_v26, 0.0  ;;  %v5805_v13 = vadd.f32 %v17470_v5, %v5636_v38  ;;  %9089 = vmatmul.mubr.bf16.gmra.mrb[120].mxu0 %v17635_v14  ;;  %9609 = vmatprep.subr.bf16.mxu1 %v13562_v39  ;;  %v13563_v20 = vld [vmem:[#allocation21 + $0x818] ss:$28 sps:$4 sm:$0xff]  }
 0x830   :  { %v5796_v22 = vadd.f32 %v17483_v36, %v5627_v0  ;;  %v5925_v28 = vmax.f32 %v5797_v31, 0.0  ;;  %v5916_v60 = vmax.f32 %v5788_v46, 0.0  ;;  %v5635_v61 = vmul.f32 %v20007_v43, %v20019_v45  ;;  %9158 = vmatpush1.bf16.msra.mxu0 %v13557_v37  ;;  %9541 = vmatmul.mubr.bf16.gmra.mrb[136].mxu1 %v17635_v14  ;;  %v20020_v0 = vld [vmem:[#allocation132_spill] sm:$0xff]  ;;  %v20021_v58 = vld [vmem:[#allocation138_spill] sm:$0xff]  ;;  %v13571_v31 = vld [vmem:[#allocation21 + $0x854] ss:$28 sps:$4 sm:$0xff]  }
 0x831   :  { %v5813_v10 = vadd.f32 %v17470_v5, %v5644_v35  ;;  %v5933_v26 = vmax.f32 %v5805_v13, 0.0  ;;  %v5643_v38 = vmul.f32 %v20007_v43, %v20020_v0  ;;  %v5652_v39 = vmul.f32 %v20004_v2, %v20021_v58  ;;  %9098 = vmatprep.mubr.bf16.mxu0 %v17650_v44  ;;  %9550 = vmatprep.mubr.bf16.mxu1 %v17650_v44  ;;  %v20022_v45 = vld [vmem:[#allocation142_spill] sm:$0xff]  ;;  %v20023_v13 = vld [vmem:[#allocation73_spill] sm:$0xff] }
 0x832   :  { %v5924_v9 = vmax.f32 %v5796_v22, 0.0  ;;  %v17919_v46 = vpack.c.bf16 %v5925_v28, %v5917_v48  ;;  %v5804_v37 = vadd.f32 %v17483_v36, %v5635_v61  ;;  %v5660_v22 = vmul.f32 %v20004_v2, %v20022_v45  ;;  %9610 = vmatpush1.bf16.msra.mxu1 %v13560_v18  ;;  %9159 = vmatprep.subr.bf16.mxu0 %v13565_v3  ;;  %v13566_v0 = vld [vmem:[#allocation21 + $0x820] ss:$28 sps:$4 sm:$0xff]   ;;  %v13569_v18 = vld [vmem:[#allocation21 + $0x850] ss:$28 sps:$4 sm:$0xff]  }
 0x833   :  { %v5941_v35 = vmax.f32 %v5813_v10, 0.0  ;;  %v5812_v58 = vadd.f32 %v17483_v36, %v5643_v38  ;;  %v5821_v44 = vadd.f32 %v17470_v5, %v5652_v39  ;;  %9611 = vmatprep.subr.bf16.mxu1 %v13568_v30  ;;  %v13574_v48 = vld [vmem:[#allocation21 + $0x85c] ss:$28 sps:$4 sm:$0xff]   ;;  %v5651_v45 = vmul.f32 %v20007_v43, %v20024_v33  ;;  %v20025_v3 = vld [vmem:[#allocation140_spill] sm:$0xff] }
 0x834   :  { %v17925_v7 = vpack.c.bf16 %v5924_v9, %v5916_v60  ;;  %v5932_v10 = vmax.f32 %v5804_v37, 0.0  ;;  %v5829_v61 = vadd.f32 %v17470_v5, %v5660_v22  ;;  %9160 = vmatpush1.bf16.msra.mxu0 %v13563_v20  ;;  %v5659_v60 = vmul.f32 %v20007_v43, %v20025_v3  ;;  %v20026_v9 = vld [vmem:[#allocation146_spill] sm:$0xff]  ;;  %v20028_v39 = vld [vmem:[#allocation144_spill] sm:$0xff] }
 0x835   :  { %v17929_v28 = vpack.c.bf16 %v5941_v35, %v5933_v26  ;;  %v5668_v38 = vmul.f32 %v20004_v2, %v20026_v9  ;;  %v20027_v14 = vld [vmem:[#allocation150_spill] sm:$0xff]  ;;  %v5667_v26 = vmul.f32 %v20007_v43, %v20028_v39  ;;  %9161 = vmatprep.subr.bf16.mxu0 %v13571_v31  ;;  %v5940_v35 = vmax.f32 %v5812_v58, 0.0  ;;  %v13580_v31 = vld [vmem:[#allocation21 + $0x894] ss:$28 sps:$4 sm:$0xff]   ;;  %v20030_v39 = vld [vmem:[#allocation156_spill] sm:$0xff] }
 0x836   :  { %v5676_v30 = vmul.f32 %v20004_v2, %v20027_v14  ;;  %v5949_v37 = vmax.f32 %v5821_v44, 0.0  ;;  %v5957_v22 = vmax.f32 %v5829_v61, 0.0  ;;  %v5820_v33 = vadd.f32 %v17483_v36, %v5651_v45  ;;  %9612 = vmatpush1.bf16.msra.mxu1 %v13566_v0  ;;  %v13572_v20 = vld [vmem:[#allocation21 + $0x858] ss:$28 sps:$4 sm:$0xff]   ;;  %v13575_v45 = vld [vmem:[#allocation21 + $0x888] ss:$28 sps:$4 sm:$0xff]  }
 0x837   :  { %v5828_v3 = vadd.f32 %v17483_v36, %v5659_v60  ;;  %v5837_v19 = vadd.f32 %v17470_v5, %v5668_v38  ;;  %v5675_v14 = vmul.f32 %v20007_v43, %v20029_v15  ;;  %9099 = vmatmul.mubr.bf16.gmra.mrb[124].mxu0 %v17656_v53  ;;  %9613 = vmatprep.subr.bf16.mxu1 %v13574_v48  ;;  %v13583_v48 = vld [vmem:[#allocation21 + $0x8c4] ss:$28 sps:$4 sm:$0xff]  }
 0x838   :  { %v5845_v9 = vadd.f32 %v17470_v5, %v5676_v30  ;;  %v17949_v44 = vpack.c.bf16 %v5940_v35, %v5932_v10  ;;  %v17951_v58 = vpack.c.bf16 %v5957_v22, %v5949_v37  ;;  %v5948_v0 = vmax.f32 %v5820_v33, 0.0  ;;  %9162 = vmatpush1.bf16.msra.mxu0 %v13569_v18  ;;  %9551 = vmatmul.mubr.bf16.gmra.mrb[140].mxu1 %v17656_v53  ;;  %v20031_v37 = vld [vmem:[#allocation160_spill] sm:$0xff] }
 0x839   :  { %v5836_v61 = vadd.f32 %v17483_v36, %v5667_v26  ;;  %v5956_v60 = vmax.f32 %v5828_v3, 0.0  ;;  %v5965_v38 = vmax.f32 %v5837_v19, 0.0  ;;  %v5844_v15 = vadd.f32 %v17483_v36, %v5675_v14  ;;  %9108 = vmatprep.mubr.bf16.mxu0 %v17669_v63  ;;  %9560 = vmatprep.mubr.bf16.mxu1 %v17669_v63  ;;  %v20032_v26 = vld [vmem:[#allocation154_spill] sm:$0xff]  ;;  %v13578_v19 = vld [vmem:[#allocation21 + $0x890] ss:$28 sps:$4 sm:$0xff]  }
 0x83a   :  { %v5973_v30 = vmax.f32 %v5845_v9, 0.0  ;;  %v5684_v35 = vmul.f32 %v20004_v2, %v20030_v39  ;;  %v5692_v18 = vmul.f32 %v20004_v2, %v20031_v37  ;;  %v5683_v22 = vmul.f32 %v20007_v43, %v20032_v26  ;;  %9614 = vmatpush1.bf16.msra.mxu1 %v13572_v20  ;;  %9163 = vmatprep.subr.bf16.mxu0 %v13577_v56  ;;  %v20033_v14 = vld [vmem:[#allocation158_spill] sm:$0xff]  ;;  %v13586_v63 = vld [vmem:[#allocation21 + $0x8cc] ss:$28 sps:$4 sm:$0xff]  }
 0x83b   :  { %v5964_v10 = vmax.f32 %v5836_v61, 0.0  ;;  %v17964_v33 = vpack.c.bf16 %v5956_v60, %v5948_v0  ;;  %v5972_v9 = vmax.f32 %v5844_v15, 0.0  ;;  %v5691_v61 = vmul.f32 %v20007_v43, %v20033_v14  ;;  %9615 = vmatprep.subr.bf16.mxu1 %v13580_v31  ;;  %v20034_v26 = vld [vmem:[#allocation164_spill] sm:$0xff]  ;;  %v13581_v20 = vld [vmem:[#allocation21 + $0x8c0] ss:$28 sps:$4 sm:$0xff]  }
 0x83c   :  { %v17966_v3 = vpack.c.bf16 %v5973_v30, %v5965_v38  ;;  %v5853_v39 = vadd.f32 %v17470_v5, %v5684_v35  ;;  %v5861_v37 = vadd.f32 %v17470_v5, %v5692_v18  ;;  %v5852_v53 = vadd.f32 %v17483_v36, %v5683_v22  ;;  %9164 = vmatpush1.bf16.msra.mxu0 %v13575_v45  ;;  %v20035_v38 = vld [vmem:[#allocation162_spill] sm:$0xff] }
 0x83d   :  { %v5700_v56 = vmul.f32 %v20004_v2, %v20034_v26  ;;  %v17975_v0 = vpack.c.bf16 %v5972_v9, %v5964_v10  ;;  %v5860_v60 = vadd.f32 %v17483_v36, %v5691_v61  ;;  %v5699_v30 = vmul.f32 %v20007_v43, %v20035_v38  ;;  %v20036_v31 = vld [vmem:[#allocation166_spill] sm:$0xff]  ;;  %9165 = vmatprep.subr.bf16.mxu0 %v13583_v48  ;;  %v13584_v2 = vld [vmem:[#allocation21 + $0x8c8] ss:$28 sps:$4 sm:$0xff]  }
 0x83e   :  { %v5707_v15 = vmul.f32 %v20007_v43, %v20036_v31  ;;  %v5981_v35 = vmax.f32 %v5853_v39, 0.0  ;;  %v5989_v18 = vmax.f32 %v5861_v37, 0.0  ;;  %v5980_v14 = vmax.f32 %v5852_v53, 0.0  ;;  %9616 = vmatpush1.bf16.msra.mxu1 %v13578_v19  ;;  %v13589_v45 = vld [vmem:[#allocation21 + $0x8fc] ss:$28 sps:$4 sm:$0xff]  }
 0x83f   :  { %v5869_v22 = vadd.f32 %v17470_v5, %v5700_v56  ;;  %v5988_v26 = vmax.f32 %v5860_v60, 0.0  ;;  %v5868_v10 = vadd.f32 %v17483_v36, %v5699_v30  ;;  %9109 = vmatmul.mubr.bf16.gmra.mrb[128].mxu0 %v17675_v6  ;;  %9617 = vmatprep.subr.bf16.mxu1 %v13586_v63  ;;  %v13592_v61 = vld [vmem:[#allocation21 + $0x904] ss:$28 sps:$4 sm:$0xff]   ;;  %v13587_v53 = vld [vmem:[#allocation21 + $0x8f8] ss:$28 sps:$4 sm:$0xff]   ;;  %v20037_v39 = vmax.f32 %v20023_v13, 0.0 }
 0x840   :  { %v5876_v9 = vadd.f32 %v17483_v36, %v5707_v15  ;;  %v17986_v38 = vpack.c.bf16 %v5989_v18, %v5981_v35  ;;  %9166 = vmatpush1.bf16.msra.mxu0 %v13581_v20  ;;  %9561 = vmatmul.mubr.bf16.gmra.mrb[144].mxu1 %v17675_v6  ;;  %v13595_v36 = vld [vmem:[#allocation21 + $0x934] ss:$28 sps:$4 sm:$0xff]   ;;  %v13590_v37 = vld [vmem:[#allocation21 + $0x900] ss:$28 sps:$4 sm:$0xff]   ;;  %v13601_v31 = vld [vmem:[#allocation21 + $0x96c] ss:$28 sps:$4 sm:$0xff]  }
 0x841   :  { %v5997_v43 = vmax.f32 %v5869_v22, 0.0  ;;  %v17989_v5 = vpack.c.bf16 %v5988_v26, %v5980_v14  ;;  %v5996_v48 = vmax.f32 %v5868_v10, 0.0  ;;  %9118 = vmatprep.mubr.bf16.mxu0 %v17680_v52  ;;  %9570 = vmatprep.mubr.bf16.mxu1 %v17680_v52  ;;  %v13598_v20 = vld [vmem:[#allocation21 + $0x93c] ss:$28 sps:$4 sm:$0xff]   ;;  %v13593_v60 = vld [vmem:[#allocation21 + $0x930] ss:$28 sps:$4 sm:$0xff]  }
 0x842   :  { %v6004_v19 = vmax.f32 %v5876_v9, 0.0  ;;  %9618 = vmatpush1.bf16.msra.mxu1 %v13584_v2  ;;  %9167 = vmatprep.subr.bf16.mxu0 %v13589_v45  ;;  %v13596_v30 = vld [vmem:[#allocation21 + $0x938] ss:$28 sps:$4 sm:$0xff]   ;;  %v13599_v13 = vld [vmem:[#allocation21 + $0x968] ss:$28 sps:$4 sm:$0xff]  }
 0x843   :  { %v17995_v63 = vpack.c.bf16 %v20037_v39, %v5997_v43  ;;  %9619 = vmatprep.subr.bf16.mxu1 %v13592_v61  ;;  %v13604_v15 = vld [vmem:[#allocation21 + $0x974] ss:$28 sps:$4 sm:$0xff]   ;;  %v13607_v35 = vld [vmem:[#allocation21 + $0x9a4] ss:$28 sps:$4 sm:$0xff]   ;;  %v13610_v14 = vld [vmem:[#allocation21 + $0x9ac] ss:$28 sps:$4 sm:$0xff]  }
 0x844   :  { %v17997_v56 = vpack.c.bf16 %v6004_v19, %v5996_v48  ;;  %9168 = vmatpush1.bf16.msra.mxu0 %v13587_v53  ;;  %v13602_v18 = vld [vmem:[#allocation21 + $0x970] ss:$28 sps:$4 sm:$0xff]   ;;  %v13605_v22 = vld [vmem:[#allocation21 + $0x9a0] ss:$28 sps:$4 sm:$0xff]   ;;  %v13608_v2 = vld [vmem:[#allocation21 + $0x9a8] ss:$28 sps:$4 sm:$0xff]  }
 0x845   :  { %9169 = vmatprep.subr.bf16.mxu0 %v13595_v36  ;;  %v13613_v45 = vld [vmem:[#allocation21 + $0x9dc] ss:$28 sps:$4 sm:$0xff]   ;;  %v13616_v26 = vld [vmem:[#allocation21 + $0x9e4] ss:$28 sps:$4 sm:$0xff]   ;;  %v13619_v9 = vld [vmem:[#allocation21 + $0xa14] ss:$28 sps:$4 sm:$0xff]  }
 0x846   :  { %9620 = vmatpush1.bf16.msra.mxu1 %v13590_v37  ;;  %v13611_v10 = vld [vmem:[#allocation21 + $0x9d8] ss:$28 sps:$4 sm:$0xff]   ;;  %v13614_v61 = vld [vmem:[#allocation21 + $0x9e0] ss:$28 sps:$4 sm:$0xff]   ;;  %v13617_v53 = vld [vmem:[#allocation21 + $0xa10] ss:$28 sps:$4 sm:$0xff]  }
 0x847   :  { %9119 = vmatmul.mubr.bf16.gmra.mrb[132].mxu0 %v17694_v29  ;;  %9621 = vmatprep.subr.bf16.mxu1 %v13598_v20  ;;  %v13622_v43 = vld [vmem:[#allocation21 + $0xa1c] ss:$28 sps:$4 sm:$0xff]   ;;  %v13625_v19 = vld [vmem:[#allocation21 + $0xa4c] ss:$28 sps:$4 sm:$0xff]   ;;  %v13628_v36 = vld [vmem:[#allocation21 + $0xa54] ss:$28 sps:$4 sm:$0xff]  }
 0x848   :  { %9170 = vmatpush1.bf16.msra.mxu0 %v13593_v60  ;;  %9571 = vmatmul.mubr.bf16.gmra.mrb[148].mxu1 %v17694_v29  ;;  %v13620_v48 = vld [vmem:[#allocation21 + $0xa18] ss:$28 sps:$4 sm:$0xff]   ;;  %v13623_v39 = vld [vmem:[#allocation21 + $0xa48] ss:$28 sps:$4 sm:$0xff]   ;;  %v13626_v20 = vld [vmem:[#allocation21 + $0xa50] ss:$28 sps:$4 sm:$0xff]  }
 0x849   :  { %9128 = vmatprep.mubr.bf16.mxu0 %v17700_v8  ;;  %9580 = vmatprep.mubr.bf16.mxu1 %v17700_v8  ;;  %v13631_v37 = vld [vmem:[#allocation21 + $0xa84] ss:$28 sps:$4 sm:$0xff]   ;;  %v13634_v60 = vld [vmem:[#allocation21 + $0xa8c] ss:$28 sps:$4 sm:$0xff]  }
 0x84a   :  { %9622 = vmatpush1.bf16.msra.mxu1 %v13596_v30  ;;  %9171 = vmatprep.subr.bf16.mxu0 %v13601_v31  ;;  %v13629_v30 = vld [vmem:[#allocation21 + $0xa80] ss:$28 sps:$4 sm:$0xff]  }
 0x84b   :  { %9623 = vmatprep.subr.bf16.mxu1 %v13604_v15  ;;  %v13637_v31 = vld [vmem:[#allocation21 + $0xabc] ss:$28 sps:$4 sm:$0xff]   ;;  %v13632_v15 = vld [vmem:[#allocation21 + $0xa88] ss:$28 sps:$4 sm:$0xff]  }
 0x84c   :  { %9172 = vmatpush1.bf16.msra.mxu0 %v13599_v13  ;;  %v13640_v13 = vld [vmem:[#allocation21 + $0xac4] ss:$28 sps:$4 sm:$0xff]  }
 0x84d   :  { %9173 = vmatprep.subr.bf16.mxu0 %v13607_v35  ;;  %v13635_v35 = vld [vmem:[#allocation21 + $0xab8] ss:$28 sps:$4 sm:$0xff]  }
 0x84e   :  { %9624 = vmatpush1.bf16.msra.mxu1 %v13602_v18  ;;  %v13643_v18 = vld [vmem:[#allocation21 + $0xaf4] ss:$28 sps:$4 sm:$0xff]  }
 0x84f   :  { %9129 = vmatmul.mubr.bf16.gmra.mrb[136].mxu0 %v17714_v23  ;;  %9625 = vmatprep.subr.bf16.mxu1 %v13610_v14  ;;  %v13638_v14 = vld [vmem:[#allocation21 + $0xac0] ss:$28 sps:$4 sm:$0xff]  }
 0x850   :  { %9174 = vmatpush1.bf16.msra.mxu0 %v13605_v22  ;;  %9581 = vmatmul.mubr.bf16.gmra.mrb[152].mxu1 %v17714_v23  ;;  %v13646_v22 = vld [vmem:[#allocation21 + $0xafc] ss:$28 sps:$4 sm:$0xff]  }
 0x851   :  { %9138 = vmatprep.mubr.bf16.mxu0 %v17720_v34  ;;  %9590 = vmatprep.mubr.bf16.mxu1 %v17720_v34 }
 0x852   :  { %9626 = vmatpush1.bf16.msra.mxu1 %v13608_v2  ;;  %9175 = vmatprep.subr.bf16.mxu0 %v13613_v45  ;;  %v13641_v2 = vld [vmem:[#allocation21 + $0xaf0] ss:$28 sps:$4 sm:$0xff]  }
 0x853   :  { %9627 = vmatprep.subr.bf16.mxu1 %v13616_v26  ;;  %v13649_v45 = vld [vmem:[#allocation21 + $0xb2c] ss:$28 sps:$4 sm:$0xff]   ;;  %v13644_v26 = vld [vmem:[#allocation21 + $0xaf8] ss:$28 sps:$4 sm:$0xff]  }
 0x854   :  { %9176 = vmatpush1.bf16.msra.mxu0 %v13611_v10  ;;  %v13652_v10 = vld [vmem:[#allocation21 + $0xb34] ss:$28 sps:$4 sm:$0xff]  }
 0x855   :  { %9177 = vmatprep.subr.bf16.mxu0 %v13619_v9  ;;  %v13647_v9 = vld [vmem:[#allocation21 + $0xb28] ss:$28 sps:$4 sm:$0xff]  }
 0x856   :  { %9628 = vmatpush1.bf16.msra.mxu1 %v13614_v61  ;;  %v13655_v61 = vld [vmem:[#allocation21 + $0xb64] ss:$28 sps:$4 sm:$0xff]  }
 0x857   :  { %9139 = vmatmul.mubr.bf16.gmra.mrb[140].mxu0 %v17724_v59  ;;  %9629 = vmatprep.subr.bf16.mxu1 %v13622_v43  ;;  %v13650_v43 = vld [vmem:[#allocation21 + $0xb30] ss:$28 sps:$4 sm:$0xff]  }
 0x858   :  { %9178 = vmatpush1.bf16.msra.mxu0 %v13617_v53  ;;  %9591 = vmatmul.mubr.bf16.gmra.mrb[156].mxu1 %v17724_v59  ;;  %v13658_v53 = vld [vmem:[#allocation21 + $0xb6c] ss:$28 sps:$4 sm:$0xff]  }
 0x859   :  { %9181 = vmatprep.mubr.bf16.mxu0 %v17738_v51  ;;  %9633 = vmatprep.mubr.bf16.mxu1 %v17738_v51 }
 0x85a   :  { %9630 = vmatpush1.bf16.msra.mxu1 %v13620_v48  ;;  %9179 = vmatprep.subr.bf16.mxu0 %v13625_v19  ;;  %v13653_v48 = vld [vmem:[#allocation21 + $0xb60] ss:$28 sps:$4 sm:$0xff]  }
 0x85b   :  { %9631 = vmatprep.subr.bf16.mxu1 %v13628_v36  ;;  %v13661_v19 = vld [vmem:[#allocation21 + $0xb9c] ss:$28 sps:$4 sm:$0xff]   ;;  %v13656_v36 = vld [vmem:[#allocation21 + $0xb68] ss:$28 sps:$4 sm:$0xff]  }
 0x85c   :  { %9180 = vmatpush1.bf16.msra.mxu0 %v13623_v39  ;;  %v13664_v39 = vld [vmem:[#allocation21 + $0xba4] ss:$28 sps:$4 sm:$0xff]  }
 0x85d   :  { %9262 = vmatprep.subr.bf16.mxu0 %v13631_v37  ;;  %v13659_v37 = vld [vmem:[#allocation21 + $0xb98] ss:$28 sps:$4 sm:$0xff]  }
 0x85e   :  { %9632 = vmatpush1.bf16.msra.mxu1 %v13626_v20  ;;  %v13667_v20 = vld [vmem:[#allocation21 + $0xbd4] ss:$28 sps:$4 sm:$0xff]  }
 0x85f   :  { %9182 = vmatmul.mubr.bf16.vlgmr.msra.gmra.mrb[112].mxu0 %v17742_v24  ;;  %9714 = vmatprep.subr.bf16.mxu1 %v13634_v60  ;;  %v13662_v60 = vld [vmem:[#allocation21 + $0xba0] ss:$28 sps:$4 sm:$0xff]  }
 0x860   :  { %9263 = vmatpush1.bf16.msra.mxu0 %v13629_v30  ;;  %9191 = vmatprep.mubr.bf16.mxu0 %v17759_v27  ;;  %v13670_v30 = vld [vmem:[#allocation21 + $0xbdc] ss:$28 sps:$4 sm:$0xff]  }
 0x861   :  { %9634 = vmatmul.mubr.bf16.vlgmr.msra.gmra.mrb[128].mxu1 %v17742_v24  ;;  %9264 = vmatprep.subr.bf16.mxu0 %v13637_v31  ;;  %v13665_v31 = vld [vmem:[#allocation21 + $0xbd0] ss:$28 sps:$4 sm:$0xff]  }
 0x862   :  { %9643 = vmatprep.mubr.bf16.mxu1 %v17759_v27  ;;  %9715 = vmatpush1.bf16.msra.mxu1 %v13632_v15  ;;  %v13673_v15 = vld [vmem:[#allocation21 + $0xc0c] ss:$28 sps:$4 sm:$0xff]  }
 0x863   :  { %9716 = vmatprep.subr.bf16.mxu1 %v13640_v13  ;;  %v13668_v13 = vld [vmem:[#allocation21 + $0xbd8] ss:$28 sps:$4 sm:$0xff]  }
 0x864   :  { %9265 = vmatpush1.bf16.msra.mxu0 %v13635_v35  ;;  %v13676_v35 = vld [vmem:[#allocation21 + $0xc14] ss:$28 sps:$4 sm:$0xff]  }
 0x865   :  { %9266 = vmatprep.subr.bf16.mxu0 %v13643_v18  ;;  %v13671_v18 = vld [vmem:[#allocation21 + $0xc08] ss:$28 sps:$4 sm:$0xff]  }
 0x866   :  { %9717 = vmatpush1.bf16.msra.mxu1 %v13638_v14  ;;  %v13679_v14 = vld [vmem:[#allocation21 + $0xc44] ss:$28 sps:$4 sm:$0xff]  }
 0x867   :  { %9192 = vmatmul.mubr.bf16.gmra.mrb[116].mxu0 %v17764_v62  ;;  %9718 = vmatprep.subr.bf16.mxu1 %v13646_v22  ;;  %v13674_v22 = vld [vmem:[#allocation21 + $0xc10] ss:$28 sps:$4 sm:$0xff]  }
 0x868   :  { %9267 = vmatpush1.bf16.msra.mxu0 %v13641_v2  ;;  %9201 = vmatprep.mubr.bf16.mxu0 %v17773_v4  ;;  %v13682_v2 = vld [vmem:[#allocation21 + $0xc4c] ss:$28 sps:$4 sm:$0xff]  }
 0x869   :  { %9644 = vmatmul.mubr.bf16.gmra.mrb[132].mxu1 %v17764_v62  ;;  %9268 = vmatprep.subr.bf16.mxu0 %v13649_v45  ;;  %v13677_v45 = vld [vmem:[#allocation21 + $0xc40] ss:$28 sps:$4 sm:$0xff]  }
 0x86a   :  { %9653 = vmatprep.mubr.bf16.mxu1 %v17773_v4  ;;  %9719 = vmatpush1.bf16.msra.mxu1 %v13644_v26  ;;  %v13685_v26 = vld [vmem:[#allocation21 + $0xc7c] ss:$28 sps:$4 sm:$0xff]  }
 0x86b   :  { %9720 = vmatprep.subr.bf16.mxu1 %v13652_v10  ;;  %v13680_v10 = vld [vmem:[#allocation21 + $0xc48] ss:$28 sps:$4 sm:$0xff]  }
 0x86c   :  { %9269 = vmatpush1.bf16.msra.mxu0 %v13647_v9  ;;  %v13688_v9 = vld [vmem:[#allocation21 + $0xc84] ss:$28 sps:$4 sm:$0xff]  }
 0x86d   :  { %9270 = vmatprep.subr.bf16.mxu0 %v13655_v61  ;;  %v13683_v61 = vld [vmem:[#allocation21 + $0xc78] ss:$28 sps:$4 sm:$0xff]  }
 0x86e   :  { %9721 = vmatpush1.bf16.msra.mxu1 %v13650_v43  ;;  %v13691_v43 = vld [vmem:[#allocation21 + $0xcb4] ss:$28 sps:$4 sm:$0xff]  }
 0x86f   :  { %9202 = vmatmul.mubr.bf16.gmra.mrb[120].mxu0 %v17781_v11  ;;  %9722 = vmatprep.subr.bf16.mxu1 %v13658_v53  ;;  %v13686_v53 = vld [vmem:[#allocation21 + $0xc80] ss:$28 sps:$4 sm:$0xff]  }
 0x870   :  { %9271 = vmatpush1.bf16.msra.mxu0 %v13653_v48  ;;  %9211 = vmatprep.mubr.bf16.mxu0 %v17790_v21  ;;  %v13694_v48 = vld [vmem:[#allocation21 + $0xcbc] ss:$28 sps:$4 sm:$0xff]  }
 0x871   :  { %9654 = vmatmul.mubr.bf16.gmra.mrb[136].mxu1 %v17781_v11  ;;  %9272 = vmatprep.subr.bf16.mxu0 %v13661_v19  ;;  %v13689_v19 = vld [vmem:[#allocation21 + $0xcb0] ss:$28 sps:$4 sm:$0xff]  }
 0x872   :  { %9663 = vmatprep.mubr.bf16.mxu1 %v17790_v21  ;;  %9723 = vmatpush1.bf16.msra.mxu1 %v13656_v36  ;;  %v13697_v36 = vld [vmem:[#allocation21 + $0xcec] ss:$28 sps:$4 sm:$0xff]  }
 0x873   :  { %9724 = vmatprep.subr.bf16.mxu1 %v13664_v39  ;;  %v13692_v39 = vld [vmem:[#allocation21 + $0xcb8] ss:$28 sps:$4 sm:$0xff]  }
 0x874   :  { %9273 = vmatpush1.bf16.msra.mxu0 %v13659_v37  ;;  %v13700_v37 = vld [vmem:[#allocation21 + $0xcf4] ss:$28 sps:$4 sm:$0xff]  }
 0x875   :  { %9274 = vmatprep.subr.bf16.mxu0 %v13667_v20  ;;  %v13695_v20 = vld [vmem:[#allocation21 + $0xce8] ss:$28 sps:$4 sm:$0xff]  }
 0x876   :  { %9725 = vmatpush1.bf16.msra.mxu1 %v13662_v60  ;;  %v13703_v60 = vld [vmem:[#allocation21 + $0xd24] ss:$28 sps:$4 sm:$0xff]  }
 0x877   :  { %9212 = vmatmul.mubr.bf16.gmra.mrb[124].mxu0 %v17799_v55  ;;  %9726 = vmatprep.subr.bf16.mxu1 %v13670_v30  ;;  %v13698_v30 = vld [vmem:[#allocation21 + $0xcf0] ss:$28 sps:$4 sm:$0xff]  }
 0x878   :  { %9275 = vmatpush1.bf16.msra.mxu0 %v13665_v31  ;;  %9221 = vmatprep.mubr.bf16.mxu0 %v17808_v16  ;;  %v13706_v31 = vld [vmem:[#allocation21 + $0xd2c] ss:$28 sps:$4 sm:$0xff]  }
 0x879   :  { %9664 = vmatmul.mubr.bf16.gmra.mrb[140].mxu1 %v17799_v55  ;;  %9276 = vmatprep.subr.bf16.mxu0 %v13673_v15  ;;  %v13701_v15 = vld [vmem:[#allocation21 + $0xd20] ss:$28 sps:$4 sm:$0xff]  }
 0x87a   :  { %9673 = vmatprep.mubr.bf16.mxu1 %v17808_v16  ;;  %9727 = vmatpush1.bf16.msra.mxu1 %v13668_v13  ;;  %v13709_v13 = vld [vmem:[#allocation21 + $0xd5c] ss:$28 sps:$4 sm:$0xff]  }
 0x87b   :  { %9728 = vmatprep.subr.bf16.mxu1 %v13676_v35  ;;  %v13704_v35 = vld [vmem:[#allocation21 + $0xd28] ss:$28 sps:$4 sm:$0xff]  }
 0x87c   :  { %9277 = vmatpush1.bf16.msra.mxu0 %v13671_v18  ;;  %v13712_v18 = vld [vmem:[#allocation21 + $0xd64] ss:$28 sps:$4 sm:$0xff]  }
 0x87d   :  { %9278 = vmatprep.subr.bf16.mxu0 %v13679_v14  ;;  %v13707_v14 = vld [vmem:[#allocation21 + $0xd58] ss:$28 sps:$4 sm:$0xff]  }
 0x87e   :  { %9729 = vmatpush1.bf16.msra.mxu1 %v13674_v22  ;;  %v13715_v22 = vld [vmem:[#allocation21 + $0xd94] ss:$28 sps:$4 sm:$0xff]  }
 0x87f   :  { %9222 = vmatmul.mubr.bf16.gmra.mrb[128].mxu0 %v17814_v49  ;;  %9730 = vmatprep.subr.bf16.mxu1 %v13682_v2  ;;  %v13710_v2 = vld [vmem:[#allocation21 + $0xd60] ss:$28 sps:$4 sm:$0xff]  }
 0x880   :  { %9279 = vmatpush1.bf16.msra.mxu0 %v13677_v45  ;;  %9231 = vmatprep.mubr.bf16.mxu0 %v17828_v42  ;;  %v13718_v45 = vld [vmem:[#allocation21 + $0xd9c] ss:$28 sps:$4 sm:$0xff]  }
 0x881   :  { %9674 = vmatmul.mubr.bf16.gmra.mrb[144].mxu1 %v17814_v49  ;;  %9280 = vmatprep.subr.bf16.mxu0 %v13685_v26  ;;  %v13713_v26 = vld [vmem:[#allocation21 + $0xd90] ss:$28 sps:$4 sm:$0xff]  }
 0x882   :  { %9683 = vmatprep.mubr.bf16.mxu1 %v17828_v42  ;;  %9731 = vmatpush1.bf16.msra.mxu1 %v13680_v10  ;;  %v13721_v10 = vld [vmem:[#allocation21 + $0xdcc] ss:$28 sps:$4 sm:$0xff]  }
 0x883   :  { %9732 = vmatprep.subr.bf16.mxu1 %v13688_v9  ;;  %v13716_v9 = vld [vmem:[#allocation21 + $0xd98] ss:$28 sps:$4 sm:$0xff]  }
 0x884   :  { %9281 = vmatpush1.bf16.msra.mxu0 %v13683_v61  ;;  %v13724_v61 = vld [vmem:[#allocation21 + $0xdd4] ss:$28 sps:$4 sm:$0xff]  }
 0x885   :  { %9282 = vmatprep.subr.bf16.mxu0 %v13691_v43  ;;  %v13719_v43 = vld [vmem:[#allocation21 + $0xdc8] ss:$28 sps:$4 sm:$0xff]  }
 0x886   :  { %9733 = vmatpush1.bf16.msra.mxu1 %v13686_v53  ;;  %v13727_v53 = vld [vmem:[#allocation21 + $0x14] ss:$28 sps:$4 sm:$0xff]  }
 0x887   :  { %9232 = vmatmul.mubr.bf16.gmra.mrb[132].mxu0 %v17834_v32  ;;  %9734 = vmatprep.subr.bf16.mxu1 %v13694_v48  ;;  %v13722_v48 = vld [vmem:[#allocation21 + $0xdd0] ss:$28 sps:$4 sm:$0xff]  }
 0x888   :  { %9283 = vmatpush1.bf16.msra.mxu0 %v13689_v19  ;;  %9241 = vmatprep.mubr.bf16.mxu0 %v17845_v47  ;;  %v13743_v19 = vld [vmem:[#allocation21 + $0x1d8] ss:$28 sps:$4 sm:$0xff]  }
 0x889   :  { %9684 = vmatmul.mubr.bf16.gmra.mrb[148].mxu1 %v17834_v32  ;;  %9284 = vmatprep.subr.bf16.mxu0 %v13697_v36  ;;  %v13725_v36 = vld [vmem:[#allocation21 + $0x10] ss:$28 sps:$4 sm:$0xff]  }
 0x88a   :  { %9693 = vmatprep.mubr.bf16.mxu1 %v17845_v47  ;;  %9735 = vmatpush1.bf16.msra.mxu1 %v13692_v39  ;;  %v13730_v39 = vld [vmem:[#allocation21 + $0x4c] ss:$28 sps:$4 sm:$0xff]  }
 0x88b   :  { %9736 = vmatprep.subr.bf16.mxu1 %v13700_v37  ;;  %v13744_v37 = vld [vmem:[#allocation21 + $0x18] ss:$28 sps:$4 sm:$0xff]  }
 0x88c   :  { %9285 = vmatpush1.bf16.msra.mxu0 %v13695_v20  ;;  %v13751_v20 = vld [vmem:[#allocation21 + $0x210] ss:$28 sps:$4 sm:$0xff]  }
 0x88d   :  { %9286 = vmatprep.subr.bf16.mxu0 %v13703_v60  ;;  %v13728_v60 = vld [vmem:[#allocation21 + $0x48] ss:$28 sps:$4 sm:$0xff]  }
 0x88e   :  { %9737 = vmatpush1.bf16.msra.mxu1 %v13698_v30  ;;  %v13733_v30 = vld [vmem:[#allocation21 + $0x84] ss:$28 sps:$4 sm:$0xff]  }
 0x88f   :  { %9242 = vmatmul.mubr.bf16.gmra.mrb[136].mxu0 %v17853_v40  ;;  %9738 = vmatprep.subr.bf16.mxu1 %v13706_v31  ;;  %v13752_v31 = vld [vmem:[#allocation21 + $0x50] ss:$28 sps:$4 sm:$0xff]  }
 0x890   :  { %9287 = vmatpush1.bf16.msra.mxu0 %v13701_v15  ;;  %9251 = vmatprep.mubr.bf16.mxu0 %v17860_v54  ;;  %v13759_v15 = vld [vmem:[#allocation21 + $0x248] ss:$28 sps:$4 sm:$0xff]  }
 0x891   :  { %9694 = vmatmul.mubr.bf16.gmra.mrb[152].mxu1 %v17853_v40  ;;  %9288 = vmatprep.subr.bf16.mxu0 %v13709_v13  ;;  %v13731_v13 = vld [vmem:[#allocation21 + $0x80] ss:$28 sps:$4 sm:$0xff]  }
 0x892   :  { %9703 = vmatprep.mubr.bf16.mxu1 %v17860_v54  ;;  %9739 = vmatpush1.bf16.msra.mxu1 %v13704_v35  ;;  %v13736_v35 = vld [vmem:[#allocation21 + $0xbc] ss:$28 sps:$4 sm:$0xff]  }
 0x893   :  { %9740 = vmatprep.subr.bf16.mxu1 %v13712_v18  ;;  %v13760_v18 = vld [vmem:[#allocation21 + $0x88] ss:$28 sps:$4 sm:$0xff]  }
 0x894   :  { %9289 = vmatpush1.bf16.msra.mxu0 %v13707_v14  ;;  %v13767_v14 = vld [vmem:[#allocation21 + $0x280] ss:$28 sps:$4 sm:$0xff]  }
 0x895   :  { %9290 = vmatprep.subr.bf16.mxu0 %v13715_v22  ;;  %v13734_v22 = vld [vmem:[#allocation21 + $0xb8] ss:$28 sps:$4 sm:$0xff]  }
 0x896   :  { %9741 = vmatpush1.bf16.msra.mxu1 %v13710_v2  ;;  %v13739_v2 = vld [vmem:[#allocation21 + $0xf4] ss:$28 sps:$4 sm:$0xff]  }
 0x897   :  { %9252 = vmatmul.mubr.bf16.gmra.mrb[140].mxu0 %v17868_v25  ;;  %9742 = vmatprep.subr.bf16.mxu1 %v13718_v45  ;;  %v13768_v45 = vld [vmem:[#allocation21 + $0xc0] ss:$28 sps:$4 sm:$0xff]  }
 0x898   :  { %9291 = vmatpush1.bf16.msra.mxu0 %v13713_v26  ;;  %9294 = vmatprep.mubr.bf16.mxu0 %v17880_v50  ;;  %v13772_v26 = vld [vmem:[#allocation21 + $0x2b8] ss:$28 sps:$4 sm:$0xff]  }
 0x899   :  { %9704 = vmatmul.mubr.bf16.gmra.mrb[156].mxu1 %v17868_v25  ;;  %9292 = vmatprep.subr.bf16.mxu0 %v13721_v10  ;;  %v13737_v10 = vld [vmem:[#allocation21 + $0xf0] ss:$28 sps:$4 sm:$0xff]  }
 0x89a   :  { %9743 = vmatpush1.bf16.msra.mxu1 %v13716_v9  ;;  %9746 = vmatprep.mubr.bf16.mxu1 %v17880_v50  ;;  %v13742_v9 = vld [vmem:[#allocation21 + $0x12c] ss:$28 sps:$4 sm:$0xff]  }
 0x89b   :  { %9744 = vmatprep.subr.bf16.mxu1 %v13724_v61  ;;  %v13773_v61 = vld [vmem:[#allocation21 + $0xf8] ss:$28 sps:$4 sm:$0xff]  }
 0x89c   :  { %9293 = vmatpush1.bf16.msra.mxu0 %v13719_v43  ;;  %v13777_v43 = vld [vmem:[#allocation21 + $0x2f0] ss:$28 sps:$4 sm:$0xff]  }
 0x89d   :  { %9827 = vmatprep.subr.bf16.mxu0 %v13727_v53  ;;  %v13740_v53 = vld [vmem:[#allocation21 + $0x128] ss:$28 sps:$4 sm:$0xff]  }
 0x89e   :  { %9745 = vmatpush1.bf16.msra.mxu1 %v13722_v48  ;;  %v13747_v48 = vld [vmem:[#allocation21 + $0x164] ss:$28 sps:$4 sm:$0xff]  }
 0x89f   :  { %9295 = vmatmul.mubr.bf16.vlgmr.msra.gmra.mrb[112].mxu0 %v17884_v12  ;;  %12663 = vmatprep.subr.bf16.mxu1 %v13743_v19  ;;  %v13778_v19 = vld [vmem:[#allocation21 + $0x130] ss:$28 sps:$4 sm:$0xff]  }
 0x8a0   :  { %9828 = vmatpush1.bf16.msra.mxu0 %v13725_v36  ;;  %9304 = vmatprep.mubr.bf16.mxu0 %v17898_v41  ;;  %v13782_v36 = vld [vmem:[#allocation21 + $0x328] ss:$28 sps:$4 sm:$0xff]  }
 0x8a1   :  { %9747 = vmatmul.mubr.bf16.vlgmr.msra.gmra.mrb[128].mxu1 %v17884_v12  ;;  %9829 = vmatprep.subr.bf16.mxu0 %v13730_v39  ;;  %v13745_v39 = vld [vmem:[#allocation21 + $0x160] ss:$28 sps:$4 sm:$0xff]  }
 0x8a2   :  { %9756 = vmatprep.mubr.bf16.mxu1 %v17898_v41  ;;  %12671 = vmatpush3.bf16.msra.mxu1 %v13744_v37  ;;  %v13750_v37 = vld [vmem:[#allocation21 + $0x19c] ss:$28 sps:$4 sm:$0xff]  }
 0x8a3   :  { %12664 = vmatprep.subr.bf16.mxu1 %v13751_v20  ;;  %v13783_v20 = vld [vmem:[#allocation21 + $0x168] ss:$28 sps:$4 sm:$0xff]  }
 0x8a4   :  { %9830 = vmatpush1.bf16.msra.mxu0 %v13728_v60  ;;  %v13787_v60 = vld [vmem:[#allocation21 + $0x360] ss:$28 sps:$4 sm:$0xff]  }
 0x8a5   :  { %9831 = vmatprep.subr.bf16.mxu0 %v13733_v30  ;;  %v13748_v30 = vld [vmem:[#allocation21 + $0x198] ss:$28 sps:$4 sm:$0xff]  }
 0x8a6   :  { %12672 = vmatpush3.bf16.msra.mxu1 %v13752_v31  ;;  %v13755_v31 = vld [vmem:[#allocation21 + $0x1d4] ss:$28 sps:$4 sm:$0xff]  }
 0x8a7   :  { %9305 = vmatmul.mubr.bf16.gmra.mrb[116].mxu0 %v17904_v17  ;;  %12665 = vmatprep.subr.bf16.mxu1 %v13759_v15  ;;  %v13788_v15 = vld [vmem:[#allocation21 + $0x1a0] ss:$28 sps:$4 sm:$0xff]  }
 0x8a8   :  { %9832 = vmatpush1.bf16.msra.mxu0 %v13731_v13  ;;  %9314 = vmatprep.mubr.bf16.mxu0 %v17919_v46  ;;  %v13807_v13 = vld [vmem:[#allocation21 + $0x558] ss:$28 sps:$4 sm:$0xff]  }
 0x8a9   :  { %9757 = vmatmul.mubr.bf16.gmra.mrb[132].mxu1 %v17904_v17  ;;  %9833 = vmatprep.subr.bf16.mxu0 %v13736_v35  ;;  %v13753_v35 = vld [vmem:[#allocation21 + $0x1d0] ss:$28 sps:$4 sm:$0xff]  }
 0x8aa   :  { %9766 = vmatprep.mubr.bf16.mxu1 %v17919_v46  ;;  %12673 = vmatpush3.bf16.msra.mxu1 %v13760_v18  ;;  %v13758_v18 = vld [vmem:[#allocation21 + $0x20c] ss:$28 sps:$4 sm:$0xff]  }
 0x8ab   :  { %12666 = vmatprep.subr.bf16.mxu1 %v13767_v14  ;;  %v13756_v14 = vld [vmem:[#allocation21 + $0x208] ss:$28 sps:$4 sm:$0xff]  }
 0x8ac   :  { %9834 = vmatpush1.bf16.msra.mxu0 %v13734_v22  ;;  %v13763_v22 = vld [vmem:[#allocation21 + $0x244] ss:$28 sps:$4 sm:$0xff]  }
 0x8ad   :  { %9835 = vmatprep.subr.bf16.mxu0 %v13739_v2  ;;  %v13761_v2 = vld [vmem:[#allocation21 + $0x240] ss:$28 sps:$4 sm:$0xff]  }
 0x8ae   :  { %12674 = vmatpush3.bf16.msra.mxu1 %v13768_v45  ;;  %v13766_v45 = vld [vmem:[#allocation21 + $0x27c] ss:$28 sps:$4 sm:$0xff]  }
 0x8af   :  { %9315 = vmatmul.mubr.bf16.gmra.mrb[120].mxu0 %v17925_v7  ;;  %12667 = vmatprep.subr.bf16.mxu1 %v13772_v26  ;;  %v13764_v26 = vld [vmem:[#allocation21 + $0x278] ss:$28 sps:$4 sm:$0xff]  }
 0x8b0   :  { %9836 = vmatpush1.bf16.msra.mxu0 %v13737_v10  ;;  %9324 = vmatprep.mubr.bf16.mxu0 %v17929_v28  ;;  %v13771_v10 = vld [vmem:[#allocation21 + $0x2b4] ss:$28 sps:$4 sm:$0xff]  }
 0x8b1   :  { %9767 = vmatmul.mubr.bf16.gmra.mrb[136].mxu1 %v17925_v7  ;;  %9837 = vmatprep.subr.bf16.mxu0 %v13742_v9  ;;  %v13769_v9 = vld [vmem:[#allocation21 + $0x2b0] ss:$28 sps:$4 sm:$0xff]  }
 0x8b2   :  { %9776 = vmatprep.mubr.bf16.mxu1 %v17929_v28  ;;  %12675 = vmatpush3.bf16.msra.mxu1 %v13773_v61  ;;  %v13776_v61 = vld [vmem:[#allocation21 + $0x2ec] ss:$28 sps:$4 sm:$0xff]  }
 0x8b3   :  { %12668 = vmatprep.subr.bf16.mxu1 %v13777_v43  ;;  %v13774_v43 = vld [vmem:[#allocation21 + $0x2e8] ss:$28 sps:$4 sm:$0xff]  }
 0x8b4   :  { %9838 = vmatpush1.bf16.msra.mxu0 %v13740_v53  ;;  %v13781_v53 = vld [vmem:[#allocation21 + $0x324] ss:$28 sps:$4 sm:$0xff]  }
 0x8b5   :  { %9839 = vmatprep.subr.bf16.mxu0 %v13747_v48  ;;  %v13779_v48 = vld [vmem:[#allocation21 + $0x320] ss:$28 sps:$4 sm:$0xff]  }
 0x8b6   :  { %12676 = vmatpush3.bf16.msra.mxu1 %v13778_v19  ;;  %v13786_v19 = vld [vmem:[#allocation21 + $0x35c] ss:$28 sps:$4 sm:$0xff]  }
 0x8b7   :  { %9325 = vmatmul.mubr.bf16.gmra.mrb[124].mxu0 %v17949_v44  ;;  %12669 = vmatprep.subr.bf16.mxu1 %v13782_v36  ;;  %v13784_v36 = vld [vmem:[#allocation21 + $0x358] ss:$28 sps:$4 sm:$0xff]  }
 0x8b8   :  { %9840 = vmatpush1.bf16.msra.mxu0 %v13745_v39  ;;  %9334 = vmatprep.mubr.bf16.mxu0 %v17951_v58  ;;  %v13791_v39 = vld [vmem:[#allocation21 + $0x394] ss:$28 sps:$4 sm:$0xff]  }
 0x8b9   :  { %9777 = vmatmul.mubr.bf16.gmra.mrb[140].mxu1 %v17949_v44  ;;  %9841 = vmatprep.subr.bf16.mxu0 %v13750_v37  ;;  %v13789_v37 = vld [vmem:[#allocation21 + $0x390] ss:$28 sps:$4 sm:$0xff]  }
 0x8ba   :  { %9786 = vmatprep.mubr.bf16.mxu1 %v17951_v58  ;;  %12677 = vmatpush3.bf16.msra.mxu1 %v13783_v20  ;;  %v13794_v20 = vld [vmem:[#allocation21 + $0x3cc] ss:$28 sps:$4 sm:$0xff]  }
 0x8bb   :  { %12670 = vmatprep.subr.bf16.mxu1 %v13787_v60  ;;  %v13808_v60 = vld [vmem:[#allocation21 + $0x398] ss:$28 sps:$4 sm:$0xff]  }
 0x8bc   :  { %9842 = vmatpush1.bf16.msra.mxu0 %v13748_v30  ;;  %v20038_v30 = vld [vmem:[#allocation76_spill] sm:$0xff] }
 0x8bd   :  { %9843 = vmatprep.subr.bf16.mxu0 %v13755_v31  ;;  %v13815_v31 = vld [vmem:[#allocation21 + $0x590] ss:$28 sps:$4 sm:$0xff]  }
 0x8be   :  { %12678 = vmatpush3.bf16.msra.mxu1 %v13788_v15  ;;  %v13792_v15 = vld [vmem:[#allocation21 + $0x3c8] ss:$28 sps:$4 sm:$0xff]  }
 0x8bf   :  { %9335 = vmatmul.mubr.bf16.gmra.mrb[128].mxu0 %v17964_v33  ;;  %12447 = vmatprep.subr.bf16.mxu1 %v13807_v13  ;;  %v20039_v13 = vld [vmem:[#allocation39_spill] sm:$0xff] }
 0x8c0   :  { %9844 = vmatpush1.bf16.msra.mxu0 %v13753_v35  ;;  %9344 = vmatprep.mubr.bf16.mxu0 %v17966_v3  ;;  %v13797_v35 = vld [vmem:[#allocation21 + $0x404] ss:$28 sps:$4 sm:$0xff]  }
 0x8c1   :  { %9787 = vmatmul.mubr.bf16.gmra.mrb[144].mxu1 %v17964_v33  ;;  %9845 = vmatprep.subr.bf16.mxu0 %v13758_v18  ;;  %v20040_v18 = vld [vmem:[#allocation43_spill] sm:$0xff] }
 0x8c2   :  { %9796 = vmatprep.mubr.bf16.mxu1 %v17966_v3 }
 0x8c4   :  { %9846 = vmatpush1.bf16.msra.mxu0 %v13756_v14  ;;  %v13816_v14 = vld [vmem:[#allocation21 + $0x3d0] ss:$28 sps:$4 sm:$0xff]  }
 0x8c5   :  { %9847 = vmatprep.subr.bf16.mxu0 %v13763_v22  ;;  %v13820_v22 = vld [vmem:[#allocation21 + $0x5c8] ss:$28 sps:$4 sm:$0xff]  }
 0x8c7   :  { %9345 = vmatmul.mubr.bf16.gmra.mrb[132].mxu0 %v17975_v0 }
 0x8c8   :  { %9848 = vmatpush1.bf16.msra.mxu0 %v13761_v2  ;;  %9354 = vmatprep.mubr.bf16.mxu0 %v17986_v38  ;;  %v13795_v2 = vld [vmem:[#allocation21 + $0x400] ss:$28 sps:$4 sm:$0xff]  }
 0x8c9   :  { %9797 = vmatmul.mubr.bf16.gmra.mrb[148].mxu1 %v17975_v0  ;;  %9849 = vmatprep.subr.bf16.mxu0 %v13766_v45  ;;  %v13800_v45 = vld [vmem:[#allocation21 + $0x43c] ss:$28 sps:$4 sm:$0xff]  }
 0x8ca   :  { %9806 = vmatprep.mubr.bf16.mxu1 %v17986_v38 }
 0x8cc   :  { %9850 = vmatpush1.bf16.msra.mxu0 %v13764_v26  ;;  %v13821_v26 = vld [vmem:[#allocation21 + $0x408] ss:$28 sps:$4 sm:$0xff]  }
 0x8cd   :  { %9851 = vmatprep.subr.bf16.mxu0 %v13771_v10  ;;  %v13798_v10 = vld [vmem:[#allocation21 + $0x438] ss:$28 sps:$4 sm:$0xff]  }
 0x8cf   :  { %9355 = vmatmul.mubr.bf16.gmra.mrb[136].mxu0 %v17989_v5 }
 0x8d0   :  { %9852 = vmatpush1.bf16.msra.mxu0 %v13769_v9  ;;  %9364 = vmatprep.mubr.bf16.mxu0 %v17995_v63  ;;  %v20041_v9 = vld [vmem:[#allocation80_spill] sm:$0xff] }
 0x8d1   :  { %9807 = vmatmul.mubr.bf16.gmra.mrb[152].mxu1 %v17989_v5  ;;  %9853 = vmatprep.subr.bf16.mxu0 %v13776_v61  ;;  %v13803_v61 = vld [vmem:[#allocation21 + $0x474] ss:$28 sps:$4 sm:$0xff]  }
 0x8d2   :  { %9816 = vmatprep.mubr.bf16.mxu1 %v17995_v63 }
 0x8d4   :  { %9854 = vmatpush1.bf16.msra.mxu0 %v13774_v43  ;;  %v20042_v43 = vld [vmem:[#allocation38_spill] sm:$0xff] }
 0x8d5   :  { %9855 = vmatprep.subr.bf16.mxu0 %v13781_v53  ;;  %v13826_v53 = vld [vmem:[#allocation21 + $0x440] ss:$28 sps:$4 sm:$0xff]  }
 0x8d7   :  { %9365 = vmatmul.mubr.bf16.gmra.mrb[140].mxu0 %v17997_v56 }
 0x8d8   :  { %9856 = vmatpush1.bf16.msra.mxu0 %v13779_v48  ;;  %9859 = vmatprep.mubr.bf16.mxu0 %v17486_v1  ;;  %v13830_v48 = vld [vmem:[#allocation21 + $0x638] ss:$28 sps:$4 sm:$0xff]  }
 0x8d9   :  { %9817 = vmatmul.mubr.bf16.gmra.mrb[156].mxu1 %v17997_v56  ;;  %9857 = vmatprep.subr.bf16.mxu0 %v13786_v19  ;;  %v13801_v19 = vld [vmem:[#allocation21 + $0x470] ss:$28 sps:$4 sm:$0xff]  }
 0x8da   :  { %10319 = vmatprep.mubr.bf16.mxu1 %v17492_v57 }
 0x8dc   :  { %9858 = vmatpush1.bf16.msra.mxu0 %v13784_v36  ;;  %v13806_v36 = vld [vmem:[#allocation21 + $0x4ac] ss:$28 sps:$4 sm:$0xff]  }
 0x8dd   :  { %9940 = vmatprep.subr.bf16.mxu0 %v13791_v39  ;;  %v13831_v39 = vld [vmem:[#allocation21 + $0x478] ss:$28 sps:$4 sm:$0xff]  }
 0x8df   :  { %9860 = vmatmul.mubr.bf16.vlgmr.msra.gmra.mrb[144].mxu0 %v20038_v30 }
 0x8e0   :  { %9941 = vmatpush1.bf16.msra.mxu0 %v13789_v37  ;;  %9869 = vmatprep.mubr.bf16.mxu0 %v17492_v57  ;;  %v13825_v57 = vld [vmem:[#allocation21 + $0x600] ss:$28 sps:$4 sm:$0xff]   ;;  %v13835_v37 = vld [vmem:[#allocation21 + $0x670] ss:$28 sps:$4 sm:$0xff]  }
 0x8e1   :  { %10320 = vmatmul.mubr.bf16.vlgmr.msra.gmra.mrb[160].mxu1 %v20039_v13  ;;  %9942 = vmatprep.subr.bf16.mxu0 %v13794_v20  ;;  %v13804_v20 = vld [vmem:[#allocation21 + $0x4a8] ss:$28 sps:$4 sm:$0xff]  }
 0x8e2   :  { %10327 = vmatprep.mubr.bf16.mxu1 %v20040_v18  ;;  %12448 = vmatpush3.bf16.msra.mxu1 %v13808_v60  ;;  %v20043_v60 = vld [vmem:[#allocation48_spill] sm:$0xff] }
 0x8e3   :  { %12449 = vmatprep.subr.bf16.mxu1 %v13815_v31  ;;  %v13811_v31 = vld [vmem:[#allocation21 + $0x4e4] ss:$28 sps:$4 sm:$0xff]  }
 0x8e4   :  { %9943 = vmatpush1.bf16.msra.mxu0 %v13792_v15  ;;  %v20044_v15 = vld [vmem:[#allocation60_spill] sm:$0xff] }
 0x8e5   :  { %9944 = vmatprep.subr.bf16.mxu0 %v13797_v35  ;;  %v13840_v35 = vld [vmem:[#allocation21 + $0x6a8] ss:$28 sps:$4 sm:$0xff]  }
 0x8e6   :  { %12450 = vmatpush3.bf16.msra.mxu1 %v13816_v14  ;;  %v13814_v14 = vld [vmem:[#allocation21 + $0x51c] ss:$28 sps:$4 sm:$0xff]  }
 0x8e7   :  { %9870 = vmatmul.mubr.bf16.gmra.mrb[148].mxu0 %v20039_v13  ;;  %12451 = vmatprep.subr.bf16.mxu1 %v13820_v22  ;;  %v13836_v13 = vld [vmem:[#allocation21 + $0x4b0] ss:$28 sps:$4 sm:$0xff]   ;;  %v13841_v22 = vld [vmem:[#allocation21 + $0x4e8] ss:$28 sps:$4 sm:$0xff]  }
 0x8e8   :  { %9945 = vmatpush1.bf16.msra.mxu0 %v13795_v2  ;;  %9879 = vmatprep.mubr.bf16.mxu0 %v20040_v18  ;;  %v13809_v18 = vld [vmem:[#allocation21 + $0x4e0] ss:$28 sps:$4 sm:$0xff]  }
 0x8e9   :  { %10328 = vmatmul.mubr.bf16.gmra.mrb[164].mxu1 %v20041_v9  ;;  %9946 = vmatprep.subr.bf16.mxu0 %v13800_v45  ;;  %v13845_v2 = vld [vmem:[#allocation21 + $0x6e0] ss:$28 sps:$4 sm:$0xff]   ;;  %v13812_v45 = vld [vmem:[#allocation21 + $0x518] ss:$28 sps:$4 sm:$0xff]  }
 0x8ea   :  { %10335 = vmatprep.mubr.bf16.mxu1 %v20042_v43  ;;  %12452 = vmatpush3.bf16.msra.mxu1 %v13821_v26  ;;  %v20045_v26 = vld [vmem:[#allocation42_spill] sm:$0xff] }
 0x8eb   :  { %12453 = vmatprep.subr.bf16.mxu1 %v13825_v57  ;;  %v13819_v57 = vld [vmem:[#allocation21 + $0x554] ss:$28 sps:$4 sm:$0xff]  }
 0x8ec   :  { %9947 = vmatpush1.bf16.msra.mxu0 %v13798_v10  ;;  %v20046_v10 = vld [vmem:[#allocation54_spill] sm:$0xff] }
 0x8ed   :  { %9948 = vmatprep.subr.bf16.mxu0 %v13803_v61  ;;  %v13865_v61 = vld [vmem:[#allocation21 + $0x8d8] ss:$28 sps:$4 sm:$0xff]  }
 0x8ee   :  { %12454 = vmatpush3.bf16.msra.mxu1 %v13826_v53  ;;  %v13824_v53 = vld [vmem:[#allocation21 + $0x58c] ss:$28 sps:$4 sm:$0xff]  }
 0x8ef   :  { %9880 = vmatmul.mubr.bf16.gmra.mrb[152].mxu0 %v20041_v9  ;;  %12455 = vmatprep.subr.bf16.mxu1 %v13830_v48  ;;  %v13846_v9 = vld [vmem:[#allocation21 + $0x520] ss:$28 sps:$4 sm:$0xff]   ;;  %v13822_v48 = vld [vmem:[#allocation21 + $0x588] ss:$28 sps:$4 sm:$0xff]  }
 0x8f0   :  { %9949 = vmatpush1.bf16.msra.mxu0 %v13801_v19  ;;  %9889 = vmatprep.mubr.bf16.mxu0 %v20042_v43  ;;  %v13817_v43 = vld [vmem:[#allocation21 + $0x550] ss:$28 sps:$4 sm:$0xff]   ;;  %v20047_v19 = vld [vmem:[#allocation83_spill] sm:$0xff] }
 0x8f1   :  { %10336 = vmatmul.mubr.bf16.gmra.mrb[168].mxu1 %v20043_v60  ;;  %9950 = vmatprep.subr.bf16.mxu0 %v13806_v36  ;;  %v13829_v36 = vld [vmem:[#allocation21 + $0x5c4] ss:$28 sps:$4 sm:$0xff]  }
 0x8f2   :  { %10343 = vmatprep.mubr.bf16.mxu1 %v20044_v15  ;;  %12456 = vmatpush3.bf16.msra.mxu1 %v13831_v39  ;;  %v20048_v39 = vld [vmem:[#allocation68_spill] sm:$0xff] }
 0x8f3   :  { %12457 = vmatprep.subr.bf16.mxu1 %v13835_v37  ;;  %v13827_v37 = vld [vmem:[#allocation21 + $0x5c0] ss:$28 sps:$4 sm:$0xff]  }
 0x8f4   :  { %9951 = vmatpush1.bf16.msra.mxu0 %v13804_v20  ;;  %v13834_v20 = vld [vmem:[#allocation21 + $0x5fc] ss:$28 sps:$4 sm:$0xff]  }
 0x8f5   :  { %9952 = vmatprep.subr.bf16.mxu0 %v13811_v31  ;;  %v20049_v31 = vld [vmem:[#allocation66_spill] sm:$0xff] }
 0x8f6   :  { %12458 = vmatpush3.bf16.msra.mxu1 %v13836_v13  ;;  %v20050_v13 = vld [vmem:[#allocation85_spill] sm:$0xff] }
 0x8f7   :  { %9890 = vmatmul.mubr.bf16.gmra.mrb[156].mxu0 %v20043_v60  ;;  %12459 = vmatprep.subr.bf16.mxu1 %v13840_v35  ;;  %v13832_v60 = vld [vmem:[#allocation21 + $0x5f8] ss:$28 sps:$4 sm:$0xff]   ;;  %v13837_v35 = vld [vmem:[#allocation21 + $0x630] ss:$28 sps:$4 sm:$0xff]  }
 0x8f8   :  { %9953 = vmatpush1.bf16.msra.mxu0 %v13809_v18  ;;  %9899 = vmatprep.mubr.bf16.mxu0 %v20044_v15  ;;  %v13839_v15 = vld [vmem:[#allocation21 + $0x634] ss:$28 sps:$4 sm:$0xff]   ;;  %v13844_v18 = vld [vmem:[#allocation21 + $0x66c] ss:$28 sps:$4 sm:$0xff]  }
 0x8f9   :  { %10344 = vmatmul.mubr.bf16.gmra.mrb[172].mxu1 %v20045_v26  ;;  %9954 = vmatprep.subr.bf16.mxu0 %v13814_v14  ;;  %v13842_v14 = vld [vmem:[#allocation21 + $0x668] ss:$28 sps:$4 sm:$0xff]  }
 0x8fa   :  { %10351 = vmatprep.mubr.bf16.mxu1 %v20046_v10  ;;  %12460 = vmatpush3.bf16.msra.mxu1 %v13841_v22  ;;  %v20051_v22 = vld [vmem:[#allocation49_spill] sm:$0xff] }
 0x8fb   :  { %12461 = vmatprep.subr.bf16.mxu1 %v13845_v2  ;;  %v13849_v2 = vld [vmem:[#allocation21 + $0x6a4] ss:$28 sps:$4 sm:$0xff]  }
 0x8fc   :  { %9955 = vmatpush1.bf16.msra.mxu0 %v13812_v45  ;;  %v20052_v45 = vld [vmem:[#allocation87_spill] sm:$0xff] }
 0x8fd   :  { %9956 = vmatprep.subr.bf16.mxu0 %v13819_v57  ;;  %v13852_v57 = vld [vmem:[#allocation21 + $0x6dc] ss:$28 sps:$4 sm:$0xff]  }
 0x8fe   :  { %12462 = vmatpush3.bf16.msra.mxu1 %v13846_v9  ;;  %v13873_v9 = vld [vmem:[#allocation21 + $0x910] ss:$28 sps:$4 sm:$0xff]  }
 0x8ff   :  { %9900 = vmatmul.mubr.bf16.gmra.mrb[160].mxu0 %v20045_v26  ;;  %12511 = vmatprep.subr.bf16.mxu1 %v13865_v61  ;;  %v13847_v26 = vld [vmem:[#allocation21 + $0x6a0] ss:$28 sps:$4 sm:$0xff]   ;;  %v13850_v61 = vld [vmem:[#allocation21 + $0x6d8] ss:$28 sps:$4 sm:$0xff]  }
 0x900   :  { %9957 = vmatpush1.bf16.msra.mxu0 %v13817_v43  ;;  %9909 = vmatprep.mubr.bf16.mxu0 %v20046_v10  ;;  %v13866_v10 = vld [vmem:[#allocation21 + $0x718] ss:$28 sps:$4 sm:$0xff]  }
 0x901   :  { %10352 = vmatmul.mubr.bf16.gmra.mrb[176].mxu1 %v20047_v19  ;;  %9958 = vmatprep.subr.bf16.mxu0 %v13824_v53  ;;  %v20053_v43 = vld [vmem:[#allocation46_spill] sm:$0xff]  ;;  %v13855_v53 = vld [vmem:[#allocation21 + $0x714] ss:$28 sps:$4 sm:$0xff]  }
 0x902   :  { %10359 = vmatprep.mubr.bf16.mxu1 %v20048_v39 }
 0x904   :  { %9959 = vmatpush1.bf16.msra.mxu0 %v13822_v48  ;;  %v20054_v48 = vld [vmem:[#allocation105_spill] sm:$0xff] }
 0x905   :  { %9960 = vmatprep.subr.bf16.mxu0 %v13829_v36  ;;  %v13881_v36 = vld [vmem:[#allocation21 + $0x948] ss:$28 sps:$4 sm:$0xff]  }
 0x907   :  { %9910 = vmatmul.mubr.bf16.gmra.mrb[164].mxu0 %v20047_v19  ;;  %v13874_v19 = vld [vmem:[#allocation21 + $0x750] ss:$28 sps:$4 sm:$0xff]  }
 0x908   :  { %9961 = vmatpush1.bf16.msra.mxu0 %v13827_v37  ;;  %9919 = vmatprep.mubr.bf16.mxu0 %v20048_v39  ;;  %v13853_v39 = vld [vmem:[#allocation21 + $0x710] ss:$28 sps:$4 sm:$0xff]  }
 0x909   :  { %10360 = vmatmul.mubr.bf16.gmra.mrb[180].mxu1 %v20049_v31  ;;  %9962 = vmatprep.subr.bf16.mxu0 %v13834_v20  ;;  %v13858_v37 = vld [vmem:[#allocation21 + $0x74c] ss:$28 sps:$4 sm:$0xff]  }
 0x90a   :  { %10367 = vmatprep.mubr.bf16.mxu1 %v20050_v13  ;;  %v13882_v20 = vld [vmem:[#allocation21 + $0x788] ss:$28 sps:$4 sm:$0xff]  }
 0x90c   :  { %9963 = vmatpush1.bf16.msra.mxu0 %v13832_v60  ;;  %v13889_v60 = vld [vmem:[#allocation21 + $0x980] ss:$28 sps:$4 sm:$0xff]  }
 0x90d   :  { %9964 = vmatprep.subr.bf16.mxu0 %v13839_v15  ;;  %v20055_v15 = vld [vmem:[#allocation52_spill] sm:$0xff] }
 0x90f   :  { %9920 = vmatmul.mubr.bf16.gmra.mrb[168].mxu0 %v20049_v31  ;;  %v13856_v31 = vld [vmem:[#allocation21 + $0x748] ss:$28 sps:$4 sm:$0xff]  }
 0x910   :  { %9965 = vmatpush1.bf16.msra.mxu0 %v13837_v35  ;;  %9929 = vmatprep.mubr.bf16.mxu0 %v20050_v13  ;;  %v13861_v13 = vld [vmem:[#allocation21 + $0x784] ss:$28 sps:$4 sm:$0xff]   ;;  %v20056_v35 = vld [vmem:[#allocation92_spill] sm:$0xff] }
 0x911   :  { %10368 = vmatmul.mubr.bf16.gmra.mrb[184].mxu1 %v20051_v22  ;;  %9966 = vmatprep.subr.bf16.mxu0 %v13844_v18  ;;  %v13890_v18 = vld [vmem:[#allocation21 + $0x7c0] ss:$28 sps:$4 sm:$0xff]  }
 0x912   :  { %10408 = vmatprep.mubr.bf16.mxu1 %v20052_v45 }
 0x914   :  { %9967 = vmatpush1.bf16.msra.mxu0 %v13842_v14  ;;  %v13894_v14 = vld [vmem:[#allocation21 + $0x9b8] ss:$28 sps:$4 sm:$0xff]  }
 0x915   :  { %9968 = vmatprep.subr.bf16.mxu0 %v13849_v2  ;;  %v13864_v2 = vld [vmem:[#allocation21 + $0x7bc] ss:$28 sps:$4 sm:$0xff]  }
 0x917   :  { %9930 = vmatmul.mubr.bf16.gmra.mrb[172].mxu0 %v20051_v22  ;;  %v13859_v22 = vld [vmem:[#allocation21 + $0x780] ss:$28 sps:$4 sm:$0xff]  }
 0x918   :  { %9969 = vmatpush1.bf16.msra.mxu0 %v13847_v26  ;;  %9972 = vmatprep.mubr.bf16.mxu0 %v20052_v45  ;;  %v13895_v45 = vld [vmem:[#allocation21 + $0x7f8] ss:$28 sps:$4 sm:$0xff]   ;;  %v13899_v26 = vld [vmem:[#allocation21 + $0x9f0] ss:$28 sps:$4 sm:$0xff]  }
 0x919   :  { %10409 = vmatmul.mubr.bf16.vlgmr.msra.gmra.mrb[188].mxu1 %v20053_v43  ;;  %9970 = vmatprep.subr.bf16.mxu0 %v13852_v57  ;;  %v13862_v57 = vld [vmem:[#allocation21 + $0x7b8] ss:$28 sps:$4 sm:$0xff]  }
 0x91a   :  { %10416 = vmatprep.mubr.bf16.mxu1 %v20054_v48  ;;  %12512 = vmatpush3.bf16.msra.mxu1 %v13866_v10  ;;  %v20057_v10 = vld [vmem:[#allocation89_spill] sm:$0xff] }
 0x91b   :  { %12513 = vmatprep.subr.bf16.mxu1 %v13873_v9  ;;  %v13869_v9 = vld [vmem:[#allocation21 + $0x7f4] ss:$28 sps:$4 sm:$0xff]  }
 0x91c   :  { %9971 = vmatpush1.bf16.msra.mxu0 %v13850_v61  ;;  %v20058_v61 = vld [vmem:[#allocation50_spill] sm:$0xff] }
 0x91d   :  { %10053 = vmatprep.subr.bf16.mxu0 %v13855_v53  ;;  %v13904_v53 = vld [vmem:[#allocation21 + $0xa28] ss:$28 sps:$4 sm:$0xff]  }
 0x91e   :  { %12514 = vmatpush3.bf16.msra.mxu1 %v13874_v19  ;;  %v13872_v19 = vld [vmem:[#allocation21 + $0x82c] ss:$28 sps:$4 sm:$0xff]  }
 0x91f   :  { %9973 = vmatmul.mubr.bf16.vlgmr.msra.gmra.mrb[144].mxu0 %v20053_v43  ;;  %12515 = vmatprep.subr.bf16.mxu1 %v13881_v36  ;;  %v13900_v43 = vld [vmem:[#allocation21 + $0x830] ss:$28 sps:$4 sm:$0xff]   ;;  %v13905_v36 = vld [vmem:[#allocation21 + $0x868] ss:$28 sps:$4 sm:$0xff]  }
 0x920   :  { %10054 = vmatpush1.bf16.msra.mxu0 %v13853_v39  ;;  %9982 = vmatprep.mubr.bf16.mxu0 %v20054_v48  ;;  %v13867_v48 = vld [vmem:[#allocation21 + $0x7f0] ss:$28 sps:$4 sm:$0xff]   ;;  %v13909_v39 = vld [vmem:[#allocation21 + $0xa60] ss:$28 sps:$4 sm:$0xff]  }
 0x921   :  { %10417 = vmatmul.mubr.bf16.gmra.mrb[192].mxu1 %v20055_v15  ;;  %10055 = vmatprep.subr.bf16.mxu0 %v13858_v37  ;;  %v13870_v37 = vld [vmem:[#allocation21 + $0x828] ss:$28 sps:$4 sm:$0xff]  }
 0x922   :  { %10424 = vmatprep.mubr.bf16.mxu1 %v20056_v35  ;;  %12516 = vmatpush3.bf16.msra.mxu1 %v13882_v20  ;;  %v20059_v20 = vld [vmem:[#allocation58_spill] sm:$0xff] }
 0x923   :  { %12517 = vmatprep.subr.bf16.mxu1 %v13889_v60  ;;  %v13877_v60 = vld [vmem:[#allocation21 + $0x864] ss:$28 sps:$4 sm:$0xff]  }
 0x924   :  { %10056 = vmatpush1.bf16.msra.mxu0 %v13856_v31  ;;  %v20060_v31 = vld [vmem:[#allocation64_spill] sm:$0xff] }
 0x925   :  { %10057 = vmatprep.subr.bf16.mxu0 %v13861_v13  ;;  %v13929_v13 = vld [vmem:[#allocation21 + $0xc58] ss:$28 sps:$4 sm:$0xff]  }
 0x926   :  { %12518 = vmatpush3.bf16.msra.mxu1 %v13890_v18  ;;  %v13880_v18 = vld [vmem:[#allocation21 + $0x89c] ss:$28 sps:$4 sm:$0xff]  }
 0x927   :  { %9983 = vmatmul.mubr.bf16.gmra.mrb[148].mxu0 %v20055_v15  ;;  %12519 = vmatprep.subr.bf16.mxu1 %v13894_v14  ;;  %v13910_v15 = vld [vmem:[#allocation21 + $0x8a0] ss:$28 sps:$4 sm:$0xff]   ;;  %v13878_v14 = vld [vmem:[#allocation21 + $0x898] ss:$28 sps:$4 sm:$0xff]  }
 0x928   :  { %10058 = vmatpush1.bf16.msra.mxu0 %v13859_v22  ;;  %9992 = vmatprep.mubr.bf16.mxu0 %v20056_v35  ;;  %v13875_v35 = vld [vmem:[#allocation21 + $0x860] ss:$28 sps:$4 sm:$0xff]   ;;  %v13885_v22 = vld [vmem:[#allocation21 + $0x8d4] ss:$28 sps:$4 sm:$0xff]  }
 0x929   :  { %10425 = vmatmul.mubr.bf16.gmra.mrb[196].mxu1 %v20057_v10  ;;  %10059 = vmatprep.subr.bf16.mxu0 %v13864_v2  ;;  %v13883_v2 = vld [vmem:[#allocation21 + $0x8d0] ss:$28 sps:$4 sm:$0xff]  }
 0x92a   :  { %10432 = vmatprep.mubr.bf16.mxu1 %v20058_v61  ;;  %12520 = vmatpush3.bf16.msra.mxu1 %v13895_v45  ;;  %v13888_v45 = vld [vmem:[#allocation21 + $0x90c] ss:$28 sps:$4 sm:$0xff]  }
 0x92b   :  { %12521 = vmatprep.subr.bf16.mxu1 %v13899_v26  ;;  %v13886_v26 = vld [vmem:[#allocation21 + $0x908] ss:$28 sps:$4 sm:$0xff]  }
 0x92c   :  { %10060 = vmatpush1.bf16.msra.mxu0 %v13862_v57  ;;  %v13893_v57 = vld [vmem:[#allocation21 + $0x944] ss:$28 sps:$4 sm:$0xff]  }
 0x92d   :  { %10061 = vmatprep.subr.bf16.mxu0 %v13869_v9  ;;  %v13898_v9 = vld [vmem:[#allocation21 + $0x97c] ss:$28 sps:$4 sm:$0xff]  }
 0x92e   :  { %12522 = vmatpush3.bf16.msra.mxu1 %v13900_v43  ;;  %v13908_v43 = vld [vmem:[#allocation21 + $0x9ec] ss:$28 sps:$4 sm:$0xff]  }
 0x92f   :  { %9993 = vmatmul.mubr.bf16.gmra.mrb[152].mxu0 %v20057_v10  ;;  %12523 = vmatprep.subr.bf16.mxu1 %v13904_v53  ;;  %v13891_v10 = vld [vmem:[#allocation21 + $0x940] ss:$28 sps:$4 sm:$0xff]  }
 0x930   :  { %10062 = vmatpush1.bf16.msra.mxu0 %v13867_v48  ;;  %10002 = vmatprep.mubr.bf16.mxu0 %v20058_v61  ;;  %v13901_v61 = vld [vmem:[#allocation21 + $0x9b0] ss:$28 sps:$4 sm:$0xff]   ;;  %v13911_v53 = vld [vmem:[#allocation21 + $0xa20] ss:$28 sps:$4 sm:$0xff]  }
 0x931   :  { %10433 = vmatmul.mubr.bf16.gmra.mrb[200].mxu1 %v20059_v20  ;;  %10063 = vmatprep.subr.bf16.mxu0 %v13872_v19  ;;  %v13916_v48 = vld [vmem:[#allocation21 + $0xa5c] ss:$28 sps:$4 sm:$0xff]  }
 0x932   :  { %10440 = vmatprep.mubr.bf16.mxu1 %v20060_v31  ;;  %12524 = vmatpush3.bf16.msra.mxu1 %v13905_v36  ;;  %v13930_v19 = vld [vmem:[#allocation21 + $0xa98] ss:$28 sps:$4 sm:$0xff]   ;;  %v13937_v36 = vld [vmem:[#allocation21 + $0xc90] ss:$28 sps:$4 sm:$0xff]  }
 0x933   :  { %12525 = vmatprep.subr.bf16.mxu1 %v13909_v39  ;;  %v13938_v39 = vld [vmem:[#allocation21 + $0xad0] ss:$28 sps:$4 sm:$0xff]  }
 0x934   :  { %10064 = vmatpush1.bf16.msra.mxu0 %v13870_v37  ;;  %v13945_v37 = vld [vmem:[#allocation21 + $0xcc8] ss:$28 sps:$4 sm:$0xff]  }
 0x935   :  { %10065 = vmatprep.subr.bf16.mxu0 %v13877_v60  ;;  %v13922_v60 = vld [vmem:[#allocation21 + $0xacc] ss:$28 sps:$4 sm:$0xff]  }
 0x936   :  { %12526 = vmatpush3.bf16.msra.mxu1 %v13910_v15  ;;  %v13925_v15 = vld [vmem:[#allocation21 + $0xb04] ss:$28 sps:$4 sm:$0xff]  }
 0x937   :  { %10003 = vmatmul.mubr.bf16.gmra.mrb[156].mxu0 %v20059_v20  ;;  %12575 = vmatprep.subr.bf16.mxu1 %v13929_v13  ;;  %v13917_v20 = vld [vmem:[#allocation21 + $0xa90] ss:$28 sps:$4 sm:$0xff]   ;;  %v13954_v13 = vld [vmem:[#allocation21 + $0xb40] ss:$28 sps:$4 sm:$0xff]  }
 0x938   :  { %10066 = vmatpush1.bf16.msra.mxu0 %v13875_v35  ;;  %10012 = vmatprep.mubr.bf16.mxu0 %v20060_v31  ;;  %v13920_v31 = vld [vmem:[#allocation21 + $0xac8] ss:$28 sps:$4 sm:$0xff]   ;;  %v13958_v35 = vld [vmem:[#allocation21 + $0xd38] ss:$28 sps:$4 sm:$0xff]  }
 0x939   :  { %10441 = vmatmul.mubr.bf16.gmra.mrb[204].mxu1 %v17675_v6  ;;  %10067 = vmatprep.subr.bf16.mxu0 %v13880_v18  ;;  %v13923_v18 = vld [vmem:[#allocation21 + $0xb00] ss:$28 sps:$4 sm:$0xff]  }
 0x93a   :  { %10448 = vmatprep.mubr.bf16.mxu1 %v17680_v52 }
 0x93c   :  { %10068 = vmatpush1.bf16.msra.mxu0 %v13878_v14  ;;  %v13959_v14 = vld [vmem:[#allocation21 + $0xb78] ss:$28 sps:$4 sm:$0xff]  }
 0x93d   :  { %10069 = vmatprep.subr.bf16.mxu0 %v13885_v22  ;;  %v13926_v22 = vld [vmem:[#allocation21 + $0xb38] ss:$28 sps:$4 sm:$0xff]  }
 0x93f   :  { %10013 = vmatmul.mubr.bf16.gmra.mrb[160].mxu0 %v17675_v6  ;;  %v13896_v6 = vld [vmem:[#allocation21 + $0x978] ss:$28 sps:$4 sm:$0xff]  }
 0x940   :  { %10070 = vmatpush1.bf16.msra.mxu0 %v13883_v2  ;;  %10022 = vmatprep.mubr.bf16.mxu0 %v17680_v52  ;;  %v13903_v52 = vld [vmem:[#allocation21 + $0x9b4] ss:$28 sps:$4 sm:$0xff]  }
 0x941   :  { %10449 = vmatmul.mubr.bf16.gmra.mrb[208].mxu1 %v17694_v29  ;;  %10071 = vmatprep.subr.bf16.mxu0 %v13888_v45  ;;  %v13933_v2 = vld [vmem:[#allocation21 + $0xb74] ss:$28 sps:$4 sm:$0xff]  }
 0x942   :  { %10456 = vmatprep.mubr.bf16.mxu1 %v17700_v8  ;;  %v13964_v45 = vld [vmem:[#allocation21 + $0xbb0] ss:$28 sps:$4 sm:$0xff]  }
 0x944   :  { %10072 = vmatpush1.bf16.msra.mxu0 %v13886_v26  ;;  %v13968_v26 = vld [vmem:[#allocation21 + $0xda8] ss:$28 sps:$4 sm:$0xff]  }
 0x945   :  { %10073 = vmatprep.subr.bf16.mxu0 %v13893_v57  ;;  %v6582_v57 = vld [vmem:[#allocation22] sm:$0xff] }
 0x947   :  { %10023 = vmatmul.mubr.bf16.gmra.mrb[164].mxu0 %v17694_v29  ;;  %v13906_v29 = vld [vmem:[#allocation21 + $0x9e8] ss:$28 sps:$4 sm:$0xff]  }
 0x948   :  { %10074 = vmatpush1.bf16.msra.mxu0 %v13891_v10  ;;  %10032 = vmatprep.mubr.bf16.mxu0 %v17700_v8  ;;  %v13913_v8 = vld [vmem:[#allocation21 + $0xa24] ss:$28 sps:$4 sm:$0xff]   ;;  %v13931_v10 = vld [vmem:[#allocation21 + $0xb70] ss:$28 sps:$4 sm:$0xff]  }
 0x949   :  { %10457 = vmatmul.mubr.bf16.gmra.mrb[212].mxu1 %v17714_v23  ;;  %10075 = vmatprep.subr.bf16.mxu0 %v13898_v9  ;;  %v13969_v9 = vld [vmem:[#allocation21 + $0xbe8] ss:$28 sps:$4 sm:$0xff]  }
 0x94a   :  { %10464 = vmatprep.mubr.bf16.mxu1 %v17720_v34 }
 0x94c   :  { %10076 = vmatpush1.bf16.msra.mxu0 %v13896_v6 }
 0x94d   :  { %10077 = vmatprep.subr.bf16.mxu0 %v13903_v52  ;;  %v13973_v52 = vld [vmem:[#allocation21 + $0xde0] ss:$28 sps:$4 sm:$0xff]  }
 0x94f   :  { %10033 = vmatmul.mubr.bf16.gmra.mrb[168].mxu0 %v17714_v23  ;;  %v13914_v23 = vld [vmem:[#allocation21 + $0xa58] ss:$28 sps:$4 sm:$0xff]  }
 0x950   :  { %10078 = vmatpush1.bf16.msra.mxu0 %v13901_v61  ;;  %10042 = vmatprep.mubr.bf16.mxu0 %v17720_v34  ;;  %v13919_v34 = vld [vmem:[#allocation21 + $0xa94] ss:$28 sps:$4 sm:$0xff]   ;;  %v20062_v61 = vld [vmem:[#allocation35_spill] sm:$0xff] }
 0x951   :  { %10465 = vmatmul.mubr.bf16.gmra.mrb[216].mxu1 %v17724_v59  ;;  %10079 = vmatprep.subr.bf16.mxu0 %v13908_v43  ;;  %v18152_v43 = vrot.slane %v6582_v57, %v20062_v61 }
 0x952   :  { %10505 = vmatprep.mubr.bf16.mxu1 %v17738_v51 }
 0x954   :  { %10080 = vmatpush1.bf16.msra.mxu0 %v13906_v29  ;;  %v13934_v29 = vld [vmem:[#allocation21 + $0xba8] ss:$28 sps:$4 sm:$0xff]  }
 0x955   :  { %10081 = vmatprep.subr.bf16.mxu0 %v13913_v8  ;;  %v20063_v8 = vld [vmem:[#allocation78_spill] sm:$0xff] }
 0x957   :  { %10043 = vmatmul.mubr.bf16.gmra.mrb[172].mxu0 %v17724_v59  ;;  %v13946_v59 = vld [vmem:[#allocation21 + $0xb08] ss:$28 sps:$4 sm:$0xff]  }
 0x958   :  { %10082 = vmatpush1.bf16.msra.mxu0 %v13911_v53  ;;  %10085 = vmatprep.mubr.bf16.mxu0 %v17738_v51  ;;  %v13953_v51 = vld [vmem:[#allocation21 + $0xd00] ss:$28 sps:$4 sm:$0xff]   ;;  %v18156_v53 = vrot.slane %v6582_v57, %v20063_v8 }
 0x959   :  { %10506 = vmatmul.mubr.bf16.vlgmr.msra.gmra.mrb[220].mxu1 %v17742_v24  ;;  %10083 = vmatprep.subr.bf16.mxu0 %v13916_v48  ;;  %v13941_v48 = vld [vmem:[#allocation21 + $0xbe4] ss:$28 sps:$4 sm:$0xff]  }
 0x95a   :  { %10513 = vmatprep.mubr.bf16.mxu1 %v17759_v27  ;;  %12576 = vmatpush3.bf16.msra.mxu1 %v13930_v19 }
 0x95b   :  { %12577 = vmatprep.subr.bf16.mxu1 %v13937_v36 }
 0x95c   :  { %10084 = vmatpush1.bf16.msra.mxu0 %v13914_v23  ;;  %v13974_v23 = vld [vmem:[#allocation21 + $0xc20] ss:$28 sps:$4 sm:$0xff]  }
 0x95d   :  { %10166 = vmatprep.subr.bf16.mxu0 %v13919_v34 }
 0x95e   :  { %12578 = vmatpush3.bf16.msra.mxu1 %v13938_v39 }
 0x95f   :  { %10086 = vmatmul.mubr.bf16.vlgmr.msra.gmra.mrb[144].mxu0 %v17742_v24  ;;  %12579 = vmatprep.subr.bf16.mxu1 %v13945_v37  ;;  %v13928_v24 = vld [vmem:[#allocation21 + $0xb3c] ss:$28 sps:$4 sm:$0xff]  }
 0x960   :  { %10167 = vmatpush1.bf16.msra.mxu0 %v13917_v20  ;;  %10095 = vmatprep.mubr.bf16.mxu0 %v17759_v27  ;;  %v13963_v27 = vld [vmem:[#allocation21 + $0xd70] ss:$28 sps:$4 sm:$0xff]  }
 0x961   :  { %10514 = vmatmul.mubr.bf16.gmra.mrb[224].mxu1 %v17764_v62  ;;  %10168 = vmatprep.subr.bf16.mxu0 %v13922_v60  ;;  %v13939_v60 = vld [vmem:[#allocation21 + $0xbe0] ss:$28 sps:$4 sm:$0xff]  }
 0x962   :  { %10521 = vmatprep.mubr.bf16.mxu1 %v17773_v4  ;;  %12580 = vmatpush3.bf16.msra.mxu1 %v13946_v59 }
 0x963   :  { %12581 = vmatprep.subr.bf16.mxu1 %v13953_v51 }
 0x964   :  { %10169 = vmatpush1.bf16.msra.mxu0 %v13920_v31 }
 0x965   :  { %10170 = vmatprep.subr.bf16.mxu0 %v13925_v15 }
 0x966   :  { %12582 = vmatpush3.bf16.msra.mxu1 %v13954_v13 }
 0x967   :  { %10096 = vmatmul.mubr.bf16.gmra.mrb[148].mxu0 %v17764_v62  ;;  %12583 = vmatprep.subr.bf16.mxu1 %v13958_v35  ;;  %v13936_v62 = vld [vmem:[#allocation21 + $0xbac] ss:$28 sps:$4 sm:$0xff]   ;;  %v13944_v35 = vld [vmem:[#allocation21 + $0xc1c] ss:$28 sps:$4 sm:$0xff]  }
 0x968   :  { %10171 = vmatpush1.bf16.msra.mxu0 %v13923_v18  ;;  %10105 = vmatprep.mubr.bf16.mxu0 %v17773_v4  ;;  %v20061_v4 = vld [vmem:[#allocation33_spill] sm:$0xff] }
 0x969   :  { %10522 = vmatmul.mubr.bf16.gmra.mrb[228].mxu1 %v17781_v11  ;;  %10172 = vmatprep.subr.bf16.mxu0 %v13928_v24  ;;  %v18149_v6 = vrot.slane %v6582_v57, %v20061_v4 }
 0x96a   :  { %10529 = vmatprep.mubr.bf16.mxu1 %v17790_v21  ;;  %12584 = vmatpush3.bf16.msra.mxu1 %v13959_v14 }
 0x96b   :  { %12585 = vmatprep.subr.bf16.mxu1 %v13963_v27 }
 0x96c   :  { %10173 = vmatpush1.bf16.msra.mxu0 %v13926_v22 }
 0x96d   :  { %10174 = vmatprep.subr.bf16.mxu0 %v13933_v2 }
 0x96e   :  { %12586 = vmatpush3.bf16.msra.mxu1 %v13964_v45 }
 0x96f   :  { %10106 = vmatmul.mubr.bf16.gmra.mrb[152].mxu0 %v17781_v11  ;;  %12587 = vmatprep.subr.bf16.mxu1 %v13968_v26  ;;  %v20064_v11 = vld [vmem:[#allocation82_spill] sm:$0xff] }
 0x970   :  { %10175 = vmatpush1.bf16.msra.mxu0 %v13931_v10  ;;  %10115 = vmatprep.mubr.bf16.mxu0 %v17790_v21  ;;  %v18160_v19 = vrot.slane %v6582_v57, %v20064_v11 }
 0x971   :  { %10530 = vmatmul.mubr.bf16.gmra.mrb[232].mxu1 %v17799_v55  ;;  %10176 = vmatprep.subr.bf16.mxu0 %v13936_v62  ;;  %v13942_v62 = vld [vmem:[#allocation21 + $0xc18] ss:$28 sps:$4 sm:$0xff]  }
 0x972   :  { %10537 = vmatprep.mubr.bf16.mxu1 %v17808_v16  ;;  %v9296_v36 = vpop.f32.mrb[112].mxu0  ;;  %12588 = vmatpush3.bf16.msra.mxu1 %v13969_v9 }
 0x973   :  { %v12679_v34 = vadd.f32 %v9296_v36, %v18149_v6  ;;  %v9298_v39 = vpop.f32.mrb[113].mxu0  ;;  %12589 = vmatprep.subr.bf16.mxu1 %v13973_v52  ;;  %v13949_v52 = vld [vmem:[#allocation21 + $0xc54] ss:$28 sps:$4 sm:$0xff]  }
 0x974   :  { %v9748_v21 = vpop.f32.mrb[128].mxu1  ;;  %v12680_v37 = vadd.f32 %v9298_v39, %v18152_v43  ;;  %10177 = vmatpush1.bf16.msra.mxu0 %v13934_v29  ;;  %v9300_v20 = vpop.f32.mrb[114].mxu0  ;;  %v13947_v36 = vld [vmem:[#allocation21 + $0xc50] ss:$28 sps:$4 sm:$0xff]  }
 0x975   :  { %v12259_v59 = vmul.f32 -1.442695, %v12679_v34  ;;  %v12711_v51 = vadd.f32 %v9748_v21, %v18156_v53  ;;  %v9750_v31 = vpop.f32.mrb[129].mxu1  ;;  %v12681_v15 = vadd.f32 %v9300_v20, %v18149_v6  ;;  %v9302_v13 = vpop.f32.mrb[115].mxu0  ;;  %10178 = vmatprep.subr.bf16.mxu0 %v13941_v48  ;;  %v13952_v20 = vld [vmem:[#allocation21 + $0xc8c] ss:$28 sps:$4 sm:$0xff]  }
 0x976   :  { %v12260_v18 = vmul.f32 -1.442695, %v12680_v37  ;;  %v12712_v24 = vadd.f32 %v9750_v31, %v18160_v19  ;;  %v9752_v14 = vpop.f32.mrb[130].mxu1  ;;  %v12682_v27 = vadd.f32 %v9302_v13, %v18152_v43  ;;  %12590 = vmatpush3.bf16.msra.mxu1 %v13974_v23 }
 0x977   :  { %14011 = vpow2.f32 %v12259_v59  ;;  %v12261_v22 = vmul.f32 -1.442695, %v12711_v51  ;;  %v12266_v2 = vmul.f32 -1.442695, %v12681_v15  ;;  %v12713_v45 = vadd.f32 %v9752_v14, %v18156_v53  ;;  %v9754_v26 = vpop.f32.mrb[131].mxu1  ;;  %10116 = vmatmul.mubr.bf16.gmra.mrb[156].mxu0 %v17799_v55 }
 0x978   :  { %14013 = vpow2.f32 %v12260_v18  ;;  %v12262_v57 = vmul.f32 -1.442695, %v12712_v24  ;;  %v12714_v10 = vadd.f32 %v9754_v26, %v18160_v19  ;;  %10179 = vmatpush1.bf16.msra.mxu0 %v13939_v60  ;;  %10125 = vmatprep.mubr.bf16.mxu0 %v17808_v16  ;;  %v12267_v4 = vmul.f32 -1.442695, %v12682_v27  ;;  %v13950_v18 = vld [vmem:[#allocation21 + $0xc88] ss:$28 sps:$4 sm:$0xff]  }
 0x979   :  { %14015 = vpow2.f32 %v12261_v22  ;;  %v12268_v9 = vmul.f32 -1.442695, %v12713_v45  ;;  %10538 = vmatmul.mubr.bf16.gmra.mrb[236].mxu1 %v17814_v49  ;;  %10180 = vmatprep.subr.bf16.mxu0 %v13944_v35  ;;  %v13957_v14 = vld [vmem:[#allocation21 + $0xcc4] ss:$28 sps:$4 sm:$0xff]  }
 0x97a   :  { %14017 = vpow2.f32 %v12262_v57  ;;  %v12269_v61 = vmul.f32 -1.442695, %v12714_v10  ;;  %10545 = vmatprep.mubr.bf16.mxu1 %v17828_v42  ;;  %v9306_v55 = vpop.f32.mrb[116].mxu0 }
 0x97b   :  { %14019 = vpow2.f32 %v12266_v2  ;;  %v12683_v29 = vadd.f32 %v9306_v55, %v18149_v6  ;;  %v9308_v8 = vpop.f32.mrb[117].mxu0 }
 0x97c   :  { %14021 = vpow2.f32 %v12268_v9  ;;  %v9758_v48 = vpop.f32.mrb[132].mxu1  ;;  %v12684_v16 = vadd.f32 %v9308_v8, %v18152_v43  ;;  %10181 = vmatpush1.bf16.msra.mxu0 %v13942_v62  ;;  %v9310_v11 = vpop.f32.mrb[118].mxu0  ;;  %v13955_v9 = vld [vmem:[#allocation21 + $0xcc0] ss:$28 sps:$4 sm:$0xff]  }
 0x97d   :  { %14023 = vpow2.f32 %v12267_v4  ;;  %v12273_v23 = vmul.f32 -1.442695, %v12683_v29  ;;  %v12715_v34 = vadd.f32 %v9758_v48, %v18156_v53  ;;  %v9760_v39 = vpop.f32.mrb[133].mxu1  ;;  %v12685_v21 = vadd.f32 %v9310_v11, %v18149_v6  ;;  %v18179_v37 = vpop.f32.mrb[119].mxu0  ;;  %10182 = vmatprep.subr.bf16.mxu0 %v13949_v52  ;;  %v13962_v29 = vld [vmem:[#allocation21 + $0xcfc] ss:$28 sps:$4 sm:$0xff]  }
 0x97e   :  { %14025 = vpow2.f32 %v12269_v61  ;;  %v12274_v60 = vmul.f32 -1.442695, %v12684_v16  ;;  %v12716_v59 = vadd.f32 %v9760_v39, %v18160_v19  ;;  %v9762_v51 = vpop.f32.mrb[134].mxu1 }
 0x97f   :  { %14027 = vpow2.f32 %v12273_v23  ;;  %v12275_v31 = vmul.f32 -1.442695, %v12715_v34  ;;  %v12280_v15 = vmul.f32 -1.442695, %v12685_v21  ;;  %v18182_v13 = vpop.f32.mrb[135].mxu1  ;;  %10126 = vmatmul.mubr.bf16.gmra.mrb[160].mxu0 %v17814_v49 }
 0x980   :  { %14029 = vpow2.f32 %v12274_v60  ;;  %v12276_v35 = vmul.f32 -1.442695, %v12716_v59  ;;  %10183 = vmatpush1.bf16.msra.mxu0 %v13947_v36  ;;  %10135 = vmatprep.mubr.bf16.mxu0 %v17828_v42  ;;  %v13960_v21 = vld [vmem:[#allocation21 + $0xcf8] ss:$28 sps:$4 sm:$0xff]   ;;  %v12717_v59 = vadd.f32 %v9762_v51, %v18156_v53  ;;  %v12718_v51 = vadd.f32 %v18182_v13, %v18160_v19 }
 0x981   :  { %v14012_v24 = vpop.eup %14011  ;;  %14031 = vpow2.f32 %v12275_v31  ;;  %10546 = vmatmul.mubr.bf16.gmra.mrb[240].mxu1 %v17834_v32  ;;  %10184 = vmatprep.subr.bf16.mxu0 %v13952_v20  ;;  %v13967_v31 = vld [vmem:[#allocation21 + $0xd34] ss:$28 sps:$4 sm:$0xff]  }
 0x982   :  { %v14014_v27 = vpop.eup %14013  ;;  %v11003_v22 = vadd.f32 1.0, %v14012_v24  ;;  %14033 = vpow2.f32 %v12276_v35  ;;  %10553 = vmatprep.mubr.bf16.mxu1 %v17845_v47  ;;  %v9316_v2 = vpop.f32.mrb[120].mxu0 }
 0x983   :  { %v14016_v45 = vpop.eup %14015  ;;  %v11004_v49 = vadd.f32 1.0, %v14014_v27  ;;  %14035 = vpow2.f32 %v12280_v15  ;;  %v18188_v26 = vpop.f32.mrb[121].mxu0  ;;  %v13965_v27 = vld [vmem:[#allocation21 + $0xd30] ss:$28 sps:$4 sm:$0xff]  }
 0x984   :  { %v14018_v57 = vpop.eup %14017  ;;  %14037 = vrcp.f32 %v11003_v22  ;;  %v11005_v42 = vadd.f32 1.0, %v14016_v45  ;;  %v9768_v10 = vpop.f32.mrb[136].mxu1  ;;  %10185 = vmatpush1.bf16.msra.mxu0 %v13950_v18 }
 0x985   :  { %v18190_v62 = vpop.f32.mrb[122].mxu0  ;;  %v14020_v4 = vpop.eup %14019  ;;  %14039 = vrcp.f32 %v11004_v49  ;;  %v11006_v52 = vadd.f32 1.0, %v14018_v57  ;;  %10186 = vmatprep.subr.bf16.mxu0 %v13957_v14  ;;  %v12687_v49 = vadd.f32 %v9316_v2, %v18149_v6  ;;  %v12719_v13 = vadd.f32 %v9768_v10, %v18156_v53 }
 0x986   :  { %v18192_v61 = vpop.f32.mrb[137].mxu1  ;;  %v18194_v55 = vpop.f32.mrb[123].mxu0  ;;  %14041 = vrcp.f32 %v11005_v42  ;;  %v11010_v48 = vadd.f32 1.0, %v14020_v4  ;;  %v13972_v42 = vld [vmem:[#allocation21 + $0xd6c] ss:$28 sps:$4 sm:$0xff]  }
 0x987   :  { %v14022_v8 = vpop.eup %14021  ;;  %v18196_v16 = vpop.f32.mrb[138].mxu1  ;;  %14043 = vrcp.f32 %v11006_v52  ;;  %10136 = vmatmul.mubr.bf16.gmra.mrb[164].mxu0 %v17834_v32  ;;  %v12686_v32 = vadd.f32 %v18179_v37, %v18152_v43  ;;  %v12282_v52 = vmul.f32 -1.442695, %v12717_v59  ;;  %v12283_v10 = vmul.f32 -1.442695, %v12718_v51 }
 0x988   :  { %v14024_v11 = vpop.eup %14023  ;;  %v11012_v36 = vadd.f32 1.0, %v14022_v8  ;;  %v18198_v23 = vpop.f32.mrb[139].mxu1  ;;  %14045 = vrcp.f32 %v11010_v48  ;;  %10187 = vmatpush1.bf16.msra.mxu0 %v13955_v9  ;;  %10145 = vmatprep.mubr.bf16.mxu0 %v17845_v47  ;;  %v12689_v59 = vadd.f32 %v18190_v62, %v18149_v6  ;;  %v12690_v62 = vadd.f32 %v18194_v55, %v18152_v43 }
 0x989   :  { %v14026_v34 = vpop.eup %14025  ;;  %v11011_v39 = vadd.f32 1.0, %v14024_v11  ;;  %10554 = vmatmul.mubr.bf16.gmra.mrb[244].mxu1 %v17853_v40  ;;  %10188 = vmatprep.subr.bf16.mxu0 %v13962_v29  ;;  %v12281_v11 = vmul.f32 -1.442695, %v12686_v32  ;;  %v12722_v51 = vadd.f32 %v18198_v23, %v18160_v19 }
 0x98a   :  { %v14028_v20 = vpop.eup %14027  ;;  %14047 = vrcp.f32 %v11012_v36  ;;  %v11013_v60 = vadd.f32 1.0, %v14026_v34  ;;  %10561 = vmatprep.mubr.bf16.mxu1 %v17860_v54  ;;  %v18207_v18 = vpop.f32.mrb[124].mxu0  ;;  %v12688_v36 = vadd.f32 %v18188_v26, %v18152_v43  ;;  %v12287_v26 = vmul.f32 -1.442695, %v12687_v49 }
 0x98b   :  { %v14030_v15 = vpop.eup %14029  ;;  %14049 = vrcp.f32 %v11011_v39  ;;  %v11017_v35 = vadd.f32 1.0, %v14028_v20  ;;  %v18211_v14 = vpop.f32.mrb[125].mxu0  ;;  %v12294_v55 = vmul.f32 -1.442695, %v12689_v59 }
 0x98c   :  { %v14032_v47 = vpop.eup %14031  ;;  %14051 = vrcp.f32 %v11013_v60  ;;  %v11018_v24 = vadd.f32 1.0, %v14030_v15  ;;  %v18214_v57 = vpop.f32.mrb[140].mxu1  ;;  %10189 = vmatpush1.bf16.msra.mxu0 %v13960_v21  ;;  %v12720_v21 = vadd.f32 %v18192_v61, %v18160_v19  ;;  %v12721_v61 = vadd.f32 %v18196_v16, %v18156_v53 }
 0x98d   :  { %v14034_v22 = vpop.eup %14033  ;;  %14053 = vrcp.f32 %v11017_v35  ;;  %v11019_v45 = vadd.f32 1.0, %v14032_v47  ;;  %v18216_v37 = vpop.f32.mrb[126].mxu0  ;;  %10190 = vmatprep.subr.bf16.mxu0 %v13967_v31  ;;  %v13970_v31 = vld [vmem:[#allocation21 + $0xd68] ss:$28 sps:$4 sm:$0xff]  }
 0x98e   :  { %v14036_v9 = vpop.eup %14035  ;;  %14055 = vrcp.f32 %v11018_v24  ;;  %v11020_v4 = vadd.f32 1.0, %v14034_v22  ;;  %v18219_v29 = vpop.f32.mrb[141].mxu1  ;;  %v13977_v35 = vld [vmem:[#allocation21 + $0xda4] ss:$28 sps:$4 sm:$0xff]   ;;  %v12290_v16 = vmul.f32 -1.442695, %v12720_v21 }
 0x98f   :  { %v18221_v8 = vpop.f32.mrb[127].mxu0  ;;  %v14038_v48 = vpop.eup %14037  ;;  %14057 = vrcp.f32 %v11019_v45  ;;  %v11024_v2 = vadd.f32 1.0, %v14036_v9  ;;  %10146 = vmatmul.mubr.bf16.gmra.mrb[168].mxu0 %v17853_v40  ;;  %v12289_v40 = vmul.f32 -1.442695, %v12719_v13  ;;  %v12691_v45 = vadd.f32 %v18207_v18, %v18149_v6  ;;  %v13975_v9 = vld [vmem:[#allocation21 + $0xda0] ss:$28 sps:$4 sm:$0xff]  }
 0x990   :  { %v18225_v34 = vpop.f32.mrb[142].mxu1  ;;  %v14040_v39 = vpop.eup %14039  ;;  %11339 = vst [vmem:[%s19041_s15] sm:$0xff] %v14038_v48  ;;  %14059 = vrcp.f32 %v11020_v4  ;;  %10191 = vmatpush1.bf16.msra.mxu0 %v13965_v27  ;;  %10155 = vmatprep.mubr.bf16.mxu0 %v17860_v54  ;;  %v12288_v54 = vmul.f32 -1.442695, %v12688_v36  ;;  %v12296_v23 = vmul.f32 -1.442695, %v12721_v61 }
 0x991   :  { %v18232_v20 = vpop.f32.mrb[143].mxu1  ;;  %v14042_v60 = vpop.eup %14041  ;;  %11340 = vst [vmem:[%s19041_s15 + $0x8] sm:$0xff] %v14040_v39  ;;  %14061 = vrcp.f32 %v11024_v2  ;;  %10562 = vmatmul.mubr.bf16.gmra.mrb[248].mxu1 %v17868_v25  ;;  %10192 = vmatprep.subr.bf16.mxu0 %v13972_v42  ;;  %v13980_v18 = vld [vmem:[#allocation21 + $0xddc] ss:$28 sps:$4 sm:$0xff]  }
 0x992   :  { %v14044_v15 = vpop.eup %14043  ;;  %11341 = vst [vmem:[%s19041_s15 + $0x10] sm:$0xff] %v14042_v60  ;;  %14063 = vpow2.f32 %v12282_v52  ;;  %10602 = vmatprep.mubr.bf16.mxu1 %v17880_v50  ;;  %v18253_v47 = vpop.f32.mrb[128].mxu0  ;;  %v12723_v52 = vadd.f32 %v18214_v57, %v18156_v53  ;;  %v12297_v57 = vmul.f32 -1.442695, %v12722_v51 }
 0x993   :  { %v14046_v32 = vpop.eup %14045  ;;  %11342 = vst [vmem:[%s19041_s15 + $0x18] sm:$0xff] %v14044_v15  ;;  %14065 = vpow2.f32 %v12281_v11  ;;  %v18260_v27 = vpop.f32.mrb[129].mxu0  ;;  %v12295_v11 = vmul.f32 -1.442695, %v12690_v62 }
 0x994   :  { %v14048_v24 = vpop.eup %14047  ;;  %11346 = vst [vmem:[%s19041_s15 + $0x38] sm:$0xff] %v14046_v32  ;;  %14067 = vpow2.f32 %v12283_v10  ;;  %v18267_v49 = vpop.f32.mrb[144].mxu1  ;;  %10193 = vmatpush1.bf16.msra.mxu0 %v13970_v31  ;;  %v13978_v31 = vld [vmem:[#allocation21 + $0xdd8] ss:$28 sps:$4 sm:$0xff]  }
 0x995   :  { %v14050_v22 = vpop.eup %14049  ;;  %11348 = vst [vmem:[%s19041_s15 + $0x48] sm:$0xff] %v14048_v24  ;;  %14069 = vpow2.f32 %v12287_v26  ;;  %v18269_v42 = vpop.f32.mrb[130].mxu0  ;;  %10194 = vmatprep.subr.bf16.mxu0 %v13977_v35  ;;  %v12301_v26 = vmul.f32 -1.442695, %v12691_v45  ;;  %v12692_v24 = vadd.f32 %v18211_v14, %v18152_v43 }
 0x996   :  { %v14052_v4 = vpop.eup %14051  ;;  %11347 = vst [vmem:[%s19041_s15 + $0x40] sm:$0xff] %v14050_v22  ;;  %14071 = vpow2.f32 %v12289_v40  ;;  %v18276_v13 = vpop.f32.mrb[145].mxu1 }
 0x997   :  { %v9342_v48 = vpop.f32.mrb[131].mxu0  ;;  %v14054_v2 = vpop.eup %14053  ;;  %11349 = vst [vmem:[%s19041_s15 + $0x50] sm:$0xff] %v14052_v4  ;;  %14073 = vpow2.f32 %v12288_v54  ;;  %10156 = vmatmul.mubr.bf16.gmra.mrb[172].mxu0 %v17868_v25  ;;  %v12303_v25 = vmul.f32 -1.442695, %v12723_v52  ;;  %v14459_v52 = vld [vmem:[#allocation21 + $0x1d8] ss:$28 sps:$4 sm:$0xff]  }
 0x998   :  { %v18281_v36 = vpop.f32.mrb[146].mxu1  ;;  %v18284_v39 = vadd.f32 %v9342_v48, %v18152_v43  ;;  %v14056_v10 = vpop.eup %14055  ;;  %11353 = vst [vmem:[%s19041_s15 + $0x70] sm:$0xff] %v14054_v2  ;;  %14075 = vpow2.f32 %v12290_v16  ;;  %10195 = vmatpush1.bf16.msra.mxu0 %v13975_v9  ;;  %10198 = vmatprep.mubr.bf16.mxu0 %v17880_v50 }
 0x999   :  { %v9794_v21 = vpop.f32.mrb[147].mxu1  ;;  %v14058_v60 = vpop.eup %14057  ;;  %11354 = vst [vmem:[%s19041_s15 + $0x78] sm:$0xff] %v14056_v10  ;;  %14077 = vpow2.f32 %v12294_v55  ;;  %10603 = vmatmul.mubr.bf16.vlgmr.msra.gmra.mrb[252].mxu1 %v17884_v12  ;;  %10196 = vmatprep.subr.bf16.mxu0 %v13980_v18 }
 0x99a   :  { %v18294_v59 = vadd.f32 %v9794_v21, %v18160_v19  ;;  %v14060_v15 = vpop.eup %14059  ;;  %11355 = vst [vmem:[%s19041_s15 + $0x80] sm:$0xff] %v14058_v60  ;;  %14079 = vpow2.f32 %v12296_v23  ;;  %10610 = vmatprep.mubr.bf16.mxu1 %v17898_v41  ;;  %v9346_v50 = vpop.f32.mrb[132].mxu0 }
 0x99b   :  { %v14062_v40 = vpop.eup %14061  ;;  %11356 = vst [vmem:[%s19041_s15 + $0x88] sm:$0xff] %v14060_v15  ;;  %14081 = vpow2.f32 %v12295_v11  ;;  %v18309_v35 = vadd.f32 %v9346_v50, %v18149_v6  ;;  %v9348_v32 = vpop.f32.mrb[133].mxu0  ;;  %v18328_v15 = vmul.f32 -1.442695, %v12692_v24  ;;  %v12725_v24 = vadd.f32 %v18225_v34, %v18156_v53 }
 0x99c   :  { %v14064_v61 = vpop.eup %14063  ;;  %11360 = vst [vmem:[%s19041_s15 + $0xa8] sm:$0xff] %v14062_v40  ;;  %14083 = vpow2.f32 %v12297_v57  ;;  %v9798_v16 = vpop.f32.mrb[148].mxu1  ;;  %v18314_v51 = vadd.f32 %v9348_v32, %v18152_v43  ;;  %10197 = vmatpush1.bf16.msra.mxu0 %v13978_v31  ;;  %v12724_v57 = vadd.f32 %v18219_v29, %v18160_v19  ;;  %v14460_v40 = vld [vmem:[#allocation21 + $0x18] ss:$28 sps:$4 sm:$0xff]   ;;  %v14461_v32 = vld [vmem:[#allocation21 + $0x210] ss:$28 sps:$4 sm:$0xff]   ;;  %v12694_v34 = vadd.f32 %v18221_v8, %v18152_v43 }
 0x99d   :  { %v14066_v54 = vpop.eup %14065  ;;  %v11026_v62 = vadd.f32 1.0, %v14064_v61  ;;  %14085 = vpow2.f32 %v12301_v26  ;;  %v9350_v22 = vpop.f32.mrb[134].mxu0  ;;  %v18317_v9 = vadd.f32 %v9798_v16, %v18156_v53  ;;  %12383 = vmatprep.subr.bf16.mxu0 %v14459_v52  ;;  %v12693_v61 = vadd.f32 %v18216_v37, %v18149_v6 }
 0x99e   :  { %v14068_v55 = vpop.eup %14067  ;;  %v11025_v45 = vadd.f32 1.0, %v14066_v54  ;;  %14087 = vpow2.f32 %v12303_v25  ;;  %v9800_v4 = vpop.f32.mrb[149].mxu1  ;;  %v18325_v21 = vadd.f32 %v9350_v22, %v18149_v6 }
 0x99f   :  { %v9352_v23 = vpop.f32.mrb[135].mxu0  ;;  %v14070_v48 = vpop.eup %14069  ;;  %14089 = vrcp.f32 %v11026_v62  ;;  %v11027_v18 = vadd.f32 1.0, %v14068_v55  ;;  %v18320_v14 = vadd.f32 %v9800_v4, %v18160_v19  ;;  %10199 = vmatmul.mubr.bf16.vlgmr.msra.gmra.mrb[144].mxu0 %v17884_v12  ;;  %v18346_v55 = vmul.f32 -1.442695, %v12724_v57 }
 0x9a0   :  { %v9802_v2 = vpop.f32.mrb[150].mxu1  ;;  %v14072_v11 = vpop.eup %14071  ;;  %14091 = vrcp.f32 %v11025_v45  ;;  %v11031_v10 = vadd.f32 1.0, %v14070_v48  ;;  %12384 = vmatpush3.bf16.msra.mxu0 %v14460_v40  ;;  %10208 = vmatprep.mubr.bf16.mxu0 %v17898_v41  ;;  %v18337_v12 = vadd.f32 %v9352_v23, %v18152_v43 }
 0x9a1   :  { %v9804_v60 = vpop.f32.mrb[151].mxu1  ;;  %v14074_v26 = vpop.eup %14073  ;;  %14093 = vrcp.f32 %v11027_v18  ;;  %v11033_v31 = vadd.f32 1.0, %v14072_v11  ;;  %v18331_v25 = vadd.f32 %v9802_v2, %v18156_v53  ;;  %10611 = vmatmul.mubr.bf16.gmra.mrb[0].mxu1 %v17904_v17  ;;  %12385 = vmatprep.subr.bf16.mxu0 %v14461_v32  ;;  %v14462_v11 = vld [vmem:[#allocation21 + $0x50] ss:$28 sps:$4 sm:$0xff]   ;;  %v12308_v32 = vmul.f32 -1.442695, %v12693_v61 }
 0x9a2   :  { %v14076_v50 = vpop.eup %14075  ;;  %14095 = vrcp.f32 %v11031_v10  ;;  %v11032_v29 = vadd.f32 1.0, %v14074_v26  ;;  %v18343_v41 = vadd.f32 %v9804_v60, %v18160_v19  ;;  %10618 = vmatprep.mubr.bf16.mxu1 %v17919_v46  ;;  %v9356_v16 = vpop.f32.mrb[136].mxu0  ;;  %v12726_v60 = vadd.f32 %v18232_v20, %v18160_v19 }
 0x9a3   :  { %v14078_v54 = vpop.eup %14077  ;;  %14097 = vrcp.f32 %v11033_v31  ;;  %v11034_v62 = vadd.f32 1.0, %v14076_v50  ;;  %v18349_v45 = vadd.f32 %v9356_v16, %v18149_v6  ;;  %v9358_v4 = vpop.f32.mrb[137].mxu0  ;;  %v14463_v50 = vld [vmem:[#allocation21 + $0x248] ss:$28 sps:$4 sm:$0xff]   ;;  %v12695_v20 = vadd.f32 %v18253_v47, %v18149_v6 }
 0x9a4   :  { %v14080_v37 = vpop.eup %14079  ;;  %14099 = vrcp.f32 %v11032_v29  ;;  %v11038_v22 = vadd.f32 1.0, %v14078_v54  ;;  %v9808_v48 = vpop.f32.mrb[152].mxu1  ;;  %v18354_v18 = vadd.f32 %v9358_v4, %v18152_v43  ;;  %12386 = vmatpush3.bf16.msra.mxu0 %v14462_v11  ;;  %v12310_v61 = vmul.f32 -1.442695, %v12725_v24  ;;  %v14464_v11 = vld [vmem:[#allocation21 + $0x88] ss:$28 sps:$4 sm:$0xff]  }
 0x9a5   :  { %v14082_v23 = vpop.eup %14081  ;;  %14101 = vrcp.f32 %v11034_v62  ;;  %v11040_v52 = vadd.f32 1.0, %v14080_v37  ;;  %v9360_v2 = vpop.f32.mrb[138].mxu0  ;;  %v18359_v26 = vadd.f32 %v9808_v48, %v18156_v53  ;;  %12387 = vmatprep.subr.bf16.mxu0 %v14463_v50  ;;  %v12315_v50 = vmul.f32 -1.442695, %v12695_v20  ;;  %v14466_v20 = vld [vmem:[#allocation21 + $0xc0] ss:$28 sps:$4 sm:$0xff]  }
 0x9a6   :  { %v14084_v10 = vpop.eup %14083  ;;  %14103 = vrcp.f32 %v11038_v22  ;;  %v11039_v57 = vadd.f32 1.0, %v14082_v23  ;;  %v9810_v31 = vpop.f32.mrb[153].mxu1  ;;  %v18367_v22 = vadd.f32 %v9360_v2, %v18149_v6 }
 0x9a7   :  { %v9362_v40 = vpop.f32.mrb[139].mxu0  ;;  %v14086_v8 = vpop.eup %14085  ;;  %14105 = vrcp.f32 %v11040_v52  ;;  %v11041_v29 = vadd.f32 1.0, %v14084_v10  ;;  %v18362_v54 = vadd.f32 %v9810_v31, %v18160_v19  ;;  %10209 = vmatmul.mubr.bf16.gmra.mrb[148].mxu0 %v17904_v17  ;;  %v12727_v17 = vadd.f32 %v18267_v49, %v18156_v53 }
 0x9a8   :  { %v9812_v62 = vpop.f32.mrb[154].mxu1  ;;  %v14088_v16 = vpop.eup %14087  ;;  %14107 = vrcp.f32 %v11039_v57  ;;  %v11045_v37 = vadd.f32 1.0, %v14086_v8  ;;  %10218 = vmatprep.mubr.bf16.mxu0 %v17919_v46  ;;  %12388 = vmatpush3.bf16.msra.mxu0 %v14464_v11  ;;  %v18380_v47 = vadd.f32 %v9362_v40, %v18152_v43  ;;  %v14465_v46 = vld [vmem:[#allocation21 + $0x280] ss:$28 sps:$4 sm:$0xff]   ;;  %v12309_v57 = vmul.f32 -1.442695, %v12694_v34 }
 0x9a9   :  { %v9814_v4 = vpop.f32.mrb[155].mxu1  ;;  %v14090_v23 = vpop.eup %14089  ;;  %14109 = vrcp.f32 %v11041_v29  ;;  %v11047_v52 = vadd.f32 1.0, %v14088_v16  ;;  %v18371_v48 = vadd.f32 %v9812_v62, %v18156_v53  ;;  %10619 = vmatmul.mubr.bf16.gmra.mrb[4].mxu1 %v17925_v7  ;;  %12389 = vmatprep.subr.bf16.mxu0 %v14465_v46  ;;  %v12311_v31 = vmul.f32 -1.442695, %v12726_v60  ;;  %v14467_v11 = vld [vmem:[#allocation21 + $0x2b8] ss:$28 sps:$4 sm:$0xff]  }
 0x9aa   :  { %v14092_v10 = vpop.eup %14091  ;;  %11362 = vst [vmem:[%s19041_s15 + $0xb8] sm:$0xff] %v14090_v23  ;;  %14111 = vrcp.f32 %v11045_v37  ;;  %v18383_v24 = vadd.f32 %v9814_v4, %v18160_v19  ;;  %10626 = vmatprep.mubr.bf16.mxu1 %v17929_v28  ;;  %v9366_v49 = vpop.f32.mrb[140].mxu0  ;;  %v12696_v8 = vadd.f32 %v18260_v27, %v18152_v43  ;;  %v12728_v60 = vadd.f32 %v18276_v13, %v18160_v19 }
 0x9ab   :  { %v14094_v2 = vpop.eup %14093  ;;  %11361 = vst [vmem:[%s19041_s15 + $0xb0] sm:$0xff] %v14092_v10  ;;  %14113 = vrcp.f32 %v11047_v52  ;;  %v18397_v29 = vadd.f32 %v9366_v49, %v18149_v6  ;;  %v9368_v62 = vpop.f32.mrb[141].mxu0 }
 0x9ac   :  { %v14096_v40 = vpop.eup %14095  ;;  %11363 = vst [vmem:[%s19041_s15 + $0xc0] sm:$0xff] %v14094_v2  ;;  %14115 = vpow2.f32 %v18328_v15  ;;  %v12697_v15 = vadd.f32 %v18269_v42, %v18149_v6  ;;  %v9818_v16 = vpop.f32.mrb[156].mxu1  ;;  %v18408_v27 = vadd.f32 %v9368_v62, %v18152_v43  ;;  %12390 = vmatpush3.bf16.msra.mxu0 %v14466_v20  ;;  %v12316_v49 = vmul.f32 -1.442695, %v12696_v8  ;;  %v14471_v20 = vld [vmem:[#allocation21 + $0x328] ss:$28 sps:$4 sm:$0xff]  }
 0x9ad   :  { %v14098_v34 = vpop.eup %14097  ;;  %11367 = vst [vmem:[%s19041_s15 + $0xe0] sm:$0xff] %v14096_v40  ;;  %14117 = vpow2.f32 %v18346_v55  ;;  %v9370_v37 = vpop.f32.mrb[142].mxu0  ;;  %v12317_v55 = vmul.f32 -1.442695, %v12727_v17  ;;  %v18414_v23 = vadd.f32 %v9818_v16, %v18156_v53  ;;  %12391 = vmatprep.subr.bf16.mxu0 %v14467_v11 }
 0x9ae   :  { %v14100_v4 = vpop.eup %14099  ;;  %11369 = vst [vmem:[%s19041_s15 + $0xf0] sm:$0xff] %v14098_v34  ;;  %14119 = vpow2.f32 %v12308_v32  ;;  %v9820_v13 = vpop.f32.mrb[157].mxu1  ;;  %v18417_v42 = vadd.f32 %v9370_v37, %v18149_v6  ;;  %v12729_v32 = vadd.f32 %v18281_v36, %v18156_v53 }
 0x9af   :  { %v9372_v52 = vpop.f32.mrb[143].mxu0  ;;  %v14102_v10 = vpop.eup %14101  ;;  %11368 = vst [vmem:[%s19041_s15 + $0xe8] sm:$0xff] %v14100_v4  ;;  %14121 = vpow2.f32 %v12310_v61  ;;  %v18425_v17 = vadd.f32 %v9820_v13, %v18160_v19  ;;  %10219 = vmatmul.mubr.bf16.gmra.mrb[152].mxu0 %v17925_v7  ;;  %v12322_v7 = vmul.f32 -1.442695, %v12697_v15  ;;  %v14470_v15 = vld [vmem:[#allocation21 + $0x130] ss:$28 sps:$4 sm:$0xff]  }
 0x9b0   :  { %v9822_v46 = vpop.f32.mrb[158].mxu1  ;;  %v18428_v2 = vadd.f32 %v9372_v52, %v18152_v43  ;;  %v14104_v6 = vpop.eup %14103  ;;  %11370 = vst [vmem:[%s19041_s15 + $0xf8] sm:$0xff] %v14102_v10  ;;  %14123 = vpow2.f32 %v12309_v57  ;;  %v12318_v43 = vmul.f32 -1.442695, %v12728_v60  ;;  %10228 = vmatprep.mubr.bf16.mxu0 %v17929_v28  ;;  %v14468_v57 = vld [vmem:[#allocation21 + $0xf8] ss:$28 sps:$4 sm:$0xff]  }
 0x9b1   :  { %v18434_v40 = vadd.f32 %v9822_v46, %v18156_v53  ;;  %v9824_v61 = vpop.f32.mrb[159].mxu1  ;;  %v14106_v36 = vpop.eup %14105  ;;  %11374 = vst [vmem:[%s19041_s15 + $0x118] sm:$0xff] %v14104_v6  ;;  %14125 = vpow2.f32 %v12311_v31  ;;  %12392 = vmatpush3.bf16.msra.mxu0 %v14468_v57  ;;  %10627 = vmatmul.mubr.bf16.gmra.mrb[8].mxu1 %v17949_v44  ;;  %v14469_v53 = vld [vmem:[#allocation21 + $0x2f0] ss:$28 sps:$4 sm:$0xff]   ;;  %v12324_v28 = vmul.f32 -1.442695, %v12729_v32 }
 0x9b2   :  { %v18441_v62 = vadd.f32 %v9824_v61, %v18160_v19  ;;  %v14108_v8 = vpop.eup %14107  ;;  %11376 = vst [vmem:[%s19041_s15 + $0x128] sm:$0xff] %v14106_v36  ;;  %14127 = vpow2.f32 %v12315_v50  ;;  %12393 = vmatprep.subr.bf16.mxu0 %v14469_v53  ;;  %10634 = vmatprep.mubr.bf16.mxu1 %v17951_v58  ;;  %v12323_v50 = vmul.f32 -1.442695, %v18284_v39 }
 0x9b3   :  { %v14110_v31 = vpop.eup %14109  ;;  %11375 = vst [vmem:[%s19041_s15 + $0x120] sm:$0xff] %v14108_v8  ;;  %14129 = vpow2.f32 %v12317_v55 }
 0x9b4   :  { %v14112_v19 = vpop.eup %14111  ;;  %11377 = vst [vmem:[%s19041_s15 + $0x130] sm:$0xff] %v14110_v31  ;;  %14131 = vpow2.f32 %v12316_v49  ;;  %v12405_v60 = vpop.f32.mrb[160].mxu1  ;;  %v14472_v49 = vld [vmem:[#allocation21 + $0x168] ss:$28 sps:$4 sm:$0xff]  }
 0x9b5   :  { %v14114_v34 = vpop.eup %14113  ;;  %11381 = vst [vmem:[%s19041_s15 + $0x150] sm:$0xff] %v14112_v19  ;;  %14133 = vpow2.f32 %v12318_v43  ;;  %12394 = vmatpush3.bf16.msra.mxu0 %v14470_v15  ;;  %v12406_v37 = vpop.f32.mrb[161].mxu1  ;;  %v14473_v43 = vld [vmem:[#allocation21 + $0x360] ss:$28 sps:$4 sm:$0xff]  }
 0x9b6   :  { %v14116_v16 = vpop.eup %14115  ;;  %11383 = vst [vmem:[%s19041_s15 + $0x160] sm:$0xff] %v14114_v34  ;;  %14135 = vpow2.f32 %v12322_v7  ;;  %12395 = vmatprep.subr.bf16.mxu0 %v14471_v20  ;;  %v18462_v55 = vadd.f32 %v12406_v37, %v12405_v60  ;;  %v12408_v13 = vpop.f32.mrb[162].mxu1 }
 0x9b7   :  { %v14118_v4 = vpop.eup %14117  ;;  %v11046_v39 = vadd.f32 1.0, %v14116_v16  ;;  %14137 = vpow2.f32 %v12324_v28  ;;  %v12409_v10 = vpop.f32.mrb[163].mxu1  ;;  %10229 = vmatmul.mubr.bf16.gmra.mrb[156].mxu0 %v17949_v44  ;;  %v14474_v28 = vld [vmem:[#allocation21 + $0x1a0] ss:$28 sps:$4 sm:$0xff]  }
 0x9b8   :  { %v14120_v52 = vpop.eup %14119  ;;  %v11048_v11 = vadd.f32 1.0, %v14118_v4  ;;  %14139 = vpow2.f32 %v12323_v50  ;;  %v18465_v6 = vadd.f32 %v12409_v10, %v12408_v13  ;;  %10238 = vmatprep.mubr.bf16.mxu0 %v17951_v58 }
 0x9b9   :  { %v14122_v32 = vpop.eup %14121  ;;  %14141 = vrcp.f32 %v11046_v39  ;;  %v11052_v46 = vadd.f32 1.0, %v14120_v52  ;;  %12396 = vmatpush3.bf16.msra.mxu0 %v14472_v49  ;;  %10635 = vmatmul.mubr.bf16.gmra.mrb[12].mxu1 %v17964_v33 }
 0x9ba   :  { %v14124_v61 = vpop.eup %14123  ;;  %14143 = vrcp.f32 %v11048_v11  ;;  %v11054_v36 = vadd.f32 1.0, %v14122_v32  ;;  %12397 = vmatprep.subr.bf16.mxu0 %v14473_v43  ;;  %10642 = vmatprep.mubr.bf16.mxu1 %v17966_v3 }
 0x9bb   :  { %v14126_v57 = vpop.eup %14125  ;;  %14145 = vrcp.f32 %v11052_v46  ;;  %v11053_v8 = vadd.f32 1.0, %v14124_v61  ;;  %v12325_v46 = vmul.f32 -1.442695, %v18294_v59  ;;  %v12330_v59 = vmul.f32 -1.442695, %v18314_v51 }
 0x9bc   :  { %v14128_v44 = vpop.eup %14127  ;;  %14147 = vrcp.f32 %v11054_v36  ;;  %v11055_v7 = vadd.f32 1.0, %v14126_v57  ;;  %v12411_v31 = vpop.f32.mrb[164].mxu1  ;;  %v12329_v36 = vmul.f32 -1.442695, %v18309_v35 }
 0x9bd   :  { %v14130_v53 = vpop.eup %14129  ;;  %14149 = vrcp.f32 %v11053_v8  ;;  %v11059_v58 = vadd.f32 1.0, %v14128_v44  ;;  %12398 = vmatpush3.bf16.msra.mxu0 %v14474_v28  ;;  %v12412_v34 = vpop.f32.mrb[165].mxu1  ;;  %v12332_v8 = vmul.f32 -1.442695, %v18320_v14  ;;  %v12338_v14 = vmul.f32 -1.442695, %v18331_v25 }
 0x9be   :  { %v14132_v19 = vpop.eup %14131  ;;  %14151 = vrcp.f32 %v11055_v7  ;;  %v11061_v50 = vadd.f32 1.0, %v14130_v53  ;;  %v18470_v16 = vadd.f32 %v12412_v34, %v12411_v31  ;;  %v12414_v37 = vpop.f32.mrb[166].mxu1 }
 0x9bf   :  { %v14134_v60 = vpop.eup %14133  ;;  %14153 = vrcp.f32 %v11059_v58  ;;  %v11060_v15 = vadd.f32 1.0, %v14132_v19  ;;  %v12415_v39 = vpop.f32.mrb[167].mxu1  ;;  %10239 = vmatmul.mubr.bf16.gmra.mrb[160].mxu0 %v17964_v33 }
 0x9c0   :  { %v14136_v20 = vpop.eup %14135  ;;  %14155 = vrcp.f32 %v11061_v50  ;;  %v11062_v4 = vadd.f32 1.0, %v14134_v60  ;;  %v18473_v11 = vadd.f32 %v12415_v39, %v12414_v37  ;;  %10248 = vmatprep.mubr.bf16.mxu0 %v17966_v3  ;;  %v12331_v3 = vmul.f32 -1.442695, %v18317_v9 }
 0x9c1   :  { %v14138_v13 = vpop.eup %14137  ;;  %14157 = vrcp.f32 %v11060_v15  ;;  %v11066_v52 = vadd.f32 1.0, %v14136_v20  ;;  %10643 = vmatmul.mubr.bf16.gmra.mrb[16].mxu1 %v17975_v0  ;;  %v12336_v9 = vmul.f32 -1.442695, %v18325_v21  ;;  %v12337_v21 = vmul.f32 -1.442695, %v18337_v12 }
 0x9c2   :  { %v14140_v10 = vpop.eup %14139  ;;  %14159 = vrcp.f32 %v11062_v4  ;;  %v11068_v32 = vadd.f32 1.0, %v14138_v13  ;;  %10650 = vmatprep.mubr.bf16.mxu1 %v17986_v38  ;;  %v12343_v12 = vmul.f32 -1.442695, %v18349_v45  ;;  %v12344_v60 = vmul.f32 -1.442695, %v18354_v18 }
 0x9c3   :  { %v14142_v49 = vpop.eup %14141  ;;  %14161 = vrcp.f32 %v11066_v52  ;;  %v11067_v61 = vadd.f32 1.0, %v14140_v10  ;;  %v12346_v37 = vmul.f32 -1.442695, %v18362_v54 }
 0x9c4   :  { %v14144_v33 = vpop.eup %14143  ;;  %11382 = vst [vmem:[%s19041_s15 + $0x158] sm:$0xff] %v14142_v49  ;;  %14163 = vrcp.f32 %v11068_v32  ;;  %v12417_v57 = vpop.f32.mrb[168].mxu1 }
 0x9c5   :  { %v14146_v43 = vpop.eup %14145  ;;  %11384 = vst [vmem:[%s19041_s15 + $0x168] sm:$0xff] %v14144_v33  ;;  %14165 = vrcp.f32 %v11067_v61  ;;  %v12418_v44 = vpop.f32.mrb[169].mxu1 }
 0x9c6   :  { %v14148_v35 = vpop.eup %14147  ;;  %11388 = vst [vmem:[%s19041_s15 + $0x188] sm:$0xff] %v14146_v43  ;;  %14167 = vpow2.f32 %v12325_v46  ;;  %v18496_v53 = vadd.f32 %v12418_v44, %v12417_v57  ;;  %v12420_v51 = vpop.f32.mrb[170].mxu1 }
 0x9c7   :  { %v14150_v7 = vpop.eup %14149  ;;  %11390 = vst [vmem:[%s19041_s15 + $0x198] sm:$0xff] %v14148_v35  ;;  %14169 = vpow2.f32 %v12329_v36  ;;  %v12421_v31 = vpop.f32.mrb[171].mxu1  ;;  %10249 = vmatmul.mubr.bf16.gmra.mrb[164].mxu0 %v17975_v0  ;;  %v12339_v0 = vmul.f32 -1.442695, %v18343_v41  ;;  %v12345_v41 = vmul.f32 -1.442695, %v18359_v26 }
 0x9c8   :  { %v14152_v58 = vpop.eup %14151  ;;  %11389 = vst [vmem:[%s19041_s15 + $0x190] sm:$0xff] %v14150_v7  ;;  %14171 = vpow2.f32 %v12331_v3  ;;  %v18507_v19 = vadd.f32 %v12421_v31, %v12420_v51  ;;  %10258 = vmatprep.mubr.bf16.mxu0 %v17986_v38 }
 0x9c9   :  { %v14154_v28 = vpop.eup %14153  ;;  %11391 = vst [vmem:[%s19041_s15 + $0x1a0] sm:$0xff] %v14152_v58  ;;  %14173 = vpow2.f32 %v12330_v59  ;;  %10651 = vmatmul.mubr.bf16.gmra.mrb[20].mxu1 %v17989_v5 }
 0x9ca   :  { %v14156_v50 = vpop.eup %14155  ;;  %11395 = vst [vmem:[%s19041_s15 + $0x1c0] sm:$0xff] %v14154_v28  ;;  %14175 = vpow2.f32 %v12332_v8  ;;  %10658 = vmatprep.mubr.bf16.mxu1 %v17995_v63 }
 0x9cb   :  { %v14158_v25 = vpop.eup %14157  ;;  %11397 = vst [vmem:[%s19041_s15 + $0x1d0] sm:$0xff] %v14156_v50  ;;  %14177 = vpow2.f32 %v12336_v9 }
 0x9cc   :  { %v14160_v38 = vpop.eup %14159  ;;  %11396 = vst [vmem:[%s19041_s15 + $0x1c8] sm:$0xff] %v14158_v25  ;;  %14179 = vpow2.f32 %v12338_v14  ;;  %v12423_v15 = vpop.f32.mrb[172].mxu1 }
 0x9cd   :  { %v14162_v34 = vpop.eup %14161  ;;  %11398 = vst [vmem:[%s19041_s15 + $0x1d8] sm:$0xff] %v14160_v38  ;;  %14181 = vpow2.f32 %v12337_v21  ;;  %v12424_v20 = vpop.f32.mrb[173].mxu1 }
 0x9ce   :  { %v14164_v45 = vpop.eup %14163  ;;  %11402 = vst [vmem:[%s19041_s15 + $0x1f8] sm:$0xff] %v14162_v34  ;;  %14183 = vpow2.f32 %v12339_v0  ;;  %v18535_v26 = vadd.f32 %v12424_v20, %v12423_v15  ;;  %v12426_v39 = vpop.f32.mrb[174].mxu1 }
 0x9cf   :  { %v14166_v4 = vpop.eup %14165  ;;  %11404 = vst [vmem:[%s19041_s15 + $0x208] sm:$0xff] %v14164_v45  ;;  %14185 = vpow2.f32 %v12343_v12  ;;  %v12427_v13 = vpop.f32.mrb[175].mxu1  ;;  %10259 = vmatmul.mubr.bf16.gmra.mrb[168].mxu0 %v17989_v5 }
 0x9d0   :  { %v14168_v18 = vpop.eup %14167  ;;  %11403 = vst [vmem:[%s19041_s15 + $0x200] sm:$0xff] %v14166_v4  ;;  %14187 = vpow2.f32 %v12345_v41  ;;  %v18541_v10 = vadd.f32 %v12427_v13, %v12426_v39  ;;  %10268 = vmatprep.mubr.bf16.mxu0 %v17995_v63  ;;  %v12350_v41 = vmul.f32 -1.442695, %v18367_v22  ;;  %v12353_v22 = vmul.f32 -1.442695, %v18383_v24 }
 0x9d1   :  { %v14170_v54 = vpop.eup %14169  ;;  %v11069_v52 = vadd.f32 1.0, %v14168_v18  ;;  %14189 = vpow2.f32 %v12344_v60  ;;  %10659 = vmatmul.mubr.bf16.gmra.mrb[24].mxu1 %v17997_v56  ;;  %v12352_v60 = vmul.f32 -1.442695, %v18371_v48  ;;  %v12359_v24 = vmul.f32 -1.442695, %v18414_v23 }
 0x9d2   :  { %v14172_v32 = vpop.eup %14171  ;;  %v11073_v46 = vadd.f32 1.0, %v14170_v54  ;;  %14191 = vpow2.f32 %v12346_v37  ;;  %v12364_v23 = vmul.f32 -1.442695, %v18417_v42  ;;  %v12367_v42 = vmul.f32 -1.442695, %v18441_v62 }
 0x9d3   :  { %v14174_v49 = vpop.eup %14173  ;;  %14193 = vrcp.f32 %v11069_v52  ;;  %v11075_v61 = vadd.f32 1.0, %v14172_v32 }
 0x9d4   :  { %v14176_v36 = vpop.eup %14175  ;;  %14195 = vrcp.f32 %v11073_v46  ;;  %v11074_v33 = vadd.f32 1.0, %v14174_v49  ;;  %v12429_v43 = vpop.f32.mrb[176].mxu1 }
 0x9d5   :  { %v14178_v3 = vpop.eup %14177  ;;  %14197 = vrcp.f32 %v11075_v61  ;;  %v11076_v5 = vadd.f32 1.0, %v14176_v36  ;;  %v12430_v35 = vpop.f32.mrb[177].mxu1 }
 0x9d6   :  { %v14180_v59 = vpop.eup %14179  ;;  %14199 = vrcp.f32 %v11074_v33  ;;  %v11080_v57 = vadd.f32 1.0, %v14178_v3  ;;  %v18545_v44 = vadd.f32 %v12430_v35, %v12429_v43  ;;  %v12432_v7 = vpop.f32.mrb[178].mxu1 }
 0x9d7   :  { %v14182_v63 = vpop.eup %14181  ;;  %14201 = vrcp.f32 %v11076_v5  ;;  %v11082_v8 = vadd.f32 1.0, %v14180_v59  ;;  %v12433_v58 = vpop.f32.mrb[179].mxu1  ;;  %10269 = vmatmul.mubr.bf16.gmra.mrb[172].mxu0 %v17997_v56 }
 0x9d8   :  { %v14184_v9 = vpop.eup %14183  ;;  %14203 = vrcp.f32 %v11080_v57  ;;  %v11081_v51 = vadd.f32 1.0, %v14182_v63  ;;  %v18548_v28 = vadd.f32 %v12433_v58, %v12432_v7  ;;  %10311 = vmatprep.mubr.bf16.mxu0 %v17486_v1  ;;  %v12351_v1 = vmul.f32 -1.442695, %v18380_v47 }
 0x9d9   :  { %v14186_v14 = vpop.eup %14185  ;;  %14205 = vrcp.f32 %v11082_v8  ;;  %v11083_v31 = vadd.f32 1.0, %v14184_v9  ;;  %v12357_v47 = vmul.f32 -1.442695, %v18397_v29  ;;  %v12358_v29 = vmul.f32 -1.442695, %v18408_v27 }
 0x9da   :  { %v14188_v21 = vpop.eup %14187  ;;  %14207 = vrcp.f32 %v11081_v51  ;;  %v11087_v50 = vadd.f32 1.0, %v14186_v14  ;;  %v12366_v27 = vmul.f32 -1.442695, %v18434_v40 }
 0x9db   :  { %v14190_v0 = vpop.eup %14189  ;;  %14209 = vrcp.f32 %v11083_v31  ;;  %v11089_v25 = vadd.f32 1.0, %v14188_v21 }
 0x9dc   :  { %v14192_v12 = vpop.eup %14191  ;;  %14211 = vrcp.f32 %v11087_v50  ;;  %v11088_v38 = vadd.f32 1.0, %v14190_v0  ;;  %v12435_v15 = vpop.f32.mrb[180].mxu1 }
 0x9dd   :  { %v14194_v34 = vpop.eup %14193  ;;  %14213 = vrcp.f32 %v11089_v25  ;;  %v11090_v56 = vadd.f32 1.0, %v14192_v12  ;;  %v12436_v37 = vpop.f32.mrb[181].mxu1 }
 0x9de   :  { %v14196_v45 = vpop.eup %14195  ;;  %11405 = vst [vmem:[%s19041_s15 + $0x210] sm:$0xff] %v14194_v34  ;;  %14215 = vrcp.f32 %v11088_v38  ;;  %v18561_v4 = vadd.f32 %v12436_v37, %v12435_v15  ;;  %v12438_v48 = vpop.f32.mrb[182].mxu1 }
 0x9df   :  { %v14198_v20 = vpop.eup %14197  ;;  %11409 = vst [vmem:[%s19041_s15 + $0x230] sm:$0xff] %v14196_v45  ;;  %14217 = vrcp.f32 %v11090_v56  ;;  %v12439_v18 = vpop.f32.mrb[183].mxu1  ;;  %10312 = vmatmul.mubr.bf16.vlgmr.msra.gmra.mrb[176].mxu0 %v20038_v30  ;;  %v12360_v30 = vmul.f32 -1.442695, %v18425_v17  ;;  %v12365_v17 = vmul.f32 -1.442695, %v18428_v2 }
 0x9e0   :  { %v14200_v39 = vpop.eup %14199  ;;  %11411 = vst [vmem:[%s19041_s15 + $0x240] sm:$0xff] %v14198_v20  ;;  %14219 = vpow2.f32 %v12350_v41  ;;  %v18572_v54 = vadd.f32 %v12439_v18, %v12438_v48  ;;  %v20065_v48 = vld [vmem:[#allocation151_spill] sm:$0xff] }
 0x9e1   :  { %v14202_v13 = vpop.eup %14201  ;;  %11410 = vst [vmem:[%s19041_s15 + $0x238] sm:$0xff] %v14200_v39  ;;  %14221 = vpow2.f32 %v12352_v60 }
 0x9e2   :  { %v14204_v52 = vpop.eup %14203  ;;  %11412 = vst [vmem:[%s19041_s15 + $0x248] sm:$0xff] %v14202_v13  ;;  %14223 = vpow2.f32 %v12351_v1 }
 0x9e3   :  { %v14206_v32 = vpop.eup %14205  ;;  %11416 = vst [vmem:[%s19041_s15 + $0x268] sm:$0xff] %v14204_v52  ;;  %14225 = vpow2.f32 %v12353_v22  ;;  %v18615_v22 = vld [vmem:[#allocation22] sm:$0xff] }
 0x9e4   :  { %v14208_v46 = vpop.eup %14207  ;;  %11418 = vst [vmem:[%s19041_s15 + $0x278] sm:$0xff] %v14206_v32  ;;  %14227 = vpow2.f32 %v12357_v47  ;;  %v12441_v61 = vpop.f32.mrb[184].mxu1  ;;  %v18619_v39 = vrot.slane %v18615_v22, %v20065_v48 }
 0x9e5   :  { %v14210_v49 = vpop.eup %14209  ;;  %11417 = vst [vmem:[%s19041_s15 + $0x270] sm:$0xff] %v14208_v46  ;;  %14229 = vpow2.f32 %v12359_v24  ;;  %v12442_v33 = vpop.f32.mrb[185].mxu1 }
 0x9e6   :  { %v14212_v36 = vpop.eup %14211  ;;  %11419 = vst [vmem:[%s19041_s15 + $0x280] sm:$0xff] %v14210_v49  ;;  %14231 = vpow2.f32 %v12358_v29  ;;  %v18598_v5 = vadd.f32 %v12442_v33, %v12441_v61  ;;  %v12444_v40 = vpop.f32.mrb[186].mxu1  ;;  %v10322_v46 = vadd.f32 %v18462_v55, %v18619_v39  ;;  %v10346_v48 = vadd.f32 %v18535_v26, %v18619_v39 }
 0x9e7   :  { %v14214_v3 = vpop.eup %14213  ;;  %11423 = vst [vmem:[%s19041_s15 + $0x2a0] sm:$0xff] %v14212_v36  ;;  %14233 = vpow2.f32 %v12360_v30  ;;  %v12445_v59 = vpop.f32.mrb[187].mxu1  ;;  %v10357_v26 = vadd.f32 %v18548_v28, %v18619_v39 }
 0x9e8   :  { %v14216_v43 = vpop.eup %14215  ;;  %11425 = vst [vmem:[%s19041_s15 + $0x2b0] sm:$0xff] %v14214_v3  ;;  %14235 = vpow2.f32 %v12364_v23  ;;  %v18606_v57 = vadd.f32 %v12445_v59, %v12444_v40 }
 0x9e9   :  { %v14218_v2 = vpop.eup %14217  ;;  %11424 = vst [vmem:[%s19041_s15 + $0x2a8] sm:$0xff] %v14216_v43  ;;  %14237 = vpow2.f32 %v12366_v27 }
 0x9ea   :  { %v14220_v35 = vpop.eup %14219  ;;  %11426 = vst [vmem:[%s19041_s15 + $0x2b8] sm:$0xff] %v14218_v2  ;;  %14239 = vpow2.f32 %v12365_v17  ;;  %v10325_v17 = vadd.f32 %v18465_v6, %v18619_v39 }
 0x9eb   :  { %v14222_v62 = vpop.eup %14221  ;;  %v11094_v63 = vadd.f32 1.0, %v14220_v35  ;;  %14241 = vpow2.f32 %v12367_v42 }
 0x9ec   :  { %v14224_v8 = vpop.eup %14223  ;;  %v11096_v7 = vadd.f32 1.0, %v14222_v62  ;;  %v12463_v58 = vpop.f32.mrb[188].mxu1 }
 0x9ed   :  { %v14226_v9 = vpop.eup %14225  ;;  %14243 = vrcp.f32 %v11094_v63  ;;  %v11095_v51 = vadd.f32 1.0, %v14224_v8  ;;  %v12464_v21 = vpop.f32.mrb[189].mxu1  ;;  %v10330_v63 = vadd.f32 %v18470_v16, %v18619_v39 }
 0x9ee   :  { %v14228_v14 = vpop.eup %14227  ;;  %14245 = vrcp.f32 %v11096_v7  ;;  %v11097_v31 = vadd.f32 1.0, %v14226_v9  ;;  %v18611_v25 = vadd.f32 %v12464_v21, %v12463_v58  ;;  %v12466_v12 = vpop.f32.mrb[190].mxu1 }
 0x9ef   :  { %v14230_v50 = vpop.eup %14229  ;;  %14247 = vrcp.f32 %v11095_v51  ;;  %v11101_v0 = vadd.f32 1.0, %v14228_v14  ;;  %v12467_v34 = vpop.f32.mrb[191].mxu1  ;;  %v10333_v14 = vadd.f32 %v18473_v11, %v18619_v39 }
 0x9f0   :  { %v14232_v38 = vpop.eup %14231  ;;  %14249 = vrcp.f32 %v11097_v31  ;;  %v11103_v41 = vadd.f32 1.0, %v14230_v50  ;;  %v18613_v15 = vadd.f32 %v12467_v34, %v12466_v12 }
 0x9f1   :  { %v14234_v56 = vpop.eup %14233  ;;  %14251 = vrcp.f32 %v11101_v0  ;;  %v11102_v60 = vadd.f32 1.0, %v14232_v38  ;;  %v10338_v38 = vadd.f32 %v18496_v53, %v18619_v39  ;;  %v10349_v53 = vadd.f32 %v18541_v10, %v18619_v39 }
 0x9f2   :  { %v14236_v45 = vpop.eup %14235  ;;  %14253 = vrcp.f32 %v11103_v41  ;;  %v11104_v1 = vadd.f32 1.0, %v14234_v56  ;;  %v10341_v56 = vadd.f32 %v18507_v19, %v18619_v39 }
 0x9f3   :  { %v14238_v37 = vpop.eup %14237  ;;  %14255 = vrcp.f32 %v11102_v60  ;;  %v11108_v20 = vadd.f32 1.0, %v14236_v45 }
 0x9f4   :  { %v14240_v47 = vpop.eup %14239  ;;  %14257 = vrcp.f32 %v11104_v1  ;;  %v11110_v18 = vadd.f32 1.0, %v14238_v37  ;;  %v12469_v52 = vpop.f32.mrb[192].mxu1 }
 0x9f5   :  { %v14242_v13 = vpop.eup %14241  ;;  %14259 = vrcp.f32 %v11108_v20  ;;  %v11109_v24 = vadd.f32 1.0, %v14240_v47  ;;  %v12470_v32 = vpop.f32.mrb[193].mxu1 }
 0x9f6   :  { %14261 = vrcp.f32 %v11110_v18  ;;  %v11111_v29 = vadd.f32 1.0, %v14242_v13  ;;  %v12471_v23 = vadd.f32 %v12470_v32, %v12469_v52  ;;  %v12472_v49 = vpop.f32.mrb[194].mxu1 }
 0x9f7   :  { %v14244_v30 = vpop.eup %14243  ;;  %14263 = vrcp.f32 %v11109_v24  ;;  %v12473_v61 = vpop.f32.mrb[195].mxu1 }
 0x9f8   :  { %v14246_v27 = vpop.eup %14245  ;;  %11430 = vst [vmem:[%s19041_s15 + $0x2d8] sm:$0xff] %v14244_v30  ;;  %14265 = vrcp.f32 %v11111_v29  ;;  %v18631_v33 = vadd.f32 %v12471_v23, %v10322_v46  ;;  %v12474_v55 = vadd.f32 %v12473_v61, %v12472_v49  ;;  %v10354_v30 = vadd.f32 %v18545_v44, %v18619_v39 }
 0x9f9   :  { %v14248_v36 = vpop.eup %14247  ;;  %11432 = vst [vmem:[%s19041_s15 + $0x2e8] sm:$0xff] %v14246_v27  ;;  %v10365_v44 = vadd.f32 %v18572_v54, %v18619_v39 }
 0x9fa   :  { %v14250_v3 = vpop.eup %14249  ;;  %11431 = vst [vmem:[%s19041_s15 + $0x2e0] sm:$0xff] %v14248_v36  ;;  %v18639_v40 = vadd.f32 %v12474_v55, %v10325_v17  ;;  %v10362_v55 = vadd.f32 %v18561_v4, %v18619_v39  ;;  %v10373_v4 = vadd.f32 %v18606_v57, %v18619_v39 }
 0x9fb   :  { %v14252_v42 = vpop.eup %14251  ;;  %11433 = vst [vmem:[%s19041_s15 + $0x2f0] sm:$0xff] %v14250_v3 }
 0x9fc   :  { %v14254_v43 = vpop.eup %14253  ;;  %11437 = vst [vmem:[%s19041_s15 + $0x310] sm:$0xff] %v14252_v42  ;;  %v12475_v59 = vpop.f32.mrb[196].mxu1 }
 0x9fd   :  { %v14256_v6 = vpop.eup %14255  ;;  %11439 = vst [vmem:[%s19041_s15 + $0x320] sm:$0xff] %v14254_v43  ;;  %v12476_v35 = vpop.f32.mrb[197].mxu1 }
 0x9fe   :  { %v14258_v2 = vpop.eup %14257  ;;  %11438 = vst [vmem:[%s19041_s15 + $0x318] sm:$0xff] %v14256_v6  ;;  %v12477_v8 = vadd.f32 %v12476_v35, %v12475_v59  ;;  %v12478_v7 = vpop.f32.mrb[198].mxu1 }
 0x9ff   :  { %v14260_v62 = vpop.eup %14259  ;;  %11440 = vst [vmem:[%s19041_s15 + $0x328] sm:$0xff] %v14258_v2  ;;  %v12479_v51 = vpop.f32.mrb[199].mxu1 }
 0xa00   :  { %v14262_v9 = vpop.eup %14261  ;;  %11444 = vst [vmem:[%s19041_s15 + $0x348] sm:$0xff] %v14260_v62  ;;  %v18663_v31 = vadd.f32 %v12477_v8, %v10330_v63  ;;  %v12480_v21 = vadd.f32 %v12479_v51, %v12478_v7  ;;  %v10370_v62 = vadd.f32 %v18598_v5, %v18619_v39 }
 0xa01   :  { %v14264_v58 = vpop.eup %14263  ;;  %11446 = vst [vmem:[%s19041_s15 + $0x358] sm:$0xff] %v14262_v9 }
 0xa02   :  { %v14266_v16 = vpop.eup %14265  ;;  %11445 = vst [vmem:[%s19041_s15 + $0x350] sm:$0xff] %v14264_v58  ;;  %v18671_v50 = vadd.f32 %v12480_v21, %v10333_v14 }
 0xa03   :  { %11447 = vst [vmem:[%s19041_s15 + $0x360] sm:$0xff] %v14266_v16 }
 0xa04   :  { %v12481_v0 = vpop.f32.mrb[200].mxu1 }
 0xa05   :  { %v12482_v12 = vpop.f32.mrb[201].mxu1 }
 0xa06   :  { %v12483_v11 = vadd.f32 %v12482_v12, %v12481_v0  ;;  %v12484_v41 = vpop.f32.mrb[202].mxu1 }
 0xa07   :  { %v12485_v34 = vpop.f32.mrb[203].mxu1 }
 0xa08   :  { %v18677_v60 = vadd.f32 %v12483_v11, %v10338_v38  ;;  %v12486_v45 = vadd.f32 %v12485_v34, %v12484_v41 }
 0xa0a   :  { %v18679_v1 = vadd.f32 %v12486_v45, %v10341_v56 }
 0xa0c   :  { %v12487_v37 = vpop.f32.mrb[204].mxu1 }
 0xa0d   :  { %v12488_v20 = vpop.f32.mrb[205].mxu1 }
 0xa0e   :  { %v12489_v47 = vadd.f32 %v12488_v20, %v12487_v37  ;;  %v12490_v18 = vpop.f32.mrb[206].mxu1 }
 0xa0f   :  { %v12491_v13 = vpop.f32.mrb[207].mxu1 }
 0xa10   :  { %v18685_v24 = vadd.f32 %v12489_v47, %v10346_v48  ;;  %v12492_v52 = vadd.f32 %v12491_v13, %v12490_v18 }
 0xa12   :  { %v18687_v19 = vadd.f32 %v12492_v52, %v10349_v53 }
 0xa14   :  { %v12493_v29 = vpop.f32.mrb[208].mxu1 }
 0xa15   :  { %v12494_v32 = vpop.f32.mrb[209].mxu1 }
 0xa16   :  { %v12495_v46 = vadd.f32 %v12494_v32, %v12493_v29  ;;  %v12496_v23 = vpop.f32.mrb[210].mxu1 }
 0xa17   :  { %v12497_v49 = vpop.f32.mrb[211].mxu1 }
 0xa18   :  { %v18693_v27 = vadd.f32 %v12495_v46, %v10354_v30  ;;  %v12498_v61 = vadd.f32 %v12497_v49, %v12496_v23 }
 0xa1a   :  { %v18695_v10 = vadd.f32 %v12498_v61, %v10357_v26 }
 0xa1c   :  { %v12499_v36 = vpop.f32.mrb[212].mxu1 }
 0xa1d   :  { %v12500_v17 = vpop.f32.mrb[213].mxu1 }
 0xa1e   :  { %v12501_v3 = vadd.f32 %v12500_v17, %v12499_v36  ;;  %v12502_v42 = vpop.f32.mrb[214].mxu1 }
 0xa1f   :  { %v12503_v43 = vpop.f32.mrb[215].mxu1 }
 0xa20   :  { %v18701_v6 = vadd.f32 %v12501_v3, %v10362_v55  ;;  %v12504_v59 = vadd.f32 %v12503_v43, %v12502_v42 }
 0xa22   :  { %v18703_v28 = vadd.f32 %v12504_v59, %v10365_v44 }
 0xa24   :  { %v12505_v2 = vpop.f32.mrb[216].mxu1 }
 0xa25   :  { %v12506_v35 = vpop.f32.mrb[217].mxu1 }
 0xa26   :  { %v12507_v63 = vadd.f32 %v12506_v35, %v12505_v2  ;;  %v12508_v8 = vpop.f32.mrb[218].mxu1 }
 0xa27   :  { %v12509_v7 = vpop.f32.mrb[219].mxu1 }
 0xa28   :  { %v10467_v9 = vadd.f32 %v12507_v63, %v10370_v62  ;;  %v12510_v51 = vadd.f32 %v12509_v7, %v12508_v8 }
 0xa2a   :  { %v10470_v58 = vadd.f32 %v12510_v51, %v10373_v4 }
 0xa2c   :  { %v12527_v54 = vpop.f32.mrb[220].mxu1 }
 0xa2d   :  { %v12528_v14 = vpop.f32.mrb[221].mxu1 }
 0xa2e   :  { %v18709_v21 = vadd.f32 %v12528_v14, %v12527_v54  ;;  %v12530_v16 = vpop.f32.mrb[222].mxu1 }
 0xa2f   :  { %v12531_v0 = vpop.f32.mrb[223].mxu1 }
 0xa30   :  { %v18711_v12 = vadd.f32 %v12531_v0, %v12530_v16 }
 0xa34   :  { %v12533_v38 = vpop.f32.mrb[224].mxu1 }
 0xa35   :  { %v12534_v11 = vpop.f32.mrb[225].mxu1 }
 0xa36   :  { %v12535_v5 = vadd.f32 %v12534_v11, %v12533_v38  ;;  %v12536_v41 = vpop.f32.mrb[226].mxu1 }
 0xa37   :  { %v12537_v34 = vpop.f32.mrb[227].mxu1 }
 0xa38   :  { %v18714_v56 = vadd.f32 %v12535_v5, %v18631_v33  ;;  %v12538_v57 = vadd.f32 %v12537_v34, %v12536_v41 }
 0xa3a   :  { %v18717_v45 = vadd.f32 %v12538_v57, %v18639_v40  ;;  %v20066_v57 = vld [vmem:[#allocation168_spill] sm:$0xff] }
 0xa3c   :  { %v12539_v37 = vpop.f32.mrb[228].mxu1 }
 0xa3d   :  { %v12540_v20 = vpop.f32.mrb[229].mxu1 }
 0xa3e   :  { %v12541_v48 = vadd.f32 %v12540_v20, %v12539_v37  ;;  %v12542_v47 = vpop.f32.mrb[230].mxu1  ;;  %v18757_v37 = vrot.slane %v18615_v22, %v20066_v57  ;;  %v20067_v20 = vld [vmem:[#allocation34_spill] sm:$0xff] }
 0xa3f   :  { %v12543_v18 = vpop.f32.mrb[231].mxu1 }
 0xa40   :  { %v18720_v13 = vadd.f32 %v12541_v48, %v18663_v31  ;;  %v12544_v53 = vadd.f32 %v12543_v18, %v12542_v47  ;;  %v18761_v48 = vrot.slane %v18615_v22, %v20067_v20 }
 0xa42   :  { %v18723_v52 = vadd.f32 %v12544_v53, %v18671_v50 }
 0xa44   :  { %v12545_v29 = vpop.f32.mrb[232].mxu1 }
 0xa45   :  { %v12546_v32 = vpop.f32.mrb[233].mxu1 }
 0xa46   :  { %v12547_v33 = vadd.f32 %v12546_v32, %v12545_v29  ;;  %v12548_v30 = vpop.f32.mrb[234].mxu1 }
 0xa47   :  { %v12549_v46 = vpop.f32.mrb[235].mxu1 }
 0xa48   :  { %v18726_v40 = vadd.f32 %v12547_v33, %v18677_v60  ;;  %v12550_v23 = vadd.f32 %v12549_v46, %v12548_v30 }
 0xa4a   :  { %v18729_v49 = vadd.f32 %v12550_v23, %v18679_v1 }
 0xa4c   :  { %v12551_v26 = vpop.f32.mrb[236].mxu1 }
 0xa4d   :  { %v12552_v61 = vpop.f32.mrb[237].mxu1 }
 0xa4e   :  { %v12553_v31 = vadd.f32 %v12552_v61, %v12551_v26  ;;  %v12554_v36 = vpop.f32.mrb[238].mxu1 }
 0xa4f   :  { %v12555_v17 = vpop.f32.mrb[239].mxu1 }
 0xa50   :  { %v18732_v50 = vadd.f32 %v12553_v31, %v18685_v24  ;;  %v12556_v55 = vadd.f32 %v12555_v17, %v12554_v36 }
 0xa52   :  { %v18735_v3 = vadd.f32 %v12556_v55, %v18687_v19 }
 0xa54   :  { %v12557_v42 = vpop.f32.mrb[240].mxu1 }
 0xa55   :  { %v12558_v43 = vpop.f32.mrb[241].mxu1 }
 0xa56   :  { %v12559_v60 = vadd.f32 %v12558_v43, %v12557_v42  ;;  %v12560_v44 = vpop.f32.mrb[242].mxu1 }
 0xa57   :  { %v12561_v59 = vpop.f32.mrb[243].mxu1 }
 0xa58   :  { %v18738_v1 = vadd.f32 %v12559_v60, %v18693_v27  ;;  %v12562_v2 = vadd.f32 %v12561_v59, %v12560_v44 }
 0xa5a   :  { %v18741_v35 = vadd.f32 %v12562_v2, %v18695_v10 }
 0xa5c   :  { %v12563_v62 = vpop.f32.mrb[244].mxu1 }
 0xa5d   :  { %v12564_v63 = vpop.f32.mrb[245].mxu1 }
 0xa5e   :  { %v12565_v24 = vadd.f32 %v12564_v63, %v12563_v62  ;;  %v12566_v8 = vpop.f32.mrb[246].mxu1 }
 0xa5f   :  { %v12567_v7 = vpop.f32.mrb[247].mxu1 }
 0xa60   :  { %v18744_v19 = vadd.f32 %v12565_v24, %v18701_v6  ;;  %v12568_v4 = vadd.f32 %v12567_v7, %v12566_v8 }
 0xa62   :  { %v18747_v51 = vadd.f32 %v12568_v4, %v18703_v28 }
 0xa64   :  { %v12569_v54 = vpop.f32.mrb[248].mxu1 }
 0xa65   :  { %v12570_v14 = vpop.f32.mrb[249].mxu1 }
 0xa66   :  { %v12571_v27 = vadd.f32 %v12570_v14, %v12569_v54  ;;  %v12572_v16 = vpop.f32.mrb[250].mxu1 }
 0xa67   :  { %v12573_v0 = vpop.f32.mrb[251].mxu1 }
 0xa68   :  { %v18749_v38 = vadd.f32 %v12571_v27, %v10467_v9  ;;  %v12574_v10 = vadd.f32 %v12573_v0, %v12572_v16 }
 0xa6a   :  { %v18751_v11 = vadd.f32 %v12574_v10, %v10470_v58 }
 0xa6c   :  { %v12591_v5 = vpop.f32.mrb[252].mxu1 }
 0xa6d   :  { %v12592_v41 = vpop.f32.mrb[253].mxu1 }
 0xa6e   :  { %v18753_v34 = vadd.f32 %v12592_v41, %v12591_v5  ;;  %v12594_v6 = vpop.f32.mrb[254].mxu1 }
 0xa6f   :  { %v12595_v28 = vpop.f32.mrb[255].mxu1 }
 0xa70   :  { %v18763_v47 = vadd.f32 %v12595_v28, %v12594_v6 }
 0xa72   :  { %v10200_v9 = vpop.f32.mrb[144].mxu0 }
 0xa73   :  { %v12743_v58 = vadd.f32 %v10200_v9, %v18757_v37  ;;  %v10202_v18 = vpop.f32.mrb[145].mxu0 }
 0xa74   :  { %v12597_v53 = vpop.f32.mrb[0].mxu1  ;;  %v12744_v29 = vadd.f32 %v10202_v18, %v18761_v48  ;;  %v10204_v32 = vpop.f32.mrb[146].mxu0 }
 0xa75   :  { %v12263_v33 = vmul.f32 -1.442695, %v12743_v58  ;;  %v12598_v30 = vpop.f32.mrb[1].mxu1  ;;  %v12745_v46 = vadd.f32 %v10204_v32, %v18757_v37  ;;  %v10206_v23 = vpop.f32.mrb[147].mxu0 }
 0xa76   :  { %v12264_v26 = vmul.f32 -1.442695, %v12744_v29  ;;  %v12599_v61 = vadd.f32 %v12598_v30, %v12597_v53  ;;  %v12600_v31 = vpop.f32.mrb[2].mxu1  ;;  %v12746_v22 = vadd.f32 %v10206_v23, %v18761_v48 }
 0xa77   :  { %14267 = vpow2.f32 %v12263_v33  ;;  %v12270_v36 = vmul.f32 -1.442695, %v12745_v46  ;;  %v12601_v17 = vpop.f32.mrb[3].mxu1 }
 0xa78   :  { %14269 = vpow2.f32 %v12264_v26  ;;  %v10613_v55 = vadd.f32 %v12599_v61, %v18714_v56  ;;  %v12271_v42 = vmul.f32 -1.442695, %v12746_v22  ;;  %v12602_v43 = vadd.f32 %v12601_v17, %v12600_v31 }
 0xa79   :  { %14271 = vpow2.f32 %v12270_v36 }
 0xa7a   :  { %v12279_v60 = vmul.f32 -1.442695, %v10613_v55  ;;  %14273 = vpow2.f32 %v12271_v42  ;;  %v10616_v44 = vadd.f32 %v12602_v43, %v18717_v45  ;;  %v10210_v59 = vpop.f32.mrb[148].mxu0 }
 0xa7b   :  { %v12747_v2 = vadd.f32 %v10210_v59, %v18757_v37  ;;  %v10212_v62 = vpop.f32.mrb[149].mxu0 }
 0xa7c   :  { %14275 = vpow2.f32 %v12279_v60  ;;  %v12286_v63 = vmul.f32 -1.442695, %v10616_v44  ;;  %v12603_v24 = vpop.f32.mrb[4].mxu1  ;;  %v12748_v8 = vadd.f32 %v10212_v62, %v18761_v48  ;;  %v10214_v7 = vpop.f32.mrb[150].mxu0 }
 0xa7d   :  { %v12277_v4 = vmul.f32 -1.442695, %v12747_v2  ;;  %v12604_v54 = vpop.f32.mrb[5].mxu1  ;;  %v12749_v56 = vadd.f32 %v10214_v7, %v18757_v37  ;;  %v10216_v14 = vpop.f32.mrb[151].mxu0 }
 0xa7e   :  { %14277 = vpow2.f32 %v12286_v63  ;;  %v12278_v27 = vmul.f32 -1.442695, %v12748_v8  ;;  %v12605_v16 = vadd.f32 %v12604_v54, %v12603_v24  ;;  %v12606_v0 = vpop.f32.mrb[6].mxu1  ;;  %v12750_v45 = vadd.f32 %v10216_v14, %v18761_v48 }
 0xa7f   :  { %14279 = vpow2.f32 %v12277_v4  ;;  %v12284_v10 = vmul.f32 -1.442695, %v12749_v56  ;;  %v12607_v5 = vpop.f32.mrb[7].mxu1 }
 0xa80   :  { %14281 = vpow2.f32 %v12278_v27  ;;  %v10621_v41 = vadd.f32 %v12605_v16, %v18720_v13  ;;  %v12285_v6 = vmul.f32 -1.442695, %v12750_v45  ;;  %v12608_v57 = vadd.f32 %v12607_v5, %v12606_v0 }
 0xa81   :  { %v14268_v28 = vpop.eup %14267  ;;  %14283 = vpow2.f32 %v12284_v10 }
 0xa82   :  { %v14270_v20 = vpop.eup %14269  ;;  %v11007_v9 = vadd.f32 1.0, %v14268_v28  ;;  %14285 = vpow2.f32 %v12285_v6  ;;  %v10624_v58 = vadd.f32 %v12608_v57, %v18723_v52  ;;  %v10220_v18 = vpop.f32.mrb[152].mxu0  ;;  %v12293_v46 = vmul.f32 -1.442695, %v10621_v41 }
 0xa83   :  { %v14272_v53 = vpop.eup %14271  ;;  %v11008_v29 = vadd.f32 1.0, %v14270_v20  ;;  %v10222_v32 = vpop.f32.mrb[153].mxu0  ;;  %v12751_v60 = vadd.f32 %v10220_v18, %v18757_v37 }
 0xa84   :  { %v14274_v33 = vpop.eup %14273  ;;  %14287 = vrcp.f32 %v11007_v9  ;;  %v11014_v30 = vadd.f32 1.0, %v14272_v53  ;;  %v12609_v23 = vpop.f32.mrb[8].mxu1  ;;  %v12300_v36 = vmul.f32 -1.442695, %v10624_v58  ;;  %v12752_v63 = vadd.f32 %v10222_v32, %v18761_v48 }
 0xa85   :  { %v10224_v26 = vpop.f32.mrb[154].mxu0  ;;  %14289 = vrcp.f32 %v11008_v29  ;;  %v11015_v13 = vadd.f32 1.0, %v14274_v33  ;;  %v12610_v61 = vpop.f32.mrb[9].mxu1  ;;  %v12291_v45 = vmul.f32 -1.442695, %v12751_v60 }
 0xa86   :  { %v10226_v31 = vpop.f32.mrb[155].mxu0  ;;  %v14276_v22 = vpop.eup %14275  ;;  %14291 = vrcp.f32 %v11014_v30  ;;  %v12611_v17 = vadd.f32 %v12610_v61, %v12609_v23  ;;  %v12753_v14 = vadd.f32 %v10224_v26, %v18757_v37  ;;  %v12292_v6 = vmul.f32 -1.442695, %v12752_v63 }
 0xa87   :  { %v12612_v55 = vpop.f32.mrb[10].mxu1  ;;  %v11023_v52 = vadd.f32 1.0, %v14276_v22  ;;  %14293 = vrcp.f32 %v11015_v13  ;;  %v12754_v27 = vadd.f32 %v10226_v31, %v18761_v48 }
 0xa88   :  { %v12613_v42 = vpop.f32.mrb[11].mxu1  ;;  %v14278_v43 = vpop.eup %14277  ;;  %14295 = vpow2.f32 %v12293_v46  ;;  %v10629_v44 = vadd.f32 %v12611_v17, %v18726_v40  ;;  %v12298_v53 = vmul.f32 -1.442695, %v12753_v14 }
 0xa89   :  { %v12614_v59 = vadd.f32 %v12613_v42, %v12612_v55  ;;  %v14280_v2 = vpop.eup %14279  ;;  %14297 = vrcp.f32 %v11023_v52  ;;  %v11030_v62 = vadd.f32 1.0, %v14278_v43  ;;  %v12299_v29 = vmul.f32 -1.442695, %v12754_v27 }
 0xa8a   :  { %v14282_v24 = vpop.eup %14281  ;;  %v11021_v8 = vadd.f32 1.0, %v14280_v2  ;;  %14299 = vpow2.f32 %v12300_v36  ;;  %v10230_v4 = vpop.f32.mrb[156].mxu0  ;;  %v12307_v20 = vmul.f32 -1.442695, %v10629_v44 }
 0xa8b   :  { %v10632_v7 = vadd.f32 %v12614_v59, %v18729_v49  ;;  %v14284_v54 = vpop.eup %14283  ;;  %14301 = vrcp.f32 %v11030_v62  ;;  %v11022_v56 = vadd.f32 1.0, %v14282_v24  ;;  %v10232_v40 = vpop.f32.mrb[157].mxu0  ;;  %v12755_v30 = vadd.f32 %v10230_v4, %v18757_v37 }
 0xa8c   :  { %v14286_v16 = vpop.eup %14285  ;;  %14303 = vrcp.f32 %v11021_v8  ;;  %v11028_v0 = vadd.f32 1.0, %v14284_v54  ;;  %v12615_v10 = vpop.f32.mrb[12].mxu1  ;;  %v12756_v13 = vadd.f32 %v10232_v40, %v18761_v48 }
 0xa8d   :  { %v10234_v5 = vpop.f32.mrb[158].mxu0  ;;  %14305 = vrcp.f32 %v11022_v56  ;;  %v11029_v41 = vadd.f32 1.0, %v14286_v16  ;;  %v12616_v57 = vpop.f32.mrb[13].mxu1  ;;  %v12314_v31 = vmul.f32 -1.442695, %v10632_v7 }
 0xa8e   :  { %v10236_v49 = vpop.f32.mrb[159].mxu0  ;;  %v14288_v28 = vpop.eup %14287  ;;  %14307 = vrcp.f32 %v11028_v0  ;;  %v12617_v9 = vadd.f32 %v12616_v57, %v12615_v10  ;;  %v12757_v55 = vadd.f32 %v10234_v5, %v18757_v37  ;;  %v12305_v43 = vmul.f32 -1.442695, %v12755_v30 }
 0xa8f   :  { %v12618_v58 = vpop.f32.mrb[14].mxu1  ;;  %v14290_v18 = vpop.eup %14289  ;;  %11343 = vst [vmem:[%s19041_s15 + $0x20] sm:$0xff] %v14288_v28  ;;  %14309 = vrcp.f32 %v11029_v41  ;;  %v12758_v60 = vadd.f32 %v10236_v49, %v18761_v48  ;;  %v12306_v62 = vmul.f32 -1.442695, %v12756_v13 }
 0xa90   :  { %v12619_v32 = vpop.f32.mrb[15].mxu1  ;;  %v14292_v33 = vpop.eup %14291  ;;  %11344 = vst [vmem:[%s19041_s15 + $0x28] sm:$0xff] %v14290_v18  ;;  %14311 = vpow2.f32 %v12291_v45  ;;  %v10637_v46 = vadd.f32 %v12617_v9, %v18732_v50  ;;  %v12312_v14 = vmul.f32 -1.442695, %v12757_v55 }
 0xa91   :  { %v12620_v23 = vadd.f32 %v12619_v32, %v12618_v58  ;;  %v14294_v26 = vpop.eup %14293  ;;  %11350 = vst [vmem:[%s19041_s15 + $0x58] sm:$0xff] %v14292_v33  ;;  %14313 = vpow2.f32 %v12292_v6  ;;  %v12313_v16 = vmul.f32 -1.442695, %v12758_v60 }
 0xa92   :  { %v14296_v61 = vpop.eup %14295  ;;  %11351 = vst [vmem:[%s19041_s15 + $0x60] sm:$0xff] %v14294_v26  ;;  %14315 = vpow2.f32 %v12307_v20  ;;  %v10240_v36 = vpop.f32.mrb[160].mxu0  ;;  %v12321_v7 = vmul.f32 -1.442695, %v10637_v46 }
 0xa93   :  { %v10640_v22 = vadd.f32 %v12620_v23, %v18735_v3  ;;  %v14298_v50 = vpop.eup %14297  ;;  %v11037_v17 = vadd.f32 1.0, %v14296_v61  ;;  %14317 = vpow2.f32 %v12298_v53  ;;  %v18800_v52 = vpop.f32.mrb[161].mxu0  ;;  %v12759_v9 = vadd.f32 %v10240_v36, %v18757_v37 }
 0xa94   :  { %v14300_v42 = vpop.eup %14299  ;;  %11359 = vst [vmem:[%s19041_s15 + $0xa0] sm:$0xff] %v14298_v50  ;;  %14319 = vpow2.f32 %v12299_v29  ;;  %v12621_v44 = vpop.f32.mrb[16].mxu1 }
 0xa95   :  { %v18806_v59 = vpop.f32.mrb[162].mxu0  ;;  %v14302_v3 = vpop.eup %14301  ;;  %14321 = vrcp.f32 %v11037_v17  ;;  %v11044_v2 = vadd.f32 1.0, %v14300_v42  ;;  %v12328_v46 = vmul.f32 -1.442695, %v10640_v22  ;;  %v12319_v17 = vmul.f32 -1.442695, %v12759_v9 }
 0xa96   :  { %v12622_v63 = vpop.f32.mrb[17].mxu1  ;;  %v18808_v24 = vpop.f32.mrb[163].mxu0  ;;  %11366 = vst [vmem:[%s19041_s15 + $0xd8] sm:$0xff] %v14302_v3  ;;  %14323 = vpow2.f32 %v12314_v31  ;;  %v12760_v31 = vadd.f32 %v18800_v52, %v18761_v48  ;;  %v12761_v52 = vadd.f32 %v18806_v59, %v18757_v37 }
 0xa97   :  { %v14304_v8 = vpop.eup %14303  ;;  %v12623_v4 = vadd.f32 %v12622_v63, %v12621_v44  ;;  %v12624_v54 = vpop.f32.mrb[18].mxu1  ;;  %14325 = vrcp.f32 %v11044_v2 }
 0xa98   :  { %v14306_v56 = vpop.eup %14305  ;;  %11357 = vst [vmem:[%s19041_s15 + $0x90] sm:$0xff] %v14304_v8  ;;  %v12625_v27 = vpop.f32.mrb[19].mxu1  ;;  %14327 = vpow2.f32 %v12305_v43 }
 0xa99   :  { %v14308_v40 = vpop.eup %14307  ;;  %11358 = vst [vmem:[%s19041_s15 + $0x98] sm:$0xff] %v14306_v56  ;;  %v18820_v0 = vadd.f32 %v12623_v4, %v18738_v1  ;;  %v12626_v45 = vadd.f32 %v12625_v27, %v12624_v54  ;;  %14329 = vpow2.f32 %v12306_v62  ;;  %v12320_v4 = vmul.f32 -1.442695, %v12760_v31 }
 0xa9a   :  { %v14310_v10 = vpop.eup %14309  ;;  %11364 = vst [vmem:[%s19041_s15 + $0xc8] sm:$0xff] %v14308_v40  ;;  %14331 = vpow2.f32 %v12321_v7  ;;  %v18831_v6 = vpop.f32.mrb[164].mxu0  ;;  %v12762_v27 = vadd.f32 %v18808_v24, %v18761_v48 }
 0xa9b   :  { %v14312_v5 = vpop.eup %14311  ;;  %11365 = vst [vmem:[%s19041_s15 + $0xd0] sm:$0xff] %v14310_v10  ;;  %v18829_v41 = vadd.f32 %v12626_v45, %v18741_v35  ;;  %14333 = vpow2.f32 %v12312_v14  ;;  %v18833_v49 = vpop.f32.mrb[165].mxu0 }
 0xa9c   :  { %v14314_v1 = vpop.eup %14313  ;;  %v11035_v57 = vadd.f32 1.0, %v14312_v5  ;;  %14335 = vpow2.f32 %v12313_v16  ;;  %v12627_v58 = vpop.f32.mrb[20].mxu1 }
 0xa9d   :  { %v14316_v28 = vpop.eup %14315  ;;  %v11036_v20 = vadd.f32 1.0, %v14314_v1  ;;  %v18836_v18 = vpop.f32.mrb[166].mxu0  ;;  %v12326_v1 = vmul.f32 -1.442695, %v12761_v52 }
 0xa9e   :  { %v14318_v53 = vpop.eup %14317  ;;  %14337 = vrcp.f32 %v11035_v57  ;;  %v11051_v29 = vadd.f32 1.0, %v14316_v28  ;;  %v12628_v35 = vpop.f32.mrb[21].mxu1 }
 0xa9f   :  { %v18838_v32 = vpop.f32.mrb[167].mxu0  ;;  %v14320_v33 = vpop.eup %14319  ;;  %14339 = vrcp.f32 %v11036_v20  ;;  %v11042_v30 = vadd.f32 1.0, %v14318_v53  ;;  %v12629_v23 = vadd.f32 %v12628_v35, %v12627_v58  ;;  %v12335_v58 = vmul.f32 -1.442695, %v18820_v0 }
 0xaa0   :  { %v12630_v26 = vpop.f32.mrb[22].mxu1  ;;  %v14322_v13 = vpop.eup %14321  ;;  %14341 = vrcp.f32 %v11051_v29  ;;  %v11043_v61 = vadd.f32 1.0, %v14320_v33  ;;  %v12763_v35 = vadd.f32 %v18831_v6, %v18757_v37  ;;  %v12327_v0 = vmul.f32 -1.442695, %v12762_v27 }
 0xaa1   :  { %v12631_v36 = vpop.f32.mrb[23].mxu1  ;;  %v14324_v50 = vpop.eup %14323  ;;  %11373 = vst [vmem:[%s19041_s15 + $0x110] sm:$0xff] %v14322_v13  ;;  %14343 = vrcp.f32 %v11042_v30  ;;  %v18846_v55 = vadd.f32 %v12629_v23, %v18744_v19 }
 0xaa2   :  { %v12632_v22 = vadd.f32 %v12631_v36, %v12630_v26  ;;  %v14326_v42 = vpop.eup %14325  ;;  %14345 = vrcp.f32 %v11043_v61  ;;  %v11058_v43 = vadd.f32 1.0, %v14324_v50  ;;  %v10260_v3 = vpop.f32.mrb[168].mxu0  ;;  %v12342_v26 = vmul.f32 -1.442695, %v18829_v41 }
 0xaa3   :  { %v14328_v60 = vpop.eup %14327  ;;  %11380 = vst [vmem:[%s19041_s15 + $0x148] sm:$0xff] %v14326_v42  ;;  %14347 = vpow2.f32 %v12328_v46  ;;  %v18857_v62 = vadd.f32 %v10260_v3, %v18757_v37  ;;  %v10262_v63 = vpop.f32.mrb[169].mxu0  ;;  %v12333_v41 = vmul.f32 -1.442695, %v12763_v35 }
 0xaa4   :  { %v18854_v44 = vadd.f32 %v12632_v22, %v18747_v51  ;;  %v14330_v2 = vpop.eup %14329  ;;  %14349 = vrcp.f32 %v11058_v43  ;;  %v11049_v19 = vadd.f32 1.0, %v14328_v60  ;;  %v12633_v54 = vpop.f32.mrb[24].mxu1  ;;  %v18860_v56 = vadd.f32 %v10262_v63, %v18761_v48 }
 0xaa5   :  { %v14332_v8 = vpop.eup %14331  ;;  %v11050_v7 = vadd.f32 1.0, %v14330_v2  ;;  %14351 = vpow2.f32 %v12319_v17  ;;  %v10264_v59 = vpop.f32.mrb[170].mxu0  ;;  %v12766_v43 = vadd.f32 %v18838_v32, %v18761_v48 }
 0xaa6   :  { %v14334_v14 = vpop.eup %14333  ;;  %14353 = vrcp.f32 %v11049_v19  ;;  %v11065_v51 = vadd.f32 1.0, %v14332_v8  ;;  %v12634_v40 = vpop.f32.mrb[25].mxu1  ;;  %v18865_v16 = vadd.f32 %v10264_v59, %v18757_v37  ;;  %v12349_v8 = vmul.f32 -1.442695, %v18846_v55 }
 0xaa7   :  { %v10266_v45 = vpop.f32.mrb[171].mxu0  ;;  %v14336_v10 = vpop.eup %14335  ;;  %14355 = vrcp.f32 %v11050_v7  ;;  %v11056_v5 = vadd.f32 1.0, %v14334_v14  ;;  %v12635_v57 = vadd.f32 %v12634_v40, %v12633_v54  ;;  %v12356_v55 = vmul.f32 -1.442695, %v18854_v44 }
 0xaa8   :  { %v12636_v28 = vpop.f32.mrb[26].mxu1  ;;  %v14338_v20 = vpop.eup %14337  ;;  %14357 = vrcp.f32 %v11065_v51  ;;  %v11057_v9 = vadd.f32 1.0, %v14336_v10  ;;  %v18869_v53 = vadd.f32 %v10266_v45, %v18761_v48 }
 0xaa9   :  { %v12637_v24 = vpop.f32.mrb[27].mxu1  ;;  %v14340_v29 = vpop.eup %14339  ;;  %11371 = vst [vmem:[%s19041_s15 + $0x100] sm:$0xff] %v14338_v20  ;;  %14359 = vrcp.f32 %v11056_v5  ;;  %v18877_v33 = vadd.f32 %v12635_v57, %v18749_v38  ;;  %v12764_v38 = vadd.f32 %v18833_v49, %v18761_v48 }
 0xaaa   :  { %v12638_v30 = vadd.f32 %v12637_v24, %v12636_v28  ;;  %v14342_v46 = vpop.eup %14341  ;;  %11372 = vst [vmem:[%s19041_s15 + $0x108] sm:$0xff] %v14340_v29  ;;  %14361 = vrcp.f32 %v11057_v9  ;;  %v10270_v13 = vpop.f32.mrb[172].mxu0 }
 0xaab   :  { %v14344_v23 = vpop.eup %14343  ;;  %11387 = vst [vmem:[%s19041_s15 + $0x180] sm:$0xff] %v14342_v46  ;;  %14363 = vpow2.f32 %v12320_v4  ;;  %v18895_v31 = vadd.f32 %v10270_v13, %v18757_v37  ;;  %v10272_v36 = vpop.f32.mrb[173].mxu0 }
 0xaac   :  { %v18889_v6 = vadd.f32 %v12638_v30, %v18751_v11  ;;  %v14346_v61 = vpop.eup %14345  ;;  %11378 = vst [vmem:[%s19041_s15 + $0x138] sm:$0xff] %v14344_v23  ;;  %14365 = vpow2.f32 %v12335_v58  ;;  %v12765_v11 = vadd.f32 %v18836_v18, %v18757_v37  ;;  %v18903_v49 = vadd.f32 %v10272_v36, %v18761_v48  ;;  %v10274_v17 = vpop.f32.mrb[174].mxu0 }
 0xaad   :  { %v14348_v50 = vpop.eup %14347  ;;  %11379 = vst [vmem:[%s19041_s15 + $0x140] sm:$0xff] %v14346_v61  ;;  %14367 = vpow2.f32 %v12326_v1  ;;  %v18908_v60 = vadd.f32 %v10274_v17, %v18757_v37  ;;  %v10276_v52 = vpop.f32.mrb[175].mxu0  ;;  %v12334_v18 = vmul.f32 -1.442695, %v12764_v38  ;;  %v12347_v58 = vmul.f32 -1.442695, %v18857_v62 }
 0xaae   :  { %v14350_v22 = vpop.eup %14349  ;;  %v11072_v42 = vadd.f32 1.0, %v14348_v50  ;;  %14369 = vpow2.f32 %v12327_v0  ;;  %v18914_v2 = vadd.f32 %v10276_v52, %v18761_v48  ;;  %v12340_v37 = vmul.f32 -1.442695, %v12765_v11 }
 0xaaf   :  { %v14352_v3 = vpop.eup %14351  ;;  %11394 = vst [vmem:[%s19041_s15 + $0x1b8] sm:$0xff] %v14350_v22  ;;  %14371 = vpow2.f32 %v12342_v26  ;;  %v12341_v48 = vmul.f32 -1.442695, %v12766_v43  ;;  %v12348_v26 = vmul.f32 -1.442695, %v18860_v56 }
 0xab0   :  { %v14354_v19 = vpop.eup %14353  ;;  %14373 = vrcp.f32 %v11072_v42  ;;  %v11063_v63 = vadd.f32 1.0, %v14352_v3  ;;  %v12363_v43 = vmul.f32 -1.442695, %v18877_v33  ;;  %v12370_v33 = vmul.f32 -1.442695, %v18889_v6 }
 0xab1   :  { %v14356_v32 = vpop.eup %14355  ;;  %11385 = vst [vmem:[%s19041_s15 + $0x170] sm:$0xff] %v14354_v19  ;;  %14375 = vpow2.f32 %v12333_v41  ;;  %v12362_v6 = vmul.f32 -1.442695, %v18903_v49 }
 0xab2   :  { %v14358_v7 = vpop.eup %14357  ;;  %11386 = vst [vmem:[%s19041_s15 + $0x178] sm:$0xff] %v14356_v32  ;;  %14377 = vrcp.f32 %v11063_v63  ;;  %v12399_v54 = vpop.f32.mrb[176].mxu0 }
 0xab3   :  { %v14360_v4 = vpop.eup %14359  ;;  %11401 = vst [vmem:[%s19041_s15 + $0x1f0] sm:$0xff] %v14358_v7  ;;  %14379 = vpow2.f32 %v12334_v18  ;;  %v12400_v14 = vpop.f32.mrb[177].mxu0 }
 0xab4   :  { %v14362_v59 = vpop.eup %14361  ;;  %11392 = vst [vmem:[%s19041_s15 + $0x1a8] sm:$0xff] %v14360_v4  ;;  %14381 = vpow2.f32 %v12349_v8  ;;  %v12401_v27 = vadd.f32 %v12400_v14, %v12399_v54  ;;  %v12402_v40 = vpop.f32.mrb[178].mxu0  ;;  %v12369_v4 = vmul.f32 -1.442695, %v18914_v2 }
 0xab5   :  { %v14364_v51 = vpop.eup %14363  ;;  %11393 = vst [vmem:[%s19041_s15 + $0x1b0] sm:$0xff] %v14362_v59  ;;  %14383 = vpow2.f32 %v12340_v37  ;;  %v12403_v44 = vpop.f32.mrb[179].mxu0 }
 0xab6   :  { %v14366_v45 = vpop.eup %14365  ;;  %v11064_v10 = vadd.f32 1.0, %v14364_v51  ;;  %14385 = vpow2.f32 %v12341_v48  ;;  %v10314_v57 = vadd.f32 %v12401_v27, %v18619_v39  ;;  %v12404_v28 = vadd.f32 %v12403_v44, %v12402_v40 }
 0xab7   :  { %v14368_v5 = vpop.eup %14367  ;;  %v11079_v1 = vadd.f32 1.0, %v14366_v45  ;;  %14387 = vpow2.f32 %v12356_v55 }
 0xab8   :  { %v14370_v20 = vpop.eup %14369  ;;  %14389 = vrcp.f32 %v11064_v10  ;;  %v11070_v9 = vadd.f32 1.0, %v14368_v5  ;;  %v10411_v35 = vadd.f32 %v18611_v25, %v10314_v57  ;;  %v10317_v30 = vadd.f32 %v12404_v28, %v18619_v39 }
 0xab9   :  { %v14372_v24 = vpop.eup %14371  ;;  %14391 = vrcp.f32 %v11079_v1  ;;  %v11071_v29 = vadd.f32 1.0, %v14370_v20 }
 0xaba   :  { %v14374_v46 = vpop.eup %14373  ;;  %14393 = vrcp.f32 %v11070_v9  ;;  %v11086_v0 = vadd.f32 1.0, %v14372_v24  ;;  %v10508_v62 = vadd.f32 %v18709_v21, %v10411_v35  ;;  %v10414_v38 = vadd.f32 %v18613_v15, %v10317_v30 }
 0xabb   :  { %v14376_v23 = vpop.eup %14375  ;;  %11408 = vst [vmem:[%s19041_s15 + $0x228] sm:$0xff] %v14374_v46  ;;  %14395 = vrcp.f32 %v11071_v29 }
 0xabc   :  { %v14378_v13 = vpop.eup %14377  ;;  %14397 = vrcp.f32 %v11086_v0  ;;  %v11077_v25 = vadd.f32 1.0, %v14376_v23  ;;  %v10605_v39 = vadd.f32 %v18753_v34, %v10508_v62  ;;  %v10511_v36 = vadd.f32 %v18711_v12, %v10414_v38 }
 0xabd   :  { %v14380_v61 = vpop.eup %14379  ;;  %11399 = vst [vmem:[%s19041_s15 + $0x1e0] sm:$0xff] %v14378_v13  ;;  %14399 = vpow2.f32 %v12347_v58  ;;  %v12354_v12 = vmul.f32 -1.442695, %v18865_v16  ;;  %v12361_v16 = vmul.f32 -1.442695, %v18895_v31 }
 0xabe   :  { %v14382_v50 = vpop.eup %14381  ;;  %14401 = vrcp.f32 %v11077_v25  ;;  %v11078_v56 = vadd.f32 1.0, %v14380_v61  ;;  %v10608_v15 = vadd.f32 %v18763_v47, %v10511_v36  ;;  %v12355_v47 = vmul.f32 -1.442695, %v18869_v53 }
 0xabf   :  { %v14384_v41 = vpop.eup %14383  ;;  %v11093_v21 = vadd.f32 1.0, %v14382_v50  ;;  %14403 = vpow2.f32 %v12348_v26  ;;  %v12368_v31 = vmul.f32 -1.442695, %v18908_v60  ;;  %v12265_v49 = vmul.f32 -1.442695, %v10605_v39 }
 0xac0   :  { %v14386_v11 = vpop.eup %14385  ;;  %14405 = vrcp.f32 %v11078_v56  ;;  %v11084_v17 = vadd.f32 1.0, %v14384_v41  ;;  %v12272_v59 = vmul.f32 -1.442695, %v10608_v15 }
 0xac1   :  { %v14388_v22 = vpop.eup %14387  ;;  %14407 = vrcp.f32 %v11093_v21  ;;  %v11085_v42 = vadd.f32 1.0, %v14386_v11 }
 0xac2   :  { %v14390_v52 = vpop.eup %14389  ;;  %14409 = vrcp.f32 %v11084_v17  ;;  %v11100_v34 = vadd.f32 1.0, %v14388_v22 }
 0xac3   :  { %v14392_v3 = vpop.eup %14391  ;;  %11400 = vst [vmem:[%s19041_s15 + $0x1e8] sm:$0xff] %v14390_v52  ;;  %14411 = vrcp.f32 %v11085_v42 }
 0xac4   :  { %v14394_v18 = vpop.eup %14393  ;;  %11415 = vst [vmem:[%s19041_s15 + $0x260] sm:$0xff] %v14392_v3  ;;  %14413 = vrcp.f32 %v11100_v34 }
 0xac5   :  { %v14396_v19 = vpop.eup %14395  ;;  %11406 = vst [vmem:[%s19041_s15 + $0x218] sm:$0xff] %v14394_v18  ;;  %14415 = vpow2.f32 %v12363_v43 }
 0xac6   :  { %v14398_v63 = vpop.eup %14397  ;;  %11407 = vst [vmem:[%s19041_s15 + $0x220] sm:$0xff] %v14396_v19  ;;  %14417 = vpow2.f32 %v12354_v12 }
 0xac7   :  { %v14400_v53 = vpop.eup %14399  ;;  %11422 = vst [vmem:[%s19041_s15 + $0x298] sm:$0xff] %v14398_v63  ;;  %14419 = vpow2.f32 %v12355_v47 }
 0xac8   :  { %v14402_v8 = vpop.eup %14401  ;;  %v11091_v32 = vadd.f32 1.0, %v14400_v53  ;;  %14421 = vpow2.f32 %v12370_v33 }
 0xac9   :  { %v14404_v37 = vpop.eup %14403  ;;  %11413 = vst [vmem:[%s19041_s15 + $0x250] sm:$0xff] %v14402_v8  ;;  %14423 = vpow2.f32 %v12361_v16 }
 0xaca   :  { %v14406_v7 = vpop.eup %14405  ;;  %14425 = vrcp.f32 %v11091_v32  ;;  %v11092_v48 = vadd.f32 1.0, %v14404_v37 }
 0xacb   :  { %v14408_v55 = vpop.eup %14407  ;;  %11414 = vst [vmem:[%s19041_s15 + $0x258] sm:$0xff] %v14406_v7  ;;  %14427 = vpow2.f32 %v12362_v6 }
 0xacc   :  { %v14410_v54 = vpop.eup %14409  ;;  %11429 = vst [vmem:[%s19041_s15 + $0x2d0] sm:$0xff] %v14408_v55  ;;  %14429 = vrcp.f32 %v11092_v48 }
 0xacd   :  { %v14412_v60 = vpop.eup %14411  ;;  %11420 = vst [vmem:[%s19041_s15 + $0x288] sm:$0xff] %v14410_v54  ;;  %14431 = vpow2.f32 %v12368_v31 }
 0xace   :  { %v14414_v2 = vpop.eup %14413  ;;  %11421 = vst [vmem:[%s19041_s15 + $0x290] sm:$0xff] %v14412_v60  ;;  %14433 = vpow2.f32 %v12369_v4 }
 0xacf   :  { %v14416_v14 = vpop.eup %14415  ;;  %11436 = vst [vmem:[%s19041_s15 + $0x308] sm:$0xff] %v14414_v2  ;;  %14435 = vpow2.f32 %v12265_v49 }
 0xad0   :  { %v14418_v51 = vpop.eup %14417  ;;  %v11107_v27 = vadd.f32 1.0, %v14416_v14  ;;  %14437 = vpow2.f32 %v12272_v59 }
 0xad1   :  { %v14420_v40 = vpop.eup %14419  ;;  %v11098_v45 = vadd.f32 1.0, %v14418_v51 }
 0xad2   :  { %v14422_v10 = vpop.eup %14421  ;;  %14439 = vrcp.f32 %v11107_v27  ;;  %v11099_v44 = vadd.f32 1.0, %v14420_v40 }
 0xad3   :  { %v14424_v5 = vpop.eup %14423  ;;  %14441 = vrcp.f32 %v11098_v45  ;;  %v11114_v1 = vadd.f32 1.0, %v14422_v10 }
 0xad4   :  { %v14426_v57 = vpop.eup %14425  ;;  %14443 = vrcp.f32 %v11099_v44  ;;  %v11105_v28 = vadd.f32 1.0, %v14424_v5 }
 0xad5   :  { %v14428_v20 = vpop.eup %14427  ;;  %11427 = vst [vmem:[%s19041_s15 + $0x2c0] sm:$0xff] %v14426_v57  ;;  %14445 = vrcp.f32 %v11114_v1 }
 0xad6   :  { %v14430_v9 = vpop.eup %14429  ;;  %14447 = vrcp.f32 %v11105_v28  ;;  %v11106_v58 = vadd.f32 1.0, %v14428_v20 }
 0xad7   :  { %v14432_v24 = vpop.eup %14431  ;;  %11428 = vst [vmem:[%s19041_s15 + $0x2c8] sm:$0xff] %v14430_v9 }
 0xad8   :  { %v14434_v29 = vpop.eup %14433  ;;  %14449 = vrcp.f32 %v11106_v58  ;;  %v11112_v35 = vadd.f32 1.0, %v14432_v24 }
 0xad9   :  { %v14436_v30 = vpop.eup %14435  ;;  %v11113_v46 = vadd.f32 1.0, %v14434_v29 }
 0xada   :  { %v14438_v0 = vpop.eup %14437  ;;  %14451 = vrcp.f32 %v11112_v35  ;;  %v11009_v23 = vadd.f32 1.0, %v14436_v30 }
 0xadb   :  { %14453 = vrcp.f32 %v11113_v46  ;;  %v11016_v26 = vadd.f32 1.0, %v14438_v0 }
 0xadc   :  { %v14440_v62 = vpop.eup %14439  ;;  %14455 = vrcp.f32 %v11009_v23 }
 0xadd   :  { %v14442_v38 = vpop.eup %14441  ;;  %11443 = vst [vmem:[%s19041_s15 + $0x340] sm:$0xff] %v14440_v62  ;;  %14457 = vrcp.f32 %v11016_v26 }
 0xade   :  { %v14444_v13 = vpop.eup %14443  ;;  %11434 = vst [vmem:[%s19041_s15 + $0x2f8] sm:$0xff] %v14442_v38 }
 0xadf   :  { %v14446_v25 = vpop.eup %14445  ;;  %11435 = vst [vmem:[%s19041_s15 + $0x300] sm:$0xff] %v14444_v13 }
 0xae0   :  { %v14448_v61 = vpop.eup %14447  ;;  %11450 = vst [vmem:[%s19041_s15 + $0x378] sm:$0xff] %v14446_v25 }
 0xae1   :  { %11441 = vst [vmem:[%s19041_s15 + $0x330] sm:$0xff] %v14448_v61 }
 0xae2   :  { %v14450_v39 = vpop.eup %14449 }
 0xae3   :  { %11442 = vst [vmem:[%s19041_s15 + $0x338] sm:$0xff] %v14450_v39 }
 0xae4   :  { %v14452_v36 = vpop.eup %14451 }
 0xae5   :  { %v14454_v50 = vpop.eup %14453  ;;  %11448 = vst [vmem:[%s19041_s15 + $0x368] sm:$0xff] %v14452_v36 }
 0xae6   :  { %v14456_v56 = vpop.eup %14455  ;;  %11449 = vst [vmem:[%s19041_s15 + $0x370] sm:$0xff] %v14454_v50 }
 0xae7   :  { %v14458_v41 = vpop.eup %14457  ;;  %11345 = vst [vmem:[%s19041_s15 + $0x30] sm:$0xff] %v14456_v56 }
 0xae8   :  { %11352 = vst [vmem:[%s19041_s15 + $0x68] sm:$0xff] %v14458_v41 }
 0xae9   :  { %11455 = vsyncpa [#allocation3], 1 }
 0xaea   :  { %11456 = vsyncpa [#allocation5], 1 }
 0xaeb   :  { %11457 = vsyncpa [#allocation8], 1 }
 0xaec   :  { %11458 = vsyncpa [#allocation11], 1 }
 0xaed   :  { %11459 = vsyncpa [#allocation14], 1 }
 0xaee   :  { %11460 = vsyncpa [#allocation17], 1 }
 0xaef   :  { %11461 = vsyncpa [#allocation20], 1 }
 0xaf0   :  { %11462 = vsyncpa [#allocation23], 1 }

</bundles_post_ra>
